<compile_context>
chip_gen: v5e
topology: v5e:2x2
jax: 0.10.0
libtpu: 0.0.40
codegen_flags: <defaults>
</compile_context>

<pallas_src>
import functools

import jax
import jax.numpy as jnp
from jax.experimental import pallas as pl
from jax.experimental.pallas import tpu as pltpu


def _round_up(v, m):
    return (v + m - 1) // m * m


def _resblock_kernel(x_ref, m_ref, w0_ref, b0_ref, w1_ref, b1_ref, ws_ref,
                     o_ref, ycat_ref, *, P, Wp, G, Cin_p, Cout_p):
    """One grid step = one image.

    x_ref   : (P + 2G, 3*Cin_p)  bf16 -- column-shifted (dx=-1,0,+1) copies of the
              zero-padded image concatenated along channels, with G zero guard rows
              on each side.  One image row is Wp flat rows (Wp % 8 == 0, G == Wp).
    ycat_ref: (P + 2G, 3*Cout_p) bf16 scratch -- same layout for the intermediate
              activation y0, built in-kernel.
    """
    f32 = jnp.float32
    bf16 = jnp.bfloat16

    # ---- conv0 (+ folded bn0): three fat row-shifted contractions, K = 3*Cin_p ----
    acc0 = jnp.dot(x_ref[G - Wp:G - Wp + P, :], w0_ref[0],
                   preferred_element_type=f32)                          # dy = -1
    acc0 = acc0 + jnp.dot(x_ref[G:G + P, :], w0_ref[1],
                          preferred_element_type=f32)                   # dy =  0
    acc0 = acc0 + jnp.dot(x_ref[G + Wp:G + Wp + P, :], w0_ref[2],
                          preferred_element_type=f32)                   # dy = +1
    # Bias + ReLU; mask re-imposes the zero padding ring (required for conv1).
    y0 = (jnp.maximum(acc0 + b0_ref[...], 0.0) * m_ref[...]).astype(bf16)

    # ---- stage y0 as 3 column-shifted channel blocks in VMEM scratch ----
    # Only the two small 8-aligned guard bands are zeroed, and per step (not only at
    # program_id == 0): with a "parallel" batch axis each TensorCore has its own
    # scratch and may never execute step 0.
    zband = jnp.zeros((G + 8, 3 * Cout_p), bf16)
    ycat_ref[0:G + 8, :] = zband
    ycat_ref[G + P - 8:G + P - 8 + (G + 8), :] = zband
    ycat_ref[G + 1:G + 1 + P, 0:Cout_p] = y0                  # dx = -1 block
    ycat_ref[G:G + P, Cout_p:2 * Cout_p] = y0                 # dx =  0 block
    ycat_ref[G - 1:G - 1 + P, 2 * Cout_p:3 * Cout_p] = y0     # dx = +1 block

    # ---- conv1 (+ folded bn1): three fat row-shifted contractions, K = 3*Cout_p ----
    acc1 = jnp.dot(ycat_ref[G - Wp:G - Wp + P, :], w1_ref[0],
                   preferred_element_type=f32)
    acc1 = acc1 + jnp.dot(ycat_ref[G:G + P, :], w1_ref[1],
                          preferred_element_type=f32)
    acc1 = acc1 + jnp.dot(ycat_ref[G + Wp:G + Wp + P, :], w1_ref[2],
                          preferred_element_type=f32)

    # ---- 1x1 skip conv on the un-shifted (dx = 0) channel block of x ----
    skip = jnp.dot(x_ref[G:G + P, Cin_p:2 * Cin_p], ws_ref[...],
                   preferred_element_type=f32)

    # Final add + ReLU.  No output mask: pad rows/cols are cropped by the wrapper.
    o_ref[0] = jnp.maximum(acc1 + b1_ref[...] + skip, 0.0).astype(o_ref.dtype)


def residual_block(x_nchw, params, *, eps=1e-5):
    """Pallas TPU forward pass of ResidualBlock (BatchNorm in eval mode, folded)."""
    f32, bf16 = jnp.float32, jnp.bfloat16
    N, Cin, H, W = x_nchw.shape
    Cout = params["conv0_w"].shape[0]

    # Lane-dense channel padding and sublane-aligned row stride.
    Cin_p = _round_up(Cin, 128)
    Cout_p = _round_up(Cout, 128)
    Hp = H + 2
    Wp = _round_up(W + 2, 8)
    P = Hp * Wp                    # flat rows per padded image (multiple of 8)
    G = Wp                         # one aligned guard image-row on each side
    R = P + 2 * G

    # ---- fold BatchNorm (eval) into the conv weights / biases, in f32 ----
    def fold_bn(w, b, gamma, beta, mean, var):
        scale = gamma.astype(f32) / jnp.sqrt(var.astype(f32) + eps)
        wf = w.astype(f32) * scale[:, None, None, None]
        bf = (b.astype(f32) - mean.astype(f32)) * scale + beta.astype(f32)
        return wf, bf

    w0f, b0f = fold_bn(params["conv0_w"], params["conv0_b"],
                       params["bn0_gamma"], params["bn0_beta"],
                       params["bn0_mean"], params["bn0_var"])
    w1f, b1f = fold_bn(params["conv1_w"], params["conv1_b"],
                       params["bn1_gamma"], params["bn1_beta"],
                       params["bn1_mean"], params["bn1_var"])

    # (O, I, 3, 3) -> (3_dy, 3_dx * I_p, O_p): contraction-ready fat-K layout, bf16.
    def prep_w3x3(w, ip, op):
        o, i = w.shape[0], w.shape[1]
        w = jnp.transpose(w, (2, 3, 1, 0))                      # (dy, dx, I, O)
        w = jnp.pad(w, ((0, 0), (0, 0), (0, ip - i), (0, op - o)))
        return w.reshape(3, 3 * ip, op).astype(bf16)

    w0k = prep_w3x3(w0f, Cin_p, Cout_p)
    w1k = prep_w3x3(w1f, Cout_p, Cout_p)
    wsk = jnp.pad(jnp.transpose(params["skip_w"].astype(f32)[:, :, 0, 0], (1, 0)),
                  ((0, Cin_p - Cin), (0, Cout_p - Cout))).astype(bf16)
    b0k = jnp.pad(b0f, (0, Cout_p - Cout)).reshape(1, Cout_p)       # f32
    b1k = jnp.pad(b1f, (0, Cout_p - Cout)).reshape(1, Cout_p)       # f32

    # ---- build the column-shifted, channel-concatenated input slab (bf16) ----
    x_nhwc = jnp.transpose(x_nchw, (0, 2, 3, 1)).astype(bf16)        # (N,H,W,Cin)
    x_pad = jnp.pad(x_nhwc, ((0, 0), (1, 1), (1, Wp - W - 1), (0, Cin_p - Cin)))
    x_flat = x_pad.reshape(N, P, Cin_p)
    x_ext = jnp.pad(x_flat, ((0, 0), (1, 1), (0, 0)))                # +-1 zero row
    x_cat = jnp.concatenate(
        [x_ext[:, 0:P], x_ext[:, 1:P + 1], x_ext[:, 2:P + 2]], axis=-1)  # (N,P,3*Cin_p)
    x_slab = jnp.pad(x_cat, ((0, 0), (G, G), (0, 0)))                # zero guard rows

    # Interior (non-padding) pixel mask over the flattened padded grid, f32.
    hh = jnp.arange(Hp)[:, None]
    ww = jnp.arange(Wp)[None, :]
    mask = ((hh >= 1) & (hh <= H) & (ww >= 1) & (ww <= W)).astype(f32).reshape(P, 1)

    kernel = functools.partial(_resblock_kernel, P=P, Wp=Wp, G=G,
                               Cin_p=Cin_p, Cout_p=Cout_p)

    # Explicit VMEM budget: double-buffered x slab + output block, resident weights,
    # y0 scratch, mask/biases.  Clamp to <= 64 MiB (v7x physical per-TC VMEM).
    est = (2 * R * 3 * Cin_p * 2 + 2 * P * Cout_p * 2 + R * 3 * Cout_p * 2
           + 2 * (w0k.size + w1k.size + wsk.size) * 2 + 4 * P + 16 * Cout_p)
    vmem_limit = int(min(64 << 20, max(32 << 20, 2 * est)))

    # TODO(synk): for N < 2*num_cores (e.g. v7x with N=2) add a row-striped second
    #             grid axis (with halo recompute) so each TC gets >=2 steps and the
    #             slab DMA / writeback overlaps compute.
    out_flat = pl.pallas_call(
        kernel,
        out_shape=jax.ShapeDtypeStruct((N, P, Cout_p), bf16),
        grid_spec=pltpu.PrefetchScalarGridSpec(
            num_scalar_prefetch=0,
            grid=(N,),                                               # one image / step
            in_specs=[
                pl.BlockSpec((pl.Squeezed(), R, 3 * Cin_p), lambda n: (n, 0, 0)),
                pl.BlockSpec((P, 1), lambda n: (0, 0)),              # mask (resident)
                pl.BlockSpec((3, 3 * Cin_p, Cout_p), lambda n: (0, 0, 0)),   # w0
                pl.BlockSpec((1, Cout_p), lambda n: (0, 0)),                 # b0
                pl.BlockSpec((3, 3 * Cout_p, Cout_p), lambda n: (0, 0, 0)),  # w1
                pl.BlockSpec((1, Cout_p), lambda n: (0, 0)),                 # b1
                pl.BlockSpec((Cin_p, Cout_p), lambda n: (0, 0)),             # skip w
            ],
            out_specs=pl.BlockSpec((1, P, Cout_p), lambda n: (n, 0, 0)),
            scratch_shapes=[pltpu.VMEM((R, 3 * Cout_p), bf16)],
        ),
        compiler_params=pltpu.CompilerParams(
            dimension_semantics=("parallel",),        # batch axis -> both TCs on v7x
            vmem_limit_bytes=vmem_limit,
        ),
    )(x_slab, mask, w0k, b0k, w1k, b1k, wsk)

    # Crop the padding ring and channel padding; back to NCHW f32.
    out = out_flat.reshape(N, Hp, Wp, Cout_p)[:, 1:H + 1, 1:W + 1, :Cout]
    return jnp.transpose(out, (0, 3, 1, 2)).astype(f32)


def reference(x, p, *, eps=1e-5):
    """Pure-JAX f32 reference (BatchNorm in eval mode) for correctness checking."""
    def conv(inp, w, b, pad):
        y = jax.lax.conv_general_dilated(
            inp, w, window_strides=(1, 1),
            padding=((pad, pad), (pad, pad)),
            dimension_numbers=("NCHW", "OIHW", "NCHW"))
        if b is not None:
            y = y + b[None, :, None, None]
        return y

    def bn(z, g, bt, m, v):
        return (z - m[None, :, None, None]) * (
            g[None, :, None, None] / jnp.sqrt(v[None, :, None, None] + eps)
        ) + bt[None, :, None, None]

    skip = conv(x, p["skip_w"], None, 0)
    y = conv(x, p["conv0_w"], p["conv0_b"], 1)
    y = jnp.maximum(bn(y, p["bn0_gamma"], p["bn0_beta"], p["bn0_mean"], p["bn0_var"]), 0.0)
    y = conv(y, p["conv1_w"], p["conv1_b"], 1)
    y = bn(y, p["bn1_gamma"], p["bn1_beta"], p["bn1_mean"], p["bn1_var"])
    return jnp.maximum(y + skip, 0.0)


if __name__ == "__main__":
    N, Cin, Cout, H, W = 2, 4, 8, 16, 16

    key = jax.random.PRNGKey(0)
    ks = jax.random.split(key, 16)

    def nrm(k, shape, scale=0.1):
        return scale * jax.random.normal(k, shape, dtype=jnp.float32)

    x = jax.random.normal(ks[0], (N, Cin, H, W), dtype=jnp.float32)
    params = dict(
        conv0_w=nrm(ks[1], (Cout, Cin, 3, 3)),
        conv0_b=nrm(ks[2], (Cout,)),
        bn0_gamma=1.0 + 0.1 * jax.random.normal(ks[3], (Cout,), dtype=jnp.float32),
        bn0_beta=nrm(ks[4], (Cout,)),
        bn0_mean=nrm(ks[5], (Cout,)),
        bn0_var=1.0 + 0.5 * jax.random.uniform(ks[6], (Cout,), dtype=jnp.float32),
        conv1_w=nrm(ks[7], (Cout, Cout, 3, 3)),
        conv1_b=nrm(ks[8], (Cout,)),
        bn1_gamma=1.0 + 0.1 * jax.random.normal(ks[9], (Cout,), dtype=jnp.float32),
        bn1_beta=nrm(ks[10], (Cout,)),
        bn1_mean=nrm(ks[11], (Cout,)),
        bn1_var=0.8 + 0.5 * jax.random.uniform(ks[12], (Cout,), dtype=jnp.float32),
        skip_w=nrm(ks[13], (Cout, Cin, 1, 1)),
    )

    out = residual_block(x, params)
    out = jax.block_until_ready(out)

    ref = reference(x, params)
    assert out.shape == (N, Cout, H, W)
    err = float(jnp.max(jnp.abs(out - ref)))
    # bf16 activations/weights (f32 accumulation): tolerance loosened vs the f32 reference.
    assert jnp.allclose(out, ref, atol=4e-2, rtol=4e-2), \
        f"mismatch vs reference, max abs err={err}"

    print("KERNEL_OK")
</pallas_src>

<mosaic_0001>
module attributes {stable_mosaic.version = 11 : i64} {
  func.func @_resblock_kernel(%arg0: i32, %arg1: memref<1x480x384xbf16, #tpu.memory_space<vmem>>, %arg2: memref<432x1xf32, #tpu.memory_space<vmem>>, %arg3: memref<3x384x128xbf16, #tpu.memory_space<vmem>>, %arg4: memref<1x128xf32, #tpu.memory_space<vmem>>, %arg5: memref<3x384x128xbf16, #tpu.memory_space<vmem>>, %arg6: memref<1x128xf32, #tpu.memory_space<vmem>>, %arg7: memref<128x128xbf16, #tpu.memory_space<vmem>>, %arg8: memref<1x432x128xbf16, #tpu.memory_space<vmem>>, %arg9: memref<480x384xbf16, #tpu.memory_space<vmem>>) attributes {dimension_semantics = [#tpu.dimension_semantics<parallel>], iteration_bounds = array<i64: 2>, scalar_prefetch = 0 : i64, scratch_operands = 1 : i64, tpu.core_type = #tpu.core_type<tc>, window_params = [{transform_indices = @transform_0, window_bounds = array<i64: 1, 480, 384>}, {pipeline_mode = #tpu.pipeline_mode<synchronous>, transform_indices = @transform_1, window_bounds = array<i64: 432, 1>}, {pipeline_mode = #tpu.pipeline_mode<synchronous>, transform_indices = @transform_2, window_bounds = array<i64: 3, 384, 128>}, {pipeline_mode = #tpu.pipeline_mode<synchronous>, transform_indices = @transform_3, window_bounds = array<i64: 1, 128>}, {pipeline_mode = #tpu.pipeline_mode<synchronous>, transform_indices = @transform_4, window_bounds = array<i64: 3, 384, 128>}, {pipeline_mode = #tpu.pipeline_mode<synchronous>, transform_indices = @transform_5, window_bounds = array<i64: 1, 128>}, {pipeline_mode = #tpu.pipeline_mode<synchronous>, transform_indices = @transform_6, window_bounds = array<i64: 128, 128>}, {transform_indices = @transform_7, window_bounds = array<i64: 1, 432, 128>}]} {
    %c0 = arith.constant 0 : index
    %c0_0 = arith.constant 0 : index
    %c0_1 = arith.constant 0 : index
    %0 = vector.load %arg1[%c0, %c0_0, %c0_1] : memref<1x480x384xbf16, #tpu.memory_space<vmem>>, vector<1x432x384xbf16>
    %1 = vector.shape_cast %0 : vector<1x432x384xbf16> to vector<432x384xbf16>
    %c0_2 = arith.constant 0 : index
    %c0_3 = arith.constant 0 : index
    %c0_4 = arith.constant 0 : index
    %2 = vector.load %arg3[%c0_2, %c0_3, %c0_4] : memref<3x384x128xbf16, #tpu.memory_space<vmem>>, vector<1x384x128xbf16>
    %3 = vector.shape_cast %2 : vector<1x384x128xbf16> to vector<384x128xbf16>
    %cst = arith.constant dense<0.000000e+00> : vector<432x128xf32>
    %4 = tpu.matmul %1, %3, %cst {dimension_numbers = #tpu.dot_dimension_numbers<[1], [0], [0], [1], [0, 0, 1, 1], [], []>} : vector<432x384xbf16>, vector<384x128xbf16>, vector<432x128xf32> -> vector<432x128xf32>
    %c0_5 = arith.constant 0 : index
    %c24 = arith.constant 24 : index
    %c0_6 = arith.constant 0 : index
    %5 = vector.load %arg1[%c0_5, %c24, %c0_6] : memref<1x480x384xbf16, #tpu.memory_space<vmem>>, vector<1x432x384xbf16>
    %6 = vector.shape_cast %5 : vector<1x432x384xbf16> to vector<432x384xbf16>
    %c1 = arith.constant 1 : index
    %c0_7 = arith.constant 0 : index
    %c0_8 = arith.constant 0 : index
    %7 = vector.load %arg3[%c1, %c0_7, %c0_8] : memref<3x384x128xbf16, #tpu.memory_space<vmem>>, vector<1x384x128xbf16>
    %8 = vector.shape_cast %7 : vector<1x384x128xbf16> to vector<384x128xbf16>
    %cst_9 = arith.constant dense<0.000000e+00> : vector<432x128xf32>
    %9 = tpu.matmul %6, %8, %cst_9 {dimension_numbers = #tpu.dot_dimension_numbers<[1], [0], [0], [1], [0, 0, 1, 1], [], []>} : vector<432x384xbf16>, vector<384x128xbf16>, vector<432x128xf32> -> vector<432x128xf32>
    %10 = arith.addf %4, %9 : vector<432x128xf32>
    %c0_10 = arith.constant 0 : index
    %c48 = arith.constant 48 : index
    %c0_11 = arith.constant 0 : index
    %11 = vector.load %arg1[%c0_10, %c48, %c0_11] : memref<1x480x384xbf16, #tpu.memory_space<vmem>>, vector<1x432x384xbf16>
    %12 = vector.shape_cast %11 : vector<1x432x384xbf16> to vector<432x384xbf16>
    %c2 = arith.constant 2 : index
    %c0_12 = arith.constant 0 : index
    %c0_13 = arith.constant 0 : index
    %13 = vector.load %arg3[%c2, %c0_12, %c0_13] : memref<3x384x128xbf16, #tpu.memory_space<vmem>>, vector<1x384x128xbf16>
    %14 = vector.shape_cast %13 : vector<1x384x128xbf16> to vector<384x128xbf16>
    %cst_14 = arith.constant dense<0.000000e+00> : vector<432x128xf32>
    %15 = tpu.matmul %12, %14, %cst_14 {dimension_numbers = #tpu.dot_dimension_numbers<[1], [0], [0], [1], [0, 0, 1, 1], [], []>} : vector<432x384xbf16>, vector<384x128xbf16>, vector<432x128xf32> -> vector<432x128xf32>
    %16 = arith.addf %10, %15 : vector<432x128xf32>
    %c0_15 = arith.constant 0 : index
    %c0_16 = arith.constant 0 : index
    %17 = vector.load %arg4[%c0_15, %c0_16] : memref<1x128xf32, #tpu.memory_space<vmem>>, vector<1x128xf32>
    %18 = vector.broadcast %17 : vector<1x128xf32> to vector<432x128xf32>
    %19 = arith.addf %16, %18 : vector<432x128xf32>
    %cst_17 = arith.constant 0.000000e+00 : f32
    %20 = vector.broadcast %cst_17 : f32 to vector<432x128xf32>
    %21 = arith.maximumf %19, %20 : vector<432x128xf32>
    %c0_18 = arith.constant 0 : index
    %c0_19 = arith.constant 0 : index
    %22 = vector.load %arg2[%c0_18, %c0_19] : memref<432x1xf32, #tpu.memory_space<vmem>>, vector<432x1xf32>
    %23 = vector.broadcast %22 : vector<432x1xf32> to vector<432x128xf32>
    %24 = arith.mulf %21, %23 : vector<432x128xf32>
    %25 = arith.truncf %24 : vector<432x128xf32> to vector<432x128xbf16>
    %cst_20 = arith.constant 0.000000e+00 : bf16
    %26 = vector.broadcast %cst_20 : bf16 to vector<32x384xbf16>
    %c0_21 = arith.constant 0 : index
    %c0_22 = arith.constant 0 : index
    %27 = vector.load %arg9[%c0_21, %c0_22] : memref<480x384xbf16, #tpu.memory_space<vmem>>, vector<32x384xbf16>
    tpu.vector_store %arg9[%c0_21, %c0_22], %26 {strides = array<i32>} : memref<480x384xbf16, #tpu.memory_space<vmem>>, vector<32x384xbf16>,
    %c448 = arith.constant 448 : index
    %c0_23 = arith.constant 0 : index
    %28 = vector.load %arg9[%c448, %c0_23] : memref<480x384xbf16, #tpu.memory_space<vmem>>, vector<32x384xbf16>
    tpu.vector_store %arg9[%c448, %c0_23], %26 {strides = array<i32>} : memref<480x384xbf16, #tpu.memory_space<vmem>>, vector<32x384xbf16>,
    %c25 = arith.constant 25 : index
    %c0_24 = arith.constant 0 : index
    %29 = vector.load %arg9[%c25, %c0_24] : memref<480x384xbf16, #tpu.memory_space<vmem>>, vector<432x128xbf16>
    tpu.vector_store %arg9[%c25, %c0_24], %25 {strides = array<i32>} : memref<480x384xbf16, #tpu.memory_space<vmem>>, vector<432x128xbf16>,
    %c24_25 = arith.constant 24 : index
    %c128 = arith.constant 128 : index
    %30 = vector.load %arg9[%c24_25, %c128] : memref<480x384xbf16, #tpu.memory_space<vmem>>, vector<432x128xbf16>
    tpu.vector_store %arg9[%c24_25, %c128], %25 {strides = array<i32>} : memref<480x384xbf16, #tpu.memory_space<vmem>>, vector<432x128xbf16>,
    %c23 = arith.constant 23 : index
    %c256 = arith.constant 256 : index
    %31 = vector.load %arg9[%c23, %c256] : memref<480x384xbf16, #tpu.memory_space<vmem>>, vector<432x128xbf16>
    tpu.vector_store %arg9[%c23, %c256], %25 {strides = array<i32>} : memref<480x384xbf16, #tpu.memory_space<vmem>>, vector<432x128xbf16>,
    %c0_26 = arith.constant 0 : index
    %c0_27 = arith.constant 0 : index
    %32 = vector.load %arg9[%c0_26, %c0_27] : memref<480x384xbf16, #tpu.memory_space<vmem>>, vector<432x384xbf16>
    %c0_28 = arith.constant 0 : index
    %c0_29 = arith.constant 0 : index
    %c0_30 = arith.constant 0 : index
    %33 = vector.load %arg5[%c0_28, %c0_29, %c0_30] : memref<3x384x128xbf16, #tpu.memory_space<vmem>>, vector<1x384x128xbf16>
    %34 = vector.shape_cast %33 : vector<1x384x128xbf16> to vector<384x128xbf16>
    %cst_31 = arith.constant dense<0.000000e+00> : vector<432x128xf32>
    %35 = tpu.matmul %32, %34, %cst_31 {dimension_numbers = #tpu.dot_dimension_numbers<[1], [0], [0], [1], [0, 0, 1, 1], [], []>} : vector<432x384xbf16>, vector<384x128xbf16>, vector<432x128xf32> -> vector<432x128xf32>
    %c24_32 = arith.constant 24 : index
    %c0_33 = arith.constant 0 : index
    %36 = vector.load %arg9[%c24_32, %c0_33] : memref<480x384xbf16, #tpu.memory_space<vmem>>, vector<432x384xbf16>
    %c1_34 = arith.constant 1 : index
    %c0_35 = arith.constant 0 : index
    %c0_36 = arith.constant 0 : index
    %37 = vector.load %arg5[%c1_34, %c0_35, %c0_36] : memref<3x384x128xbf16, #tpu.memory_space<vmem>>, vector<1x384x128xbf16>
    %38 = vector.shape_cast %37 : vector<1x384x128xbf16> to vector<384x128xbf16>
    %cst_37 = arith.constant dense<0.000000e+00> : vector<432x128xf32>
    %39 = tpu.matmul %36, %38, %cst_37 {dimension_numbers = #tpu.dot_dimension_numbers<[1], [0], [0], [1], [0, 0, 1, 1], [], []>} : vector<432x384xbf16>, vector<384x128xbf16>, vector<432x128xf32> -> vector<432x128xf32>
    %40 = arith.addf %35, %39 : vector<432x128xf32>
    %c48_38 = arith.constant 48 : index
    %c0_39 = arith.constant 0 : index
    %41 = vector.load %arg9[%c48_38, %c0_39] : memref<480x384xbf16, #tpu.memory_space<vmem>>, vector<432x384xbf16>
    %c2_40 = arith.constant 2 : index
    %c0_41 = arith.constant 0 : index
    %c0_42 = arith.constant 0 : index
    %42 = vector.load %arg5[%c2_40, %c0_41, %c0_42] : memref<3x384x128xbf16, #tpu.memory_space<vmem>>, vector<1x384x128xbf16>
    %43 = vector.shape_cast %42 : vector<1x384x128xbf16> to vector<384x128xbf16>
    %cst_43 = arith.constant dense<0.000000e+00> : vector<432x128xf32>
    %44 = tpu.matmul %41, %43, %cst_43 {dimension_numbers = #tpu.dot_dimension_numbers<[1], [0], [0], [1], [0, 0, 1, 1], [], []>} : vector<432x384xbf16>, vector<384x128xbf16>, vector<432x128xf32> -> vector<432x128xf32>
    %45 = arith.addf %40, %44 : vector<432x128xf32>
    %c0_44 = arith.constant 0 : index
    %c24_45 = arith.constant 24 : index
    %c128_46 = arith.constant 128 : index
    %46 = vector.load %arg1[%c0_44, %c24_45, %c128_46] : memref<1x480x384xbf16, #tpu.memory_space<vmem>>, vector<1x432x128xbf16>
    %47 = vector.shape_cast %46 : vector<1x432x128xbf16> to vector<432x128xbf16>
    %c0_47 = arith.constant 0 : index
    %c0_48 = arith.constant 0 : index
    %48 = vector.load %arg7[%c0_47, %c0_48] : memref<128x128xbf16, #tpu.memory_space<vmem>>, vector<128x128xbf16>
    %cst_49 = arith.constant dense<0.000000e+00> : vector<432x128xf32>
    %49 = tpu.matmul %47, %48, %cst_49 {dimension_numbers = #tpu.dot_dimension_numbers<[1], [0], [0], [1], [0, 0, 1, 1], [], []>} : vector<432x128xbf16>, vector<128x128xbf16>, vector<432x128xf32> -> vector<432x128xf32>
    %c0_50 = arith.constant 0 : index
    %c0_51 = arith.constant 0 : index
    %50 = vector.load %arg6[%c0_50, %c0_51] : memref<1x128xf32, #tpu.memory_space<vmem>>, vector<1x128xf32>
    %51 = vector.broadcast %50 : vector<1x128xf32> to vector<432x128xf32>
    %52 = arith.addf %45, %51 : vector<432x128xf32>
    %53 = arith.addf %52, %49 : vector<432x128xf32>
    %cst_52 = arith.constant 0.000000e+00 : f32
    %54 = vector.broadcast %cst_52 : f32 to vector<432x128xf32>
    %55 = arith.maximumf %53, %54 : vector<432x128xf32>
    %56 = arith.truncf %55 : vector<432x128xf32> to vector<432x128xbf16>
    %c0_53 = arith.constant 0 : index
    %c0_54 = arith.constant 0 : index
    %c0_55 = arith.constant 0 : index
    %57 = vector.load %arg8[%c0_53, %c0_54, %c0_55] : memref<1x432x128xbf16, #tpu.memory_space<vmem>>, vector<1x432x128xbf16>
    %58 = vector.shape_cast %57 : vector<1x432x128xbf16> to vector<432x128xbf16>
    %59 = vector.shape_cast %56 : vector<432x128xbf16> to vector<1x432x128xbf16>
    tpu.vector_store %arg8[%c0_53, %c0_54, %c0_55], %59 {strides = array<i32>} : memref<1x432x128xbf16, #tpu.memory_space<vmem>>, vector<1x432x128xbf16>,
    return
  }
  func.func @transform_0(%arg0: i32) -> (i32, i32, i32) {
    %c0_i32 = arith.constant 0 : i32
    %c0_i32_0 = arith.constant 0 : i32
    %c0_i32_1 = arith.constant 0 : i32
    return %arg0, %c0_i32, %c0_i32_0 : i32, i32, i32
  }
  func.func @transform_1(%arg0: i32) -> (i32, i32) {
    %c0_i32 = arith.constant 0 : i32
    %c0_i32_0 = arith.constant 0 : i32
    %c0_i32_1 = arith.constant 0 : i32
    return %c0_i32, %c0_i32_0 : i32, i32
  }
  func.func @transform_2(%arg0: i32) -> (i32, i32, i32) {
    %c0_i32 = arith.constant 0 : i32
    %c0_i32_0 = arith.constant 0 : i32
    %c0_i32_1 = arith.constant 0 : i32
    %c0_i32_2 = arith.constant 0 : i32
    return %c0_i32, %c0_i32_0, %c0_i32_1 : i32, i32, i32
  }
  func.func @transform_3(%arg0: i32) -> (i32, i32) {
    %c0_i32 = arith.constant 0 : i32
    %c0_i32_0 = arith.constant 0 : i32
    %c0_i32_1 = arith.constant 0 : i32
    return %c0_i32, %c0_i32_0 : i32, i32
  }
  func.func @transform_4(%arg0: i32) -> (i32, i32, i32) {
    %c0_i32 = arith.constant 0 : i32
    %c0_i32_0 = arith.constant 0 : i32
    %c0_i32_1 = arith.constant 0 : i32
    %c0_i32_2 = arith.constant 0 : i32
    return %c0_i32, %c0_i32_0, %c0_i32_1 : i32, i32, i32
  }
  func.func @transform_5(%arg0: i32) -> (i32, i32) {
    %c0_i32 = arith.constant 0 : i32
    %c0_i32_0 = arith.constant 0 : i32
    %c0_i32_1 = arith.constant 0 : i32
    return %c0_i32, %c0_i32_0 : i32, i32
  }
  func.func @transform_6(%arg0: i32) -> (i32, i32) {
    %c0_i32 = arith.constant 0 : i32
    %c0_i32_0 = arith.constant 0 : i32
    %c0_i32_1 = arith.constant 0 : i32
    return %c0_i32, %c0_i32_0 : i32, i32
  }
  func.func @transform_7(%arg0: i32) -> (i32, i32, i32) {
    %c0_i32 = arith.constant 0 : i32
    %c0_i32_0 = arith.constant 0 : i32
    %c0_i32_1 = arith.constant 0 : i32
    return %arg0, %c0_i32, %c0_i32_0 : i32, i32, i32
  }
}

</mosaic_0001>

<bundles_post_ra>
// kernel: tpu_custom_call.1
= control target key start
LH: loop header
LB: loop body
LE: loop exit
PB: predicated region body
PF: predicated region fallthrough
CT: control target
= control target key end

     0   :  { %s15945_s0 = inlined_call_operand.hbm [shape: bf16[2,480,384], index: 0, kind: input, shape index: {}]   ;;  %s15946_s1 = inlined_call_operand.vmem [shape: f32[432,1], index: 1, kind: input, shape index: {}]   ;;  %s15947_s2 = inlined_call_operand.hbm [shape: bf16[3,384,128], index: 2, kind: input, shape index: {}]   ;;  %s15948_s3 = inlined_call_operand.vmem [shape: f32[1,128], index: 3, kind: input, shape index: {}]   ;;  %s15949_s4 = inlined_call_operand.hbm [shape: bf16[3,384,128], index: 4, kind: input, shape index: {}]   ;;  %s15950_s5 = inlined_call_operand.vmem [shape: f32[1,128], index: 5, kind: input, shape index: {}]   ;;  %s15951_s6 = inlined_call_operand.vmem [shape: bf16[128,128], index: 6, kind: input, shape index: {}]   ;;  %s15952_s7 = inlined_call_operand.hbm [shape: bf16[2,432,128], index: 7, kind: output, shape index: {}]  }
   0x1   :  { %16249 = sst [smem:[#allocation129_spill]] %s15947_s2 }
   0x2   :  { %16250 = sst [smem:[#allocation130_spill]] %s15949_s4 }
   0x3   :  { %12 = vsyncpa [#allocation4], 0 }
   0x4   :  { %14 = vsyncpa [#allocation4 + $0x1], 0 }
   0x5   :  { %15 = vsyncpa [#allocation7], 0 }
   0x6   :  { %16 = vsyncpa [#allocation5], 0 }
   0x7   :  { %18 = vsyncpa [#allocation5 + $0x1], 0  ;;  %s11395_s24 = smov 0   ;;  %s11397_s25 = smov 0  }
   0x8   :  { %s11399_s26 = smov 0   ;;  %s11401_s27 = smov 0  }
   0x9 LB: > { %s11416_s28 = sadd.s32 4294967295, %s11344_s27   ;;  %s9132_s29 = sadd.s32 4294967294, %s11344_s27   ;;  %s11344_s27 = sphi %s11401_s27, %s17233_s27   ;;  %s11340_s26 = sphi %s11399_s26, %s17232_s26   ;;  %s11336_s25 = sphi %s11397_s25, %s17231_s25   ;;  %s11332_s24 = sphi %s11395_s24, %s17230_s24  }
   0xa   : > { %p44_p0 = scmp.ne.s32.totalorder %s11336_s25, %s11332_s24  ;;  %p45_p1 = scmp.eq.s32.totalorder %s11416_s28, 0 }
   0xb   : > { %p194_p2 = scmp.eq.s32.totalorder %s11416_s28, 1  ;;  %p200_p3 = scmp.eq.s32.totalorder %s9132_s29, 1 }
   0xc   : > { %p11425_p4 = por %p45_p1, %p44_p0  ;;  %p9133_p5 = scmp.ge.s32.totalorder %s11344_s27, 1 }
   0xd   : > { %p11430_p6 = por %p200_p3, %p44_p0  ;;  %p207_p7 = scmp.lt.s32.totalorder %s11344_s27, 3 }
   0xe   : > { %s16253_s2 = sld [smem:[#allocation129_spill]]  ;;  %s11346_s13 = smov [#allocation6]  }
   0xf   : > { %p11438_p8 = pnand %p9133_p5, %p207_p7  ;;  %s223_s14 = sshll.u32 %s11346_s13, 4  ;;  %s224_s14 = int_to_ptr.vmem [resolvable:$true] %s223_s14 }
  0x10   : > { %s16255_s4 = sld [smem:[#allocation130_spill]]  ;;  %s11347_s18 = smov 64  }
  0x11   : > { %p11111_p9 = pneg %p11438_p8  ;;  %s11348_s19 = smov 4  }
  0x12   : > { %s11349_s20 = smov [#allocation8]   ;;  %s11451_s22 = sadd.s32 1, %s11344_s27  }
  0x13   : > { %p11112_p10 = pnand %p11111_p9, %p45_p1  ;;  %s240_s21 = sshll.u32 %s11349_s20, 4  ;;  %s241_s21 = int_to_ptr.vmem [resolvable:$true] %s240_s21 }
  0x14   : > { %s221_s11 = sshll.u32 %s16253_s2, 4  ;;  %s31_s23 = sadd.s32 1, %s11340_s26  ;;  %s222_s11 = int_to_ptr.hbm [resolvable:$true] %s221_s11 }
  0x15   : > { %11114 = dma.hbm_to_vmem [thread:$0]  (!%p11112_p10), %s222_s11, 9216, %s224_s14, [#allocation7], %s11347_s18, %s11347_s18, %s11348_s19  }
  0x16   : > { %s238_s17 = sshll.u32 %s16255_s4, 4  ;;  %s28_s29 = ssub.s32 %s11344_s27, %s11451_s22  ;;  %s239_s17 = int_to_ptr.hbm [resolvable:$true] %s238_s17 }
  0x17   : > { %11117 = dma.hbm_to_vmem [thread:$0]  (!%p11112_p10), %s239_s17, 9216, %s241_s21, [#allocation7], %s11347_s18, %s11347_s18, %s11348_s19  }
  0x18   : > { %p38_p12 = scmp.ne.s32.totalorder %s11340_s26, %s11336_s25  ;;  %p29_p13 = scmp.eq.s32.totalorder %s28_s29, 0 }
  0x19   : > { %p39_p0 = scmp.eq.s32.totalorder %s11344_s27, 0  ;;  %p11128_p5 = scmp.lt.s32.totalorder %s11344_s27, 2 }
  0x1a   : > { %p11461_p3 = por %p194_p2, %p38_p12  ;;  %s260_s11 = sand.u32 1, %s11340_s26  }
  0x1b   : > { %s11467_s10 = scalar_select %p29_p13, %s11340_s26, %s31_s23  }
  0x1c   : > { %p40_p7 = por %p39_p0, %p38_p12  ;;  %s11094_s13 = smul.u32 720, %s260_s11 }
  0x1d   : > { %16257 = sst [smem:[#allocation13_spill]] %s11467_s10  ;;  %s11095_s14 = smul.u32 720, %s11344_s27 }
  0x1e   : > { %p11471_p9 = pnand %p11128_p5, %p40_p7  ;;  %s264_s19 = scalar_lea.vmem [#allocation3], %s11094_s13 }
  0x1f   : > { %s269_s18 = scalar_lea.hbm %s15945_s0, %s11095_s14  ;;  %s272_s20 = sshll.u32 %s264_s19, 4  ;;  %s273_s20 = int_to_ptr.vmem [resolvable:$true] %s272_s20 }
  0x20   : > { %s270_s21 = sshll.u32 %s269_s18, 4  ;;  %s261_s23 = scalar_lea.sflag [#allocation4], %s260_s11  ;;  %s271_s21 = int_to_ptr.hbm [resolvable:$true] %s270_s21 }
  0x21   : > { %s11244_s29 = sshra.s32 %s271_s21, 4  ;;  %p11248_p10 = pneg %p11471_p9  ;;  %s11245_s29 = int_to_ptr.hbm [resolvable:$true] %s11244_s29 }
  0x22   : > { %s11246_s2 = scalar_lea.hbm %s11245_s29, 720  ;;  %s11251_s16 = scalar_lea.hbm %s15945_s0, 1440 }
  0x23   : > { %p11247_p2 = scmp.ne.s32.totalorder %s11245_s29, %s11246_s2  ;;  %p11252_p0 = scmp.lt.s32.totalorder %s11245_s29, %s15945_s0 }
  0x24   : > { %p11253_p5 = scmp.lt.s32.totalorder %s11251_s16, %s11246_s2 }
  0x25   : > { %p11249_p12 = pnand %p11248_p10, %p11247_p2 }
  0x26   : > { %p11254_p7 = por %p11253_p5, %p11252_p0 }
  0x27   : > { %p11250_p13 = pneg %p11249_p12 }
  0x29   : > { %p11255_p11 = pnand %p11254_p7, %p11250_p13 }
  0x2b   : > { %11258 = shalt.err (!%p11255_p11)
}
  0x2c   : > { %s11350_s11 = smov 192   ;;  %s11351_s13 = smov 12  }
  0x2d   : > { %11121 = dma.hbm_to_vmem [thread:$0]  (!%p11471_p9), %s271_s21, 11520, %s273_s20, %s261_s23, %s11350_s11, %s11350_s11, %s11351_s13  }
  0x2e   : > { %284 = sbr.rel (%p11438_p8) target bundleno = 2455 (0x997), region = 48 }
  0x33   : > { %s11491_s4 = sand.u32 1, %s11336_s25  }
  0x34   : > { %s11096_s10 = smul.u32 720, %s11491_s4  ;;  %s287_s18 = scalar_lea.sflag [#allocation4], %s11491_s4 }
  0x36   : > { %s11495_s2 = scalar_lea.vmem [#allocation3], %s11096_s10 }
  0x37   : > { %11319 = dma.done.wait (%p11425_p4), %s287_s18, 11520  }
  0x38   : > { %11321 = vsyncadd (%p11425_p4), %s287_s18, 4294955776 }
  0x39   : > { %11323 = dma.done.wait (%p45_p1), [#allocation7], 18432  }
  0x3a   : > { %11325 = vsyncadd (%p45_p1), [#allocation7], 4294948864  ;;  %v10593_v0 = vld [vmem:[#allocation6 + $0xf8] sm:$0xff]  ;;  %v10592_v3 = vld [vmem:[#allocation6 + $0xf0] sm:$0xff]  ;;  %vm4627_vm0 = vcmask 1043456   ;;  %vm5072_vm3 = vcmask 1043459  }
  0x3b   : > { %v11505_v1 = vld [vmem:[#allocation6 + $0x138] sm:$0xff]  ;;  %1120 = vmatpush.bf16.msra.mxu0 %v10593_v0  ;;  %11070 = vmatpush.bf16.msra.mxu3 %v10593_v0  ;;  %v11511_v4 = vld [vmem:[#allocation6 + $0x130] sm:$0xff]  ;;  %v10591_v6 = vld [vmem:[#allocation6 + $0xe8] sm:$0xff]  ;;  %vm4745_vm1 = vsmask.f32 3328  ;;  %vm4686_vm13 = vcmask 1040384  }
  0x3c   : > { %v11507_v2 = vld [vmem:[#allocation6 + $0x178] sm:$0xff]  ;;  %1264 = vmatpush.bf16.msra.mxu1 %v11505_v1  ;;  %v11513_v5 = vld [vmem:[#allocation6 + $0x170] sm:$0xff]  ;;  %v11517_v7 = vld [vmem:[#allocation6 + $0x128] sm:$0xff]  ;;  %vm5073_vm4 = vsmask.f32 7950  ;;  %s11097_s18 = smul.u32 216, %s11491_s4 }
  0x3d   : > { %1408 = vmatpush.bf16.msra.mxu2 %v11507_v2  ;;  %v11519_v8 = vld [vmem:[#allocation6 + $0x168] sm:$0xff]  ;;  %v10590_v9 = vld [vmem:[#allocation6 + $0xe0] sm:$0xff]  ;;  %v10589_v12 = vld [vmem:[#allocation6 + $0xd8] sm:$0xff]  ;;  %vm4628_vm5 = vsmask.f32 7938  ;;  %s9025_s16 = scalar_lea.sflag [#allocation5], %s11491_s4 }
  0x3e   : > { %v11521_v10 = vld [vmem:[#allocation6 + $0x120] sm:$0xff]  ;;  %v11529_v13 = vld [vmem:[#allocation6 + $0x118] sm:$0xff]  ;;  %v10588_v15 = vld [vmem:[#allocation6 + $0xd0] sm:$0xff]  ;;  %vm4746_vm8 = vsmask.f32 7440  ;;  %s15650_s30 = scalar_lea.vmem [#allocation9], %s11097_s18 }
  0x3f   : > { %1121 = vmatpush.bf16.msra.mxu0 %v10592_v3  ;;  %11071 = vmatpush.bf16.msra.mxu3 %v10592_v3  ;;  %v11525_v11 = vld [vmem:[#allocation6 + $0x160] sm:$0xff]  ;;  %v11531_v14 = vld [vmem:[#allocation6 + $0x158] sm:$0xff]  ;;  %v11535_v16 = vld [vmem:[#allocation6 + $0x110] sm:$0xff]  ;;  %vm4084_vm9 = vsmask.f32 256  ;;  %s9037_s23 = sshll.u32 %s15650_s30, 4  ;;  %s9038_s23 = int_to_ptr.vmem [resolvable:$true] %s9037_s23 }
  0x40   : > { %1265 = vmatpush.bf16.msra.mxu1 %v11511_v4  ;;  %v11537_v17 = vld [vmem:[#allocation6 + $0x150] sm:$0xff]  ;;  %v10587_v18 = vld [vmem:[#allocation6 + $0xc8] sm:$0xff]  ;;  %v10586_v31 = vld [vmem:[#allocation6 + $0xc0] sm:$0xff]  ;;  %vm4085_vm10 = vsmask.f32 4368  ;;  %s11294_s13 = scalar_lea.hbm %s15952_s7, 432 }
  0x41   : > { %1409 = vmatpush.bf16.msra.mxu2 %v11513_v5  ;;  %v11539_v19 = vld [vmem:[#allocation6 + $0x108] sm:$0xff]  ;;  %v11545_v21 = vld [vmem:[%s11495_s2 + $0x30] sm:$0xff]  ;;  %v10574_v38 = vld [vmem:[#allocation6 + $0x78] sm:$0xff] }
  0x42   : > { %v11542_v20 = vld [vmem:[%s11495_s2 + $0x24] sm:$0xff]  ;;  %v11548_v22 = vld [vmem:[%s11495_s2 + $0x21c] sm:$0xff]  ;;  %v11558_v25 = vld [vmem:[%s11495_s2 + $0x2c] sm:$0xf]  ;;  %v16018_v28 = vunpack.c.l.b16 %v11545_v21  ;;  %v15994_v33 = vunpack.c.h.b16 %v11545_v21 }
  0x43   : > { %1122 = vmatpush.bf16.msra.mxu0 %v10591_v6  ;;  %11072 = vmatpush.bf16.msra.mxu3 %v10591_v6  ;;  %16259 = vst [vmem:[#allocation14_spill] sm:$0xff] %v11548_v22  ;;  %v11551_v23 = vld [vmem:[%s11495_s2 + $0x228] sm:$0xff]  ;;  %v11561_v26 = vld [vmem:[%s11495_s2 + $0x38] sm:$0xf]  ;;  %v16021_v27 = vunpack.c.l.b16 %v11542_v20  ;;  %v15960_v29 = vunpack.c.l.b16 %v11548_v22  ;;  %v16006_v32 = vunpack.c.h.b16 %v11542_v20  ;;  %v16005_v34 = vunpack.c.l.b16 %v11558_v25  ;;  %v10594_v36 = vld [vmem:[#allocation6 + $0x100] sm:$0xff] }
  0x44   : > { %1266 = vmatpush.bf16.msra.mxu1 %v11517_v7  ;;  %16260 = vst [vmem:[#allocation15_spill] sm:$0xff] %v11551_v23  ;;  %v11555_v24 = vld [vmem:[#allocation6 + $0x148] sm:$0xff]  ;;  %v15959_v30 = vunpack.c.l.b16 %v11551_v23  ;;  %v15984_v35 = vunpack.c.l.b16 %v11561_v26  ;;  %v11573_v37 = vld [vmem:[#allocation6 + $0x140] sm:$0xff]  ;;  %v10573_v43 = vld [vmem:[#allocation6 + $0x70] sm:$0xff] }
  0x45   : > { %1410 = vmatpush.bf16.msra.mxu2 %v11519_v8  ;;  %v814_v39 = vpack.c.b16 %v16018_v28, %v16021_v27  ;;  %v815_v41 = vpack.c.b16 %v15994_v33, %v16006_v32  ;;  %v11595_v44 = vld [vmem:[%s11495_s2 + $0x3c] sm:$0xff]  ;;  %v11598_v45 = vld [vmem:[%s11495_s2 + $0x48] sm:$0xff]  ;;  %v11601_v46 = vld [vmem:[%s11495_s2 + $0x234] sm:$0xff] }
  0x46   : > { %v877_v40 = vpack.c.b16 %v15959_v30, %v15960_v29  ;;  %v816_v42 = vpack.c.b16 %v15984_v35, %v16005_v34  ;;  %16261 = vst [vmem:[#allocation16_spill] sm:$0xff] %v11601_v46  ;;  %v11604_v47 = vld [vmem:[%s11495_s2 + $0x240] sm:$0xff]  ;;  %v11610_v49 = vld [vmem:[%s11495_s2 + $0x50] sm:$0xf]  ;;  %v16015_v50 = vunpack.c.l.b16 %v11595_v44  ;;  %v16014_v51 = vunpack.c.l.b16 %v11598_v45  ;;  %v11641_v62 = vld [vmem:[%s11495_s2 + $0x54] sm:$0xff] }
  0x47   : > { %1123 = vmatpush.bf16.msra.mxu0 %v10590_v9  ;;  %11073 = vmatpush.bf16.msra.mxu3 %v10590_v9  ;;  %16262 = vst [vmem:[#allocation17_spill] sm:$0xff] %v11604_v47  ;;  %v11607_v48 = vld [vmem:[%s11495_s2 + $0x44] sm:$0xf]  ;;  %v15958_v52 = vunpack.c.l.b16 %v11601_v46  ;;  %v15957_v53 = vunpack.c.l.b16 %v11604_v47  ;;  %v15993_v54 = vunpack.c.h.b16 %v11595_v44  ;;  %v15975_v55 = vunpack.c.h.b16 %v11598_v45  ;;  %v11647_v0 = vld [vmem:[%s11495_s2 + $0x24c] sm:$0xff]  ;;  %v11653_v3 = vld [vmem:[%s11495_s2 + $0x5c] sm:$0xf] }
  0x48   : > { %1267 = vmatpush.bf16.msra.mxu1 %v11521_v10  ;;  %v15983_v56 = vunpack.c.l.b16 %v11607_v48  ;;  %v15973_v57 = vunpack.c.l.b16 %v11610_v49  ;;  %v817_v58 = vpack.c.b16 %v16014_v51, %v16015_v50  ;;  %v11644_v63 = vld [vmem:[%s11495_s2 + $0x60] sm:$0xff]  ;;  %16263 = vst [vmem:[#allocation18_spill] sm:$0xff] %v11647_v0  ;;  %v16013_v6 = vunpack.c.l.b16 %v11641_v62  ;;  %v11747_v30 = vld [vmem:[%s11495_s2 + $0x98] sm:$0xf]  ;;  %vm13538_vm2 = vmand %vm4627_vm0, %vm4745_vm1 }
  0x49   : > { %1411 = vmatpush.bf16.msra.mxu2 %v11525_v11  ;;  %v880_v59 = vpack.c.b16 %v15957_v53, %v15958_v52  ;;  %v818_v60 = vpack.c.b16 %v15975_v55, %v15993_v54  ;;  %v15956_v9 = vunpack.c.l.b16 %v11647_v0  ;;  %v11741_v53 = vld [vmem:[%s11495_s2 + $0x288] sm:$0xff]  ;;  %16270 = vst [vmem:[#allocation25_spill] sm:$0xff] %v11747_v30  ;;  %v11809_v55 = vld [vmem:[%s11495_s2 + $0xc0] sm:$0xff]  ;;  %vm13572_vm6 = vmand %vm5072_vm3, %vm5073_vm4 }
  0x4a   : > { %v819_v61 = vpack.c.b16 %v15973_v57, %v15983_v56  ;;  %v11744_v52 = vld [vmem:[%s11495_s2 + $0x8c] sm:$0xf]  ;;  %v10571_v35 = vld [vmem:[#allocation6 + $0x60] sm:$0xff]  ;;  %vm4629_vm7 = vmand %vm4627_vm0, %vm4628_vm5 }
  0x4b   : > { %1124 = vmatpush.bf16.msra.mxu0 %v10589_v12  ;;  %11074 = vmatpush.bf16.msra.mxu3 %v10589_v12  ;;  %v15974_v12 = vunpack.c.h.b16 %v11641_v62  ;;  %16269 = vst [vmem:[#allocation24_spill] sm:$0xff] %v11744_v52  ;;  %v11918_v50 = vld [vmem:[%s11495_s2 + $0xfc] sm:$0xff]  ;;  %v11924_v28 = vld [vmem:[%s11495_s2 + $0x104] sm:$0xf]  ;;  %vm13592_vm11 = vmor %vm4745_vm1, %vm4746_vm8 }
  0x4c   : > { %1268 = vmatpush.bf16.msra.mxu1 %v11529_v13  ;;  %16284 = vst [vmem:[#allocation39_spill] sm:$0xff] %v11918_v50  ;;  %vm13600_vm12 = vmor %vm4084_vm9, %vm4085_vm10 }
  0x4d   : > { %1412 = vmatpush.bf16.msra.mxu2 %v11531_v14  ;;  %16286 = vst [vmem:[#allocation41_spill] sm:$0xff] %v11924_v28  ;;  %vm4687_vm14 = vmand %vm4686_vm13, %vm4084_vm9 }
  0x4f   : > { %1125 = vmatpush.bf16.msra.mxu0 %v10588_v15  ;;  %11075 = vmatpush.bf16.msra.mxu3 %v10588_v15  ;;  %v15972_v15 = vunpack.c.l.b16 %v11653_v3 }
  0x50   : > { %1269 = vmatpush.bf16.msra.mxu1 %v11535_v16 }
  0x51   : > { %1413 = vmatpush.bf16.msra.mxu2 %v11537_v17 }
  0x53   : > { %1126 = vmatpush.bf16.msra.mxu0 %v10587_v18  ;;  %11076 = vmatpush.bf16.msra.mxu3 %v10587_v18 }
  0x54   : > { %1270 = vmatpush.bf16.msra.mxu1 %v11539_v19 }
  0x55   : > { %1414 = vmatpush.bf16.msra.mxu2 %v11555_v24 }
  0x57   : > { %1127 = vmatpush.bf16.msra.mxu0 %v10586_v31  ;;  %11077 = vmatpush.bf16.msra.mxu3 %v10586_v31 }
  0x58   : > { %1271 = vmatpush.bf16.msra.mxu1 %v10594_v36 }
  0x59   : > { %1415 = vmatpush.bf16.msra.mxu2 %v11573_v37 }
  0x5a   : > { %1128 = vmatmul.bf16.vlgmr.msra.gmra.mxu0 %v814_v39  ;;  %1233 = vmatmul.bf16.vlgmr.msra.gmra.mxu3 %v877_v40  ;;  %v11689_v39 = vld [vmem:[%s11495_s2 + $0x78] sm:$0xff]  ;;  %v11695_v40 = vld [vmem:[%s11495_s2 + $0x270] sm:$0xff] }
  0x5b   : > { %2017 = vmatpush.bf16.msrb.mxu0 %v10574_v38  ;;  %11078 = vmatpush.bf16.msrb.mxu3 %v11505_v1  ;;  %v11650_v1 = vld [vmem:[%s11495_s2 + $0x258] sm:$0xff]  ;;  %v11686_v38 = vld [vmem:[%s11495_s2 + $0x6c] sm:$0xff]  ;;  %16266 = vst [vmem:[#allocation21_spill] sm:$0xff] %v11695_v40 }
  0x5c   : > { %1272 = vmatmul.bf16.vlgmr.msra.gmra.mxu1 %v815_v41  ;;  %1416 = vmatmul.bf16.vlgmr.msra.gmra.mxu2 %v816_v42  ;;  %16264 = vst [vmem:[#allocation19_spill] sm:$0xff] %v11650_v1  ;;  %v11698_v41 = vld [vmem:[%s11495_s2 + $0x74] sm:$0xf]  ;;  %v11701_v42 = vld [vmem:[%s11495_s2 + $0x80] sm:$0xf] }
  0x5d   : > { %16267 = vst [vmem:[#allocation22_spill] sm:$0xff] %v11701_v42 }
  0x5f   : > { %2018 = vmatpush.bf16.msrb.mxu0 %v10573_v43  ;;  %11079 = vmatpush.bf16.msrb.mxu3 %v11511_v4  ;;  %v11656_v4 = vld [vmem:[%s11495_s2 + $0x68] sm:$0xf]  ;;  %v16007_v43 = vunpack.c.l.b16 %v11686_v38 }
  0x63   : > { %11080 = vmatpush.bf16.msrb.mxu3 %v11517_v7  ;;  %v16008_v7 = vunpack.c.l.b16 %v11644_v63 }
  0x65   : > { %v820_v18 = vpack.c.b16 %v16008_v7, %v16013_v6 }
  0x67   : > { %11081 = vmatpush.bf16.msrb.mxu3 %v11521_v10  ;;  %v15953_v10 = vunpack.c.l.b16 %v11650_v1 }
  0x6a   : > { %1133 = vmatmul.bf16.gmra.mxu0 %v817_v58  ;;  %1238 = vmatmul.bf16.gmra.mxu3 %v880_v59  ;;  %v15998_v58 = vunpack.c.l.b16 %v11689_v39  ;;  %v15954_v59 = vunpack.c.l.b16 %v11695_v40 }
  0x6b   : > { %11082 = vmatpush.bf16.msrb.mxu3 %v11529_v13  ;;  %v15971_v13 = vunpack.c.h.b16 %v11644_v63 }
  0x6c   : > { %1277 = vmatmul.bf16.gmra.mxu1 %v818_v60  ;;  %1421 = vmatmul.bf16.gmra.mxu2 %v819_v61  ;;  %v15965_v60 = vunpack.c.h.b16 %v11686_v38  ;;  %v15962_v61 = vunpack.c.h.b16 %v11689_v39 }
  0x6d   : > { %v821_v31 = vpack.c.b16 %v15971_v13, %v15974_v12  ;;  %v11806_v12 = vld [vmem:[%s11495_s2 + $0xb4] sm:$0xff] }
  0x6f   : > { %11083 = vmatpush.bf16.msrb.mxu3 %v11535_v16  ;;  %v15964_v16 = vunpack.c.l.b16 %v11656_v4 }
  0x73   : > { %11084 = vmatpush.bf16.msrb.mxu3 %v11539_v19  ;;  %v883_v19 = vpack.c.b16 %v15953_v10, %v15956_v9  ;;  %v10572_v10 = vld [vmem:[#allocation6 + $0x68] sm:$0xff] }
  0x74   : > { %2019 = vmatpush.bf16.msrb.mxu0 %v10572_v10  ;;  %v11738_v9 = vld [vmem:[%s11495_s2 + $0x27c] sm:$0xff]  ;;  %v805_v10 = vunpack.c.l.b16 %v11741_v53 }
  0x75   : > { %16268 = vst [vmem:[#allocation23_spill] sm:$0xff] %v11738_v9 }
  0x77   : > { %11085 = vmatpush.bf16.msrb.mxu3 %v10594_v36  ;;  %v822_v36 = vpack.c.b16 %v15964_v16, %v15972_v15  ;;  %v11777_v16 = vld [vmem:[%s11495_s2 + $0xa8] sm:$0xff] }
  0x78   : > { %2020 = vmatpush.bf16.msrb.mxu0 %v10571_v35 }
  0x7a   : > { %1138 = vmatmul.bf16.gmra.mxu0 %v820_v18  ;;  %1243 = vmatmul.bf16.gmra.mxu3 %v883_v19  ;;  %v15963_v18 = vunpack.c.l.b16 %v11698_v41  ;;  %v15961_v19 = vunpack.c.l.b16 %v11701_v42 }
  0x7b   : > { %11086 = vmatpush.bf16.msra.mxu3 %v11507_v2  ;;  %v11692_v2 = vld [vmem:[%s11495_s2 + $0x264] sm:$0xff] }
  0x7c   : > { %1282 = vmatmul.bf16.gmra.mxu1 %v821_v31  ;;  %1426 = vmatmul.bf16.gmra.mxu2 %v822_v36  ;;  %16265 = vst [vmem:[#allocation20_spill] sm:$0xff] %v11692_v2  ;;  %v824_v36 = vpack.c.b16 %v15962_v61, %v15965_v60  ;;  %v11780_v60 = vld [vmem:[%s11495_s2 + $0xa4] sm:$0xf] }
  0x7d   : > { %16271 = vst [vmem:[#allocation26_spill] sm:$0xff] %v11780_v60 }
  0x7f   : > { %11087 = vmatpush.bf16.msra.mxu3 %v11513_v5  ;;  %v15955_v5 = vunpack.c.l.b16 %v11692_v2 }
  0x81   : > { %v886_v31 = vpack.c.b16 %v15954_v59, %v15955_v5  ;;  %v11732_v59 = vld [vmem:[%s11495_s2 + $0x84] sm:$0xff]  ;;  %v11735_v5 = vld [vmem:[%s11495_s2 + $0x90] sm:$0xff] }
  0x83   : > { %11088 = vmatpush.bf16.msra.mxu3 %v11519_v8  ;;  %v823_v8 = vpack.c.b16 %v15998_v58, %v16007_v43  ;;  %v11884_v58 = vld [vmem:[%s11495_s2 + $0xec] sm:$0xf] }
  0x84   : > { %16281 = vst [vmem:[#allocation36_spill] sm:$0xff] %v11884_v58 }
  0x87   : > { %11089 = vmatpush.bf16.msra.mxu3 %v11525_v11  ;;  %v825_v11 = vpack.c.b16 %v15961_v19, %v15963_v18 }
  0x8a   : > { %1143 = vmatmul.bf16.gmra.mxu0 %v823_v8  ;;  %1248 = vmatmul.bf16.gmra.mxu3 %v886_v31  ;;  %v15982_v8 = vunpack.c.l.b16 %v11735_v5  ;;  %v15968_v31 = vunpack.c.h.b16 %v11732_v59 }
  0x8b   : > { %11090 = vmatpush.bf16.msra.mxu3 %v11531_v14  ;;  %v15995_v14 = vunpack.c.l.b16 %v11732_v59 }
  0x8c   : > { %1287 = vmatmul.bf16.gmra.mxu1 %v824_v36  ;;  %1431 = vmatmul.bf16.gmra.mxu2 %v825_v11  ;;  %v15967_v36 = vunpack.c.h.b16 %v11735_v5  ;;  %v15970_v11 = vunpack.c.l.b16 %v11744_v52 }
  0x8d   : > { %v826_v29 = vpack.c.b16 %v15982_v8, %v15995_v14 }
  0x8e   : > { %v827_v61 = vpack.c.b16 %v15967_v36, %v15968_v31  ;;  %v15976_v36 = vunpack.c.l.b16 %v11777_v16  ;;  %v9143_v31 = vld [vmem:[%s11495_s2 + $0x294] sm:$0xf] }
  0x8f   : > { %11091 = vmatpush.bf16.msra.mxu3 %v11537_v17  ;;  %v15966_v17 = vunpack.c.l.b16 %v11738_v9 }
  0x91   : > { %v889_v19 = vpack.c.b16 %v805_v10, %v15966_v17  ;;  %v11783_v10 = vld [vmem:[%s11495_s2 + $0xb0] sm:$0xf] }
  0x92   : > { %16272 = vst [vmem:[#allocation27_spill] sm:$0xff] %v11783_v10 }
  0x93   : > { %11092 = vmatpush.bf16.msra.mxu3 %v11555_v24  ;;  %v15969_v24 = vunpack.c.l.b16 %v11747_v30 }
  0x95   : > { %v828_v18 = vpack.c.b16 %v15969_v24, %v15970_v11  ;;  %v15979_v24 = vunpack.c.l.b16 %v11783_v10 }
  0x97   : > { %11093 = vmatpush.bf16.msra.mxu3 %v11573_v37  ;;  %v11774_v37 = vld [vmem:[%s11495_s2 + $0x9c] sm:$0xff] }
  0x98   : > { %v15981_v17 = vunpack.c.l.b16 %v11774_v37 }
  0x9a   : > { %1148 = vmatmul.bf16.gmra.mxu0 %v826_v29  ;;  %1253 = vmatmul.bf16.gmra.mxu3 %v889_v19  ;;  %v10584_v29 = vld [vmem:[%s11495_s2 + $0x29c] sm:$0xf0]  ;;  %v15980_v19 = vunpack.c.l.b16 %v11780_v60  ;;  %v829_v11 = vpack.c.b16 %v15976_v36, %v15981_v17  ;;  %v11812_v36 = vld [vmem:[%s11495_s2 + $0xbc] sm:$0xf] }
  0x9b   : > { %v9144_v13 = vor.u32 %v10584_v29, %v9143_v31  ;;  %16273 = vst [vmem:[#allocation28_spill] sm:$0xff] %v11812_v36  ;;  %v11815_v31 = vld [vmem:[%s11495_s2 + $0xc8] sm:$0xf]  ;;  %v15988_v29 = vunpack.c.h.b16 %v11548_v22 }
  0x9c   : > { %1292 = vmatmul.bf16.gmra.mxu1 %v827_v61  ;;  %1436 = vmatmul.bf16.gmra.mxu2 %v828_v18  ;;  %v15978_v61 = vunpack.c.h.b16 %v11774_v37  ;;  %v15977_v18 = vunpack.c.h.b16 %v11777_v16  ;;  %v831_v57 = vpack.c.b16 %v15979_v24, %v15980_v19  ;;  %16274 = vst [vmem:[#allocation29_spill] sm:$0xff] %v11815_v31  ;;  %v15991_v24 = vunpack.c.l.b16 %v11815_v31 }
  0x9e   : > { %v830_v15 = vpack.c.b16 %v15977_v18, %v15978_v61  ;;  %v15987_v18 = vunpack.c.h.b16 %v11551_v23  ;;  %v15986_v61 = vunpack.c.l.b16 %v11806_v12  ;;  %v11968_v23 = vld [vmem:[%s11495_s2 + $0x11c] sm:$0xf] }
  0x9f   : > { %16298 = vst [vmem:[#allocation47_spill] sm:$0xff] %v11968_v23 }
  0xa0   : > { %v878_v17 = vpack.c.b16 %v15987_v18, %v15988_v29  ;;  %v11848_v18 = vld [vmem:[%s11495_s2 + $0xd4] sm:$0xf]  ;;  %v11851_v29 = vld [vmem:[%s11495_s2 + $0xe0] sm:$0xf] }
  0xa1   : > { %16277 = vst [vmem:[#allocation32_spill] sm:$0xff] %v11848_v18 }
  0xa2   : > { %16278 = vst [vmem:[#allocation33_spill] sm:$0xff] %v11851_v29 }
  0xaa   : > { %1153 = vmatmul.bf16.gmra.mxu0 %v829_v11  ;;  %1258 = vmatmul.bf16.gmra.mxu3 %v9144_v13  ;;  %v15985_v11 = vunpack.c.l.b16 %v11809_v55  ;;  %v15989_v13 = vunpack.c.h.b16 %v11809_v55 }
  0xac   : > { %1297 = vmatmul.bf16.gmra.mxu1 %v830_v15  ;;  %1441 = vmatmul.bf16.gmra.mxu2 %v831_v57  ;;  %v15990_v57 = vunpack.c.h.b16 %v11806_v12  ;;  %v15992_v15 = vunpack.c.l.b16 %v11812_v36  ;;  %v832_v19 = vpack.c.b16 %v15985_v11, %v15986_v61  ;;  %v11842_v11 = vld [vmem:[%s11495_s2 + $0xcc] sm:$0xff]  ;;  %v11845_v61 = vld [vmem:[%s11495_s2 + $0xd8] sm:$0xff] }
  0xad   : > { %16275 = vst [vmem:[#allocation30_spill] sm:$0xff] %v11842_v11  ;;  %v16002_v35 = vunpack.c.h.b16 %v11842_v11  ;;  %v10581_v36 = vld [vmem:[#allocation6 + $0xb0] sm:$0xff] }
  0xae   : > { %v833_v8 = vpack.c.b16 %v15989_v13, %v15990_v57  ;;  %v834_v56 = vpack.c.b16 %v15991_v24, %v15992_v15  ;;  %16276 = vst [vmem:[#allocation31_spill] sm:$0xff] %v11845_v61  ;;  %v15997_v13 = vunpack.c.l.b16 %v11842_v11  ;;  %v15996_v57 = vunpack.c.l.b16 %v11845_v61  ;;  %v10575_v11 = vld [vmem:[#allocation6 + $0x80] sm:$0xff] }
  0xaf   : > { %v16003_v24 = vunpack.c.l.b16 %v11851_v29 }
  0xb0   : > { %v835_v15 = vpack.c.b16 %v15996_v57, %v15997_v13  ;;  %v11878_v57 = vld [vmem:[%s11495_s2 + $0xe4] sm:$0xff]  ;;  %v11881_v13 = vld [vmem:[%s11495_s2 + $0xf0] sm:$0xff] }
  0xb1   : > { %16279 = vst [vmem:[#allocation34_spill] sm:$0xff] %v11878_v57 }
  0xb2   : > { %16280 = vst [vmem:[#allocation35_spill] sm:$0xff] %v11881_v13 }
  0xba   : > { %1158 = vmatmul.bf16.gmra.mxu0 %v832_v19  ;;  %1377 = vmatmul.bf16.vlgmr.msrb.gmra.mxu3 %v878_v17  ;;  %v16000_v19 = vunpack.c.h.b16 %v11601_v46  ;;  %v16004_v17 = vunpack.c.l.b16 %v11848_v18  ;;  %v11962_v46 = vld [vmem:[%s11495_s2 + $0x114] sm:$0xff] }
  0xbb   : > { %16296 = vst [vmem:[#allocation45_spill] sm:$0xff] %v11962_v46 }
  0xbc   : > { %1302 = vmatmul.bf16.gmra.mxu1 %v833_v8  ;;  %1446 = vmatmul.bf16.gmra.mxu2 %v834_v56  ;;  %v15999_v56 = vunpack.c.h.b16 %v11604_v47  ;;  %v16001_v8 = vunpack.c.h.b16 %v11845_v61  ;;  %v837_v14 = vpack.c.b16 %v16003_v24, %v16004_v17  ;;  %v16011_v24 = vunpack.c.h.b16 %v11650_v1 }
  0xbd   : > { %v16293_v47 = vunpack.c.l.b16 %v11924_v28  ;;  %v16302_v28 = vunpack.c.l.b16 %v11968_v23 }
  0xbe   : > { %v881_v54 = vpack.c.b16 %v15999_v56, %v16000_v19  ;;  %v836_v33 = vpack.c.b16 %v16001_v8, %v16002_v35  ;;  %v11887_v56 = vld [vmem:[%s11495_s2 + $0xf8] sm:$0xf]  ;;  %v16010_v19 = vunpack.c.l.b16 %v11878_v57  ;;  %v16009_v8 = vunpack.c.l.b16 %v11881_v13 }
  0xbf   : > { %16282 = vst [vmem:[#allocation37_spill] sm:$0xff] %v11887_v56  ;;  %v16012_v35 = vunpack.c.h.b16 %v11647_v0 }
  0xc0   : > { %v838_v17 = vpack.c.b16 %v16009_v8, %v16010_v19 }
  0xc1   : > { %v884_v34 = vpack.c.b16 %v16011_v24, %v16012_v35 }
  0xca   : > { %1163 = vmatmul.bf16.gmra.mxu0 %v835_v15  ;;  %1382 = vmatmul.bf16.gmra.mxu3 %v881_v54  ;;  %v16017_v54 = vunpack.c.h.b16 %v11878_v57  ;;  %v16019_v15 = vunpack.c.l.b16 %v11887_v56 }
  0xcc   : > { %1307 = vmatmul.bf16.gmra.mxu1 %v836_v33  ;;  %1451 = vmatmul.bf16.gmra.mxu2 %v837_v14  ;;  %v16016_v33 = vunpack.c.h.b16 %v11881_v13  ;;  %v16020_v14 = vunpack.c.l.b16 %v11884_v58 }
  0xce   : > { %v839_v43 = vpack.c.b16 %v16016_v33, %v16017_v54  ;;  %v840_v7 = vpack.c.b16 %v16019_v15, %v16020_v14  ;;  %v11921_v33 = vld [vmem:[%s11495_s2 + $0x108] sm:$0xff]  ;;  %v11927_v15 = vld [vmem:[%s11495_s2 + $0x110] sm:$0xf]  ;;  %v16289_v14 = vunpack.c.h.b16 %v11695_v40 }
  0xcf   : > { %16285 = vst [vmem:[#allocation40_spill] sm:$0xff] %v11921_v33 }
  0xd0   : > { %16287 = vst [vmem:[#allocation42_spill] sm:$0xff] %v11927_v15 }
  0xd7   : > { %v1129_v32 = vpop.f32.mrf.mxu0 }
  0xd9   : > { %v1273_v8 = vpop.f32.mrf.mxu1 }
  0xda   : > { %v1274_v19 = vadd.f32 %v1273_v8, %v1129_v32  ;;  %1168 = vmatmul.bf16.gmra.mxu0 %v838_v17  ;;  %1387 = vmatmul.bf16.gmra.mxu3 %v884_v34  ;;  %v10582_v8 = vld [vmem:[#allocation6 + $0xb8] sm:$0xff]  ;;  %v16028_v17 = vunpack.c.l.b16 %v11921_v33 }
  0xdb   : > { %v10698_v34 = vld [vmem:[#allocation6 + $0x1b8] sm:$0xff]  ;;  %2161 = vmatpush.bf16.msrb.mxu1 %v10582_v8 }
  0xdc   : > { %1312 = vmatmul.bf16.gmra.mxu1 %v839_v43  ;;  %1456 = vmatmul.bf16.gmra.mxu2 %v840_v7  ;;  %v10570_v43 = vld [vmem:[#allocation6 + $0x58] sm:$0xff]  ;;  %v16029_v7 = vunpack.c.l.b16 %v11918_v50 }
  0xdd   : > { %v11913_v24 = vpop.f32.mrf.mxu3  ;;  %3038 = vmatpush.bf16.msrb.mxu2 %v10698_v34  ;;  %2021 = vmatpush.bf16.msrb.mxu0 %v10570_v43  ;;  %v16291_v34 = vunpack.c.h.b16 %v11918_v50  ;;  %v16292_v43 = vunpack.c.h.b16 %v11921_v33 }
  0xdf   : > { %v1417_v35 = vpop.f32.mrf.mxu2  ;;  %v1131_v51 = vpop.f32.mrf.mxu0  ;;  %v842_v0 = vpack.c.b16 %v16292_v43, %v16291_v34  ;;  %v11965_v34 = vld [vmem:[%s11495_s2 + $0x120] sm:$0xff]  ;;  %2162 = vmatpush.bf16.msrb.mxu1 %v10581_v36  ;;  %v12059_v36 = vld [vmem:[%s11495_s2 + $0x158] sm:$0xf] }
  0xe0   : > { %v11915_v6 = vadd.f32 %v1417_v35, %v1274_v19  ;;  %v841_v19 = vpack.c.b16 %v16028_v17, %v16029_v7  ;;  %v16288_v35 = vunpack.c.h.b16 %v11692_v2  ;;  %v16294_v17 = vunpack.c.l.b16 %v11927_v15  ;;  %16297 = vst [vmem:[#allocation46_spill] sm:$0xff] %v11965_v34 }
  0xe1   : > { %v1275_v54 = vpop.f32.mrf.mxu1  ;;  %16318 = vst [vmem:[#allocation62_spill] sm:$0xff] %v12059_v36 }
  0xe2   : > { %16283 = vst [vmem:[#allocation38_spill] sm:$0xff] %v11915_v6  ;;  %v1276_v32 = vadd.f32 %v1275_v54, %v1131_v51  ;;  %v887_v27 = vpack.c.b16 %v16289_v14, %v16288_v35  ;;  %v843_v7 = vpack.c.b16 %v16294_v17, %v16293_v47  ;;  %v11971_v47 = vld [vmem:[%s11495_s2 + $0x128] sm:$0xf]  ;;  %v16048_v17 = vunpack.c.h.b16 %v11962_v46 }
  0xe3   : > { %16299 = vst [vmem:[#allocation48_spill] sm:$0xff] %v11971_v47  ;;  %v16303_v56 = vunpack.c.l.b16 %v11971_v47 }
  0xe5   : > { %v11937_v51 = vpop.f32.mrf.mxu3 }
  0xe7   : > { %v1419_v54 = vpop.f32.mrf.mxu2  ;;  %v1134_v8 = vpop.f32.mrf.mxu0 }
  0xe8   : > { %v11947_v1 = vadd.f32 %v1419_v54, %v1276_v32 }
  0xe9   : > { %v1278_v2 = vpop.f32.mrf.mxu1 }
  0xea   : > { %16290 = vst [vmem:[#allocation43_spill] sm:$0xff] %v11947_v1  ;;  %v1279_v40 = vadd.f32 %v1278_v2, %v1134_v8  ;;  %1173 = vmatmul.bf16.gmra.mxu0 %v841_v19  ;;  %1392 = vmatmul.bf16.gmra.mxu3 %v887_v27  ;;  %v16044_v27 = vunpack.c.l.b16 %v11962_v46 }
  0xec   : > { %1317 = vmatmul.bf16.gmra.mxu1 %v842_v0  ;;  %1461 = vmatmul.bf16.gmra.mxu2 %v843_v7  ;;  %v16043_v0 = vunpack.c.l.b16 %v11965_v34  ;;  %v16047_v7 = vunpack.c.h.b16 %v11738_v9 }
  0xed   : > { %v11957_v14 = vpop.f32.mrf.mxu3 }
  0xef   : > { %v1422_v32 = vpop.f32.mrf.mxu2  ;;  %v1136_v54 = vpop.f32.mrf.mxu0 }
  0xf0   : > { %v11959_v35 = vadd.f32 %v1422_v32, %v1279_v40  ;;  %v806_v40 = vunpack.c.h.b16 %v11741_v53  ;;  %v16301_v32 = vunpack.c.h.b16 %v11965_v34 }
  0xf1   : > { %v1280_v43 = vpop.f32.mrf.mxu1 }
  0xf2   : > { %16295 = vst [vmem:[#allocation44_spill] sm:$0xff] %v11959_v35  ;;  %v1281_v2 = vadd.f32 %v1280_v43, %v1136_v54  ;;  %v844_v54 = vpack.c.b16 %v16043_v0, %v16044_v27  ;;  %v890_v53 = vpack.c.b16 %v806_v40, %v16047_v7  ;;  %v845_v8 = vpack.c.b16 %v16301_v32, %v16048_v17  ;;  %v12004_v7 = vld [vmem:[%s11495_s2 + $0x12c] sm:$0xff]  ;;  %v12007_v17 = vld [vmem:[%s11495_s2 + $0x138] sm:$0xff] }
  0xf3   : > { %v846_v0 = vpack.c.b16 %v16303_v56, %v16302_v28  ;;  %16305 = vst [vmem:[#allocation51_spill] sm:$0xff] %v12004_v7  ;;  %v12010_v28 = vld [vmem:[%s11495_s2 + $0x134] sm:$0xf]  ;;  %v12013_v56 = vld [vmem:[%s11495_s2 + $0x140] sm:$0xf]  ;;  %v16311_v18 = vunpack.c.h.b16 %v12007_v17 }
  0xf4   : > { %16306 = vst [vmem:[#allocation52_spill] sm:$0xff] %v12007_v17  ;;  %v16062_v23 = vunpack.c.l.b16 %v12013_v56 }
  0xf5   : > { %v11981_v22 = vpop.f32.mrf.mxu3  ;;  %16307 = vst [vmem:[#allocation53_spill] sm:$0xff] %v12010_v28 }
  0xf6   : > { %16308 = vst [vmem:[#allocation54_spill] sm:$0xff] %v12013_v56 }
  0xf7   : > { %v1424_v15 = vpop.f32.mrf.mxu2  ;;  %v1139_v19 = vpop.f32.mrf.mxu0 }
  0xf8   : > { %v11989_v43 = vadd.f32 %v1424_v15, %v1281_v2 }
  0xf9   : > { %v1283_v27 = vpop.f32.mrf.mxu1 }
  0xfa   : > { %16300 = vst [vmem:[#allocation49_spill] sm:$0xff] %v11989_v43  ;;  %v1284_v9 = vadd.f32 %v1283_v27, %v1139_v19  ;;  %1178 = vmatmul.bf16.gmra.mxu0 %v844_v54  ;;  %1397 = vmatmul.bf16.gmra.mxu3 %v890_v53  ;;  %v16065_v19 = vunpack.c.l.b16 %v12004_v7  ;;  %v10583_v54 = vld [vmem:[%s11495_s2 + $0x298] sm:$0xf]  ;;  %v9145_v53 = vld [vmem:[%s11495_s2 + $0x2a0] sm:$0xf0] }
  0xfc   : > { %1322 = vmatmul.bf16.gmra.mxu1 %v845_v8  ;;  %1466 = vmatmul.bf16.gmra.mxu2 %v846_v0  ;;  %v16064_v0 = vunpack.c.l.b16 %v12007_v17 }
  0xfd   : > { %v11999_v15 = vpop.f32.mrf.mxu3 }
  0xff   : > { %v1427_v2 = vpop.f32.mrf.mxu2  ;;  %v1141_v32 = vpop.f32.mrf.mxu0 }
 0x100   : > { %v12001_v40 = vadd.f32 %v1427_v2, %v1284_v9  ;;  %v16063_v2 = vunpack.c.l.b16 %v12010_v28  ;;  %v16310_v9 = vunpack.c.h.b16 %v12004_v7 }
 0x101   : > { %v1285_v47 = vpop.f32.mrf.mxu1 }
 0x102   : > { %16304 = vst [vmem:[#allocation50_spill] sm:$0xff] %v12001_v40  ;;  %v1286_v27 = vadd.f32 %v1285_v47, %v1141_v32  ;;  %v847_v47 = vpack.c.b16 %v16064_v0, %v16065_v19  ;;  %v9148_v32 = vor.u32 %v10583_v54, %v9145_v53  ;;  %v848_v31 = vpack.c.b16 %v16311_v18, %v16310_v9  ;;  %v10697_v54 = vld [vmem:[#allocation6 + $0x1b0] sm:$0xff] }
 0x103   : > { %v849_v46 = vpack.c.b16 %v16062_v23, %v16063_v2  ;;  %v10569_v18 = vld [vmem:[#allocation6 + $0x50] sm:$0xff]  ;;  %3039 = vmatpush.bf16.msrb.mxu2 %v10697_v54 }
 0x104   : > { %2022 = vmatpush.bf16.msrb.mxu0 %v10569_v18  ;;  %v12042_v9 = vld [vmem:[%s11495_s2 + $0x144] sm:$0xff]  ;;  %v12047_v53 = vld [vmem:[%s11495_s2 + $0x150] sm:$0xff] }
 0x105   : > { %v12023_v58 = vpop.f32.mrf.mxu3  ;;  %16312 = vst [vmem:[#allocation56_spill] sm:$0xff] %v12042_v9  ;;  %v16073_v18 = vunpack.c.l.b16 %v12042_v9  ;;  %v16072_v23 = vunpack.c.l.b16 %v12047_v53  ;;  %v16320_v56 = vunpack.c.h.b16 %v12042_v9  ;;  %v16321_v17 = vunpack.c.h.b16 %v12047_v53 }
 0x106   : > { %16314 = vst [vmem:[#allocation58_spill] sm:$0xff] %v12047_v53 }
 0x107   : > { %v1429_v29 = vpop.f32.mrf.mxu2  ;;  %v1144_v8 = vpop.f32.mrf.mxu0  ;;  %v851_v7 = vpack.c.b16 %v16321_v17, %v16320_v56  ;;  %v12097_v56 = vld [vmem:[%s11495_s2 + $0x168] sm:$0xff] }
 0x108   : > { %v12029_v34 = vadd.f32 %v1429_v29, %v1286_v27  ;;  %16326 = vst [vmem:[#allocation66_spill] sm:$0xff] %v12097_v56  ;;  %v16333_v9 = vunpack.c.h.b16 %v12097_v56 }
 0x109   : > { %v1288_v33 = vpop.f32.mrf.mxu1 }
 0x10a   : > { %16309 = vst [vmem:[#allocation55_spill] sm:$0xff] %v12029_v34  ;;  %v1289_v40 = vadd.f32 %v1288_v33, %v1144_v8  ;;  %1183 = vmatmul.bf16.gmra.mxu0 %v847_v47  ;;  %1402 = vmatmul.bf16.gmra.mxu3 %v9148_v32  ;;  %v12050_v47 = vld [vmem:[%s11495_s2 + $0x224] sm:$0xf]  ;;  %v12053_v32 = vld [vmem:[%s11495_s2 + $0x230] sm:$0xf] }
 0x10b   : > { %16315 = vst [vmem:[#allocation59_spill] sm:$0xff] %v12050_v47 }
 0x10c   : > { %1327 = vmatmul.bf16.gmra.mxu1 %v848_v31  ;;  %1471 = vmatmul.bf16.gmra.mxu2 %v849_v46  ;;  %16316 = vst [vmem:[#allocation60_spill] sm:$0xff] %v12053_v32  ;;  %v12056_v46 = vld [vmem:[%s11495_s2 + $0x14c] sm:$0xf] }
 0x10d   : > { %v12039_v29 = vpop.f32.mrf.mxu3  ;;  %16317 = vst [vmem:[#allocation61_spill] sm:$0xff] %v12056_v46 }
 0x10f   : > { %v1432_v27 = vpop.f32.mrf.mxu2  ;;  %v1146_v8 = vpop.f32.mrf.mxu0 }
 0x110   : > { %v12044_v33 = vadd.f32 %v1432_v27, %v1289_v40  ;;  %v16076_v40 = vunpack.c.l.b16 %v12050_v47  ;;  %v16075_v27 = vunpack.c.l.b16 %v12053_v32 }
 0x111   : > { %v1290_v31 = vpop.f32.mrf.mxu1 }
 0x112   : > { %16313 = vst [vmem:[#allocation57_spill] sm:$0xff] %v12044_v33  ;;  %v1291_v54 = vadd.f32 %v1290_v31, %v1146_v8  ;;  %v850_v31 = vpack.c.b16 %v16072_v23, %v16073_v18  ;;  %v879_v2 = vpack.c.b16 %v16075_v27, %v16076_v40  ;;  %v16322_v33 = vunpack.c.l.b16 %v12056_v46  ;;  %v12092_v40 = vld [vmem:[%s11495_s2 + $0x15c] sm:$0xff] }
 0x113   : > { %v16323_v23 = vunpack.c.l.b16 %v12059_v36  ;;  %16324 = vst [vmem:[#allocation64_spill] sm:$0xff] %v12092_v40  ;;  %v12100_v36 = vld [vmem:[%s11495_s2 + $0x23c] sm:$0xf] }
 0x114   : > { %16327 = vst [vmem:[#allocation67_spill] sm:$0xff] %v12100_v36 }
 0x115   : > { %v12069_v28 = vpop.f32.mrf.mxu3  ;;  %v852_v18 = vpack.c.b16 %v16323_v23, %v16322_v33  ;;  %v12103_v23 = vld [vmem:[%s11495_s2 + $0x248] sm:$0xf] }
 0x116   : > { %16328 = vst [vmem:[#allocation68_spill] sm:$0xff] %v12103_v23 }
 0x117   : > { %v1434_v8 = vpop.f32.mrf.mxu2  ;;  %v1149_v19 = vpop.f32.mrf.mxu0 }
 0x118   : > { %v12079_v0 = vadd.f32 %v1434_v8, %v1291_v54 }
 0x119   : > { %v1293_v47 = vpop.f32.mrf.mxu1 }
 0x11a   : > { %16319 = vst [vmem:[#allocation63_spill] sm:$0xff] %v12079_v0  ;;  %v1294_v27 = vadd.f32 %v1293_v47, %v1149_v19  ;;  %1188 = vmatmul.bf16.gmra.mxu0 %v850_v31  ;;  %1521 = vmatmul.bf16.vlgmr.msra.gmra.mxu3 %v879_v2  ;;  %v12106_v19 = vld [vmem:[%s11495_s2 + $0x164] sm:$0xf]  ;;  %v12109_v2 = vld [vmem:[%s11495_s2 + $0x170] sm:$0xf]  ;;  %v10566_v47 = vld [vmem:[#allocation6 + $0x38] sm:$0xff]  ;;  %v16087_v31 = vunpack.c.l.b16 %v12097_v56 }
 0x11b   : > { %16329 = vst [vmem:[#allocation69_spill] sm:$0xff] %v12106_v19  ;;  %1873 = vmatpush.bf16.msrb.mxu3 %v10566_v47  ;;  %v16332_v47 = vunpack.c.h.b16 %v12092_v40  ;;  %v16334_v10 = vunpack.c.l.b16 %v12106_v19  ;;  %v16335_v50 = vunpack.c.l.b16 %v12109_v2 }
 0x11c   : > { %1332 = vmatmul.bf16.gmra.mxu1 %v851_v7  ;;  %1476 = vmatmul.bf16.gmra.mxu2 %v852_v18  ;;  %16330 = vst [vmem:[#allocation70_spill] sm:$0xff] %v12109_v2  ;;  %v16088_v18 = vunpack.c.l.b16 %v12092_v40 }
 0x11d   : > { %v12089_v54 = vpop.f32.mrf.mxu3  ;;  %v854_v34 = vpack.c.b16 %v16333_v9, %v16332_v47 }
 0x11f   : > { %v1437_v8 = vpop.f32.mrf.mxu2  ;;  %v1151_v17 = vpop.f32.mrf.mxu0 }
 0x120   : > { %v12094_v32 = vadd.f32 %v1437_v8, %v1294_v27  ;;  %v16091_v27 = vunpack.c.l.b16 %v12100_v36  ;;  %v16090_v8 = vunpack.c.l.b16 %v12103_v23  ;;  %v12150_v23 = vld [vmem:[%s11495_s2 + $0x254] sm:$0xf] }
 0x121   : > { %v1295_v33 = vpop.f32.mrf.mxu1  ;;  %16339 = vst [vmem:[#allocation75_spill] sm:$0xff] %v12150_v23 }
 0x122   : > { %16325 = vst [vmem:[#allocation65_spill] sm:$0xff] %v12094_v32  ;;  %v1296_v7 = vadd.f32 %v1295_v33, %v1151_v17  ;;  %v853_v33 = vpack.c.b16 %v16087_v31, %v16088_v18  ;;  %v882_v53 = vpack.c.b16 %v16090_v8, %v16091_v27  ;;  %v855_v31 = vpack.c.b16 %v16335_v50, %v16334_v10  ;;  %v12142_v8 = vld [vmem:[%s11495_s2 + $0x174] sm:$0xff]  ;;  %v12145_v27 = vld [vmem:[%s11495_s2 + $0x180] sm:$0xff] }
 0x123   : > { %16336 = vst [vmem:[#allocation72_spill] sm:$0xff] %v12142_v8  ;;  %v12153_v50 = vld [vmem:[%s11495_s2 + $0x260] sm:$0xf]  ;;  %v16102_v2 = vunpack.c.l.b16 %v12142_v8 }
 0x124   : > { %16337 = vst [vmem:[#allocation73_spill] sm:$0xff] %v12145_v27  ;;  %v10565_v10 = vld [vmem:[#allocation6 + $0x30] sm:$0xff]  ;;  %v16103_v19 = vunpack.c.l.b16 %v12153_v50 }
 0x125   : > { %v12119_v0 = vpop.f32.mrf.mxu3  ;;  %16340 = vst [vmem:[#allocation76_spill] sm:$0xff] %v12153_v50  ;;  %1874 = vmatpush.bf16.msrb.mxu3 %v10565_v10  ;;  %v10563_v50 = vld [vmem:[#allocation6 + $0x20] sm:$0xff] }
 0x127   : > { %v1439_v17 = vpop.f32.mrf.mxu2  ;;  %v1154_v32 = vpop.f32.mrf.mxu0 }
 0x128   : > { %v12129_v46 = vadd.f32 %v1439_v17, %v1296_v7 }
 0x129   : > { %v1298_v18 = vpop.f32.mrf.mxu1 }
 0x12a   : > { %16331 = vst [vmem:[#allocation71_spill] sm:$0xff] %v12129_v46  ;;  %v1299_v36 = vadd.f32 %v1298_v18, %v1154_v32  ;;  %1193 = vmatmul.bf16.gmra.mxu0 %v853_v33  ;;  %1526 = vmatmul.bf16.gmra.mxu3 %v882_v53  ;;  %v12156_v18 = vld [vmem:[%s11495_s2 + $0x17c] sm:$0xf] }
 0x12b   : > { %16341 = vst [vmem:[#allocation77_spill] sm:$0xff] %v12156_v18  ;;  %v10696_v33 = vld [vmem:[#allocation6 + $0x1a8] sm:$0xff]  ;;  %v16346_v13 = vunpack.c.l.b16 %v12156_v18 }
 0x12c   : > { %1337 = vmatmul.bf16.gmra.mxu1 %v854_v34  ;;  %1481 = vmatmul.bf16.gmra.mxu2 %v855_v31  ;;  %v12159_v34 = vld [vmem:[%s11495_s2 + $0x188] sm:$0xf] }
 0x12d   : > { %v12139_v7 = vpop.f32.mrf.mxu3  ;;  %16342 = vst [vmem:[#allocation78_spill] sm:$0xff] %v12159_v34  ;;  %v10580_v31 = vld [vmem:[#allocation6 + $0xa8] sm:$0xff]  ;;  %3040 = vmatpush.bf16.msrb.mxu2 %v10696_v33  ;;  %v16345_v33 = vunpack.c.h.b16 %v12145_v27  ;;  %v16347_v43 = vunpack.c.l.b16 %v12159_v34 }
 0x12e   : > { %2163 = vmatpush.bf16.msrb.mxu1 %v10580_v31  ;;  %v16344_v31 = vunpack.c.h.b16 %v12142_v8 }
 0x12f   : > { %v1442_v17 = vpop.f32.mrf.mxu2  ;;  %v1156_v47 = vpop.f32.mrf.mxu0  ;;  %v858_v35 = vpack.c.b16 %v16347_v43, %v16346_v13 }
 0x130   : > { %v12147_v9 = vadd.f32 %v1442_v17, %v1299_v36  ;;  %v16101_v36 = vunpack.c.l.b16 %v12145_v27  ;;  %v16104_v17 = vunpack.c.l.b16 %v12150_v23  ;;  %v857_v46 = vpack.c.b16 %v16345_v33, %v16344_v31  ;;  %v12192_v33 = vld [vmem:[%s11495_s2 + $0x18c] sm:$0xff] }
 0x131   : > { %v1300_v32 = vpop.f32.mrf.mxu1  ;;  %16348 = vst [vmem:[#allocation80_spill] sm:$0xff] %v12192_v33  ;;  %v16356_v18 = vunpack.c.h.b16 %v12192_v33 }
 0x132   : > { %16338 = vst [vmem:[#allocation74_spill] sm:$0xff] %v12147_v9  ;;  %v1301_v53 = vadd.f32 %v1300_v32, %v1156_v47  ;;  %v856_v32 = vpack.c.b16 %v16101_v36, %v16102_v2  ;;  %v885_v56 = vpack.c.b16 %v16103_v19, %v16104_v17  ;;  %v10568_v36 = vld [vmem:[#allocation6 + $0x48] sm:$0xff] }
 0x133   : > { %2023 = vmatpush.bf16.msrb.mxu0 %v10568_v36  ;;  %v12197_v17 = vld [vmem:[%s11495_s2 + $0x198] sm:$0xff] }
 0x134   : > { %16350 = vst [vmem:[#allocation82_spill] sm:$0xff] %v12197_v17 }
 0x135   : > { %v12169_v47 = vpop.f32.mrf.mxu3 }
 0x137   : > { %v1444_v10 = vpop.f32.mrf.mxu2  ;;  %v1159_v9 = vpop.f32.mrf.mxu0 }
 0x138   : > { %v12179_v40 = vadd.f32 %v1444_v10, %v1301_v53  ;;  %v10564_v53 = vld [vmem:[#allocation6 + $0x28] sm:$0xff] }
 0x139   : > { %v1303_v2 = vpop.f32.mrf.mxu1  ;;  %1875 = vmatpush.bf16.msrb.mxu3 %v10564_v53  ;;  %v16115_v53 = vunpack.c.l.b16 %v12197_v17 }
 0x13a   : > { %16343 = vst [vmem:[#allocation79_spill] sm:$0xff] %v12179_v40  ;;  %v1304_v19 = vadd.f32 %v1303_v2, %v1159_v9  ;;  %1198 = vmatmul.bf16.gmra.mxu0 %v856_v32  ;;  %1531 = vmatmul.bf16.gmra.mxu3 %v885_v56  ;;  %v12200_v2 = vld [vmem:[%s11495_s2 + $0x26c] sm:$0xf]  ;;  %v12203_v9 = vld [vmem:[%s11495_s2 + $0x278] sm:$0xf]  ;;  %v16116_v32 = vunpack.c.l.b16 %v12192_v33 }
 0x13b   : > { %16351 = vst [vmem:[#allocation83_spill] sm:$0xff] %v12200_v2  ;;  %v12206_v56 = vld [vmem:[%s11495_s2 + $0x194] sm:$0xf] }
 0x13c   : > { %1342 = vmatmul.bf16.gmra.mxu1 %v857_v46  ;;  %1486 = vmatmul.bf16.gmra.mxu2 %v858_v35  ;;  %16352 = vst [vmem:[#allocation84_spill] sm:$0xff] %v12203_v9  ;;  %v12209_v35 = vld [vmem:[%s11495_s2 + $0x1a0] sm:$0xf]  ;;  %v16358_v60 = vunpack.c.l.b16 %v12206_v56 }
 0x13d   : > { %v12189_v10 = vpop.f32.mrf.mxu3  ;;  %16353 = vst [vmem:[#allocation85_spill] sm:$0xff] %v12206_v56  ;;  %v16359_v30 = vunpack.c.l.b16 %v12209_v35  ;;  %1876 = vmatpush.bf16.msrb.mxu3 %v10563_v50  ;;  %v12247_v50 = vld [vmem:[%s11495_s2 + $0x1b0] sm:$0xff] }
 0x13e   : > { %16354 = vst [vmem:[#allocation86_spill] sm:$0xff] %v12209_v35  ;;  %v16133_v56 = vunpack.c.h.b16 %v12247_v50 }
 0x13f   : > { %v1447_v31 = vpop.f32.mrf.mxu2  ;;  %v1161_v43 = vpop.f32.mrf.mxu0  ;;  %16362 = vst [vmem:[#allocation90_spill] sm:$0xff] %v12247_v50 }
 0x140   : > { %v12194_v13 = vadd.f32 %v1447_v31, %v1304_v19  ;;  %v16118_v19 = vunpack.c.l.b16 %v12200_v2  ;;  %v16117_v31 = vunpack.c.l.b16 %v12203_v9  ;;  %v16131_v2 = vunpack.c.l.b16 %v12247_v50  ;;  %v10585_v50 = vld [vmem:[%s11495_s2 + $0x2a4] sm:$0xf0] }
 0x141   : > { %v1305_v36 = vpop.f32.mrf.mxu1 }
 0x142   : > { %16349 = vst [vmem:[#allocation81_spill] sm:$0xff] %v12194_v13  ;;  %v1306_v46 = vadd.f32 %v1305_v36, %v1161_v43  ;;  %v859_v43 = vpack.c.b16 %v16115_v53, %v16116_v32  ;;  %v888_v36 = vpack.c.b16 %v16117_v31, %v16118_v19  ;;  %v16357_v13 = vunpack.c.h.b16 %v12197_v17 }
 0x143   : > { %v861_v53 = vpack.c.b16 %v16359_v30, %v16358_v60  ;;  %v10561_v30 = vld [vmem:[#allocation6 + $0x10] sm:$0xff] }
 0x144   : > { %v860_v40 = vpack.c.b16 %v16357_v13, %v16356_v18 }
 0x145   : > { %v12219_v27 = vpop.f32.mrf.mxu3 }
 0x147   : > { %v1449_v8 = vpop.f32.mrf.mxu2  ;;  %v1164_v34 = vpop.f32.mrf.mxu0 }
 0x148   : > { %v12229_v23 = vadd.f32 %v1449_v8, %v1306_v46  ;;  %v10562_v8 = vld [vmem:[#allocation6 + $0x18] sm:$0xff] }
 0x149   : > { %v1308_v32 = vpop.f32.mrf.mxu1  ;;  %1877 = vmatpush.bf16.msrb.mxu3 %v10562_v8  ;;  %v12242_v46 = vld [vmem:[%s11495_s2 + $0x1a4] sm:$0xff] }
 0x14a   : > { %16355 = vst [vmem:[#allocation87_spill] sm:$0xff] %v12229_v23  ;;  %v1309_v31 = vadd.f32 %v1308_v32, %v1164_v34  ;;  %1203 = vmatmul.bf16.gmra.mxu0 %v859_v43  ;;  %1536 = vmatmul.bf16.gmra.mxu3 %v888_v36  ;;  %v12250_v34 = vld [vmem:[%s11495_s2 + $0x284] sm:$0xf]  ;;  %v490_v32 = vld [vmem:[%s11495_s2 + $0x290] sm:$0xf]  ;;  %v10560_v8 = vld [vmem:[#allocation6 + $0x8] sm:$0xff]  ;;  %v16134_v9 = vunpack.c.l.b16 %v12242_v46  ;;  %v16367_v33 = vunpack.c.h.b16 %v12242_v46 }
 0x14b   : > { %16360 = vst [vmem:[#allocation88_spill] sm:$0xff] %v12242_v46  ;;  %v12254_v36 = vld [vmem:[%s11495_s2 + $0x1ac] sm:$0xf] }
 0x14c   : > { %1347 = vmatmul.bf16.gmra.mxu1 %v860_v40  ;;  %1491 = vmatmul.bf16.gmra.mxu2 %v861_v53  ;;  %16363 = vst [vmem:[#allocation91_spill] sm:$0xff] %v12250_v34  ;;  %v12257_v40 = vld [vmem:[%s11495_s2 + $0x1b8] sm:$0xf]  ;;  %v16368_v23 = vunpack.c.l.b16 %v12254_v36 }
 0x14d   : > { %v12239_v18 = vpop.f32.mrf.mxu3  ;;  %16364 = vst [vmem:[#allocation92_spill] sm:$0xff] %v12254_v36  ;;  %1878 = vmatpush.bf16.msrb.mxu3 %v10561_v30  ;;  %v862_v30 = vpack.c.b16 %v16131_v2, %v16134_v9  ;;  %v16369_v57 = vunpack.c.l.b16 %v12257_v40  ;;  %v12292_v9 = vld [vmem:[%s11495_s2 + $0x1c8] sm:$0xff]  ;;  %v9151_v36 = vld [vmem:[%s11495_s2 + $0x29c] sm:$0xf] }
 0x14e   : > { %16365 = vst [vmem:[#allocation93_spill] sm:$0xff] %v12257_v40  ;;  %v16376_v40 = vunpack.c.h.b16 %v12292_v9 }
 0x14f   : > { %v1452_v13 = vpop.f32.mrf.mxu2  ;;  %v1166_v19 = vpop.f32.mrf.mxu0  ;;  %v864_v61 = vpack.c.b16 %v16369_v57, %v16368_v23  ;;  %16372 = vst [vmem:[#allocation97_spill] sm:$0xff] %v12292_v9  ;;  %v10579_v57 = vld [vmem:[#allocation6 + $0xa0] sm:$0xff] }
 0x150   : > { %v12244_v60 = vadd.f32 %v1452_v13, %v1309_v31  ;;  %v16132_v31 = vunpack.c.l.b16 %v12250_v34  ;;  %v807_v13 = vunpack.c.l.b16 %v490_v32  ;;  %v10695_v23 = vld [vmem:[#allocation6 + $0x1a0] sm:$0xff]  ;;  %2164 = vmatpush.bf16.msrb.mxu1 %v10579_v57 }
 0x151   : > { %v1310_v43 = vpop.f32.mrf.mxu1  ;;  %1879 = vmatpush.bf16.msrb.mxu3 %v10560_v8  ;;  %v863_v8 = vpack.c.b16 %v16133_v56, %v16367_v33  ;;  %3041 = vmatpush.bf16.msrb.mxu2 %v10695_v23  ;;  %v9152_v23 = vor.u32 %v10585_v50, %v9151_v36 }
 0x152   : > { %16361 = vst [vmem:[#allocation89_spill] sm:$0xff] %v12244_v60  ;;  %v1311_v53 = vadd.f32 %v1310_v43, %v1166_v19  ;;  %v891_v32 = vpack.c.b16 %v807_v13, %v16132_v31  ;;  %v10559_v43 = vld [vmem:[#allocation6] sm:$0xff] }
 0x153   : > { %v12287_v31 = vld [vmem:[%s11495_s2 + $0x1bc] sm:$0xff] }
 0x154   : > { %16370 = vst [vmem:[#allocation95_spill] sm:$0xff] %v12287_v31 }
 0x155   : > { %v12266_v60 = vpop.f32.mrf.mxu3  ;;  %1880 = vmatpush.bf16.msrb.mxu3 %v10559_v43 }
 0x157   : > { %v1454_v19 = vpop.f32.mrf.mxu2  ;;  %v1169_v17 = vpop.f32.mrf.mxu0 }
 0x158   : > { %v12274_v35 = vadd.f32 %v1454_v19, %v1311_v53 }
 0x159   : > { %v1313_v2 = vpop.f32.mrf.mxu1 }
 0x15a   : > { %16366 = vst [vmem:[#allocation94_spill] sm:$0xff] %v12274_v35  ;;  %v1314_v13 = vadd.f32 %v1313_v2, %v1169_v17  ;;  %1208 = vmatmul.bf16.gmra.mxu0 %v862_v30  ;;  %1541 = vmatmul.bf16.gmra.mxu3 %v891_v32  ;;  %v12295_v17 = vld [vmem:[%s11495_s2 + $0x1c4] sm:$0xf]  ;;  %v12298_v2 = vld [vmem:[%s11495_s2 + $0x1d0] sm:$0xf]  ;;  %v16144_v32 = vunpack.c.l.b16 %v12287_v31 }
 0x15b   : > { %16373 = vst [vmem:[#allocation98_spill] sm:$0xff] %v12295_v17  ;;  %v10567_v30 = vld [vmem:[#allocation6 + $0x40] sm:$0xff]  ;;  %v16145_v34 = vunpack.c.l.b16 %v12295_v17 }
 0x15c   : > { %1352 = vmatmul.bf16.gmra.mxu1 %v863_v8  ;;  %1496 = vmatmul.bf16.gmra.mxu2 %v864_v61  ;;  %16374 = vst [vmem:[#allocation99_spill] sm:$0xff] %v12298_v2  ;;  %v16142_v8 = vunpack.c.l.b16 %v12292_v9 }
 0x15d   : > { %v12284_v53 = vpop.f32.mrf.mxu3  ;;  %2024 = vmatpush.bf16.msrb.mxu0 %v10567_v30 }
 0x15e   : > { %v865_v57 = vpack.c.b16 %v16142_v8, %v16144_v32 }
 0x15f   : > { %v1457_v19 = vpop.f32.mrf.mxu2  ;;  %v1171_v56 = vpop.f32.mrf.mxu0 }
 0x160   : > { %v12289_v33 = vadd.f32 %v1457_v19, %v1314_v13  ;;  %v16143_v13 = vunpack.c.h.b16 %v12287_v31 }
 0x161   : > { %v1315_v43 = vpop.f32.mrf.mxu1 }
 0x162   : > { %16371 = vst [vmem:[#allocation96_spill] sm:$0xff] %v12289_v33  ;;  %v1316_v61 = vadd.f32 %v1315_v43, %v1171_v56  ;;  %v866_v30 = vpack.c.b16 %v16376_v40, %v16143_v13  ;;  %v16377_v33 = vunpack.c.l.b16 %v12298_v2  ;;  %v12332_v13 = vld [vmem:[%s11495_s2 + $0x1e0] sm:$0xff]  ;;  %v10557_v2 = vld [vmem:[%s11495_s2 + $0x8] sm:$0xf0] }
 0x163   : > { %16380 = vst [vmem:[#allocation103_spill] sm:$0xff] %v12332_v13 }
 0x164   : > { %v867_v35 = vpack.c.b16 %v16377_v33, %v16145_v34  ;;  %v12335_v33 = vld [vmem:[%s11495_s2 + $0x1dc] sm:$0xf]  ;;  %v9251_v34 = vld [vmem:[%s11495_s2] sm:$0xf] }
 0x165   : > { %v12308_v46 = vpop.f32.mrf.mxu3  ;;  %16381 = vst [vmem:[#allocation104_spill] sm:$0xff] %v12335_v33  ;;  %v16387_v31 = vunpack.c.l.b16 %v12335_v33 }
 0x167   : > { %v1459_v56 = vpop.f32.mrf.mxu2  ;;  %v1174_v19 = vpop.f32.mrf.mxu0 }
 0x168   : > { %v12314_v43 = vadd.f32 %v1459_v56, %v1316_v61  ;;  %v12329_v56 = vld [vmem:[%s11495_s2 + $0x1d4] sm:$0xff] }
 0x169   : > { %v1318_v1 = vpop.f32.mrf.mxu1  ;;  %16379 = vst [vmem:[#allocation102_spill] sm:$0xff] %v12329_v56 }
 0x16a   : > { %16375 = vst [vmem:[#allocation100_spill] sm:$0xff] %v12314_v43  ;;  %v1319_v8 = vadd.f32 %v1318_v1, %v1174_v19  ;;  %1213 = vmatmul.bf16.gmra.mxu0 %v865_v57  ;;  %1546 = vmatmul.bf16.gmra.mxu3 %v9152_v23  ;;  %v12338_v1 = vld [vmem:[%s11495_s2 + $0x1e8] sm:$0xf]  ;;  %v16152_v57 = vunpack.c.l.b16 %v12332_v13 }
 0x16b   : > { %16382 = vst [vmem:[#allocation105_spill] sm:$0xff] %v12338_v1 }
 0x16c   : > { %1357 = vmatmul.bf16.gmra.mxu1 %v866_v30  ;;  %1501 = vmatmul.bf16.gmra.mxu2 %v867_v35  ;;  %v16153_v35 = vunpack.c.l.b16 %v12329_v56  ;;  %v16386_v30 = vunpack.c.h.b16 %v12332_v13 }
 0x16d   : > { %v12324_v50 = vpop.f32.mrf.mxu3 }
 0x16f   : > { %v1462_v36 = vpop.f32.mrf.mxu2  ;;  %v1176_v40 = vpop.f32.mrf.mxu0 }
 0x170   : > { %v12326_v61 = vadd.f32 %v1462_v36, %v1319_v8  ;;  %v16385_v8 = vunpack.c.h.b16 %v12329_v56 }
 0x171   : > { %v1320_v32 = vpop.f32.mrf.mxu1 }
 0x172   : > { %16378 = vst [vmem:[#allocation101_spill] sm:$0xff] %v12326_v61  ;;  %v12340_v19 = vadd.f32 %v1320_v32, %v1176_v40  ;;  %v868_v32 = vpack.c.b16 %v16152_v57, %v16153_v35  ;;  %v9252_v40 = vor.u32 %v10557_v2, %v9251_v34  ;;  %v869_v36 = vpack.c.b16 %v16386_v30, %v16385_v8  ;;  %v10578_v34 = vld [vmem:[#allocation6 + $0x98] sm:$0xff] }
 0x173   : > { %2165 = vmatpush.bf16.msrb.mxu1 %v10578_v34  ;;  %v12371_v35 = vld [vmem:[%s11495_s2 + $0x1ec] sm:$0xff] }
 0x174   : > { %16383 = vst [vmem:[#allocation106_spill] sm:$0xff] %v12340_v19  ;;  %v16388_v19 = vunpack.c.l.b16 %v12338_v1  ;;  %v12374_v1 = vld [vmem:[%s11495_s2 + $0x1f8] sm:$0xff]  ;;  %v16397_v13 = vunpack.c.h.b16 %v12371_v35 }
 0x175   : > { %v12350_v17 = vpop.f32.mrf.mxu3  ;;  %16390 = vst [vmem:[#allocation109_spill] sm:$0xff] %v12371_v35  ;;  %v16398_v56 = vunpack.c.h.b16 %v12374_v1 }
 0x176   : > { %16391 = vst [vmem:[#allocation110_spill] sm:$0xff] %v12374_v1 }
 0x177   : > { %v12352_v9 = vpop.f32.mrf.mxu2  ;;  %v1179_v23 = vpop.f32.mrf.mxu0 }
 0x178   : > { %16384 = vst [vmem:[#allocation107_spill] sm:$0xff] %v12352_v9  ;;  %v870_v9 = vpack.c.b16 %v16388_v19, %v16387_v31  ;;  %v12377_v31 = vld [vmem:[%s11495_s2 + $0x18] sm:$0xff]  ;;  %v12380_v19 = vld [vmem:[%s11495_s2 + $0x1f4] sm:$0xf] }
 0x179   : > { %v1323_v61 = vpop.f32.mrf.mxu1  ;;  %16392 = vst [vmem:[#allocation111_spill] sm:$0xff] %v12380_v19  ;;  %v16399_v6 = vunpack.c.l.b16 %v12380_v19  ;;  %v16408_v19 = vunpack.c.l.b16 %v11595_v44 }
 0x17a   : > { %v1324_v43 = vadd.f32 %v1323_v61, %v1179_v23  ;;  %1218 = vmatmul.bf16.gmra.mxu0 %v868_v32  ;;  %1881 = vmatmul.bf16.vlgmr.msrb.gmra.mxu3 %v9252_v40  ;;  %v12383_v23 = vld [vmem:[%s11495_s2 + $0x200] sm:$0xf]  ;;  %v10706_v32 = vld [vmem:[#allocation6 + $0x1f8] sm:$0xff]  ;;  %v16165_v40 = vunpack.c.l.b16 %v12371_v35 }
 0x17b   : > { %16393 = vst [vmem:[#allocation112_spill] sm:$0xff] %v12383_v23  ;;  %3182 = vmatpush.bf16.msra.mxu3 %v10706_v32  ;;  %v872_v32 = vpack.c.b16 %v16398_v56, %v16397_v13  ;;  %v16400_v52 = vunpack.c.l.b16 %v12383_v23 }
 0x17c   : > { %1362 = vmatmul.bf16.gmra.mxu1 %v869_v36  ;;  %1506 = vmatmul.bf16.gmra.mxu2 %v870_v9  ;;  %v10577_v9 = vld [vmem:[#allocation6 + $0x90] sm:$0xff] }
 0x17d   : > { %v12366_v2 = vpop.f32.mrf.mxu3  ;;  %2166 = vmatpush.bf16.msrb.mxu1 %v10577_v9  ;;  %v16396_v9 = vunpack.c.l.b16 %v11542_v20 }
 0x17f   : > { %v1467_v57 = vpop.f32.mrf.mxu2  ;;  %v1181_v30 = vpop.f32.mrf.mxu0 }
 0x180   : > { %v12368_v8 = vadd.f32 %v1467_v57, %v1324_v43  ;;  %v16164_v43 = vunpack.c.l.b16 %v12374_v1  ;;  %v1564_v57 = vunpack.c.l.b16 %v12377_v31 }
 0x181   : > { %v1325_v61 = vpop.f32.mrf.mxu1 }
 0x182   : > { %16389 = vst [vmem:[#allocation108_spill] sm:$0xff] %v12368_v8  ;;  %v12385_v36 = vadd.f32 %v1325_v61, %v1181_v30  ;;  %v10576_v8 = vld [vmem:[#allocation6 + $0x88] sm:$0xff]  ;;  %v1570_v34 = vpack.c.b16 %v16396_v9, %v1564_v57 }
 0x183   : > { %2167 = vmatpush.bf16.msrb.mxu1 %v10576_v8  ;;  %v10714_v8 = vld [vmem:[#allocation6 + $0x238] sm:$0xff] }
 0x184   : > { %16394 = vst [vmem:[#allocation113_spill] sm:$0xff] %v12385_v36  ;;  %v871_v36 = vpack.c.b16 %v16164_v43, %v16165_v40  ;;  %v10694_v40 = vld [vmem:[#allocation6 + $0x198] sm:$0xff]  ;;  %3326 = vmatpush.bf16.msra.mxu0 %v10714_v8 }
 0x185   : > { %v12394_v30 = vpop.f32.mrf.mxu3  ;;  %3042 = vmatpush.bf16.msrb.mxu2 %v10694_v40  ;;  %v12417_v57 = vld [vmem:[%s11495_s2 + $0x204] sm:$0xff] }
 0x187   : > { %v12396_v61 = vpop.f32.mrf.mxu2  ;;  %v1184_v33 = vpop.f32.mrf.mxu0  ;;  %2168 = vmatpush.bf16.msrb.mxu1 %v10575_v11  ;;  %v16173_v11 = vunpack.c.l.b16 %v12417_v57 }
 0x188   : > { %16395 = vst [vmem:[#allocation114_spill] sm:$0xff] %v12396_v61  ;;  %v873_v61 = vpack.c.b16 %v16400_v52, %v16399_v6 }
 0x189   : > { %v1328_v42 = vpop.f32.mrf.mxu1 }
 0x18a   : > { %v1329_v43 = vadd.f32 %v1328_v42, %v1184_v33  ;;  %1223 = vmatmul.bf16.gmra.mxu0 %v871_v36  ;;  %1886 = vmatmul.bf16.gmra.mxu3 %v1570_v34  ;;  %v12420_v42 = vld [vmem:[%s11495_s2 + $0x210] sm:$0xff]  ;;  %v12423_v36 = vld [vmem:[%s11495_s2 + $0x20c] sm:$0xf]  ;;  %v12426_v34 = vld [vmem:[%s11495_s2 + $0x218] sm:$0xf] }
 0x18b   : > { %16402 = vst [vmem:[#allocation116_spill] sm:$0xff] %v12420_v42  ;;  %v16172_v40 = vunpack.c.l.b16 %v12420_v42  ;;  %v16411_v35 = vunpack.c.l.b16 %v12423_v36 }
 0x18c   : > { %1367 = vmatmul.bf16.gmra.mxu1 %v872_v32  ;;  %1511 = vmatmul.bf16.gmra.mxu2 %v873_v61  ;;  %16403 = vst [vmem:[#allocation117_spill] sm:$0xff] %v12423_v36  ;;  %v16410_v32 = vunpack.c.h.b16 %v12420_v42 }
 0x18d   : > { %v12412_v13 = vpop.f32.mrf.mxu3  ;;  %16404 = vst [vmem:[#allocation118_spill] sm:$0xff] %v12426_v34 }
 0x18f   : > { %v1472_v56 = vpop.f32.mrf.mxu2  ;;  %v1186_v6 = vpop.f32.mrf.mxu0 }
 0x190   : > { %v12414_v52 = vadd.f32 %v1472_v56, %v1329_v43  ;;  %v16409_v43 = vunpack.c.h.b16 %v12417_v57 }
 0x191   : > { %v1330_v33 = vpop.f32.mrf.mxu1 }
 0x192   : > { %16401 = vst [vmem:[#allocation115_spill] sm:$0xff] %v12414_v52  ;;  %v12428_v9 = vadd.f32 %v1330_v33, %v1186_v6  ;;  %v874_v6 = vpack.c.b16 %v16172_v40, %v16173_v11  ;;  %v16407_v33 = vunpack.c.l.b16 %v11545_v21  ;;  %v875_v8 = vpack.c.b16 %v16410_v32, %v16409_v43 }
 0x194   : > { %16405 = vst [vmem:[#allocation119_spill] sm:$0xff] %v12428_v9  ;;  %v1573_v61 = vpack.c.b16 %v16408_v19, %v16407_v33  ;;  %v1379_v19 = vadd.f32 %v12189_v10, %v11913_v24  ;;  %v16415_v10 = vunpack.c.l.b16 %v11598_v45 }
 0x195   : > { %v12436_v56 = vpop.f32.mrf.mxu3 }
 0x197   : > { %v12438_v23 = vpop.f32.mrf.mxu2  ;;  %v1189_v1 = vpop.f32.mrf.mxu0 }
 0x198   : > { %16406 = vst [vmem:[#allocation120_spill] sm:$0xff] %v12438_v23  ;;  %v16412_v23 = vunpack.c.l.b16 %v12426_v34 }
 0x199   : > { %v1333_v52 = vpop.f32.mrf.mxu1 }
 0x19a   : > { %v876_v9 = vpack.c.b16 %v16412_v23, %v16411_v35  ;;  %v1334_v40 = vadd.f32 %v1333_v52, %v1189_v1  ;;  %1228 = vmatmul.bf16.gmra.mxu0 %v874_v6  ;;  %1891 = vmatmul.bf16.gmra.mxu3 %v1573_v61  ;;  %v10556_v1 = vld [vmem:[%s11495_s2 + $0x4] sm:$0xf]  ;;  %v9253_v52 = vld [vmem:[%s11495_s2 + $0xc] sm:$0xf0]  ;;  %v1381_v61 = vadd.f32 %v12219_v27, %v11937_v51 }
 0x19b   : > { %v1384_v51 = vadd.f32 %v12239_v18, %v11957_v14 }
 0x19c   : > { %1372 = vmatmul.bf16.gmra.mxu1 %v875_v8  ;;  %1516 = vmatmul.bf16.gmra.mxu2 %v876_v9  ;;  %v9259_v8 = vld [vmem:[%s11495_s2 + $0x8] sm:$0xf]  ;;  %v10558_v9 = vld [vmem:[%s11495_s2 + $0x10] sm:$0xf0] }
 0x19d   : > { %v1522_v33 = vpop.f32.mrf.mxu3 }
 0x19e   : > { %v12458_v32 = vadd.f32 %v1522_v33, %v1379_v19 }
 0x19f   : > { %v1477_v43 = vpop.f32.mrf.mxu2  ;;  %v1191_v34 = vpop.f32.mrf.mxu0 }
 0x1a0   : > { %16413 = vst [vmem:[#allocation121_spill] sm:$0xff] %v12458_v32  ;;  %v12460_v11 = vadd.f32 %v1477_v43, %v1334_v40  ;;  %v16416_v40 = vunpack.c.l.b16 %v11641_v62  ;;  %v9260_v43 = vor.u32 %v10558_v9, %v9259_v8  ;;  %v1565_v8 = vunpack.c.h.b16 %v12377_v31 }
 0x1a1   : > { %v1335_v35 = vpop.f32.mrf.mxu1  ;;  %v16420_v31 = vunpack.c.l.b16 %v11558_v25 }
 0x1a2   : > { %v12462_v23 = vadd.f32 %v1335_v35, %v1191_v34  ;;  %v1576_v19 = vpack.c.b16 %v16416_v40, %v16415_v10  ;;  %v9256_v34 = vor.u32 %v10556_v1, %v9253_v52  ;;  %v338_v40 = vld [vmem:[%s11495_s2 + $0x20] sm:$0xf] }
 0x1a3   : > { %v10693_v52 = vld [vmem:[#allocation6 + $0x190] sm:$0xff]  ;;  %v1566_v9 = vunpack.c.l.b16 %v338_v40 }
 0x1a4   : > { %3043 = vmatpush.bf16.msrb.mxu2 %v10693_v52 }
 0x1a5   : > { %v1524_v6 = vpop.f32.mrf.mxu3 }
 0x1a6   : > { %v12472_v24 = vadd.f32 %v1524_v6, %v1381_v61 }
 0x1a7   : > { %v12470_v36 = vpop.f32.mrf.mxu2  ;;  %v1194_v33 = vpop.f32.mrf.mxu0 }
 0x1a8   : > { %16414 = vst [vmem:[#allocation122_spill] sm:$0xff] %v12472_v24 }
 0x1a9   : > { %v1338_v35 = vpop.f32.mrf.mxu1 }
 0x1aa   : > { %v1339_v32 = vadd.f32 %v1338_v35, %v1194_v33  ;;  %1896 = vmatmul.bf16.gmra.mxu3 %v1576_v19  ;;  %2025 = vmatmul.bf16.vlgmr.msrb.gmra.mxu0 %v9256_v34  ;;  %v1386_v19 = vadd.f32 %v12266_v60, %v11981_v22  ;;  %v16418_v33 = vunpack.c.l.b16 %v11686_v38  ;;  %v10705_v22 = vld [vmem:[#allocation6 + $0x1f0] sm:$0xff]  ;;  %v1389_v60 = vadd.f32 %v12284_v53, %v11999_v15 }
 0x1ab   : > { %3183 = vmatpush.bf16.msra.mxu3 %v10705_v22  ;;  %v16421_v15 = vunpack.c.l.b16 %v11689_v39  ;;  %v16422_v53 = vunpack.c.l.b16 %v11732_v59 }
 0x1ac   : > { %2169 = vmatmul.bf16.vlgmr.msrb.gmra.mxu1 %v9260_v43 }
 0x1ad   : > { %v1527_v27 = vpop.f32.mrf.mxu3 }
 0x1ae   : > { %v12480_v6 = vadd.f32 %v1527_v27, %v1384_v51  ;;  %v1572_v27 = vpack.c.b16 %v16420_v31, %v1566_v9  ;;  %v10713_v9 = vld [vmem:[#allocation6 + $0x230] sm:$0xff]  ;;  %v16424_v31 = vunpack.c.h.b16 %v11595_v44 }
 0x1af   : > { %v1482_v61 = vpop.f32.mrf.mxu2  ;;  %v1196_v42 = vpop.f32.mrf.mxu0  ;;  %3327 = vmatpush.bf16.msra.mxu0 %v10713_v9 }
 0x1b0   : > { %v12482_v24 = vadd.f32 %v1482_v61, %v1339_v32  ;;  %v16417_v32 = vunpack.c.l.b16 %v11644_v63 }
 0x1b1   : > { %v1340_v10 = vpop.f32.mrf.mxu1 }
 0x1b2   : > { %v12485_v1 = vadd.f32 %v1340_v10, %v1196_v42  ;;  %v1579_v43 = vpack.c.b16 %v16418_v33, %v16417_v32  ;;  %v16419_v42 = vunpack.c.h.b16 %v11542_v20  ;;  %v1391_v32 = vadd.f32 %v12308_v46, %v12023_v58 }
 0x1b3   : > { %v16426_v58 = vunpack.c.l.b16 %v11607_v48  ;;  %v1396_v48 = vadd.f32 %v12350_v17, %v12069_v28  ;;  %v16434_v28 = vunpack.c.l.b16 %v11653_v3 }
 0x1b4   : > { %v1571_v35 = vpack.c.b16 %v16419_v42, %v1565_v8 }
 0x1b5   : > { %v1529_v14 = vpop.f32.mrf.mxu3 }
 0x1b6   : > { %v12492_v34 = vadd.f32 %v1529_v14, %v1386_v19 }
 0x1b7   : > { %v12490_v18 = vpop.f32.mrf.mxu2  ;;  %v1199_v51 = vpop.f32.mrf.mxu0 }
 0x1b9   : > { %v1343_v61 = vpop.f32.mrf.mxu1 }
 0x1ba   : > { %v1344_v10 = vadd.f32 %v1343_v61, %v1199_v51  ;;  %1901 = vmatmul.bf16.gmra.mxu3 %v1579_v43  ;;  %2030 = vmatmul.bf16.gmra.mxu0 %v1571_v35  ;;  %v1582_v35 = vpack.c.b16 %v16422_v53, %v16421_v15  ;;  %v16423_v51 = vunpack.c.h.b16 %v11545_v21 }
 0x1bc   : > { %2174 = vmatmul.bf16.gmra.mxu1 %v1572_v27  ;;  %v1574_v27 = vpack.c.b16 %v16424_v31, %v16423_v51  ;;  %v16432_v51 = vunpack.c.h.b16 %v11641_v62 }
 0x1bd   : > { %v1532_v40 = vpop.f32.mrf.mxu3 }
 0x1be   : > { %v12504_v19 = vadd.f32 %v1532_v40, %v1389_v60  ;;  %v1394_v40 = vadd.f32 %v12324_v50, %v12039_v29  ;;  %v16429_v29 = vunpack.c.l.b16 %v11735_v5  ;;  %v16430_v50 = vunpack.c.l.b16 %v11774_v37 }
 0x1bf   : > { %v1487_v52 = vpop.f32.mrf.mxu2  ;;  %v1201_v8 = vpop.f32.mrf.mxu0 }
 0x1c0   : > { %v12506_v20 = vadd.f32 %v1487_v52, %v1344_v10  ;;  %v16425_v10 = vunpack.c.l.b16 %v11561_v26  ;;  %v1585_v53 = vpack.c.b16 %v16430_v50, %v16429_v29  ;;  %v16439_v29 = vunpack.c.h.b16 %v11644_v63 }
 0x1c1   : > { %v1345_v14 = vpop.f32.mrf.mxu1  ;;  %v16440_v50 = vunpack.c.h.b16 %v11686_v38 }
 0x1c2   : > { %v12508_v25 = vadd.f32 %v1345_v14, %v1201_v8  ;;  %v1575_v46 = vpack.c.b16 %v16426_v58, %v16425_v10 }
 0x1c5   : > { %v1534_v33 = vpop.f32.mrf.mxu3 }
 0x1c6   : > { %v12514_v42 = vadd.f32 %v1534_v33, %v1391_v32 }
 0x1c7   : > { %v12512_v43 = vpop.f32.mrf.mxu2  ;;  %v1204_v61 = vpop.f32.mrf.mxu0 }
 0x1c9   : > { %v1348_v22 = vpop.f32.mrf.mxu1 }
 0x1ca   : > { %v1349_v60 = vadd.f32 %v1348_v22, %v1204_v61  ;;  %1906 = vmatmul.bf16.gmra.mxu3 %v1582_v35  ;;  %2035 = vmatmul.bf16.gmra.mxu0 %v1574_v27  ;;  %v16431_v35 = vunpack.c.h.b16 %v11598_v45  ;;  %v16433_v61 = vunpack.c.l.b16 %v11610_v49  ;;  %v1399_v22 = vadd.f32 %v12366_v2, %v12089_v54 }
 0x1cb   : > { %v16437_v54 = vunpack.c.l.b16 %v11777_v16  ;;  %v16438_v2 = vunpack.c.l.b16 %v11806_v12 }
 0x1cc   : > { %2179 = vmatmul.bf16.gmra.mxu1 %v1575_v46  ;;  %v1577_v31 = vpack.c.b16 %v16432_v51, %v16431_v35  ;;  %v1578_v17 = vpack.c.b16 %v16434_v28, %v16433_v61  ;;  %v10692_v46 = vld [vmem:[#allocation6 + $0x188] sm:$0xff]  ;;  %v16441_v51 = vunpack.c.l.b16 %v11656_v4  ;;  %v1404_v61 = vadd.f32 %v12412_v13, %v12139_v7  ;;  %v16446_v13 = vld [vmem:[#allocation30_spill] sm:$0xff] }
 0x1cd   : > { %v1537_v52 = vpop.f32.mrf.mxu3  ;;  %3044 = vmatpush.bf16.msrb.mxu2 %v10692_v46  ;;  %v16445_v7 = vunpack.c.l.b16 %v11809_v55 }
 0x1ce   : > { %v12530_v21 = vadd.f32 %v1537_v52, %v1394_v40 }
 0x1cf   : > { %v1492_v8 = vpop.f32.mrf.mxu2  ;;  %v1206_v14 = vpop.f32.mrf.mxu0 }
 0x1d0   : > { %16427 = vst [vmem:[#allocation123_spill] sm:$0xff] %v12530_v21  ;;  %v12532_v44 = vadd.f32 %v1492_v8, %v1349_v60  ;;  %v1401_v8 = vadd.f32 %v12394_v30, %v12119_v0  ;;  %v16442_v0 = vunpack.c.l.b16 %v11698_v41  ;;  %v1406_v41 = vadd.f32 %v12436_v56, %v12169_v47 }
 0x1d1   : > { %v1350_v9 = vpop.f32.mrf.mxu1 }
 0x1d2   : > { %v12534_v26 = vadd.f32 %v1350_v9, %v1206_v14  ;;  %v1581_v30 = vpack.c.b16 %v16442_v0, %v16441_v51 }
 0x1d5   : > { %v1539_v32 = vpop.f32.mrf.mxu3 }
 0x1d6   : > { %v12540_v15 = vadd.f32 %v1539_v32, %v1396_v48  ;;  %v1588_v32 = vpack.c.b16 %v16438_v2, %v16437_v54 }
 0x1d7   : > { %v12538_v33 = vpop.f32.mrf.mxu2  ;;  %v1209_v27 = vpop.f32.mrf.mxu0 }
 0x1d8   : > { %16428 = vst [vmem:[#allocation124_spill] sm:$0xff] %v12540_v15 }
 0x1d9   : > { %v1353_v10 = vpop.f32.mrf.mxu1 }
 0x1da   : > { %v1354_v58 = vadd.f32 %v1353_v10, %v1209_v27  ;;  %1911 = vmatmul.bf16.gmra.mxu3 %v1585_v53  ;;  %2040 = vmatmul.bf16.gmra.mxu0 %v1577_v31  ;;  %v1580_v53 = vpack.c.b16 %v16440_v50, %v16439_v29  ;;  %v16452_v50 = vld [vmem:[#allocation24_spill] sm:$0xff] }
 0x1db   : > { %v16453_v47 = vunpack.c.l.b16 %v16452_v50  ;;  %v16464_v50 = vld [vmem:[#allocation26_spill] sm:$0xff] }
 0x1dc   : > { %2184 = vmatmul.bf16.gmra.mxu1 %v1578_v17 }
 0x1dd   : > { %v1542_v45 = vpop.f32.mrf.mxu3 }
 0x1de   : > { %v12556_v62 = vadd.f32 %v1542_v45, %v1399_v22 }
 0x1df   : > { %v1497_v60 = vpop.f32.mrf.mxu2  ;;  %v1211_v49 = vpop.f32.mrf.mxu0 }
 0x1e0   : > { %16435 = vst [vmem:[#allocation125_spill] sm:$0xff] %v12556_v62  ;;  %v12558_v40 = vadd.f32 %v1497_v60, %v1354_v58  ;;  %v10704_v58 = vld [vmem:[#allocation6 + $0x1e8] sm:$0xff] }
 0x1e1   : > { %v1355_v52 = vpop.f32.mrf.mxu1  ;;  %3184 = vmatpush.bf16.msra.mxu3 %v10704_v58  ;;  %v16455_v58 = vld [vmem:[#allocation43_spill] sm:$0xff] }
 0x1e2   : > { %v12560_v3 = vadd.f32 %v1355_v52, %v1211_v49  ;;  %v16447_v49 = vunpack.c.l.b16 %v16446_v13 }
 0x1e4   : > { %v1591_v52 = vpack.c.b16 %v16447_v49, %v16445_v7  ;;  %v16458_v7 = vld [vmem:[#allocation34_spill] sm:$0xff] }
 0x1e5   : > { %v1544_v14 = vpop.f32.mrf.mxu3  ;;  %v16459_v49 = vunpack.c.l.b16 %v16458_v7 }
 0x1e6   : > { %v12566_v48 = vadd.f32 %v1544_v14, %v1401_v8  ;;  %v16448_v8 = vunpack.c.h.b16 %v11689_v39  ;;  %v16449_v14 = vunpack.c.h.b16 %v11732_v59 }
 0x1e7   : > { %v12564_v9 = vpop.f32.mrf.mxu2  ;;  %v1214_v35 = vpop.f32.mrf.mxu0 }
 0x1e8   : > { %16436 = vst [vmem:[#allocation126_spill] sm:$0xff] %v12566_v48  ;;  %v1583_v54 = vpack.c.b16 %v16449_v14, %v16448_v8  ;;  %v16460_v8 = vunpack.c.h.b16 %v11735_v5  ;;  %v16461_v14 = vunpack.c.h.b16 %v11774_v37 }
 0x1e9   : > { %v1358_v31 = vpop.f32.mrf.mxu1 }
 0x1ea   : > { %v1359_v27 = vadd.f32 %v1358_v31, %v1214_v35  ;;  %1916 = vmatmul.bf16.gmra.mxu3 %v1588_v32  ;;  %2045 = vmatmul.bf16.gmra.mxu0 %v1580_v53  ;;  %v16450_v32 = vld [vmem:[#allocation22_spill] sm:$0xff]  ;;  %v10712_v53 = vld [vmem:[#allocation6 + $0x228] sm:$0xff] }
 0x1eb   : > { %v16451_v29 = vunpack.c.l.b16 %v16450_v32  ;;  %3328 = vmatpush.bf16.msra.mxu0 %v10712_v53  ;;  %v16454_v31 = vld [vmem:[#allocation38_spill] sm:$0xff]  ;;  %v16462_v32 = vld [vmem:[#allocation25_spill] sm:$0xff]  ;;  %v10691_v53 = vld [vmem:[#allocation6 + $0x180] sm:$0xff] }
 0x1ec   : > { %2189 = vmatmul.bf16.gmra.mxu1 %v1581_v30  ;;  %3045 = vmatpush.bf16.msrb.mxu2 %v10691_v53  ;;  %v16474_v53 = vld [vmem:[#allocation27_spill] sm:$0xff] }
 0x1ed   : > { %v1547_v28 = vpop.f32.mrf.mxu3  ;;  %v1584_v56 = vpack.c.b16 %v16453_v47, %v16451_v29  ;;  %v16463_v29 = vunpack.c.l.b16 %v16462_v32  ;;  %v16465_v47 = vunpack.c.l.b16 %v16464_v50  ;;  %v16473_v50 = vunpack.c.h.b16 %v11806_v12 }
 0x1ee   : > { %v12582_v63 = vadd.f32 %v1547_v28, %v1404_v61 }
 0x1ef   : > { %v1502_v17 = vpop.f32.mrf.mxu2  ;;  %v1216_v10 = vpop.f32.mrf.mxu0 }
 0x1f0   : > { %16443 = vst [vmem:[#allocation127_spill] sm:$0xff] %v12582_v63  ;;  %v12584_v38 = vadd.f32 %v1502_v17, %v1359_v27  ;;  %v16488_v63 = vld [vmem:[#allocation32_spill] sm:$0xff] }
 0x1f1   : > { %v1360_v4 = vpop.f32.mrf.mxu1  ;;  %v16489_v48 = vunpack.c.l.b16 %v16488_v63  ;;  %v10752_v63 = vld [vmem:[#allocation8 + $0xf8] sm:$0xff] }
 0x1f2   : > { %v12586_v46 = vadd.f32 %v1360_v4, %v1216_v10  ;;  %5922 = vmatpush.bf16.msra.mxu1 %v10752_v63  ;;  %v16502_v63 = vld [vmem:[#allocation36_spill] sm:$0xff] }
 0x1f5   : > { %v1549_v22 = vpop.f32.mrf.mxu3 }
 0x1f6   : > { %v12592_v60 = vadd.f32 %v1549_v22, %v1406_v41  ;;  %v16456_v41 = vld [vmem:[#allocation31_spill] sm:$0xff] }
 0x1f7   : > { %v12590_v45 = vpop.f32.mrf.mxu2  ;;  %v1219_v2 = vpop.f32.mrf.mxu0  ;;  %v16457_v22 = vunpack.c.l.b16 %v16456_v41 }
 0x1f8   : > { %16444 = vst [vmem:[#allocation128_spill] sm:$0xff] %v12592_v60  ;;  %v16486_v60 = vld [vmem:[#allocation29_spill] sm:$0xff] }
 0x1f9   : > { %v1363_v35 = vpop.f32.mrf.mxu1 }
 0x1fa   : > { %v1364_v51 = vadd.f32 %v1363_v35, %v1219_v2  ;;  %1921 = vmatmul.bf16.gmra.mxu3 %v1591_v52  ;;  %2050 = vmatmul.bf16.gmra.mxu0 %v1583_v54  ;;  %v1594_v52 = vpack.c.b16 %v16459_v49, %v16457_v22  ;;  %v1586_v54 = vpack.c.b16 %v16461_v14, %v16460_v8  ;;  %v16467_v49 = vld [vmem:[#allocation49_spill] sm:$0xff] }
 0x1fc   : > { %2194 = vmatmul.bf16.gmra.mxu1 %v1584_v56  ;;  %v1587_v56 = vpack.c.b16 %v16465_v47, %v16463_v29  ;;  %v16472_v29 = vunpack.c.h.b16 %v11777_v16 }
 0x1fd   : > { %v1882_v0 = vpop.f32.mrf.mxu3 }
 0x1fe   : > { %v1883_v39 = vadd.f32 %v1882_v0, %v16454_v31  ;;  %v16466_v31 = vld [vmem:[#allocation44_spill] sm:$0xff]  ;;  %v1589_v47 = vpack.c.b16 %v16473_v50, %v16472_v29 }
 0x1ff   : > { %v1507_v30 = vpop.f32.mrf.mxu2  ;;  %v1221_v59 = vpop.f32.mrf.mxu0  ;;  %v10703_v50 = vld [vmem:[#allocation6 + $0x1e0] sm:$0xff] }
 0x200   : > { %v12607_v27 = vadd.f32 %v1507_v30, %v1364_v51  ;;  %3185 = vmatpush.bf16.msra.mxu3 %v10703_v50  ;;  %v16487_v50 = vunpack.c.l.b16 %v16486_v60 }
 0x201   : > { %v1365_v61 = vpop.f32.mrf.mxu1 }
 0x202   : > { %v12609_v28 = vadd.f32 %v1365_v61, %v1221_v59  ;;  %v1593_v62 = vpack.c.b16 %v16489_v48, %v16487_v50  ;;  %v10760_v48 = vld [vmem:[#allocation8 + $0x138] sm:$0xff] }
 0x203   : > { %6066 = vmatpush.bf16.msra.mxu2 %v10760_v48  ;;  %v16503_v48 = vunpack.c.l.b16 %v16502_v63 }
 0x205   : > { %v1884_v17 = vpop.f32.mrf.mxu3 }
 0x206   : > { %v1885_v4 = vadd.f32 %v1884_v17, %v16455_v58 }
 0x207   : > { %v12611_v10 = vpop.f32.mrf.mxu2  ;;  %v1224_v2 = vpop.f32.mrf.mxu0 }
 0x209   : > { %v1368_v35 = vpop.f32.mrf.mxu1 }
 0x20a   : > { %v1369_v51 = vadd.f32 %v1368_v35, %v1224_v2  ;;  %1926 = vmatmul.bf16.gmra.mxu3 %v1594_v52  ;;  %2055 = vmatmul.bf16.gmra.mxu0 %v1586_v54  ;;  %v16468_v52 = vld [vmem:[#allocation35_spill] sm:$0xff]  ;;  %v16475_v35 = vunpack.c.l.b16 %v16474_v53 }
 0x20b   : > { %v16469_v14 = vunpack.c.l.b16 %v16468_v52  ;;  %v16470_v54 = vld [vmem:[#allocation39_spill] sm:$0xff] }
 0x20c   : > { %2199 = vmatmul.bf16.gmra.mxu1 %v1587_v56  ;;  %v16471_v2 = vunpack.c.l.b16 %v16470_v54 }
 0x20d   : > { %v1887_v0 = vpop.f32.mrf.mxu3 }
 0x20e   : > { %v12627_v5 = vadd.f32 %v1887_v0, %v16466_v31  ;;  %v1597_v32 = vpack.c.b16 %v16471_v2, %v16469_v14 }
 0x20f   : > { %v1512_v30 = vpop.f32.mrf.mxu2  ;;  %v1226_v59 = vpop.f32.mrf.mxu0 }
 0x210   : > { %v12629_v37 = vadd.f32 %v1512_v30, %v1369_v51  ;;  %v16476_v51 = vld [vmem:[#allocation28_spill] sm:$0xff] }
 0x211   : > { %v1370_v61 = vpop.f32.mrf.mxu1  ;;  %v16477_v0 = vunpack.c.l.b16 %v16476_v51  ;;  %v10611_v51 = vld [vmem:[%s11495_s2 + $0x50] sm:$0xf0] }
 0x212   : > { %v12631_v17 = vadd.f32 %v1370_v61, %v1226_v59 }
 0x213   : > { %v1590_v30 = vpack.c.b16 %v16477_v0, %v16475_v35  ;;  %v9359_v35 = vld [vmem:[%s11495_s2 + $0x48] sm:$0xf] }
 0x215   : > { %v1889_v58 = vpop.f32.mrf.mxu3 }
 0x216   : > { %v12636_v8 = vadd.f32 %v1889_v58, %v16467_v49  ;;  %v16478_v49 = vld [vmem:[#allocation50_spill] sm:$0xff] }
 0x217   : > { %v12633_v22 = vpop.f32.mrf.mxu2  ;;  %v1229_v56 = vpop.f32.mrf.mxu0 }
 0x219   : > { %v1373_v31 = vpop.f32.mrf.mxu1 }
 0x21a   : > { %v1374_v59 = vadd.f32 %v1373_v31, %v1229_v56  ;;  %1931 = vmatmul.bf16.gmra.mxu3 %v1597_v32  ;;  %2060 = vmatmul.bf16.gmra.mxu0 %v1589_v47  ;;  %v16479_v56 = vld [vmem:[#allocation55_spill] sm:$0xff]  ;;  %v16480_v47 = vld [vmem:[#allocation40_spill] sm:$0xff] }
 0x21b   : > { %v16481_v0 = vunpack.c.l.b16 %v16480_v47 }
 0x21c   : > { %2204 = vmatmul.bf16.gmra.mxu1 %v1590_v30  ;;  %v16482_v30 = vld [vmem:[#allocation45_spill] sm:$0xff] }
 0x21d   : > { %v1892_v61 = vpop.f32.mrf.mxu3  ;;  %v16483_v31 = vunpack.c.l.b16 %v16482_v30 }
 0x21e   : > { %v12651_v16 = vadd.f32 %v1892_v61, %v16478_v49 }
 0x21f   : > { %v1517_v58 = vpop.f32.mrf.mxu2  ;;  %v1231_v14 = vpop.f32.mrf.mxu0  ;;  %v1600_v61 = vpack.c.b16 %v16483_v31, %v16481_v0 }
 0x220   : > { %v12653_v12 = vadd.f32 %v1517_v58, %v1374_v59  ;;  %v16484_v59 = vunpack.c.h.b16 %v11809_v55  ;;  %v16485_v58 = vunpack.c.h.b16 %v16446_v13  ;;  %v10711_v55 = vld [vmem:[#allocation6 + $0x220] sm:$0xff] }
 0x221   : > { %v1375_v2 = vpop.f32.mrf.mxu1  ;;  %3329 = vmatpush.bf16.msra.mxu0 %v10711_v55  ;;  %v16498_v55 = vunpack.c.h.b16 %v16456_v41 }
 0x222   : > { %v12655_v29 = vadd.f32 %v1375_v2, %v1231_v14  ;;  %v1592_v49 = vpack.c.b16 %v16485_v58, %v16484_v59  ;;  %v9360_v14 = vor.u32 %v10611_v51, %v9359_v35  ;;  %v16491_v35 = vld [vmem:[#allocation57_spill] sm:$0xff]  ;;  %v16493_v58 = vld [vmem:[#allocation63_spill] sm:$0xff] }
 0x223   : > { %v10614_v59 = vld [vmem:[%s11495_s2 + $0x68] sm:$0xf0] }
 0x224   : > { %3046 = vmatmul.bf16.vlgmr.msrb.gmra.mxu2 %v9360_v14 }
 0x225   : > { %v1894_v53 = vpop.f32.mrf.mxu3 }
 0x226   : > { %v12660_v32 = vadd.f32 %v1894_v53, %v16479_v56 }
 0x227   : > { %v2026_v2 = vpop.f32.mrf.mxu0 }
 0x228   : > { %v2027_v15 = vadd.f32 %v2026_v2, %v1883_v39  ;;  %v16496_v2 = vld [vmem:[#allocation51_spill] sm:$0xff] }
 0x229   : > { %v2170_v53 = vpop.f32.mrf.mxu1  ;;  %v16497_v50 = vunpack.c.l.b16 %v16496_v2 }
 0x22a   : > { %v12674_v56 = vadd.f32 %v2170_v53, %v2027_v15  ;;  %1936 = vmatmul.bf16.gmra.mxu3 %v1600_v61  ;;  %2065 = vmatmul.bf16.gmra.mxu0 %v1592_v49  ;;  %v9371_v61 = vld [vmem:[%s11495_s2 + $0x60] sm:$0xf] }
 0x22c   : > { %16490 = vst [vmem:[#allocation30_spill] sm:$0xff] %v12674_v56  ;;  %2209 = vmatmul.bf16.gmra.mxu1 %v1593_v62  ;;  %v16494_v62 = vld [vmem:[#allocation46_spill] sm:$0xff] }
 0x22d   : > { %v1897_v13 = vpop.f32.mrf.mxu3  ;;  %v16495_v14 = vunpack.c.l.b16 %v16494_v62 }
 0x22e   : > { %v1898_v51 = vadd.f32 %v1897_v13, %v16491_v35  ;;  %v9372_v35 = vor.u32 %v10614_v59, %v9371_v61 }
 0x22f   : > { %v2028_v0 = vpop.f32.mrf.mxu0  ;;  %v1603_v53 = vpack.c.b16 %v16497_v50, %v16495_v14 }
 0x230   : > { %v2029_v60 = vadd.f32 %v2028_v0, %v1885_v4  ;;  %v16499_v4 = vunpack.c.h.b16 %v16458_v7  ;;  %v16505_v7 = vld [vmem:[#allocation65_spill] sm:$0xff] }
 0x231   : > { %v2172_v31 = vpop.f32.mrf.mxu1 }
 0x232   : > { %v12677_v39 = vadd.f32 %v2172_v31, %v2029_v60  ;;  %v1595_v13 = vpack.c.b16 %v16499_v4, %v16498_v55  ;;  %v16500_v60 = vld [vmem:[#allocation33_spill] sm:$0xff] }
 0x233   : > { %v16501_v31 = vunpack.c.l.b16 %v16500_v60  ;;  %v9383_v60 = vld [vmem:[%s11495_s2 + $0x78] sm:$0xf] }
 0x234   : > { %16492 = vst [vmem:[#allocation22_spill] sm:$0xff] %v12677_v39  ;;  %3051 = vmatmul.bf16.gmra.mxu2 %v9372_v35 }
 0x235   : > { %v1899_v15 = vpop.f32.mrf.mxu3  ;;  %v1596_v39 = vpack.c.b16 %v16503_v48, %v16501_v31  ;;  %v16508_v31 = vld [vmem:[#allocation52_spill] sm:$0xff]  ;;  %v16512_v48 = vunpack.c.h.b16 %v16468_v52 }
 0x236   : > { %v1900_v49 = vadd.f32 %v1899_v15, %v16493_v58 }
 0x237   : > { %v2031_v0 = vpop.f32.mrf.mxu0 }
 0x238   : > { %v2032_v15 = vadd.f32 %v2031_v0, %v12627_v5  ;;  %v10617_v5 = vld [vmem:[%s11495_s2 + $0x80] sm:$0xf0]  ;;  %v16507_v0 = vld [vmem:[#allocation71_spill] sm:$0xff] }
 0x239   : > { %v2175_v58 = vpop.f32.mrf.mxu1 }
 0x23a   : > { %v12695_v56 = vadd.f32 %v2175_v58, %v2032_v15  ;;  %1941 = vmatmul.bf16.gmra.mxu3 %v1603_v53  ;;  %2070 = vmatmul.bf16.gmra.mxu0 %v1595_v13  ;;  %v16509_v53 = vunpack.c.l.b16 %v16508_v31  ;;  %v16510_v13 = vld [vmem:[#allocation56_spill] sm:$0xff]  ;;  %v16513_v15 = vunpack.c.h.b16 %v16470_v54  ;;  %v16519_v54 = vld [vmem:[#allocation74_spill] sm:$0xff] }
 0x23c   : > { %16504 = vst [vmem:[#allocation24_spill] sm:$0xff] %v12695_v56  ;;  %2214 = vmatmul.bf16.gmra.mxu1 %v1596_v39  ;;  %v16511_v39 = vunpack.c.l.b16 %v16510_v13  ;;  %v1598_v58 = vpack.c.b16 %v16513_v15, %v16512_v48 }
 0x23d   : > { %v1902_v41 = vpop.f32.mrf.mxu3 }
 0x23e   : > { %v12698_v61 = vadd.f32 %v1902_v41, %v16505_v7  ;;  %v1606_v63 = vpack.c.b16 %v16511_v39, %v16509_v53  ;;  %v16514_v7 = vld [vmem:[#allocation37_spill] sm:$0xff] }
 0x23f   : > { %v2033_v59 = vpop.f32.mrf.mxu0 }
 0x240   : > { %v2034_v14 = vadd.f32 %v2033_v59, %v12636_v8  ;;  %v9384_v8 = vor.u32 %v10617_v5, %v9383_v60  ;;  %v16515_v59 = vunpack.c.l.b16 %v16514_v7  ;;  %v9395_v7 = vld [vmem:[%s11495_s2 + $0x90] sm:$0xf] }
 0x241   : > { %v2177_v50 = vpop.f32.mrf.mxu1 }
 0x242   : > { %v12701_v55 = vadd.f32 %v2177_v50, %v2034_v14  ;;  %v16516_v14 = vld [vmem:[#allocation41_spill] sm:$0xff] }
 0x243   : > { %v16517_v50 = vunpack.c.l.b16 %v16516_v14 }
 0x244   : > { %16506 = vst [vmem:[#allocation38_spill] sm:$0xff] %v12701_v55  ;;  %3056 = vmatmul.bf16.gmra.mxu2 %v9384_v8 }
 0x245   : > { %v1904_v4 = vpop.f32.mrf.mxu3  ;;  %v1599_v55 = vpack.c.b16 %v16517_v50, %v16515_v59  ;;  %v16522_v59 = vld [vmem:[#allocation58_spill] sm:$0xff]  ;;  %v16526_v50 = vunpack.c.h.b16 %v16480_v47  ;;  %v10702_v47 = vld [vmem:[#allocation6 + $0x1d8] sm:$0xff] }
 0x246   : > { %v12706_v35 = vadd.f32 %v1904_v4, %v16507_v0  ;;  %3186 = vmatpush.bf16.msra.mxu3 %v10702_v47 }
 0x247   : > { %v2036_v41 = vpop.f32.mrf.mxu0 }
 0x248   : > { %v2037_v4 = vadd.f32 %v2036_v41, %v12651_v16  ;;  %v10620_v16 = vld [vmem:[%s11495_s2 + $0x98] sm:$0xf0] }
 0x249   : > { %v2180_v0 = vpop.f32.mrf.mxu1  ;;  %v16521_v41 = vld [vmem:[#allocation79_spill] sm:$0xff] }
 0x24a   : > { %v12721_v56 = vadd.f32 %v2180_v0, %v2037_v4  ;;  %1946 = vmatmul.bf16.gmra.mxu3 %v1606_v63  ;;  %2075 = vmatmul.bf16.gmra.mxu0 %v1598_v58  ;;  %v16523_v63 = vunpack.c.l.b16 %v16522_v59  ;;  %v16524_v58 = vld [vmem:[#allocation64_spill] sm:$0xff]  ;;  %v16527_v4 = vunpack.c.h.b16 %v16482_v30 }
 0x24c   : > { %16518 = vst [vmem:[#allocation43_spill] sm:$0xff] %v12721_v56  ;;  %2219 = vmatmul.bf16.gmra.mxu1 %v1599_v55  ;;  %v16525_v55 = vunpack.c.l.b16 %v16524_v58  ;;  %v1601_v0 = vpack.c.b16 %v16527_v4, %v16526_v50 }
 0x24d   : > { %v1907_v52 = vpop.f32.mrf.mxu3 }
 0x24e   : > { %v12724_v60 = vadd.f32 %v1907_v52, %v16519_v54  ;;  %v1609_v14 = vpack.c.b16 %v16525_v55, %v16523_v63  ;;  %v16528_v54 = vld [vmem:[#allocation42_spill] sm:$0xff] }
 0x24f   : > { %v2038_v5 = vpop.f32.mrf.mxu0 }
 0x250   : > { %v2039_v53 = vadd.f32 %v2038_v5, %v12660_v32  ;;  %v9396_v32 = vor.u32 %v10620_v16, %v9395_v7  ;;  %v16529_v5 = vunpack.c.l.b16 %v16528_v54  ;;  %v16533_v7 = vld [vmem:[#allocation81_spill] sm:$0xff]  ;;  %v16535_v54 = vld [vmem:[#allocation87_spill] sm:$0xff] }
 0x251   : > { %v2182_v39 = vpop.f32.mrf.mxu1 }
 0x252   : > { %v12727_v48 = vadd.f32 %v2182_v39, %v2039_v53  ;;  %v16530_v53 = vld [vmem:[#allocation47_spill] sm:$0xff] }
 0x253   : > { %v16531_v39 = vunpack.c.l.b16 %v16530_v53 }
 0x254   : > { %16520 = vst [vmem:[#allocation31_spill] sm:$0xff] %v12727_v48  ;;  %3061 = vmatmul.bf16.gmra.mxu2 %v9396_v32 }
 0x255   : > { %v1909_v15 = vpop.f32.mrf.mxu3  ;;  %v1602_v48 = vpack.c.b16 %v16531_v39, %v16529_v5  ;;  %v16538_v5 = vld [vmem:[#allocation72_spill] sm:$0xff] }
 0x256   : > { %v12732_v8 = vadd.f32 %v1909_v15, %v16521_v41  ;;  %v16539_v53 = vunpack.c.l.b16 %v16538_v5 }
 0x257   : > { %v2041_v52 = vpop.f32.mrf.mxu0 }
 0x258   : > { %v2042_v56 = vadd.f32 %v2041_v52, %v1898_v51  ;;  %v10710_v51 = vld [vmem:[#allocation6 + $0x218] sm:$0xff]  ;;  %v10623_v52 = vld [vmem:[%s11495_s2 + $0xb0] sm:$0xf0] }
 0x259   : > { %v2185_v15 = vpop.f32.mrf.mxu1  ;;  %3330 = vmatpush.bf16.msra.mxu0 %v10710_v51 }
 0x25a   : > { %v12746_v41 = vadd.f32 %v2185_v15, %v2042_v56  ;;  %1951 = vmatmul.bf16.gmra.mxu3 %v1609_v14  ;;  %2080 = vmatmul.bf16.gmra.mxu0 %v1601_v0  ;;  %v9407_v56 = vld [vmem:[%s11495_s2 + $0xa8] sm:$0xf]  ;;  %v16536_v0 = vld [vmem:[#allocation66_spill] sm:$0xff]  ;;  %v16540_v15 = vunpack.c.h.b16 %v16494_v62 }
 0x25c   : > { %16532 = vst [vmem:[#allocation34_spill] sm:$0xff] %v12746_v41  ;;  %2224 = vmatmul.bf16.gmra.mxu1 %v1602_v48  ;;  %v16537_v48 = vunpack.c.l.b16 %v16536_v0 }
 0x25d   : > { %v1912_v30 = vpop.f32.mrf.mxu3 }
 0x25e   : > { %v12749_v16 = vadd.f32 %v1912_v30, %v16533_v7  ;;  %v1612_v39 = vpack.c.b16 %v16539_v53, %v16537_v48  ;;  %v10751_v30 = vld [vmem:[#allocation8 + $0xf0] sm:$0xff] }
 0x25f   : > { %v2043_v63 = vpop.f32.mrf.mxu0  ;;  %v10759_v7 = vld [vmem:[#allocation8 + $0x130] sm:$0xff]  ;;  %5923 = vmatpush.bf16.msra.mxu1 %v10751_v30 }
 0x260   : > { %v2044_v55 = vadd.f32 %v2043_v63, %v1900_v49  ;;  %v16541_v49 = vunpack.c.h.b16 %v16496_v2  ;;  %v9408_v63 = vor.u32 %v10623_v52, %v9407_v56  ;;  %6067 = vmatpush.bf16.msra.mxu2 %v10759_v7  ;;  %v16547_v56 = vld [vmem:[#allocation89_spill] sm:$0xff]  ;;  %v16549_v30 = vld [vmem:[#allocation94_spill] sm:$0xff] }
 0x261   : > { %v2187_v50 = vpop.f32.mrf.mxu1 }
 0x262   : > { %v12751_v4 = vadd.f32 %v2187_v50, %v2044_v55  ;;  %v1604_v47 = vpack.c.b16 %v16541_v49, %v16540_v15  ;;  %v16542_v50 = vld [vmem:[#allocation48_spill] sm:$0xff]  ;;  %v10626_v49 = vld [vmem:[%s11495_s2 + $0xc8] sm:$0xf0] }
 0x263   : > { %v16543_v51 = vunpack.c.l.b16 %v16542_v50  ;;  %v9419_v15 = vld [vmem:[%s11495_s2 + $0xc0] sm:$0xf]  ;;  %v16554_v50 = vunpack.c.h.b16 %v16508_v31 }
 0x264   : > { %16534 = vst [vmem:[#allocation25_spill] sm:$0xff] %v12751_v4  ;;  %v16544_v4 = vld [vmem:[#allocation53_spill] sm:$0xff]  ;;  %3066 = vmatmul.bf16.gmra.mxu2 %v9408_v63 }
 0x265   : > { %v1914_v32 = vpop.f32.mrf.mxu3  ;;  %v16545_v41 = vunpack.c.l.b16 %v16544_v4 }
 0x266   : > { %v12756_v14 = vadd.f32 %v1914_v32, %v16535_v54 }
 0x267   : > { %v2046_v55 = vpop.f32.mrf.mxu0  ;;  %v1605_v32 = vpack.c.b16 %v16545_v41, %v16543_v51  ;;  %v16555_v51 = vunpack.c.h.b16 %v16510_v13  ;;  %v16561_v13 = vld [vmem:[#allocation96_spill] sm:$0xff] }
 0x268   : > { %v2047_v54 = vadd.f32 %v2046_v55, %v12698_v61 }
 0x269   : > { %v2190_v21 = vpop.f32.mrf.mxu1 }
 0x26a   : > { %v12771_v62 = vadd.f32 %v2190_v21, %v2047_v54  ;;  %1956 = vmatmul.bf16.gmra.mxu3 %v1612_v39  ;;  %2085 = vmatmul.bf16.gmra.mxu0 %v1604_v47  ;;  %v16550_v21 = vld [vmem:[#allocation73_spill] sm:$0xff]  ;;  %v16552_v39 = vld [vmem:[#allocation80_spill] sm:$0xff] }
 0x26b   : > { %v16551_v63 = vunpack.c.l.b16 %v16550_v21  ;;  %v16553_v47 = vunpack.c.l.b16 %v16552_v39 }
 0x26c   : > { %16546 = vst [vmem:[#allocation26_spill] sm:$0xff] %v12771_v62  ;;  %2229 = vmatmul.bf16.gmra.mxu1 %v1605_v32  ;;  %v1607_v32 = vpack.c.b16 %v16555_v51, %v16554_v50 }
 0x26d   : > { %v1917_v2 = vpop.f32.mrf.mxu3  ;;  %v1615_v55 = vpack.c.b16 %v16553_v47, %v16551_v63 }
 0x26e   : > { %v1918_v52 = vadd.f32 %v1917_v2, %v16547_v56  ;;  %v16556_v2 = vld [vmem:[#allocation54_spill] sm:$0xff] }
 0x26f   : > { %v2048_v48 = vpop.f32.mrf.mxu0  ;;  %v16557_v56 = vunpack.c.l.b16 %v16556_v2  ;;  %v9431_v2 = vld [vmem:[%s11495_s2 + $0xd8] sm:$0xf] }
 0x270   : > { %v2049_v4 = vadd.f32 %v2048_v48, %v12706_v35  ;;  %v9420_v35 = vor.u32 %v10626_v49, %v9419_v15  ;;  %v16558_v48 = vld [vmem:[#allocation61_spill] sm:$0xff] }
 0x271   : > { %v2192_v41 = vpop.f32.mrf.mxu1 }
 0x272   : > { %v12775_v53 = vadd.f32 %v2192_v41, %v2049_v4  ;;  %v16559_v4 = vunpack.c.l.b16 %v16558_v48 }
 0x274   : > { %16548 = vst [vmem:[#allocation44_spill] sm:$0xff] %v12775_v53  ;;  %v1608_v41 = vpack.c.b16 %v16559_v4, %v16557_v56  ;;  %3071 = vmatmul.bf16.gmra.mxu2 %v9420_v35  ;;  %v16564_v56 = vld [vmem:[#allocation82_spill] sm:$0xff] }
 0x275   : > { %v1919_v61 = vpop.f32.mrf.mxu3 }
 0x276   : > { %v12780_v7 = vadd.f32 %v1919_v61, %v16549_v30 }
 0x277   : > { %v2051_v54 = vpop.f32.mrf.mxu0 }
 0x278   : > { %v2052_v61 = vadd.f32 %v2051_v54, %v12724_v60  ;;  %v10629_v60 = vld [vmem:[%s11495_s2 + $0xe0] sm:$0xf0] }
 0x279   : > { %v2195_v30 = vpop.f32.mrf.mxu1  ;;  %v16563_v54 = vld [vmem:[#allocation100_spill] sm:$0xff] }
 0x27a   : > { %v12795_v53 = vadd.f32 %v2195_v30, %v2052_v61  ;;  %1961 = vmatmul.bf16.gmra.mxu3 %v1615_v55  ;;  %2090 = vmatmul.bf16.gmra.mxu0 %v1607_v32  ;;  %v16565_v55 = vunpack.c.l.b16 %v16564_v56  ;;  %v16566_v32 = vld [vmem:[#allocation88_spill] sm:$0xff]  ;;  %v16569_v61 = vunpack.c.h.b16 %v16524_v58  ;;  %v16575_v58 = vld [vmem:[#allocation101_spill] sm:$0xff] }
 0x27b   : > { %v16567_v48 = vunpack.c.l.b16 %v16566_v32 }
 0x27c   : > { %16560 = vst [vmem:[#allocation49_spill] sm:$0xff] %v12795_v53  ;;  %2234 = vmatmul.bf16.gmra.mxu1 %v1608_v41  ;;  %v16568_v41 = vunpack.c.h.b16 %v16522_v59 }
 0x27d   : > { %v1922_v31 = vpop.f32.mrf.mxu3  ;;  %v1618_v4 = vpack.c.b16 %v16567_v48, %v16565_v55 }
 0x27e   : > { %v12798_v15 = vadd.f32 %v1922_v31, %v16561_v13  ;;  %v1610_v30 = vpack.c.b16 %v16569_v61, %v16568_v41  ;;  %v16570_v13 = vld [vmem:[#allocation62_spill] sm:$0xff] }
 0x27f   : > { %v2053_v49 = vpop.f32.mrf.mxu0  ;;  %v10701_v41 = vld [vmem:[#allocation6 + $0x1d0] sm:$0xff] }
 0x280   : > { %v2054_v63 = vadd.f32 %v2053_v49, %v12732_v8  ;;  %v9432_v8 = vor.u32 %v10629_v60, %v9431_v2  ;;  %v16571_v49 = vunpack.c.l.b16 %v16570_v13  ;;  %3187 = vmatpush.bf16.msra.mxu3 %v10701_v41 }
 0x281   : > { %v2197_v47 = vpop.f32.mrf.mxu1 }
 0x282   : > { %v12801_v50 = vadd.f32 %v2197_v47, %v2054_v63  ;;  %v16572_v63 = vld [vmem:[#allocation69_spill] sm:$0xff] }
 0x283   : > { %v16573_v47 = vunpack.c.l.b16 %v16572_v63 }
 0x284   : > { %16562 = vst [vmem:[#allocation35_spill] sm:$0xff] %v12801_v50  ;;  %3076 = vmatmul.bf16.gmra.mxu2 %v9432_v8  ;;  %v16578_v8 = vld [vmem:[#allocation107_spill] sm:$0xff] }
 0x285   : > { %v1924_v51 = vpop.f32.mrf.mxu3  ;;  %v1611_v50 = vpack.c.b16 %v16573_v47, %v16571_v49  ;;  %v9443_v49 = vld [vmem:[%s11495_s2 + $0xf0] sm:$0xf]  ;;  %v16581_v47 = vld [vmem:[#allocation95_spill] sm:$0xff] }
 0x286   : > { %v12806_v35 = vadd.f32 %v1924_v51, %v16563_v54 }
 0x287   : > { %v2056_v31 = vpop.f32.mrf.mxu0 }
 0x288   : > { %v2057_v51 = vadd.f32 %v2056_v31, %v12749_v16  ;;  %v16577_v16 = vld [vmem:[#allocation106_spill] sm:$0xff] }
 0x289   : > { %v2200_v54 = vpop.f32.mrf.mxu1  ;;  %v1465_v31 = vadd.f32 %v16578_v8, %v16577_v16  ;;  %v16587_v16 = vld [vmem:[#allocation77_spill] sm:$0xff] }
 0x28a   : > { %v12821_v53 = vadd.f32 %v2200_v54, %v2057_v51  ;;  %1966 = vmatmul.bf16.gmra.mxu3 %v1618_v4  ;;  %2095 = vmatmul.bf16.gmra.mxu0 %v1610_v30  ;;  %v10632_v4 = vld [vmem:[%s11495_s2 + $0xf8] sm:$0xf0]  ;;  %v16582_v51 = vunpack.c.l.b16 %v16581_v47  ;;  %v16588_v8 = vunpack.c.l.b16 %v16587_v16 }
 0x28b   : > { %v16594_v16 = vld [vmem:[#allocation97_spill] sm:$0xff] }
 0x28c   : > { %16574 = vst [vmem:[#allocation39_spill] sm:$0xff] %v12821_v53  ;;  %2239 = vmatmul.bf16.gmra.mxu1 %v1611_v50  ;;  %v16579_v50 = vld [vmem:[#allocation90_spill] sm:$0xff] }
 0x28d   : > { %v1927_v59 = vpop.f32.mrf.mxu3  ;;  %v16580_v63 = vunpack.c.l.b16 %v16579_v50 }
 0x28e   : > { %v12824_v2 = vadd.f32 %v1927_v59, %v16575_v58  ;;  %v16584_v59 = vunpack.c.h.b16 %v16538_v5  ;;  %v10758_v5 = vld [vmem:[#allocation8 + $0x128] sm:$0xff] }
 0x28f   : > { %v2058_v60 = vpop.f32.mrf.mxu0  ;;  %v1621_v54 = vpack.c.b16 %v16582_v51, %v16580_v63  ;;  %6068 = vmatpush.bf16.msra.mxu2 %v10758_v5  ;;  %v16599_v5 = vunpack.c.h.b16 %v16552_v39 }
 0x290   : > { %v2059_v55 = vadd.f32 %v2058_v60, %v12756_v14  ;;  %v16583_v14 = vunpack.c.h.b16 %v16536_v0  ;;  %v9444_v60 = vor.u32 %v10632_v4, %v9443_v49  ;;  %v10750_v0 = vld [vmem:[#allocation8 + $0xe8] sm:$0xff]  ;;  %v16590_v4 = vld [vmem:[#allocation108_spill] sm:$0xff] }
 0x291   : > { %v2202_v48 = vpop.f32.mrf.mxu1  ;;  %5924 = vmatpush.bf16.msra.mxu1 %v10750_v0 }
 0x292   : > { %v12827_v61 = vadd.f32 %v2202_v48, %v2059_v55  ;;  %v1613_v58 = vpack.c.b16 %v16584_v59, %v16583_v14  ;;  %v16585_v48 = vld [vmem:[#allocation70_spill] sm:$0xff]  ;;  %v16592_v59 = vld [vmem:[#allocation113_spill] sm:$0xff] }
 0x293   : > { %v16586_v41 = vunpack.c.l.b16 %v16585_v48  ;;  %v10635_v48 = vld [vmem:[%s11495_s2 + $0x110] sm:$0xf0] }
 0x294   : > { %16576 = vst [vmem:[#allocation27_spill] sm:$0xff] %v12827_v61  ;;  %3081 = vmatmul.bf16.gmra.mxu2 %v9444_v60 }
 0x295   : > { %v1929_v13 = vpop.f32.mrf.mxu3  ;;  %v1614_v61 = vpack.c.b16 %v16588_v8, %v16586_v41  ;;  %v16595_v8 = vunpack.c.l.b16 %v16594_v16 }
 0x296   : > { %v12833_v30 = vadd.f32 %v1929_v13, %v1465_v31  ;;  %v10709_v13 = vld [vmem:[#allocation6 + $0x210] sm:$0xff] }
 0x297   : > { %v2061_v55 = vpop.f32.mrf.mxu0  ;;  %3331 = vmatpush.bf16.msra.mxu0 %v10709_v13 }
 0x298   : > { %v2062_v53 = vadd.f32 %v2061_v55, %v1918_v52 }
 0x299   : > { %v2205_v31 = vpop.f32.mrf.mxu1 }
 0x29a   : > { %v12847_v62 = vadd.f32 %v2205_v31, %v2062_v53  ;;  %1971 = vmatmul.bf16.gmra.mxu3 %v1621_v54  ;;  %2100 = vmatmul.bf16.gmra.mxu0 %v1613_v58  ;;  %v12855_v54 = vpop.f32.mrf.mxu2  ;;  %v16593_v58 = vld [vmem:[#allocation114_spill] sm:$0xff] }
 0x29b   : > { %v1470_v60 = vadd.f32 %v16593_v58, %v16592_v59  ;;  %v16596_v31 = vld [vmem:[#allocation102_spill] sm:$0xff]  ;;  %v16602_v59 = vld [vmem:[#allocation85_spill] sm:$0xff] }
 0x29c   : > { %16589 = vst [vmem:[#allocation28_spill] sm:$0xff] %v12847_v62  ;;  %2244 = vmatmul.bf16.gmra.mxu1 %v1614_v61  ;;  %v9455_v61 = vld [vmem:[%s11495_s2 + $0x108] sm:$0xf]  ;;  %v16597_v13 = vunpack.c.l.b16 %v16596_v31  ;;  %v16603_v58 = vunpack.c.l.b16 %v16602_v59 }
 0x29d   : > { %v1932_v49 = vpop.f32.mrf.mxu3  ;;  %v16611_v59 = vld [vmem:[#allocation103_spill] sm:$0xff] }
 0x29e   : > { %v12850_v63 = vadd.f32 %v1932_v49, %v16590_v4  ;;  %v1624_v0 = vpack.c.b16 %v16597_v13, %v16595_v8  ;;  %v9456_v4 = vor.u32 %v10635_v48, %v9455_v61  ;;  %v16606_v61 = vld [vmem:[#allocation115_spill] sm:$0xff] }
 0x29f   : > { %v2063_v52 = vpop.f32.mrf.mxu0 }
 0x2a0   : > { %v2064_v51 = vadd.f32 %v2063_v52, %v12780_v7  ;;  %v16598_v7 = vunpack.c.h.b16 %v16550_v21 }
 0x2a1   : > { %v2207_v14 = vpop.f32.mrf.mxu1 }
 0x2a2   : > { %v12853_v53 = vadd.f32 %v2207_v14, %v2064_v51  ;;  %v1616_v49 = vpack.c.b16 %v16599_v5, %v16598_v7  ;;  %v16600_v51 = vld [vmem:[#allocation78_spill] sm:$0xff] }
 0x2a3   : > { %v16601_v14 = vunpack.c.l.b16 %v16600_v51 }
 0x2a4   : > { %16591 = vst [vmem:[#allocation50_spill] sm:$0xff] %v12853_v53  ;;  %3086 = vmatmul.bf16.gmra.mxu2 %v9456_v4  ;;  %v16609_v4 = vld [vmem:[#allocation119_spill] sm:$0xff] }
 0x2a5   : > { %v1934_v55 = vpop.f32.mrf.mxu3  ;;  %v1617_v53 = vpack.c.b16 %v16603_v58, %v16601_v14  ;;  %v16612_v58 = vunpack.c.l.b16 %v16611_v59 }
 0x2a6   : > { %v12861_v41 = vadd.f32 %v1934_v55, %v1470_v60 }
 0x2a7   : > { %v2066_v52 = vpop.f32.mrf.mxu0  ;;  %v12878_v21 = vpop.f32.mrf.mxu2 }
 0x2a8   : > { %v2067_v60 = vadd.f32 %v2066_v52, %v12798_v15  ;;  %16605 = vst [vmem:[#allocation40_spill] sm:$0xff] %v12878_v21  ;;  %v16610_v52 = vld [vmem:[#allocation120_spill] sm:$0xff] }
 0x2a9   : > { %v2210_v55 = vpop.f32.mrf.mxu1  ;;  %v1475_v51 = vadd.f32 %v16610_v52, %v16609_v4  ;;  %v16619_v4 = vld [vmem:[#allocation92_spill] sm:$0xff] }
 0x2aa   : > { %v12876_v62 = vadd.f32 %v2210_v55, %v2067_v60  ;;  %1976 = vmatmul.bf16.gmra.mxu3 %v1624_v0  ;;  %2105 = vmatmul.bf16.gmra.mxu0 %v1616_v49  ;;  %v9467_v49 = vld [vmem:[%s11495_s2 + $0x120] sm:$0xf]  ;;  %v16613_v60 = vld [vmem:[#allocation109_spill] sm:$0xff]  ;;  %v16620_v52 = vunpack.c.l.b16 %v16619_v4 }
 0x2ab   : > { %v16614_v55 = vunpack.c.l.b16 %v16613_v60 }
 0x2ac   : > { %16604 = vst [vmem:[#allocation55_spill] sm:$0xff] %v12876_v62  ;;  %2249 = vmatmul.bf16.gmra.mxu1 %v1617_v53  ;;  %v10638_v53 = vld [vmem:[%s11495_s2 + $0x128] sm:$0xf0] }
 0x2ad   : > { %v1937_v39 = vpop.f32.mrf.mxu3 }
 0x2ae   : > { %v12881_v48 = vadd.f32 %v1937_v39, %v16606_v61  ;;  %v1627_v39 = vpack.c.b16 %v16614_v55, %v16612_v58  ;;  %v16616_v61 = vunpack.c.h.b16 %v16566_v32  ;;  %v3636_v58 = vld [vmem:[%s15946_s1] sm:$0xff] }
 0x2af   : > { %v2068_v8 = vpop.f32.mrf.mxu0  ;;  %v12886_v5 = vpop.f32.mrf.mxu2 }
 0x2b0   : > { %v2069_v13 = vadd.f32 %v2068_v8, %v12806_v35  ;;  %16608 = vst [vmem:[#allocation29_spill] sm:$0xff] %v12886_v5  ;;  %v16615_v35 = vunpack.c.h.b16 %v16564_v56 }
 0x2b1   : > { %v2212_v7 = vpop.f32.mrf.mxu1 }
 0x2b2   : > { %v12884_v15 = vadd.f32 %v2212_v7, %v2069_v13  ;;  %v1619_v8 = vpack.c.b16 %v16616_v61, %v16615_v35  ;;  %v9468_v13 = vor.u32 %v10638_v53, %v9467_v49  ;;  %v10641_v35 = vld [vmem:[%s11495_s2 + $0x140] sm:$0xf0] }
 0x2b4   : > { %16607 = vst [vmem:[#allocation45_spill] sm:$0xff] %v12884_v15  ;;  %v16617_v15 = vld [vmem:[#allocation86_spill] sm:$0xff]  ;;  %3091 = vmatmul.bf16.gmra.mxu2 %v9468_v13 }
 0x2b5   : > { %v1939_v0 = vpop.f32.mrf.mxu3  ;;  %v16618_v62 = vunpack.c.l.b16 %v16617_v15 }
 0x2b6   : > { %v12892_v14 = vadd.f32 %v1939_v0, %v1475_v51 }
 0x2b7   : > { %v2071_v7 = vpop.f32.mrf.mxu0  ;;  %v1620_v5 = vpack.c.b16 %v16620_v52, %v16618_v62  ;;  %v12909_v56 = vpop.f32.mrf.mxu2  ;;  %v16625_v52 = vunpack.c.h.b16 %v16579_v50 }
 0x2b8   : > { %v2072_v51 = vadd.f32 %v2071_v7, %v12824_v2  ;;  %v16624_v7 = vunpack.c.l.b16 %v12417_v57 }
 0x2b9   : > { %v2215_v0 = vpop.f32.mrf.mxu1 }
 0x2ba   : > { %v12907_v21 = vadd.f32 %v2215_v0, %v2072_v51  ;;  %1981 = vmatmul.bf16.gmra.mxu3 %v1627_v39  ;;  %2110 = vmatmul.bf16.gmra.mxu0 %v1619_v8  ;;  %v9479_v39 = vld [vmem:[%s11495_s2 + $0x138] sm:$0xf]  ;;  %v16622_v8 = vld [vmem:[#allocation110_spill] sm:$0xff]  ;;  %v16626_v51 = vunpack.c.h.b16 %v16581_v47 }
 0x2bb   : > { %v16623_v13 = vunpack.c.l.b16 %v16622_v8 }
 0x2bc   : > { %2254 = vmatmul.bf16.gmra.mxu1 %v1620_v5  ;;  %v11352_v5 = vmov 0   ;;  %v1622_v0 = vpack.c.b16 %v16626_v51, %v16625_v52  ;;  %v10749_v51 = vld [vmem:[#allocation8 + $0xe0] sm:$0xff] }
 0x2bd   : > { %v1942_v32 = vpop.f32.mrf.mxu3  ;;  %11173 = vset.pattern.permute.xlu0 %v11352_v5  ;;  %4068 = vst [vmem:[#allocation2] sm:$0xff] %v11352_v5  ;;  %11174 = vset.pattern.permute.xlu1 %v11352_v5  ;;  %v1630_v4 = vpack.c.b16 %v16624_v7, %v16623_v13 }
 0x2be   : > { %v12912_v49 = vadd.f32 %v1942_v32, %v12460_v11  ;;  %v1480_v11 = vadd.f32 %v12470_v36, %v12462_v23  ;;  %4069 = vst [vmem:[#allocation2 + $0x8] sm:$0xf] %v11352_v5  ;;  %3692 = vperm.xlu0 %11173, %v3636_v58   ;;  %11175 = vset.pattern.permute.xlu2 %v11352_v5  ;;  %v10700_v36 = vld [vmem:[#allocation6 + $0x1c8] sm:$0xff] }
 0x2bf   : > { %v2073_v53 = vpop.f32.mrf.mxu0  ;;  %v12920_v55 = vpop.f32.mrf.mxu2  ;;  %4070 = vst [vmem:[#allocation2 + $0xc] sm:$0xff] %v11352_v5  ;;  %v9480_v23 = vor.u32 %v10641_v35, %v9479_v39  ;;  %3188 = vmatpush.bf16.msra.mxu3 %v10700_v36  ;;  %v3637_v39 = vld [vmem:[%s15946_s1 + $0x8] sm:$0xff]  ;;  %5925 = vmatpush.bf16.msra.mxu1 %v10749_v51  ;;  %v16639_v51 = vld [vmem:[#allocation104_spill] sm:$0xff] }
 0x2c0   : > { %v2074_v15 = vadd.f32 %v2073_v53, %v12833_v30  ;;  %4071 = vst [vmem:[#allocation2 + $0x14] sm:$0xf] %v11352_v5  ;;  %v16627_v53 = vld [vmem:[#allocation93_spill] sm:$0xff] }
 0x2c1   : > { %v2217_v62 = vpop.f32.mrf.mxu1  ;;  %4073 = vst [vmem:[#allocation2 + $0x20] sm:$0xf] %v11352_v5 }
 0x2c2   : > { %v12915_v2 = vadd.f32 %v2217_v62, %v2074_v15  ;;  %v16628_v15 = vunpack.c.l.b16 %v16627_v53  ;;  %v16629_v62 = vld [vmem:[#allocation98_spill] sm:$0xff]  ;;  %4074 = vst [vmem:[#allocation2 + $0x24] sm:$0xff] %v11352_v5  ;;  %v10644_v53 = vld [vmem:[%s11495_s2 + $0x158] sm:$0xf0] }
 0x2c3   : > { %v16630_v58 = vunpack.c.l.b16 %v16629_v62  ;;  %4075 = vst [vmem:[#allocation2 + $0x2c] sm:$0xf] %v11352_v5  ;;  %v16631_v62 = vld [vmem:[#allocation116_spill] sm:$0xff] }
 0x2c4   : > { %16621 = vst [vmem:[#allocation32_spill] sm:$0xff] %v12915_v2  ;;  %3096 = vmatmul.bf16.gmra.mxu2 %v9480_v23  ;;  %v1485_v23 = vadd.f32 %v12490_v18, %v12485_v1  ;;  %v16637_v18 = vld [vmem:[#allocation99_spill] sm:$0xff] }
 0x2c5   : > { %v1944_v30 = vpop.f32.mrf.mxu3  ;;  %4076 = vst [vmem:[#allocation2 + $0x2a0] sm:$0xff] %v11352_v5 }
 0x2c6   : > { %v12926_v61 = vadd.f32 %v1944_v30, %v1480_v11  ;;  %v1623_v11 = vpack.c.b16 %v16630_v58, %v16628_v15  ;;  %4077 = vst [vmem:[#allocation2 + $0x2a8] sm:$0xf] %v11352_v5  ;;  %3697 = vperm.xlu0 %11173, %v3637_v39   ;;  %v16632_v58 = vunpack.c.l.b16 %v16631_v62 }
 0x2c7   : > { %v2076_v32 = vpop.f32.mrf.mxu0  ;;  %v12943_v47 = vpop.f32.mrf.mxu2  ;;  %4078 = vst [vmem:[#allocation2 + $0x2ac] sm:$0xff] %v11352_v5 }
 0x2c8   : > { %v2077_v30 = vadd.f32 %v2076_v32, %v12850_v63  ;;  %4079 = vst [vmem:[#allocation2 + $0x2b4] sm:$0xf] %v11352_v5 }
 0x2c9   : > { %v2220_v2 = vpop.f32.mrf.mxu1  ;;  %4080 = vst [vmem:[#allocation2 + $0x2b8] sm:$0xff] %v11352_v5 }
 0x2ca   : > { %v12941_v50 = vadd.f32 %v2220_v2, %v2077_v30  ;;  %1986 = vmatmul.bf16.gmra.mxu3 %v1630_v4  ;;  %2115 = vmatmul.bf16.gmra.mxu0 %v1622_v0  ;;  %v10708_v2 = vld [vmem:[#allocation6 + $0x208] sm:$0xff]  ;;  %4081 = vst [vmem:[#allocation2 + $0x2c0] sm:$0xf] %v11352_v5  ;;  %v10757_v0 = vld [vmem:[#allocation8 + $0x120] sm:$0xff] }
 0x2cb   : > { %3332 = vmatpush.bf16.msra.mxu0 %v10708_v2  ;;  %4082 = vst [vmem:[#allocation2 + $0x2c4] sm:$0xff] %v11352_v5  ;;  %6069 = vmatpush.bf16.msra.mxu2 %v10757_v0  ;;  %v16636_v2 = vunpack.c.h.b16 %v16596_v31  ;;  %v16640_v0 = vunpack.c.l.b16 %v16639_v51  ;;  %v3639_v31 = vld [vmem:[%s15946_s1 + $0x18] sm:$0xff]  ;;  %v16642_v51 = vld [vmem:[#allocation15_spill] sm:$0xff] }
 0x2cc   : > { %2259 = vmatmul.bf16.gmra.mxu1 %v1623_v11  ;;  %4083 = vst [vmem:[#allocation2 + $0x2cc] sm:$0xf] %v11352_v5  ;;  %v9491_v5 = vld [vmem:[%s11495_s2 + $0x150] sm:$0xf] }
 0x2cd   : > { %v1947_v63 = vpop.f32.mrf.mxu3  ;;  %v16633_v11 = vld [vmem:[#allocation14_spill] sm:$0xff] }
 0x2ce   : > { %v12949_v35 = vadd.f32 %v1947_v63, %v12482_v24  ;;  %v3638_v24 = vld [vmem:[%s15946_s1 + $0x10] sm:$0xff]  ;;  %v16634_v30 = vunpack.c.l.b16 %v16633_v11  ;;  %v16635_v63 = vunpack.c.h.b16 %v16594_v16 }
 0x2cf   : > { %v2078_v13 = vpop.f32.mrf.mxu0  ;;  %v12957_v36 = vpop.f32.mrf.mxu2  ;;  %3702 = vperm.xlu1 %11174, %v3638_v24  }
 0x2d0   : > { %v2079_v7 = vadd.f32 %v2078_v13, %v12861_v41  ;;  %v3642_v41 = vld [vmem:[%s15946_s1 + $0x30] sm:$0xff]  ;;  %v1633_v39 = vpack.c.b16 %v16634_v30, %v16632_v58  ;;  %v1625_v13 = vpack.c.b16 %v16636_v2, %v16635_v63  ;;  %v3643_v2 = vld [vmem:[%s15946_s1 + $0x38] sm:$0xff] }
 0x2d1   : > { %v2222_v4 = vpop.f32.mrf.mxu1  ;;  %3722 = vperm.xlu0 %11173, %v3642_v41  }
 0x2d2   : > { %v12952_v52 = vadd.f32 %v2222_v4, %v2079_v7  ;;  %v9492_v7 = vor.u32 %v10644_v53, %v9491_v5  ;;  %v16638_v4 = vunpack.c.l.b16 %v16637_v18  ;;  %v3645_v5 = vld [vmem:[%s15946_s1 + $0x48] sm:$0xff]  ;;  %v10647_v18 = vld [vmem:[%s11495_s2 + $0x170] sm:$0xf0] }
 0x2d4   : > { %v1626_v24 = vpack.c.b16 %v16640_v0, %v16638_v4  ;;  %3101 = vmatmul.bf16.gmra.mxu2 %v9492_v7  ;;  %v16643_v0 = vunpack.c.l.b16 %v16642_v51 }
 0x2d5   : > { %v1949_v32 = vpop.f32.mrf.mxu3 }
 0x2d6   : > { %v12966_v15 = vadd.f32 %v1949_v32, %v1485_v23 }
 0x2d7   : > { %v2081_v1 = vpop.f32.mrf.mxu0  ;;  %v12983_v16 = vpop.f32.mrf.mxu2  ;;  %3707 = vperm.xlu1 %11174, %v3639_v31   ;;  %v16646_v31 = vunpack.c.h.b16 %v16611_v59  ;;  %v3646_v59 = vld [vmem:[%s15946_s1 + $0x50] sm:$0xff] }
 0x2d8   : > { %v2082_v41 = vadd.f32 %v2081_v1, %v12881_v48 }
 0x2d9   : > { %v2225_v23 = vpop.f32.mrf.mxu1  ;;  %3737 = vperm.xlu0 %11173, %v3645_v5   ;;  %v16647_v5 = vunpack.c.h.b16 %v16613_v60  ;;  %v3651_v60 = vld [vmem:[%s15946_s1 + $0x78] sm:$0xff] }
 0x2da   : > { %v12981_v32 = vadd.f32 %v2225_v23, %v2082_v41  ;;  %1991 = vmatmul.bf16.gmra.mxu3 %v1633_v39  ;;  %2120 = vmatmul.bf16.gmra.mxu0 %v1625_v13  ;;  %v3648_v13 = vld [vmem:[%s15946_s1 + $0x60] sm:$0xff] }
 0x2dc   : > { %2264 = vmatmul.bf16.gmra.mxu1 %v1626_v24  ;;  %v16644_v24 = vld [vmem:[#allocation16_spill] sm:$0xff] }
 0x2dd   : > { %v1952_v48 = vpop.f32.mrf.mxu3  ;;  %v16645_v41 = vunpack.c.l.b16 %v16644_v24 }
 0x2de   : > { %v12992_v53 = vadd.f32 %v1952_v48, %v12506_v20  ;;  %v1490_v20 = vadd.f32 %v12512_v43, %v12508_v25  ;;  %v1628_v48 = vpack.c.b16 %v16647_v5, %v16646_v31  ;;  %v16648_v25 = vld [vmem:[#allocation105_spill] sm:$0xff]  ;;  %v3649_v5 = vld [vmem:[%s15946_s1 + $0x68] sm:$0xff] }
 0x2df   : > { %v2083_v58 = vpop.f32.mrf.mxu0  ;;  %v13003_v7 = vpop.f32.mrf.mxu2  ;;  %3727 = vperm.xlu1 %11174, %v3643_v2   ;;  %v1636_v23 = vpack.c.b16 %v16645_v41, %v16643_v0  ;;  %v16649_v43 = vunpack.c.l.b16 %v16648_v25  ;;  %v10650_v25 = vld [vmem:[%s11495_s2 + $0x188] sm:$0xf0] }
 0x2e0   : > { %v2084_v30 = vadd.f32 %v2083_v58, %v12892_v14  ;;  %v9503_v14 = vld [vmem:[%s11495_s2 + $0x168] sm:$0xf] }
 0x2e1   : > { %v2227_v39 = vpop.f32.mrf.mxu1  ;;  %3752 = vperm.xlu0 %11173, %v3648_v13   ;;  %v9504_v58 = vor.u32 %v10647_v18, %v9503_v14 }
 0x2e2   : > { %v12995_v63 = vadd.f32 %v2227_v39, %v2084_v30  ;;  %v16650_v39 = vld [vmem:[#allocation111_spill] sm:$0xff] }
 0x2e3   : > { %v16651_v2 = vunpack.c.l.b16 %v16650_v39  ;;  %v16654_v39 = vld [vmem:[#allocation17_spill] sm:$0xff] }
 0x2e4   : > { %16641 = vst [vmem:[#allocation57_spill] sm:$0xff] %v12995_v63  ;;  %3106 = vmatmul.bf16.gmra.mxu2 %v9504_v58  ;;  %v1495_v58 = vadd.f32 %v12538_v33, %v12534_v26 }
 0x2e5   : > { %v1954_v1 = vpop.f32.mrf.mxu3  ;;  %v1629_v13 = vpack.c.b16 %v16651_v2, %v16649_v43  ;;  %v16655_v2 = vunpack.c.l.b16 %v16654_v39 }
 0x2e6   : > { %v13009_v4 = vadd.f32 %v1954_v1, %v1490_v20 }
 0x2e7   : > { %v2086_v30 = vpop.f32.mrf.mxu0  ;;  %v13032_v14 = vpop.f32.mrf.mxu2  ;;  %3742 = vperm.xlu1 %11174, %v3646_v59   ;;  %v16658_v59 = vunpack.c.h.b16 %v16622_v8  ;;  %v10699_v8 = vld [vmem:[#allocation6 + $0x1c0] sm:$0xff] }
 0x2e8   : > { %v2087_v20 = vadd.f32 %v2086_v30, %v12912_v49  ;;  %3189 = vmatpush.bf16.msra.mxu3 %v10699_v8 }
 0x2e9   : > { %v2230_v1 = vpop.f32.mrf.mxu1  ;;  %3767 = vperm.xlu0 %11173, %v3651_v60   ;;  %v16659_v60 = vunpack.c.h.b16 %v12417_v57  ;;  %v3640_v57 = vld [vmem:[%s15946_s1 + $0x20] sm:$0xff] }
 0x2ea   : > { %v13024_v63 = vadd.f32 %v2230_v1, %v2087_v20  ;;  %1996 = vmatmul.bf16.gmra.mxu3 %v1636_v23  ;;  %2125 = vmatmul.bf16.gmra.mxu0 %v1628_v48  ;;  %v3654_v48 = vld [vmem:[%s15946_s1 + $0x90] sm:$0xff] }
 0x2eb   : > { %3712 = vperm.xlu2 %11175, %v3640_v57   ;;  %v16668_v57 = vld [vmem:[#allocation20_spill] sm:$0xff] }
 0x2ec   : > { %16652 = vst [vmem:[#allocation63_spill] sm:$0xff] %v13024_v63  ;;  %2269 = vmatmul.bf16.gmra.mxu1 %v1629_v13  ;;  %v16656_v13 = vld [vmem:[#allocation18_spill] sm:$0xff] }
 0x2ed   : > { %v1957_v49 = vpop.f32.mrf.mxu3  ;;  %v16657_v20 = vunpack.c.l.b16 %v16656_v13 }
 0x2ee   : > { %v13035_v18 = vadd.f32 %v1957_v49, %v12532_v44  ;;  %v1631_v49 = vpack.c.b16 %v16659_v60, %v16658_v59 }
 0x2ef   : > { %v2088_v0 = vpop.f32.mrf.mxu0  ;;  %v13048_v30 = vpop.f32.mrf.mxu2  ;;  %3757 = vperm.xlu1 %11174, %v3649_v5   ;;  %v1639_v1 = vpack.c.b16 %v16657_v20, %v16655_v2 }
 0x2f0   : > { %v2089_v41 = vadd.f32 %v2088_v0, %v12926_v61  ;;  %v9515_v61 = vld [vmem:[%s11495_s2 + $0x180] sm:$0xf] }
 0x2f1   : > { %v2232_v23 = vpop.f32.mrf.mxu1  ;;  %3782 = vperm.xlu0 %11173, %v3654_v48   ;;  %v9516_v26 = vor.u32 %v10650_v25, %v9515_v61  ;;  %v16660_v0 = vld [vmem:[#allocation112_spill] sm:$0xff]  ;;  %v3652_v61 = vld [vmem:[%s15946_s1 + $0x80] sm:$0xff] }
 0x2f2   : > { %v13038_v31 = vadd.f32 %v2232_v23, %v2089_v41  ;;  %v16661_v41 = vunpack.c.l.b16 %v16660_v0  ;;  %v16662_v23 = vld [vmem:[#allocation117_spill] sm:$0xff] }
 0x2f3   : > { %v16663_v5 = vunpack.c.l.b16 %v16662_v23  ;;  %v3655_v0 = vld [vmem:[%s15946_s1 + $0x98] sm:$0xff] }
 0x2f4   : > { %16653 = vst [vmem:[#allocation46_spill] sm:$0xff] %v13038_v31  ;;  %3111 = vmatmul.bf16.gmra.mxu2 %v9516_v26  ;;  %v10707_v26 = vld [vmem:[#allocation6 + $0x200] sm:$0xff] }
 0x2f5   : > { %v1959_v44 = vpop.f32.mrf.mxu3  ;;  %v1632_v48 = vpack.c.b16 %v16663_v5, %v16661_v41  ;;  %v1500_v41 = vadd.f32 %v12564_v9, %v12560_v3  ;;  %3333 = vmatpush.bf16.msra.mxu0 %v10707_v26  ;;  %v9527_v5 = vld [vmem:[%s11495_s2 + $0x198] sm:$0xf]  ;;  %v16671_v3 = vunpack.c.h.b16 %v16633_v11  ;;  %v3658_v11 = vld [vmem:[%s15946_s1 + $0xb0] sm:$0xff] }
 0x2f6   : > { %v13052_v43 = vadd.f32 %v1959_v44, %v1495_v58 }
 0x2f7   : > { %v2091_v33 = vpop.f32.mrf.mxu0  ;;  %v13075_v25 = vpop.f32.mrf.mxu2  ;;  %3772 = vperm.xlu1 %11174, %v3652_v61   ;;  %v16669_v61 = vunpack.c.l.b16 %v16668_v57 }
 0x2f8   : > { %v2092_v58 = vadd.f32 %v2091_v33, %v12949_v35  ;;  %v3657_v35 = vld [vmem:[%s15946_s1 + $0xa8] sm:$0xff] }
 0x2f9   : > { %v2235_v44 = vpop.f32.mrf.mxu1  ;;  %3797 = vperm.xlu0 %11173, %v3657_v35   ;;  %v3641_v33 = vld [vmem:[%s15946_s1 + $0x28] sm:$0xff] }
 0x2fa   : > { %v13067_v31 = vadd.f32 %v2235_v44, %v2092_v58  ;;  %2001 = vmatmul.bf16.gmra.mxu3 %v1639_v1  ;;  %2130 = vmatmul.bf16.gmra.mxu0 %v1631_v49  ;;  %v16666_v44 = vld [vmem:[#allocation19_spill] sm:$0xff] }
 0x2fb   : > { %3717 = vperm.xlu2 %11175, %v3641_v33   ;;  %v16667_v8 = vunpack.c.l.b16 %v16666_v44  ;;  %v16674_v33 = vld [vmem:[#allocation59_spill] sm:$0xff] }
 0x2fc   : > { %16664 = vst [vmem:[#allocation51_spill] sm:$0xff] %v13067_v31  ;;  %2274 = vmatmul.bf16.gmra.mxu1 %v1632_v48  ;;  %v10653_v48 = vld [vmem:[%s11495_s2 + $0x1a0] sm:$0xf0]  ;;  %v10756_v31 = vld [vmem:[#allocation8 + $0x118] sm:$0xff] }
 0x2fd   : > { %v1962_v2 = vpop.f32.mrf.mxu3  ;;  %v1642_v35 = vpack.c.b16 %v16669_v61, %v16667_v8  ;;  %6070 = vmatpush.bf16.msra.mxu2 %v10756_v31 }
 0x2fe   : > { %v13081_v20 = vadd.f32 %v1962_v2, %v12558_v40  ;;  %v3660_v40 = vld [vmem:[%s15946_s1 + $0xc0] sm:$0xff]  ;;  %v16670_v2 = vunpack.c.h.b16 %v16631_v62 }
 0x2ff   : > { %v2093_v1 = vpop.f32.mrf.mxu0  ;;  %3787 = vperm.xlu1 %11174, %v3655_v0   ;;  %v16675_v0 = vunpack.c.l.b16 %v16674_v33  ;;  %v3644_v62 = vld [vmem:[%s15946_s1 + $0x40] sm:$0xff]  ;;  %v16678_v33 = vld [vmem:[#allocation21_spill] sm:$0xff] }
 0x300   : > { %v2094_v59 = vadd.f32 %v2093_v1, %v12966_v15  ;;  %v13097_v15 = vpop.f32.mrf.mxu2  ;;  %v1634_v9 = vpack.c.b16 %v16671_v3, %v16670_v2  ;;  %v9528_v1 = vor.u32 %v10653_v48, %v9527_v5  ;;  %v3661_v3 = vld [vmem:[%s15946_s1 + $0xc8] sm:$0xff] }
 0x301   : > { %v2237_v60 = vpop.f32.mrf.mxu1  ;;  %3812 = vperm.xlu0 %11173, %v3660_v40  }
 0x302   : > { %v13084_v49 = vadd.f32 %v2237_v60, %v2094_v59  ;;  %v16672_v60 = vld [vmem:[#allocation118_spill] sm:$0xff] }
 0x303   : > { %v16673_v26 = vunpack.c.l.b16 %v16672_v60  ;;  %3732 = vperm.xlu2 %11175, %v3644_v62   ;;  %v10656_v60 = vld [vmem:[%s11495_s2 + $0x1b8] sm:$0xf0]  ;;  %v16682_v62 = vunpack.c.h.b16 %v16642_v51  ;;  %v3650_v51 = vld [vmem:[%s15946_s1 + $0x70] sm:$0xff] }
 0x304   : > { %16665 = vst [vmem:[#allocation33_spill] sm:$0xff] %v13084_v49  ;;  %v10748_v49 = vld [vmem:[#allocation8 + $0xd8] sm:$0xff]  ;;  %3116 = vmatmul.bf16.gmra.mxu2 %v9528_v1 }
 0x305   : > { %v1964_v23 = vpop.f32.mrf.mxu3  ;;  %v1635_v40 = vpack.c.b16 %v16675_v0, %v16673_v26  ;;  %5926 = vmatpush.bf16.msra.mxu1 %v10748_v49  ;;  %v3647_v49 = vld [vmem:[%s15946_s1 + $0x58] sm:$0xff]  ;;  %v16679_v0 = vunpack.c.l.b16 %v16678_v33 }
 0x306   : > { %v13101_v58 = vadd.f32 %v1964_v23, %v1500_v41 }
 0x307   : > { %v2096_v59 = vpop.f32.mrf.mxu0  ;;  %3802 = vperm.xlu1 %11174, %v3658_v11   ;;  %v16683_v11 = vunpack.c.h.b16 %v16644_v24  ;;  %v3664_v24 = vld [vmem:[%s15946_s1 + $0xe0] sm:$0xff] }
 0x308   : > { %v2097_v41 = vadd.f32 %v2096_v59, %v12992_v53  ;;  %v3663_v53 = vld [vmem:[%s15946_s1 + $0xd8] sm:$0xff]  ;;  %v13127_v5 = vpop.f32.mrf.mxu2  ;;  %v9539_v59 = vld [vmem:[%s11495_s2 + $0x1b0] sm:$0xf] }
 0x309   : > { %v2240_v23 = vpop.f32.mrf.mxu1  ;;  %3827 = vperm.xlu0 %11173, %v3663_v53  }
 0x30a   : > { %v13116_v63 = vadd.f32 %v2240_v23, %v2097_v41  ;;  %2006 = vmatmul.bf16.gmra.mxu3 %v1642_v35  ;;  %2135 = vmatmul.bf16.gmra.mxu0 %v1634_v9  ;;  %v3666_v9 = vld [vmem:[%s15946_s1 + $0xf0] sm:$0xff] }
 0x30b   : > { %3747 = vperm.xlu2 %11175, %v3647_v49  }
 0x30c   : > { %16676 = vst [vmem:[#allocation36_spill] sm:$0xff] %v13116_v63  ;;  %2279 = vmatmul.bf16.gmra.mxu1 %v1635_v40  ;;  %v16680_v40 = vld [vmem:[#allocation23_spill] sm:$0xff] }
 0x30d   : > { %v1967_v48 = vpop.f32.mrf.mxu3  ;;  %v16681_v41 = vunpack.c.l.b16 %v16680_v40 }
 0x30e   : > { %v13130_v31 = vadd.f32 %v1967_v48, %v12584_v38  ;;  %v1505_v38 = vadd.f32 %v12590_v45, %v12586_v46  ;;  %v1637_v46 = vpack.c.b16 %v16683_v11, %v16682_v62  ;;  %v9540_v45 = vor.u32 %v10656_v60, %v9539_v59  ;;  %v16684_v48 = vld [vmem:[#allocation60_spill] sm:$0xff]  ;;  %v3653_v62 = vld [vmem:[%s15946_s1 + $0x88] sm:$0xff]  ;;  %v3667_v11 = vld [vmem:[%s15946_s1 + $0xf8] sm:$0xff] }
 0x30f   : > { %v2098_v8 = vpop.f32.mrf.mxu0  ;;  %3817 = vperm.xlu1 %11174, %v3661_v3   ;;  %v1645_v23 = vpack.c.b16 %v16681_v41, %v16679_v0 }
 0x310   : > { %v2099_v61 = vadd.f32 %v2098_v8, %v13009_v4  ;;  %v13146_v1 = vpop.f32.mrf.mxu2  ;;  %v16685_v8 = vunpack.c.l.b16 %v16684_v48 }
 0x311   : > { %v2242_v35 = vpop.f32.mrf.mxu1  ;;  %3842 = vperm.xlu0 %11173, %v3666_v9  }
 0x312   : > { %v13133_v2 = vadd.f32 %v2242_v35, %v2099_v61  ;;  %v16686_v61 = vld [vmem:[#allocation67_spill] sm:$0xff] }
 0x313   : > { %v16687_v35 = vunpack.c.l.b16 %v16686_v61  ;;  %3762 = vperm.xlu2 %11175, %v3650_v51   ;;  %v10659_v61 = vld [vmem:[%s11495_s2 + $0x1d0] sm:$0xf0] }
 0x314   : > { %16677 = vst [vmem:[#allocation65_spill] sm:$0xff] %v13133_v2  ;;  %3121 = vmatmul.bf16.gmra.mxu2 %v9540_v45  ;;  %v9361_v45 = vld [vmem:[%s11495_s2 + $0x54] sm:$0xf0] }
 0x315   : > { %v1969_v4 = vpop.f32.mrf.mxu3  ;;  %v1638_v49 = vpack.c.b16 %v16687_v35, %v16685_v8  ;;  %v9551_v8 = vld [vmem:[%s11495_s2 + $0x1c8] sm:$0xf] }
 0x316   : > { %v13150_v26 = vadd.f32 %v1969_v4, %v1505_v38 }
 0x317   : > { %v2101_v53 = vpop.f32.mrf.mxu0  ;;  %3832 = vperm.xlu1 %11174, %v3664_v24   ;;  %v9552_v24 = vor.u32 %v10659_v61, %v9551_v8 }
 0x318   : > { %v2102_v3 = vadd.f32 %v2101_v53, %v13035_v18  ;;  %v3669_v18 = vld [vmem:[%s15946_s1 + $0x108] sm:$0xff]  ;;  %v13176_v4 = vpop.f32.mrf.mxu2 }
 0x319   : > { %v2245_v9 = vpop.f32.mrf.mxu1  ;;  %3857 = vperm.xlu0 %11173, %v3669_v18  }
 0x31a   : > { %v13165_v38 = vadd.f32 %v2245_v9, %v2102_v3  ;;  %2011 = vmatmul.bf16.gmra.mxu3 %v1645_v23  ;;  %2140 = vmatmul.bf16.gmra.mxu0 %v1637_v46  ;;  %v10610_v46 = vld [vmem:[%s11495_s2 + $0x4c] sm:$0xf]  ;;  %v16692_v3 = vunpack.c.h.b16 %v16656_v13  ;;  %v3670_v13 = vld [vmem:[%s15946_s1 + $0x110] sm:$0xff] }
 0x31b   : > { %3777 = vperm.xlu2 %11175, %v3653_v62   ;;  %v9364_v51 = vor.u32 %v10610_v46, %v9361_v45 }
 0x31c   : > { %16688 = vst [vmem:[#allocation71_spill] sm:$0xff] %v13165_v38  ;;  %2284 = vmatmul.bf16.gmra.mxu1 %v1638_v49  ;;  %v16691_v49 = vunpack.c.h.b16 %v16654_v39  ;;  %v3656_v39 = vld [vmem:[%s15946_s1 + $0xa0] sm:$0xff] }
 0x31d   : > { %v1972_v59 = vpop.f32.mrf.mxu3 }
 0x31e   : > { %v13179_v60 = vadd.f32 %v1972_v59, %v12607_v27  ;;  %v3672_v27 = vld [vmem:[%s15946_s1 + $0x120] sm:$0xff]  ;;  %v1640_v9 = vpack.c.b16 %v16692_v3, %v16691_v49  ;;  %v16693_v59 = vld [vmem:[#allocation68_spill] sm:$0xff]  ;;  %v3659_v49 = vld [vmem:[%s15946_s1 + $0xb8] sm:$0xff] }
 0x31f   : > { %v2103_v0 = vpop.f32.mrf.mxu0  ;;  %3847 = vperm.xlu1 %11174, %v3667_v11   ;;  %v3673_v3 = vld [vmem:[%s15946_s1 + $0x128] sm:$0xff] }
 0x320   : > { %v13182_v41 = vadd.f32 %v2103_v0, %v13052_v43  ;;  %v1510_v43 = vadd.f32 %v12611_v10, %v12609_v28  ;;  %v13199_v53 = vpop.f32.mrf.mxu2  ;;  %v16694_v28 = vunpack.c.l.b16 %v16693_v59  ;;  %v16695_v10 = vld [vmem:[#allocation75_spill] sm:$0xff]  ;;  %v9563_v59 = vld [vmem:[%s11495_s2 + $0x1e0] sm:$0xf] }
 0x321   : > { %v13184_v23 = vpop.f32.mrf.mxu1  ;;  %3872 = vperm.xlu0 %11173, %v3672_v27   ;;  %v16696_v0 = vunpack.c.l.b16 %v16695_v10 }
 0x322   : > { %16689 = vst [vmem:[#allocation52_spill] sm:$0xff] %v13182_v41 }
 0x323   : > { %16690 = vst [vmem:[#allocation56_spill] sm:$0xff] %v13184_v23  ;;  %v1641_v62 = vpack.c.b16 %v16696_v0, %v16694_v28  ;;  %3792 = vperm.xlu2 %11175, %v3656_v39   ;;  %v10662_v28 = vld [vmem:[%s11495_s2 + $0x1e8] sm:$0xf0]  ;;  %v16700_v0 = vunpack.c.h.b16 %v16666_v44  ;;  %v3662_v44 = vld [vmem:[%s15946_s1 + $0xd0] sm:$0xff] }
 0x324   : > { %3126 = vmatmul.bf16.gmra.mxu2 %v9552_v24  ;;  %v9564_v39 = vor.u32 %v10662_v28, %v9563_v59  ;;  %v10755_v59 = vld [vmem:[#allocation8 + $0x110] sm:$0xff] }
 0x325   : > { %v1974_v48 = vpop.f32.mrf.mxu3  ;;  %6071 = vmatpush.bf16.msra.mxu2 %v10755_v59 }
 0x326   : > { %v13203_v35 = vadd.f32 %v1974_v48, %v1510_v43 }
 0x327   : > { %v2106_v18 = vpop.f32.mrf.mxu0  ;;  %3862 = vperm.xlu1 %11174, %v3670_v13  }
 0x328   : > { %v2107_v11 = vadd.f32 %v2106_v18, %v13081_v20  ;;  %v3675_v20 = vld [vmem:[%s15946_s1 + $0x138] sm:$0xff]  ;;  %v13225_v46 = vpop.f32.mrf.mxu2 }
 0x329   : > { %v2250_v27 = vpop.f32.mrf.mxu1  ;;  %3887 = vperm.xlu0 %11173, %v3675_v20   ;;  %v16702_v20 = vld [vmem:[#allocation76_spill] sm:$0xff] }
 0x32a   : > { %v13214_v23 = vadd.f32 %v2250_v27, %v2107_v11  ;;  %2145 = vmatmul.bf16.gmra.mxu0 %v1640_v9  ;;  %3190 = vmatmul.bf16.vlgmr.msra.gmra.mxu3 %v9364_v51  ;;  %v10613_v9 = vld [vmem:[%s11495_s2 + $0x64] sm:$0xf]  ;;  %v9373_v51 = vld [vmem:[%s11495_s2 + $0x6c] sm:$0xf0] }
 0x32b   : > { %3807 = vperm.xlu2 %11175, %v3659_v49   ;;  %v9376_v27 = vor.u32 %v10613_v9, %v9373_v51  ;;  %v3681_v9 = vld [vmem:[%s15946_s1 + $0x168] sm:$0xff] }
 0x32c   : > { %16697 = vst [vmem:[#allocation37_spill] sm:$0xff] %v13214_v23  ;;  %2289 = vmatmul.bf16.gmra.mxu1 %v1641_v62  ;;  %v16701_v62 = vunpack.c.h.b16 %v16668_v57  ;;  %v3676_v57 = vld [vmem:[%s15946_s1 + $0x140] sm:$0xff] }
 0x32d   : > { %v1977_v45 = vpop.f32.mrf.mxu3 }
 0x32e   : > { %v13228_v43 = vadd.f32 %v1977_v45, %v12629_v37  ;;  %v3678_v37 = vld [vmem:[%s15946_s1 + $0x150] sm:$0xff]  ;;  %v1643_v11 = vpack.c.b16 %v16701_v62, %v16700_v0 }
 0x32f   : > { %v2108_v48 = vpop.f32.mrf.mxu0  ;;  %3877 = vperm.xlu1 %11174, %v3673_v3  }
 0x330   : > { %v13231_v8 = vadd.f32 %v2108_v48, %v13101_v58  ;;  %v1515_v58 = vadd.f32 %v12633_v22, %v12631_v17  ;;  %v13248_v24 = vpop.f32.mrf.mxu2  ;;  %v16703_v17 = vunpack.c.l.b16 %v16702_v20  ;;  %v16704_v22 = vld [vmem:[#allocation83_spill] sm:$0xff] }
 0x331   : > { %v13233_v61 = vpop.f32.mrf.mxu1  ;;  %3902 = vperm.xlu0 %11173, %v3678_v37   ;;  %v16705_v45 = vunpack.c.l.b16 %v16704_v22  ;;  %v9575_v22 = vld [vmem:[%s11495_s2 + $0x1f8] sm:$0xf] }
 0x332   : > { %16698 = vst [vmem:[#allocation41_spill] sm:$0xff] %v13231_v8  ;;  %v10639_v8 = vld [vmem:[%s11495_s2 + $0x130] sm:$0xf0] }
 0x333   : > { %16699 = vst [vmem:[#allocation74_spill] sm:$0xff] %v13233_v61  ;;  %v1644_v48 = vpack.c.b16 %v16705_v45, %v16703_v17  ;;  %3822 = vperm.xlu2 %11175, %v3662_v44   ;;  %v10665_v45 = vld [vmem:[%s11495_s2 + $0x200] sm:$0xf0]  ;;  %v9505_v61 = vld [vmem:[%s11495_s2 + $0x174] sm:$0xf0] }
 0x334   : > { %3131 = vmatmul.bf16.gmra.mxu2 %v9564_v39  ;;  %v10616_v39 = vld [vmem:[%s11495_s2 + $0x7c] sm:$0xf] }
 0x335   : > { %v1979_v18 = vpop.f32.mrf.mxu3 }
 0x336   : > { %v13252_v10 = vadd.f32 %v1979_v18, %v1515_v58  ;;  %v10747_v18 = vld [vmem:[#allocation8 + $0xd0] sm:$0xff] }
 0x337   : > { %v2111_v13 = vpop.f32.mrf.mxu0  ;;  %3892 = vperm.xlu1 %11174, %v3676_v57   ;;  %5927 = vmatpush.bf16.msra.mxu1 %v10747_v18  ;;  %v16711_v18 = vld [vmem:[#allocation84_spill] sm:$0xff] }
 0x338   : > { %v2112_v49 = vadd.f32 %v2111_v13, %v13130_v31  ;;  %v13274_v31 = vpop.f32.mrf.mxu2  ;;  %v1520_v13 = vadd.f32 %v12855_v54, %v12655_v29  ;;  %v16712_v29 = vunpack.c.l.b16 %v16711_v18  ;;  %v16713_v54 = vld [vmem:[#allocation91_spill] sm:$0xff] }
 0x339   : > { %v2255_v3 = vpop.f32.mrf.mxu1  ;;  %3917 = vperm.xlu0 %11173, %v3681_v9   ;;  %v9576_v9 = vor.u32 %v10665_v45, %v9575_v22  ;;  %v16714_v59 = vunpack.c.l.b16 %v16713_v54  ;;  %v10612_v18 = vld [vmem:[%s11495_s2 + $0x58] sm:$0xf0] }
 0x33a   : > { %v13263_v37 = vadd.f32 %v2255_v3, %v2112_v49  ;;  %2150 = vmatmul.bf16.gmra.mxu0 %v1643_v11  ;;  %3195 = vmatmul.bf16.gmra.mxu3 %v9376_v27  ;;  %v3665_v11 = vld [vmem:[%s15946_s1 + $0xe8] sm:$0xff]  ;;  %v3684_v27 = vld [vmem:[%s15946_s1 + $0x180] sm:$0xff]  ;;  %v16709_v49 = vunpack.c.h.b16 %v16678_v33  ;;  %v16710_v3 = vunpack.c.h.b16 %v16680_v40  ;;  %v3682_v40 = vld [vmem:[%s15946_s1 + $0x170] sm:$0xff] }
 0x33b   : > { %3837 = vperm.xlu2 %11175, %v3665_v11   ;;  %v3668_v33 = vld [vmem:[%s15946_s1 + $0x100] sm:$0xff] }
 0x33c   : > { %16706 = vst [vmem:[#allocation79_spill] sm:$0xff] %v13263_v37  ;;  %2294 = vmatmul.bf16.gmra.mxu1 %v1644_v48  ;;  %v1646_v44 = vpack.c.b16 %v16710_v3, %v16709_v49  ;;  %v10619_v3 = vld [vmem:[%s11495_s2 + $0x94] sm:$0xf] }
 0x33d   : > { %v1982_v51 = vpop.f32.mrf.mxu3 }
 0x33e   : > { %v13277_v58 = vadd.f32 %v1982_v51, %v12653_v12  ;;  %v3679_v12 = vld [vmem:[%s15946_s1 + $0x158] sm:$0xff] }
 0x33f   : > { %v2113_v28 = vpop.f32.mrf.mxu0  ;;  %3907 = vperm.xlu1 %11174, %v3679_v12  }
 0x340   : > { %v13280_v0 = vadd.f32 %v2113_v28, %v13150_v26  ;;  %v9385_v26 = vld [vmem:[%s11495_s2 + $0x84] sm:$0xf0]  ;;  %v13297_v20 = vpop.f32.mrf.mxu2  ;;  %v1647_v28 = vpack.c.b16 %v16714_v59, %v16712_v29  ;;  %v10668_v59 = vld [vmem:[%s11495_s2 + $0x218] sm:$0xf0] }
 0x341   : > { %v13282_v62 = vpop.f32.mrf.mxu1  ;;  %3932 = vperm.xlu0 %11173, %v3684_v27   ;;  %v9388_v57 = vor.u32 %v10616_v39, %v9385_v26 }
 0x342   : > { %16707 = vst [vmem:[#allocation58_spill] sm:$0xff] %v13280_v0 }
 0x343   : > { %16708 = vst [vmem:[#allocation64_spill] sm:$0xff] %v13282_v62  ;;  %3852 = vperm.xlu2 %11175, %v3668_v33  }
 0x344   : > { %3136 = vmatmul.bf16.gmra.mxu2 %v9576_v9  ;;  %v9397_v9 = vld [vmem:[%s11495_s2 + $0x9c] sm:$0xf0] }
 0x345   : > { %v1984_v17 = vpop.f32.mrf.mxu3 }
 0x346   : > { %v13301_v48 = vadd.f32 %v1984_v17, %v1520_v13  ;;  %v16716_v13 = vld [vmem:[#allocation121_spill] sm:$0xff] }
 0x347   : > { %v2116_v51 = vpop.f32.mrf.mxu0  ;;  %3922 = vperm.xlu1 %11174, %v3682_v40  }
 0x348   : > { %v2117_v11 = vadd.f32 %v2116_v51, %v13179_v60  ;;  %v3687_v60 = vld [vmem:[%s15946_s1 + $0x198] sm:$0xff]  ;;  %v13323_v39 = vpop.f32.mrf.mxu2  ;;  %v9367_v51 = vld [vmem:[%s11495_s2 + $0x50] sm:$0xf] }
 0x349   : > { %v2260_v12 = vpop.f32.mrf.mxu1  ;;  %3947 = vperm.xlu0 %11173, %v3687_v60   ;;  %v9368_v33 = vor.u32 %v10612_v18, %v9367_v51 }
 0x34a   : > { %v13312_v27 = vadd.f32 %v2260_v12, %v2117_v11  ;;  %2155 = vmatmul.bf16.gmra.mxu0 %v1646_v44  ;;  %3200 = vmatmul.bf16.gmra.mxu3 %v9388_v57  ;;  %v3671_v44 = vld [vmem:[%s15946_s1 + $0x118] sm:$0xff]  ;;  %v3685_v57 = vld [vmem:[%s15946_s1 + $0x188] sm:$0xff]  ;;  %v9400_v12 = vor.u32 %v10619_v3, %v9397_v9  ;;  %v3688_v3 = vld [vmem:[%s15946_s1 + $0x1a0] sm:$0xff] }
 0x34b   : > { %3867 = vperm.xlu2 %11175, %v3671_v44   ;;  %v3674_v44 = vld [vmem:[%s15946_s1 + $0x130] sm:$0xff] }
 0x34c   : > { %16715 = vst [vmem:[#allocation42_spill] sm:$0xff] %v13312_v27  ;;  %2299 = vmatmul.bf16.gmra.mxu1 %v1647_v28  ;;  %v16719_v28 = vld [vmem:[#allocation122_spill] sm:$0xff] }
 0x34d   : > { %v1987_v26 = vpop.f32.mrf.mxu3 }
 0x34e   : > { %v13326_v17 = vadd.f32 %v1987_v26, %v16716_v13 }
 0x34f   : > { %v2118_v22 = vpop.f32.mrf.mxu0  ;;  %3937 = vperm.xlu1 %11174, %v3685_v57  }
 0x350   : > { %v13329_v45 = vadd.f32 %v2118_v22, %v13203_v35  ;;  %v13343_v29 = vpop.f32.mrf.mxu2  ;;  %v9587_v35 = vld [vmem:[%s11495_s2 + $0x210] sm:$0xf] }
 0x351   : > { %v13331_v49 = vpop.f32.mrf.mxu1  ;;  %v9588_v40 = vor.u32 %v10668_v59, %v9587_v35  ;;  %v10622_v35 = vld [vmem:[%s11495_s2 + $0xac] sm:$0xf] }
 0x352   : > { %16717 = vst [vmem:[#allocation47_spill] sm:$0xff] %v13329_v45  ;;  %v3677_v59 = vld [vmem:[%s15946_s1 + $0x148] sm:$0xff] }
 0x353   : > { %16718 = vst [vmem:[#allocation81_spill] sm:$0xff] %v13331_v49  ;;  %3882 = vperm.xlu2 %11175, %v3674_v44  }
 0x354   : > { %3141 = vmatmul.bf16.gmra.mxu2 %v9588_v40 }
 0x355   : > { %v1989_v54 = vpop.f32.mrf.mxu3 }
 0x356   : > { %v13348_v11 = vadd.f32 %v1989_v54, %v16719_v28  ;;  %v9409_v28 = vld [vmem:[%s11495_s2 + $0xb4] sm:$0xf0] }
 0x357   : > { %v2121_v60 = vpop.f32.mrf.mxu0  ;;  %3952 = vperm.xlu1 %11174, %v3688_v3  }
 0x358   : > { %v2122_v26 = vadd.f32 %v2121_v60, %v13228_v43  ;;  %v13359_v57 = vpop.f32.mrf.mxu2 }
 0x359   : > { %v2265_v13 = vpop.f32.mrf.mxu1 }
 0x35a   : > { %v13351_v22 = vadd.f32 %v2265_v13, %v2122_v26  ;;  %3205 = vmatmul.bf16.gmra.mxu3 %v9400_v12  ;;  %3334 = vmatmul.bf16.vlgmr.msra.gmra.mxu0 %v9368_v33  ;;  %v9379_v12 = vld [vmem:[%s11495_s2 + $0x68] sm:$0xf]  ;;  %v10615_v33 = vld [vmem:[%s11495_s2 + $0x70] sm:$0xf0] }
 0x35b   : > { %3897 = vperm.xlu2 %11175, %v3677_v59   ;;  %v10671_v26 = vld [vmem:[%s11495_s2 + $0x230] sm:$0xf0]  ;;  %v9380_v44 = vor.u32 %v10615_v33, %v9379_v12  ;;  %v10625_v33 = vld [vmem:[%s11495_s2 + $0xc4] sm:$0xf] }
 0x35c   : > { %16720 = vst [vmem:[#allocation87_spill] sm:$0xff] %v13351_v22 }
 0x35d   : > { %v1992_v43 = vpop.f32.mrf.mxu3 }
 0x35e   : > { %v13362_v9 = vadd.f32 %v1992_v43, %v12480_v6  ;;  %v9599_v6 = vld [vmem:[%s11495_s2 + $0x228] sm:$0xf] }
 0x35f   : > { %v2123_v51 = vpop.f32.mrf.mxu0  ;;  %v9600_v3 = vor.u32 %v10671_v26, %v9599_v6  ;;  %v10754_v6 = vld [vmem:[#allocation8 + $0x108] sm:$0xff] }
 0x360   : > { %v13365_v18 = vadd.f32 %v2123_v51, %v13252_v10  ;;  %v13376_v40 = vpop.f32.mrf.mxu2  ;;  %v9412_v10 = vor.u32 %v10622_v35, %v9409_v28  ;;  %v3683_v26 = vld [vmem:[%s15946_s1 + $0x178] sm:$0xff]  ;;  %6072 = vmatpush.bf16.msra.mxu2 %v10754_v6 }
 0x361   : > { %v13367_v54 = vpop.f32.mrf.mxu1 }
 0x362   : > { %16721 = vst [vmem:[#allocation66_spill] sm:$0xff] %v13365_v18 }
 0x363   : > { %16722 = vst [vmem:[#allocation72_spill] sm:$0xff] %v13367_v54 }
 0x364   : > { %3146 = vmatmul.bf16.gmra.mxu2 %v9600_v3  ;;  %v10618_v3 = vld [vmem:[%s11495_s2 + $0x88] sm:$0xf0] }
 0x365   : > { %v1994_v60 = vpop.f32.mrf.mxu3 }
 0x366   : > { %v13381_v13 = vadd.f32 %v1994_v60, %v12492_v34  ;;  %v3680_v34 = vld [vmem:[%s15946_s1 + $0x160] sm:$0xff]  ;;  %v10746_v60 = vld [vmem:[#allocation8 + $0xc8] sm:$0xff] }
 0x367   : > { %v2126_v43 = vpop.f32.mrf.mxu0  ;;  %3912 = vperm.xlu2 %11175, %v3680_v34   ;;  %5928 = vmatpush.bf16.msra.mxu1 %v10746_v60 }
 0x368   : > { %v2127_v51 = vadd.f32 %v2126_v43, %v13277_v58  ;;  %v13389_v35 = vpop.f32.mrf.mxu2 }
 0x369   : > { %v2270_v54 = vpop.f32.mrf.mxu1 }
 0x36a   : > { %v13384_v18 = vadd.f32 %v2270_v54, %v2127_v51  ;;  %3210 = vmatmul.bf16.gmra.mxu3 %v9412_v10  ;;  %3339 = vmatmul.bf16.gmra.mxu0 %v9380_v44  ;;  %v9421_v10 = vld [vmem:[%s11495_s2 + $0xcc] sm:$0xf0]  ;;  %v9391_v44 = vld [vmem:[%s11495_s2 + $0x80] sm:$0xf]  ;;  %v10674_v51 = vld [vmem:[%s11495_s2 + $0x248] sm:$0xf0] }
 0x36c   : > { %16723 = vst [vmem:[#allocation48_spill] sm:$0xff] %v13384_v18 }
 0x36d   : > { %v1997_v59 = vpop.f32.mrf.mxu3 }
 0x36e   : > { %v13392_v28 = vadd.f32 %v1997_v59, %v12504_v19  ;;  %v9424_v59 = vor.u32 %v10625_v33, %v9421_v10  ;;  %v3689_v10 = vld [vmem:[%s15946_s1 + $0x1a8] sm:$0xff] }
 0x36f   : > { %v2128_v58 = vpop.f32.mrf.mxu0  ;;  %3927 = vperm.xlu2 %11175, %v3683_v26  }
 0x370   : > { %v13395_v54 = vadd.f32 %v2128_v58, %v13301_v48  ;;  %v13406_v19 = vpop.f32.mrf.mxu2  ;;  %v9611_v48 = vld [vmem:[%s11495_s2 + $0x240] sm:$0xf]  ;;  %v9392_v58 = vor.u32 %v10618_v3, %v9391_v44  ;;  %v9433_v44 = vld [vmem:[%s11495_s2 + $0xe4] sm:$0xf0]  ;;  %v9403_v3 = vld [vmem:[%s11495_s2 + $0x98] sm:$0xf] }
 0x371   : > { %v13397_v12 = vpop.f32.mrf.mxu1 }
 0x372   : > { %16724 = vst [vmem:[#allocation53_spill] sm:$0xff] %v13395_v54 }
 0x373   : > { %16725 = vst [vmem:[#allocation89_spill] sm:$0xff] %v13397_v12  ;;  %v9612_v12 = vor.u32 %v10674_v51, %v9611_v48 }
 0x375   : > { %v1999_v43 = vpop.f32.mrf.mxu3  ;;  %3151 = vmatmul.bf16.gmra.mxu2 %v9612_v12 }
 0x376   : > { %v13411_v34 = vadd.f32 %v1999_v43, %v12514_v42  ;;  %v3686_v42 = vld [vmem:[%s15946_s1 + $0x190] sm:$0xff] }
 0x377   : > { %v2131_v54 = vpop.f32.mrf.mxu0  ;;  %3942 = vperm.xlu2 %11175, %v3686_v42   ;;  %v10621_v43 = vld [vmem:[%s11495_s2 + $0xa0] sm:$0xf0] }
 0x378   : > { %v2132_v18 = vadd.f32 %v2131_v54, %v13326_v17  ;;  %v13419_v33 = vpop.f32.mrf.mxu2  ;;  %v16727_v17 = vld [vmem:[#allocation123_spill] sm:$0xff]  ;;  %v16730_v42 = vld [vmem:[#allocation124_spill] sm:$0xff] }
 0x379   : > { %v2275_v22 = vpop.f32.mrf.mxu1 }
 0x37a   : > { %v13414_v60 = vadd.f32 %v2275_v22, %v2132_v18  ;;  %3215 = vmatmul.bf16.gmra.mxu3 %v9424_v59  ;;  %3344 = vmatmul.bf16.gmra.mxu0 %v9392_v58  ;;  %v10628_v18 = vld [vmem:[%s11495_s2 + $0xdc] sm:$0xf]  ;;  %v9623_v59 = vld [vmem:[%s11495_s2 + $0x258] sm:$0xf]  ;;  %v10677_v58 = vld [vmem:[%s11495_s2 + $0x260] sm:$0xf0] }
 0x37c   : > { %16726 = vst [vmem:[#allocation94_spill] sm:$0xff] %v13414_v60 }
 0x37d   : > { %v2002_v6 = vpop.f32.mrf.mxu3 }
 0x37e   : > { %v13422_v54 = vadd.f32 %v2002_v6, %v16727_v17  ;;  %v9404_v17 = vor.u32 %v10621_v43, %v9403_v3 }
 0x37f   : > { %v2133_v26 = vpop.f32.mrf.mxu0  ;;  %3957 = vperm.xlu2 %11175, %v3689_v10  }
 0x380   : > { %v13425_v12 = vadd.f32 %v2133_v26, %v13348_v11  ;;  %v13436_v48 = vpop.f32.mrf.mxu2  ;;  %v9436_v11 = vor.u32 %v10628_v18, %v9433_v44  ;;  %v9624_v26 = vor.u32 %v10677_v58, %v9623_v59  ;;  %v16732_v44 = vld [vmem:[#allocation125_spill] sm:$0xff]  ;;  %v9415_v58 = vld [vmem:[%s11495_s2 + $0xb0] sm:$0xf] }
 0x381   : > { %v13427_v22 = vpop.f32.mrf.mxu1 }
 0x382   : > { %16728 = vst [vmem:[#allocation73_spill] sm:$0xff] %v13425_v12 }
 0x383   : > { %16729 = vst [vmem:[#allocation80_spill] sm:$0xff] %v13427_v22 }
 0x385   : > { %v2004_v51 = vpop.f32.mrf.mxu3  ;;  %3156 = vmatmul.bf16.gmra.mxu2 %v9624_v26  ;;  %v16736_v26 = vld [vmem:[#allocation126_spill] sm:$0xff] }
 0x386   : > { %v13441_v6 = vadd.f32 %v2004_v51, %v16730_v42 }
 0x387   : > { %v2136_v22 = vpop.f32.mrf.mxu0 }
 0x388   : > { %v2137_v12 = vadd.f32 %v2136_v22, %v13362_v9  ;;  %v13446_v10 = vpop.f32.mrf.mxu2  ;;  %v10631_v9 = vld [vmem:[%s11495_s2 + $0xf4] sm:$0xf]  ;;  %v9445_v22 = vld [vmem:[%s11495_s2 + $0xfc] sm:$0xf0] }
 0x389   : > { %v2280_v60 = vpop.f32.mrf.mxu1 }
 0x38a   : > { %v13444_v49 = vadd.f32 %v2280_v60, %v2137_v12  ;;  %3220 = vmatmul.bf16.gmra.mxu3 %v9436_v11  ;;  %3349 = vmatmul.bf16.gmra.mxu0 %v9404_v17  ;;  %v10624_v60 = vld [vmem:[%s11495_s2 + $0xb8] sm:$0xf0]  ;;  %v9635_v11 = vld [vmem:[%s11495_s2 + $0x270] sm:$0xf] }
 0x38b   : > { %v10680_v17 = vld [vmem:[%s11495_s2 + $0x278] sm:$0xf0] }
 0x38c   : > { %16731 = vst [vmem:[#allocation54_spill] sm:$0xff] %v13444_v49 }
 0x38d   : > { %v2007_v18 = vpop.f32.mrf.mxu3 }
 0x38e   : > { %v13449_v3 = vadd.f32 %v2007_v18, %v16732_v44  ;;  %v9448_v18 = vor.u32 %v10631_v9, %v9445_v22  ;;  %v9416_v44 = vor.u32 %v10624_v60, %v9415_v58  ;;  %v16739_v22 = vld [vmem:[#allocation127_spill] sm:$0xff] }
 0x38f   : > { %v2138_v43 = vpop.f32.mrf.mxu0 }
 0x390   : > { %v13452_v51 = vadd.f32 %v2138_v43, %v13381_v13  ;;  %v13460_v12 = vpop.f32.mrf.mxu2  ;;  %v9636_v13 = vor.u32 %v10680_v17, %v9635_v11 }
 0x391   : > { %v13454_v59 = vpop.f32.mrf.mxu1  ;;  %16735 = vst [vmem:[#allocation100_spill] sm:$0xff] %v13460_v12 }
 0x392   : > { %16733 = vst [vmem:[#allocation61_spill] sm:$0xff] %v13452_v51 }
 0x393   : > { %16734 = vst [vmem:[#allocation96_spill] sm:$0xff] %v13454_v59 }
 0x395   : > { %v2009_v42 = vpop.f32.mrf.mxu3  ;;  %3161 = vmatmul.bf16.gmra.mxu2 %v9636_v13  ;;  %v9427_v13 = vld [vmem:[%s11495_s2 + $0xc8] sm:$0xf] }
 0x396   : > { %v13465_v49 = vadd.f32 %v2009_v42, %v16736_v26  ;;  %v9457_v26 = vld [vmem:[%s11495_s2 + $0x114] sm:$0xf0] }
 0x397   : > { %v2141_v43 = vpop.f32.mrf.mxu0 }
 0x398   : > { %v2142_v59 = vadd.f32 %v2141_v43, %v13392_v28  ;;  %v13470_v42 = vpop.f32.mrf.mxu2  ;;  %v10634_v28 = vld [vmem:[%s11495_s2 + $0x10c] sm:$0xf]  ;;  %v10683_v43 = vld [vmem:[%s11495_s2 + $0x290] sm:$0xf0] }
 0x399   : > { %v2285_v51 = vpop.f32.mrf.mxu1  ;;  %16738 = vst [vmem:[#allocation88_spill] sm:$0xff] %v13470_v42 }
 0x39a   : > { %v13468_v45 = vadd.f32 %v2285_v51, %v2142_v59  ;;  %3225 = vmatmul.bf16.gmra.mxu3 %v9448_v18  ;;  %3354 = vmatmul.bf16.gmra.mxu0 %v9416_v44  ;;  %v10627_v51 = vld [vmem:[%s11495_s2 + $0xd0] sm:$0xf0]  ;;  %v9647_v44 = vld [vmem:[%s11495_s2 + $0x288] sm:$0xf] }
 0x39b   : > { %v9648_v62 = vor.u32 %v10683_v43, %v9647_v44  ;;  %v10630_v44 = vld [vmem:[%s11495_s2 + $0xe8] sm:$0xf0] }
 0x39c   : > { %16737 = vst [vmem:[#allocation82_spill] sm:$0xff] %v13468_v45  ;;  %v16743_v45 = vld [vmem:[#allocation128_spill] sm:$0xff] }
 0x39d   : > { %v2012_v9 = vpop.f32.mrf.mxu3 }
 0x39e   : > { %v13473_v58 = vadd.f32 %v2012_v9, %v16739_v22  ;;  %v9460_v9 = vor.u32 %v10634_v28, %v9457_v26  ;;  %v9428_v22 = vor.u32 %v10627_v51, %v9427_v13  ;;  %v9469_v51 = vld [vmem:[%s11495_s2 + $0x12c] sm:$0xf0] }
 0x39f   : > { %v2143_v60 = vpop.f32.mrf.mxu0 }
 0x3a0   : > { %v13476_v11 = vadd.f32 %v2143_v60, %v13411_v34  ;;  %v13484_v59 = vpop.f32.mrf.mxu2 }
 0x3a1   : > { %v13478_v17 = vpop.f32.mrf.mxu1  ;;  %16742 = vst [vmem:[#allocation101_spill] sm:$0xff] %v13484_v59 }
 0x3a2   : > { %16740 = vst [vmem:[#allocation62_spill] sm:$0xff] %v13476_v11  ;;  %v10745_v11 = vld [vmem:[#allocation8 + $0xc0] sm:$0xff] }
 0x3a3   : > { %16741 = vst [vmem:[#allocation69_spill] sm:$0xff] %v13478_v17  ;;  %5929 = vmatpush.bf16.msra.mxu1 %v10745_v11 }
 0x3a5   : > { %v2014_v18 = vpop.f32.mrf.mxu3  ;;  %3166 = vmatmul.bf16.gmra.mxu2 %v9648_v62  ;;  %v10637_v62 = vld [vmem:[%s11495_s2 + $0x124] sm:$0xf] }
 0x3a6   : > { %v13489_v27 = vadd.f32 %v2014_v18, %v16743_v45  ;;  %v10753_v45 = vld [vmem:[#allocation8 + $0x100] sm:$0xff]  ;;  %v9472_v11 = vor.u32 %v10637_v62, %v9469_v51 }
 0x3a7   : > { %v2146_v0 = vpop.f32.mrf.mxu0  ;;  %6073 = vmatpush.bf16.msra.mxu2 %v10753_v45  ;;  %v9439_v18 = vld [vmem:[%s11495_s2 + $0xe0] sm:$0xf] }
 0x3a8   : > { %v2147_v34 = vadd.f32 %v2146_v0, %v13422_v54  ;;  %v13494_v28 = vpop.f32.mrf.mxu2 }
 0x3a9   : > { %v2290_v60 = vpop.f32.mrf.mxu1  ;;  %16745 = vst [vmem:[#allocation107_spill] sm:$0xff] %v13494_v28 }
 0x3aa   : > { %v13492_v17 = vadd.f32 %v2290_v60, %v2147_v34  ;;  %3230 = vmatmul.bf16.gmra.mxu3 %v9460_v9  ;;  %3359 = vmatmul.bf16.gmra.mxu0 %v9428_v22  ;;  %v9659_v22 = vld [vmem:[%s11495_s2 + $0x2a0] sm:$0xf]  ;;  %v10686_v34 = vld [vmem:[%s11495_s2 + $0x2a8] sm:$0xf0]  ;;  %v9440_v60 = vor.u32 %v10630_v44, %v9439_v18  ;;  %v10640_v44 = vld [vmem:[%s11495_s2 + $0x13c] sm:$0xf] }
 0x3ab   : > { %v9660_v45 = vor.u32 %v10686_v34, %v9659_v22  ;;  %v9451_v22 = vld [vmem:[%s11495_s2 + $0xf8] sm:$0xf]  ;;  %v10633_v34 = vld [vmem:[%s11495_s2 + $0x100] sm:$0xf0] }
 0x3ac   : > { %16744 = vst [vmem:[#allocation106_spill] sm:$0xff] %v13492_v17 }
 0x3ad   : > { %v3191_v26 = vpop.f32.mrf.mxu3 }
 0x3af   : > { %v2148_v13 = vpop.f32.mrf.mxu0 }
 0x3b0   : > { %v13497_v0 = vadd.f32 %v2148_v13, %v13441_v6  ;;  %v13505_v43 = vpop.f32.mrf.mxu2 }
 0x3b1   : > { %v13499_v54 = vpop.f32.mrf.mxu1  ;;  %16748 = vst [vmem:[#allocation70_spill] sm:$0xff] %v13505_v43 }
 0x3b2   : > { %16746 = vst [vmem:[#allocation90_spill] sm:$0xff] %v13497_v0 }
 0x3b3   : > { %16747 = vst [vmem:[#allocation95_spill] sm:$0xff] %v13499_v54 }
 0x3b5   : > { %v3193_v9 = vpop.f32.mrf.mxu3  ;;  %3171 = vmatmul.bf16.gmra.mxu2 %v9660_v45  ;;  %v10689_v45 = vld [vmem:[%s11495_s2 + $0x2c0] sm:$0xf0] }
 0x3b7   : > { %v2151_v6 = vpop.f32.mrf.mxu0 }
 0x3b8   : > { %v2152_v13 = vadd.f32 %v2151_v6, %v13449_v3  ;;  %v13514_v37 = vpop.f32.mrf.mxu2  ;;  %v9481_v3 = vld [vmem:[%s11495_s2 + $0x144] sm:$0xf0] }
 0x3b9   : > { %v2295_v54 = vpop.f32.mrf.mxu1  ;;  %16750 = vst [vmem:[#allocation108_spill] sm:$0xff] %v13514_v37 }
 0x3ba   : > { %v13510_v0 = vadd.f32 %v2295_v54, %v2152_v13  ;;  %3235 = vmatmul.bf16.gmra.mxu3 %v9472_v11  ;;  %3364 = vmatmul.bf16.gmra.mxu0 %v9440_v60  ;;  %v9671_v54 = vld [vmem:[%s11495_s2 + $0x2b8] sm:$0xf]  ;;  %v9484_v11 = vor.u32 %v10640_v44, %v9481_v3  ;;  %v9452_v60 = vor.u32 %v10633_v34, %v9451_v22  ;;  %v16755_v3 = vmov 0  ;;  %v10643_v34 = vld [vmem:[%s11495_s2 + $0x154] sm:$0xf] }
 0x3bb   : > { %v9672_v13 = vor.u32 %v10689_v45, %v9671_v54  ;;  %v16756_v3 = vsel %vm13538_vm2, 4294967295, %v16755_v3  ;;  %v9493_v54 = vld [vmem:[%s11495_s2 + $0x15c] sm:$0xf0]  ;;  %v9463_v45 = vld [vmem:[%s11495_s2 + $0x110] sm:$0xf] }
 0x3bc   : > { %16749 = vst [vmem:[#allocation77_spill] sm:$0xff] %v13510_v0 }
 0x3bd   : > { %v13512_v17 = vpop.f32.mrf.mxu3  ;;  %16757 = vst [vmem:[#allocation78_spill] sm:$0xff] %v16756_v3 }
 0x3bf   : > { %v2153_v62 = vpop.f32.mrf.mxu0 }
 0x3c0   : > { %v13517_v51 = vadd.f32 %v2153_v62, %v13465_v49  ;;  %v13529_v37 = vpop.f32.mrf.mxu2 }
 0x3c1   : > { %v13519_v18 = vpop.f32.mrf.mxu1  ;;  %16753 = vst [vmem:[#allocation97_spill] sm:$0xff] %v13529_v37 }
 0x3c2   : > { %16751 = vst [vmem:[#allocation113_spill] sm:$0xff] %v13517_v51 }
 0x3c3   : > { %16752 = vst [vmem:[#allocation114_spill] sm:$0xff] %v13519_v18 }
 0x3c5   : > { %v13525_v6 = vpop.f32.mrf.mxu3  ;;  %3176 = vmatmul.bf16.gmra.mxu2 %v9672_v13  ;;  %v16760_v13 = vld [vmem:[#allocation40_spill] sm:$0xff] }
 0x3c7   : > { %v2156_v0 = vpop.f32.mrf.mxu0 }
 0x3c8   : > { %v2157_v49 = vadd.f32 %v2156_v0, %v13473_v58  ;;  %v13545_v0 = vpop.f32.mrf.mxu2 }
 0x3c9   : > { %v2300_v62 = vpop.f32.mrf.mxu1  ;;  %16759 = vst [vmem:[#allocation115_spill] sm:$0xff] %v13545_v0 }
 0x3ca   : > { %v13532_v18 = vadd.f32 %v2300_v62, %v2157_v49  ;;  %3240 = vmatmul.bf16.gmra.mxu3 %v9484_v11  ;;  %3369 = vmatmul.bf16.gmra.mxu0 %v9452_v60  ;;  %v10636_v11 = vld [vmem:[%s11495_s2 + $0x118] sm:$0xf0]  ;;  %v3192_v49 = vadd.f32 %v3191_v26, %v16760_v13  ;;  %v9496_v62 = vor.u32 %v10643_v34, %v9493_v54 }
 0x3cb   : > { %v16763_v54 = vld [vmem:[#allocation29_spill] sm:$0xff] }
 0x3cc   : > { %16754 = vst [vmem:[#allocation102_spill] sm:$0xff] %v13532_v18  ;;  %v9464_v18 = vor.u32 %v10636_v11, %v9463_v45  ;;  %v3194_v45 = vadd.f32 %v3193_v9, %v16763_v54 }
 0x3cd   : > { %v13534_v44 = vpop.f32.mrf.mxu3 }
 0x3cf   : > { %v2158_v22 = vpop.f32.mrf.mxu0 }
 0x3d0   : > { %v13543_v58 = vadd.f32 %v2158_v22, %v13489_v27  ;;  %v13557_v27 = vld [vmem:[%s15948_s3] ss:$0 sm:$0xff] }
 0x3d1   : > { %v16761_v22 = vld [vmem:[#allocation30_spill] sm:$0xff] }
 0x3d2   : > { %16758 = vst [vmem:[#allocation85_spill] sm:$0xff] %v13543_v58  ;;  %v13560_v58 = vpop.f32.mrf.mxu2 }
 0x3d3   : > { %16762 = vst [vmem:[#allocation119_spill] sm:$0xff] %v13560_v58  ;;  %v9475_v58 = vld [vmem:[%s11495_s2 + $0x128] sm:$0xf] }
 0x3d5   : > { %v13551_v60 = vpop.f32.mrf.mxu3 }
 0x3d7   : > { %v3335_v51 = vpop.f32.mrf.mxu0 }
 0x3d8   : > { %v3336_v37 = vadd.f32 %v3335_v51, %v3192_v49  ;;  %v3693_v51 = vpop.permute.xlu0 %3692 }
 0x3da   : > { %v3470_v3 = vadd.f32 %v3336_v37, %v16761_v22  ;;  %3245 = vmatmul.bf16.gmra.mxu3 %v9496_v62  ;;  %3374 = vmatmul.bf16.gmra.mxu0 %v9464_v18  ;;  %v10646_v37 = vld [vmem:[%s11495_s2 + $0x16c] sm:$0xf]  ;;  %v16764_v18 = vld [vmem:[#allocation22_spill] sm:$0xff] }
 0x3db   : > { %v9508_v54 = vor.u32 %v10646_v37, %v9505_v61 }
 0x3dc   : > { %v3528_v26 = vadd.f32 %v13557_v27, %v3470_v3 }
 0x3dd   : > { %v13563_v34 = vpop.f32.mrf.mxu3 }
 0x3de   : > { %v3582_v11 = vmax.f32 %v3528_v26, 0.0  ;;  %v5075_v26 = vld [vmem:[#allocation2 + $0x20] sm:$0x8] }
 0x3df   : > { %v3337_v13 = vpop.f32.mrf.mxu0 }
 0x3e0   : > { %v3960_v49 = vmul.f32 %v3693_v51, %v3582_v11  ;;  %v3338_v0 = vadd.f32 %v3337_v13, %v3194_v45  ;;  %v9476_v45 = vor.u32 %v10639_v8, %v9475_v58  ;;  %v13578_v11 = vpop.f32.mrf.mxu2  ;;  %v3698_v41 = vpop.permute.xlu0 %3697 }
 0x3e1   : > { %16767 = vst [vmem:[#allocation120_spill] sm:$0xff] %v13578_v11 }
 0x3e2   : > { %v4014_v62 = vpack.c.bf16 %v3960_v49, %v3960_v49  ;;  %v3471_v22 = vadd.f32 %v3338_v0, %v16764_v18 }
 0x3e4   : > { %v4088_v43 = vshrl.u32 %v4014_v62, 16  ;;  %v4091_v3 = vshll.u32 %v4014_v62, 16  ;;  %4691 = vst [vmem:[#allocation2 + $0x28] sm:$0xf] %v4014_v62  ;;  %v3529_v23 = vadd.f32 %v13557_v27, %v3471_v22  ;;  %v3197_v62 = vadd.f32 %v13512_v17, %v12909_v56  ;;  %v4630_v22 = vld [vmem:[#allocation2 + $0x24] sm:$0xf] }
 0x3e5   : > { %v13576_v51 = vpop.f32.mrf.mxu3  ;;  %v16768_v56 = vld [vmem:[#allocation24_spill] sm:$0xff] }
 0x3e6   : > { %v4090_v0 = vrot.slane %v4088_v43, 7  ;;  %v4748_v13 = vrot.slane %v4091_v3, 5  ;;  %v4749_v49 = vrot.slane %v4088_v43, 4  ;;  %v3583_v18 = vmax.f32 %v3529_v23, 0.0  ;;  %v3703_v43 = vpop.permute.xlu1 %3702 }
 0x3e7   : > { %v3340_v28 = vpop.f32.mrf.mxu0 }
 0x3e8   : > { %v4093_v59 = vor.u32 %v4091_v3, %v4090_v0  ;;  %v5076_v38 = vsel %vm13572_vm6, %v4748_v13, %v5075_v26  ;;  %v3961_v8 = vmul.f32 %v3698_v41, %v3583_v18  ;;  %v3341_v61 = vadd.f32 %v3340_v28, %v3197_v62  ;;  %v10768_v41 = vld [vmem:[#allocation8 + $0x178] sm:$0xff] }
 0x3e9   : > { %5077 = vst [vmem:[#allocation2 + $0x20] sm:$0x8] %v5076_v38  ;;  %v4750_v37 = vor.u32 %v4749_v49, %v4748_v13  ;;  %v3199_v28 = vadd.f32 %v13525_v6, %v12920_v55  ;;  %6210 = vmatpush.bf16.msrb.mxu3 %v10768_v41 }
 0x3ea   : > { %v4631_v58 = vsel %vm4629_vm7, %v4093_v59, %v4630_v22  ;;  %3250 = vmatmul.bf16.gmra.mxu3 %v9508_v54  ;;  %3379 = vmatmul.bf16.gmra.mxu0 %v9476_v45  ;;  %v4015_v23 = vpack.c.bf16 %v3961_v8, %v3961_v8  ;;  %v3472_v17 = vadd.f32 %v3341_v61, %v16768_v56  ;;  %v10725_v59 = vld [vmem:[#allocation8 + $0x38] sm:$0xff]  ;;  %v13596_v22 = vpop.f32.mrf.mxu2  ;;  %v4094_v8 = vrot.slane %v4090_v0, 4  ;;  %v10649_v56 = vld [vmem:[%s11495_s2 + $0x184] sm:$0xf] }
 0x3eb   : > { %4632 = vst [vmem:[#allocation2 + $0x24] sm:$0xf] %v4631_v58  ;;  %v4751_v54 = vrot.slane %v4750_v37, 4  ;;  %6675 = vmatpush.bf16.msrb.mxu0 %v10725_v59  ;;  %v16774_v37 = vld [vmem:[#allocation38_spill] sm:$0xff] }
 0x3ec   : > { %v4096_v11 = vshrl.u32 %v4015_v23, 16  ;;  %v4099_v3 = vshll.u32 %v4015_v23, 16  ;;  %4692 = vst [vmem:[#allocation2 + $0x34] sm:$0xf] %v4015_v23  ;;  %v3530_v9 = vadd.f32 %v13557_v27, %v3472_v17  ;;  %v9517_v17 = vld [vmem:[%s11495_s2 + $0x18c] sm:$0xf0] }
 0x3ed   : > { %v13587_v38 = vpop.f32.mrf.mxu3  ;;  %16771 = vst [vmem:[#allocation103_spill] sm:$0xff] %v13596_v22  ;;  %v9487_v59 = vld [vmem:[%s11495_s2 + $0x140] sm:$0xf]  ;;  %v10642_v22 = vld [vmem:[%s11495_s2 + $0x148] sm:$0xf0] }
 0x3ee   : > { %v4098_v45 = vrot.slane %v4096_v11, 7  ;;  %v4752_v13 = vrot.slane %v4099_v3, 5  ;;  %v4754_v49 = vrot.slane %v4096_v11, 4  ;;  %v3584_v18 = vmax.f32 %v3530_v9, 0.0 }
 0x3ef   : > { %v3342_v62 = vpop.f32.mrf.mxu0 }
 0x3f0   : > { %v3343_v6 = vadd.f32 %v3342_v62, %v3199_v28  ;;  %v4101_v61 = vor.u32 %v4099_v3, %v4098_v45  ;;  %v4753_v11 = vsel %vm13592_vm11, %v4751_v54, %v4752_v13  ;;  %v3962_v58 = vmul.f32 %v3703_v43, %v3584_v18  ;;  %v10733_v3 = vld [vmem:[#allocation8 + $0x78] sm:$0xff] }
 0x3f1   : > { %5078 = vst [vmem:[#allocation2 + $0x2c] sm:$0xf] %v4753_v11  ;;  %v4755_v41 = vor.u32 %v4754_v49, %v4752_v13  ;;  %v10741_v28 = vld [vmem:[#allocation8 + $0xb8] sm:$0xff]  ;;  %v9520_v54 = vor.u32 %v10649_v56, %v9517_v17  ;;  %v9488_v11 = vor.u32 %v10642_v22, %v9487_v59  ;;  %6819 = vmatpush.bf16.msrb.mxu1 %v10733_v3 }
 0x3f2   : > { %v3473_v23 = vadd.f32 %v3343_v6, %v16774_v37  ;;  %v4102_v9 = vsel %vm13600_vm12, %v4094_v8, %v4101_v61  ;;  %v4016_v42 = vpack.c.bf16 %v3962_v58, %v3962_v58  ;;  %6963 = vmatpush.bf16.msrb.mxu2 %v10741_v28  ;;  %v3708_v8 = vpop.permute.xlu1 %3707  ;;  %v3202_v13 = vadd.f32 %v13534_v44, %v12943_v47  ;;  %v13618_v2 = vld [vmem:[#allocation2 + $0x24] sm:$0xff]  ;;  %v13620_v17 = vpop.f32.mrf.mxu2 }
 0x3f3   : > { %4633 = vst [vmem:[#allocation2 + $0x30] sm:$0xf] %v4102_v9  ;;  %v4756_v49 = vrot.slane %v4755_v41, 4  ;;  %v16777_v44 = vld [vmem:[#allocation43_spill] sm:$0xff]  ;;  %v16180_v28 = vunpack.c.l.b16 %v13618_v2 }
 0x3f4   : > { %v3531_v0 = vadd.f32 %v13557_v27, %v3473_v23  ;;  %v4105_v43 = vshrl.u32 %v4016_v42, 16  ;;  %v4108_v18 = vshll.u32 %v4016_v42, 16  ;;  %4693 = vst [vmem:[#allocation2 + $0x40] sm:$0xf] %v4016_v42  ;;  %v4103_v42 = vrot.slane %v4098_v45, 4 }
 0x3f5   : > { %v13614_v62 = vpop.f32.mrf.mxu3  ;;  %16775 = vst [vmem:[#allocation109_spill] sm:$0xff] %v13618_v2  ;;  %v16179_v45 = vunpack.c.h.b16 %v13618_v2  ;;  %v10645_v2 = vld [vmem:[%s11495_s2 + $0x160] sm:$0xf0] }
 0x3f6   : > { %v3585_v6 = vmax.f32 %v3531_v0, 0.0  ;;  %v4107_v58 = vrot.slane %v4105_v43, 7  ;;  %v4757_v37 = vrot.slane %v4108_v18, 5  ;;  %v4759_v23 = vrot.slane %v4105_v43, 4  ;;  %16776 = vst [vmem:[#allocation86_spill] sm:$0xff] %v13620_v17 }
 0x3f7   : > { %v3345_v61 = vpop.f32.mrf.mxu0  ;;  %v9499_v17 = vld [vmem:[%s11495_s2 + $0x158] sm:$0xf] }
 0x3f8   : > { %v3963_v9 = vmul.f32 %v3708_v8, %v3585_v6  ;;  %v3346_v56 = vadd.f32 %v3345_v61, %v3202_v13  ;;  %v4110_v0 = vor.u32 %v4108_v18, %v4107_v58  ;;  %v4758_v22 = vsel %vm13592_vm11, %v4756_v49, %v4757_v37  ;;  %v3713_v8 = vpop.permute.xlu2 %3712 }
 0x3f9   : > { %v4760_v59 = vor.u32 %v4759_v23, %v4757_v37  ;;  %5079 = vst [vmem:[#allocation2 + $0x38] sm:$0xf] %v4758_v22  ;;  %v3204_v61 = vadd.f32 %v13551_v60, %v12957_v36  ;;  %v4112_v36 = vrot.slane %v4107_v58, 4 }
 0x3fa   : > { %3255 = vmatmul.bf16.gmra.mxu3 %v9520_v54  ;;  %3384 = vmatmul.bf16.gmra.mxu0 %v9488_v11  ;;  %v4017_v47 = vpack.c.bf16 %v3963_v9, %v3963_v9  ;;  %v3474_v41 = vadd.f32 %v3346_v56, %v16777_v44  ;;  %v5143_v3 = vld [vmem:[#allocation2 + $0x30] sm:$0xff]  ;;  %v4111_v43 = vsel %vm13600_vm12, %v4103_v42, %v4110_v0 }
 0x3fb   : > { %v5457_v6 = vunpack.c.l.b16 %v5143_v3  ;;  %v5458_v18 = vunpack.c.h.b16 %v5143_v3  ;;  %4634 = vst [vmem:[#allocation2 + $0x3c] sm:$0xf] %v4111_v43  ;;  %v4761_v37 = vrot.slane %v4760_v59, 4  ;;  %v16778_v3 = vld [vmem:[#allocation31_spill] sm:$0xff] }
 0x3fc   : > { %v4114_v13 = vshrl.u32 %v4017_v47, 16  ;;  %v4117_v49 = vshll.u32 %v4017_v47, 16  ;;  %v3532_v54 = vadd.f32 %v13557_v27, %v3474_v41  ;;  %4694 = vst [vmem:[#allocation2 + $0x4c] sm:$0xf] %v4017_v47 }
 0x3fd   : > { %v13630_v11 = vpop.f32.mrf.mxu3  ;;  %v5616_v23 = vpack.c.b16 %v5457_v6, %v16180_v28  ;;  %v5617_v9 = vpack.c.b16 %v5458_v18, %v16179_v45  ;;  %v10652_v45 = vld [vmem:[%s11495_s2 + $0x19c] sm:$0xf]  ;;  %v9529_v28 = vld [vmem:[%s11495_s2 + $0x1a4] sm:$0xf0] }
 0x3fe   : > { %v4116_v56 = vrot.slane %v4114_v13, 7  ;;  %v4762_v42 = vrot.slane %v4117_v49, 5  ;;  %v4764_v0 = vrot.slane %v4114_v13, 4  ;;  %v3586_v22 = vmax.f32 %v3532_v54, 0.0 }
 0x3ff   : > { %v3347_v44 = vpop.f32.mrf.mxu0  ;;  %5930 = vmatmul.bf16.vlgmr.msra.gmra.mxu1 %v5616_v23  ;;  %6074 = vmatmul.bf16.vlgmr.msra.gmra.mxu2 %v5617_v9 }
 0x400   : > { %v3348_v41 = vadd.f32 %v3347_v44, %v3204_v61  ;;  %v4119_v60 = vor.u32 %v4117_v49, %v4116_v56  ;;  %v4763_v59 = vsel %vm13592_vm11, %v4761_v37, %v4762_v42  ;;  %v3964_v47 = vmul.f32 %v3713_v8, %v3586_v22  ;;  %v13647_v61 = vpop.f32.mrf.mxu2 }
 0x401   : > { %5080 = vst [vmem:[#allocation2 + $0x44] sm:$0xf] %v4763_v59  ;;  %v4765_v54 = vor.u32 %v4764_v0, %v4762_v42  ;;  %v9532_v8 = vor.u32 %v10652_v45, %v9529_v28  ;;  %v3718_v42 = vpop.permute.xlu2 %3717  ;;  %v3207_v0 = vadd.f32 %v13563_v34, %v12983_v16  ;;  %v4121_v12 = vrot.slane %v4116_v56, 4 }
 0x402   : > { %v3475_v43 = vadd.f32 %v3348_v41, %v16778_v3  ;;  %v4120_v13 = vsel %vm13600_vm12, %v4112_v36, %v4119_v60  ;;  %16779 = vst [vmem:[#allocation92_spill] sm:$0xff] %v13647_v61  ;;  %v4018_v58 = vpack.c.bf16 %v3964_v47, %v3964_v47  ;;  %v5145_v23 = vld [vmem:[#allocation2 + $0x3c] sm:$0xff]  ;;  %v9500_v36 = vor.u32 %v10645_v2, %v9499_v17 }
 0x403   : > { %4635 = vst [vmem:[#allocation2 + $0x48] sm:$0xf] %v4120_v13  ;;  %v5460_v9 = vunpack.c.l.b16 %v5145_v23  ;;  %v5461_v22 = vunpack.c.h.b16 %v5145_v23  ;;  %v4766_v60 = vrot.slane %v4765_v54, 4 }
 0x404   : > { %v3533_v49 = vadd.f32 %v13557_v27, %v3475_v43  ;;  %v4123_v44 = vshrl.u32 %v4018_v58, 16  ;;  %v4126_v41 = vshll.u32 %v4018_v58, 16  ;;  %4695 = vst [vmem:[#allocation2 + $0x58] sm:$0xf] %v4018_v58  ;;  %v13663_v58 = vld [vmem:[#allocation2 + $0x38] sm:$0xf] }
 0x405   : > { %v13650_v37 = vpop.f32.mrf.mxu3  ;;  %v13654_v47 = vpack.c.b16 %v5460_v9, %v5457_v6  ;;  %v13656_v43 = vpack.c.b16 %v5461_v22, %v5458_v18  ;;  %v16782_v6 = vld [vmem:[#allocation34_spill] sm:$0xff] }
 0x406   : > { %v3587_v59 = vmax.f32 %v3533_v49, 0.0  ;;  %v4125_v13 = vrot.slane %v4123_v44, 7  ;;  %v4767_v61 = vrot.slane %v4126_v41, 5  ;;  %v4769_v28 = vrot.slane %v4123_v44, 4 }
 0x407   : > { %v3350_v3 = vpop.f32.mrf.mxu0  ;;  %16780 = vst [vmem:[#allocation110_spill] sm:$0xff] %v13654_v47  ;;  %v3209_v49 = vadd.f32 %v13576_v51, %v13003_v7  ;;  %v16184_v51 = vunpack.c.l.b16 %v13663_v58 }
 0x408   : > { %16781 = vst [vmem:[#allocation93_spill] sm:$0xff] %v13656_v43  ;;  %v3965_v45 = vmul.f32 %v3718_v42, %v3587_v59  ;;  %v3351_v23 = vadd.f32 %v3350_v3, %v3207_v0  ;;  %v4128_v63 = vor.u32 %v4126_v41, %v4125_v13  ;;  %v4768_v2 = vsel %vm13592_vm11, %v4766_v60, %v4767_v61  ;;  %v13660_v16 = vld [vmem:[#allocation2 + $0x44] sm:$0xf]  ;;  %v13672_v42 = vpop.f32.mrf.mxu2 }
 0x409   : > { %v4770_v17 = vor.u32 %v4769_v28, %v4767_v61  ;;  %5081 = vst [vmem:[#allocation2 + $0x50] sm:$0xf] %v4768_v2  ;;  %v16183_v0 = vunpack.c.l.b16 %v13660_v16 }
 0x40a   : > { %3260 = vmatmul.bf16.gmra.mxu3 %v9532_v8  ;;  %3389 = vmatmul.bf16.gmra.mxu0 %v9500_v36  ;;  %v4019_v34 = vpack.c.bf16 %v3965_v45, %v3965_v45  ;;  %v3476_v18 = vadd.f32 %v3351_v23, %v16782_v6  ;;  %v5147_v54 = vld [vmem:[#allocation2 + $0x48] sm:$0xff]  ;;  %v4129_v56 = vsel %vm13600_vm12, %v4121_v12, %v4128_v63 }
 0x40b   : > { %v5463_v44 = vunpack.c.l.b16 %v5147_v54  ;;  %v5464_v41 = vunpack.c.h.b16 %v5147_v54  ;;  %4636 = vst [vmem:[#allocation2 + $0x54] sm:$0xf] %v4129_v56  ;;  %v4771_v60 = vrot.slane %v4770_v17, 4  ;;  %v4130_v17 = vrot.slane %v4125_v13, 4  ;;  %v16785_v54 = vld [vmem:[#allocation25_spill] sm:$0xff] }
 0x40c   : > { %v4132_v61 = vshrl.u32 %v4019_v34, 16  ;;  %v4135_v8 = vshll.u32 %v4019_v34, 16  ;;  %v3534_v59 = vadd.f32 %v13557_v27, %v3476_v18  ;;  %16783 = vst [vmem:[#allocation98_spill] sm:$0xff] %v13672_v42 }
 0x40d   : > { %v13670_v36 = vpop.f32.mrf.mxu3  ;;  %4696 = vst [vmem:[#allocation2 + $0x64] sm:$0xf] %v4019_v34  ;;  %v5619_v3 = vpack.c.b16 %v5463_v44, %v5460_v9  ;;  %v5620_v7 = vpack.c.b16 %v5464_v41, %v5461_v22  ;;  %v13680_v9 = vpack.c.b16 %v16183_v0, %v16184_v51  ;;  %v3723_v22 = vpop.permute.xlu0 %3722 }
 0x40e   : > { %v4134_v63 = vrot.slane %v4132_v61, 7  ;;  %v4772_v12 = vrot.slane %v4135_v8, 5  ;;  %v4774_v28 = vrot.slane %v4132_v61, 4  ;;  %v3588_v45 = vmax.f32 %v3534_v59, 0.0  ;;  %v9541_v61 = vld [vmem:[%s11495_s2 + $0x1bc] sm:$0xf0] }
 0x40f   : > { %v3352_v23 = vpop.f32.mrf.mxu0  ;;  %5935 = vmatmul.bf16.gmra.mxu1 %v5619_v3  ;;  %6079 = vmatmul.bf16.gmra.mxu2 %v5620_v7  ;;  %16784 = vst [vmem:[#allocation116_spill] sm:$0xff] %v13680_v9  ;;  %v9511_v7 = vld [vmem:[%s11495_s2 + $0x170] sm:$0xf] }
 0x410   : > { %v3353_v2 = vadd.f32 %v3352_v23, %v3209_v49  ;;  %v4137_v34 = vor.u32 %v4135_v8, %v4134_v63  ;;  %v4773_v6 = vsel %vm13592_vm11, %v4771_v60, %v4772_v12  ;;  %v3966_v18 = vmul.f32 %v3723_v22, %v3588_v45  ;;  %v10655_v49 = vld [vmem:[%s11495_s2 + $0x1b4] sm:$0xf]  ;;  %v10648_v23 = vld [vmem:[%s11495_s2 + $0x178] sm:$0xf0]  ;;  %v3728_v22 = vpop.permute.xlu1 %3727 }
 0x411   : > { %5082 = vst [vmem:[#allocation2 + $0x5c] sm:$0xf] %v4773_v6  ;;  %v4775_v3 = vor.u32 %v4774_v28, %v4772_v12  ;;  %v9544_v60 = vor.u32 %v10655_v49, %v9541_v61  ;;  %v9512_v43 = vor.u32 %v10648_v23, %v9511_v7  ;;  %v3212_v12 = vadd.f32 %v13587_v38, %v13032_v14 }
 0x412   : > { %v3477_v56 = vadd.f32 %v3353_v2, %v16785_v54  ;;  %v4138_v59 = vsel %vm13600_vm12, %v4130_v17, %v4137_v34  ;;  %v4020_v0 = vpack.c.bf16 %v3966_v18, %v3966_v18  ;;  %v5149_v8 = vld [vmem:[#allocation2 + $0x54] sm:$0xff]  ;;  %v13696_v34 = vpop.f32.mrf.mxu2  ;;  %v4139_v42 = vrot.slane %v4134_v63, 4 }
 0x413   : > { %4637 = vst [vmem:[#allocation2 + $0x60] sm:$0xf] %v4138_v59  ;;  %v5466_v6 = vunpack.c.l.b16 %v5149_v8  ;;  %v5467_v45 = vunpack.c.h.b16 %v5149_v8  ;;  %v4776_v28 = vrot.slane %v4775_v3, 4  ;;  %v3214_v63 = vadd.f32 %v13614_v62, %v13048_v30 }
 0x414   : > { %v3535_v13 = vadd.f32 %v13557_v27, %v3477_v56  ;;  %v4141_v2 = vshrl.u32 %v4020_v0, 16  ;;  %v4144_v54 = vshll.u32 %v4020_v0, 16  ;;  %4697 = vst [vmem:[#allocation2 + $0x70] sm:$0xf] %v4020_v0 }
 0x415   : > { %v13692_v51 = vpop.f32.mrf.mxu3  ;;  %16786 = vst [vmem:[#allocation14_spill] sm:$0xff] %v13696_v34  ;;  %v13698_v18 = vpack.c.b16 %v5466_v6, %v5463_v44  ;;  %v13700_v56 = vpack.c.b16 %v5467_v45, %v5464_v41  ;;  %v16789_v44 = vld [vmem:[#allocation26_spill] sm:$0xff] }
 0x416   : > { %v3589_v9 = vmax.f32 %v3535_v13, 0.0  ;;  %v4143_v49 = vrot.slane %v4141_v2, 7  ;;  %v4777_v61 = vrot.slane %v4144_v54, 5  ;;  %v4779_v59 = vrot.slane %v4141_v2, 4  ;;  %v13709_v13 = vld [vmem:[#allocation2 + $0x50] sm:$0xf] }
 0x417   : > { %v3355_v17 = vpop.f32.mrf.mxu0  ;;  %16787 = vst [vmem:[#allocation99_spill] sm:$0xff] %v13698_v18 }
 0x418   : > { %16788 = vst [vmem:[#allocation104_spill] sm:$0xff] %v13700_v56  ;;  %v3967_v8 = vmul.f32 %v3728_v22, %v3589_v9  ;;  %v3356_v47 = vadd.f32 %v3355_v17, %v3212_v12  ;;  %v4146_v0 = vor.u32 %v4144_v54, %v4143_v49  ;;  %v4778_v7 = vsel %vm13592_vm11, %v4776_v28, %v4777_v61  ;;  %v13704_v14 = vld [vmem:[#allocation2 + $0x5c] sm:$0xf]  ;;  %v10767_v12 = vld [vmem:[#allocation8 + $0x170] sm:$0xff] }
 0x419   : > { %v4780_v23 = vor.u32 %v4779_v59, %v4777_v61  ;;  %5083 = vst [vmem:[#allocation2 + $0x68] sm:$0xf] %v4778_v7  ;;  %v16185_v28 = vunpack.c.l.b16 %v13704_v14  ;;  %6211 = vmatpush.bf16.msrb.mxu3 %v10767_v12  ;;  %v9553_v12 = vld [vmem:[%s11495_s2 + $0x1d4] sm:$0xf0] }
 0x41a   : > { %3265 = vmatmul.bf16.gmra.mxu3 %v9544_v60  ;;  %3394 = vmatmul.bf16.gmra.mxu0 %v9512_v43  ;;  %v4021_v38 = vpack.c.bf16 %v3967_v8, %v3967_v8  ;;  %v3478_v41 = vadd.f32 %v3356_v47, %v16789_v44  ;;  %v13707_v3 = vld [vmem:[#allocation2 + $0x60] sm:$0xff]  ;;  %v4147_v9 = vsel %vm13600_vm12, %v4139_v42, %v4146_v0  ;;  %v16186_v42 = vunpack.c.l.b16 %v13709_v13 }
 0x41b   : > { %v5469_v22 = vunpack.c.l.b16 %v13707_v3  ;;  %v5470_v43 = vunpack.c.h.b16 %v13707_v3  ;;  %4638 = vst [vmem:[#allocation2 + $0x6c] sm:$0xf] %v4147_v9  ;;  %v4781_v17 = vrot.slane %v4780_v23, 4  ;;  %v4148_v23 = vrot.slane %v4143_v49, 4  ;;  %v13733_v3 = vpop.f32.mrf.mxu2  ;;  %v16792_v9 = vld [vmem:[#allocation44_spill] sm:$0xff] }
 0x41c   : > { %v4150_v60 = vshrl.u32 %v4021_v38, 16  ;;  %v4153_v2 = vshll.u32 %v4021_v38, 16  ;;  %v3536_v54 = vadd.f32 %v13557_v27, %v3478_v41  ;;  %4698 = vst [vmem:[#allocation2 + $0x7c] sm:$0xf] %v4021_v38 }
 0x41d   : > { %v13718_v47 = vpop.f32.mrf.mxu3  ;;  %v5622_v30 = vpack.c.b16 %v5469_v22, %v5466_v6  ;;  %v5623_v62 = vpack.c.b16 %v5470_v43, %v5467_v45  ;;  %v13728_v6 = vpack.c.b16 %v16185_v28, %v16186_v42  ;;  %v3733_v45 = vpop.permute.xlu2 %3732  ;;  %16791 = vst [vmem:[#allocation16_spill] sm:$0xff] %v13733_v3  ;;  %v10651_v28 = vld [vmem:[%s11495_s2 + $0x190] sm:$0xf0] }
 0x41e   : > { %v13722_v61 = vrot.slane %v4150_v60, 7  ;;  %v4782_v59 = vrot.slane %v4153_v2, 5  ;;  %v4784_v8 = vrot.slane %v4150_v60, 4  ;;  %v3590_v0 = vmax.f32 %v3536_v54, 0.0  ;;  %v10658_v54 = vld [vmem:[%s11495_s2 + $0x1cc] sm:$0xf] }
 0x41f   : > { %v3357_v7 = vpop.f32.mrf.mxu0  ;;  %5940 = vmatmul.bf16.gmra.mxu1 %v5622_v30  ;;  %6084 = vmatmul.bf16.gmra.mxu2 %v5623_v62  ;;  %16790 = vst [vmem:[#allocation15_spill] sm:$0xff] %v13728_v6  ;;  %v10732_v6 = vld [vmem:[#allocation8 + $0x70] sm:$0xff] }
 0x420   : > { %v3358_v44 = vadd.f32 %v3357_v7, %v3214_v63  ;;  %v4155_v38 = vor.u32 %v4153_v2, %v13722_v61  ;;  %v4783_v41 = vsel %vm13592_vm11, %v4781_v17, %v4782_v59  ;;  %v3968_v63 = vmul.f32 %v3733_v45, %v3590_v0  ;;  %v9523_v7 = vld [vmem:[%s11495_s2 + $0x188] sm:$0xf]  ;;  %v10724_v17 = vld [vmem:[#allocation8 + $0x30] sm:$0xff]  ;;  %6820 = vmatpush.bf16.msrb.mxu1 %v10732_v6 }
 0x421   : > { %5084 = vst [vmem:[#allocation2 + $0x74] sm:$0xf] %v4783_v41  ;;  %v4785_v62 = vor.u32 %v4784_v8, %v4782_v59  ;;  %v9556_v0 = vor.u32 %v10658_v54, %v9553_v12  ;;  %v10740_v41 = vld [vmem:[#allocation8 + $0xb0] sm:$0xff]  ;;  %v9524_v59 = vor.u32 %v10651_v28, %v9523_v7  ;;  %6676 = vmatpush.bf16.msrb.mxu0 %v10724_v17  ;;  %v3738_v8 = vpop.permute.xlu0 %3737  ;;  %v4157_v28 = vrot.slane %v13722_v61, 4 }
 0x422   : > { %v3479_v60 = vadd.f32 %v3358_v44, %v16792_v9  ;;  %v4156_v30 = vsel %vm13600_vm12, %v4148_v23, %v4155_v38  ;;  %v4022_v49 = vpack.c.bf16 %v3968_v63, %v3968_v63  ;;  %v5153_v42 = vld [vmem:[#allocation2 + $0x6c] sm:$0xff]  ;;  %v3217_v38 = vadd.f32 %v13630_v11, %v13075_v25  ;;  %6964 = vmatpush.bf16.msrb.mxu2 %v10740_v41  ;;  %v13759_v41 = vld [vmem:[#allocation2 + $0x68] sm:$0xf] }
 0x423   : > { %4639 = vst [vmem:[#allocation2 + $0x78] sm:$0xf] %v4156_v30  ;;  %v5472_v45 = vunpack.c.l.b16 %v5153_v42  ;;  %v5473_v44 = vunpack.c.h.b16 %v5153_v42  ;;  %v4786_v63 = vrot.slane %v4785_v62, 4  ;;  %v13757_v17 = vpop.f32.mrf.mxu2 }
 0x424   : > { %v3537_v2 = vadd.f32 %v13557_v27, %v3479_v60  ;;  %v4159_v9 = vshrl.u32 %v4022_v49, 16  ;;  %v4162_v18 = vshll.u32 %v4022_v49, 16  ;;  %4699 = vst [vmem:[#allocation2 + $0x88] sm:$0xf] %v4022_v49 }
 0x425   : > { %v13743_v56 = vpop.f32.mrf.mxu3  ;;  %v13747_v30 = vpack.c.b16 %v5472_v45, %v5469_v22  ;;  %v13749_v54 = vpack.c.b16 %v5473_v44, %v5470_v43  ;;  %v16795_v22 = vld [vmem:[#allocation49_spill] sm:$0xff]  ;;  %16796 = vst [vmem:[#allocation17_spill] sm:$0xff] %v13757_v17 }
 0x426   : > { %v3591_v23 = vmax.f32 %v3537_v2, 0.0  ;;  %v4161_v42 = vrot.slane %v4159_v9, 7  ;;  %v4787_v12 = vrot.slane %v4162_v18, 5  ;;  %v4789_v3 = vrot.slane %v4159_v9, 4 }
 0x427   : > { %v3360_v60 = vpop.f32.mrf.mxu0  ;;  %16793 = vst [vmem:[#allocation105_spill] sm:$0xff] %v13747_v30 }
 0x428   : > { %16794 = vst [vmem:[#allocation111_spill] sm:$0xff] %v13749_v54  ;;  %v3969_v34 = vmul.f32 %v3738_v8, %v3591_v23  ;;  %v3361_v49 = vadd.f32 %v3360_v60, %v3217_v38  ;;  %v4164_v7 = vor.u32 %v4162_v18, %v4161_v42  ;;  %v4788_v6 = vsel %vm13592_vm11, %v4786_v63, %v4787_v12  ;;  %v13754_v25 = vld [vmem:[#allocation2 + $0x74] sm:$0xf] }
 0x429   : > { %v4790_v2 = vor.u32 %v4789_v3, %v4787_v12  ;;  %5085 = vst [vmem:[#allocation2 + $0x80] sm:$0xf] %v4788_v6  ;;  %v3219_v18 = vadd.f32 %v13650_v37, %v13097_v15  ;;  %v16187_v8 = vunpack.c.l.b16 %v13754_v25  ;;  %v16188_v15 = vunpack.c.l.b16 %v13759_v41 }
 0x42a   : > { %3270 = vmatmul.bf16.gmra.mxu3 %v9556_v0  ;;  %3399 = vmatmul.bf16.gmra.mxu0 %v9524_v59  ;;  %v4023_v11 = vpack.c.bf16 %v3969_v34, %v3969_v34  ;;  %v3480_v43 = vadd.f32 %v3361_v49, %v16795_v22  ;;  %v5155_v62 = vld [vmem:[#allocation2 + $0x78] sm:$0xff]  ;;  %v4165_v61 = vsel %vm13600_vm12, %v4157_v28, %v4164_v7 }
 0x42b   : > { %v5475_v3 = vunpack.c.l.b16 %v5155_v62  ;;  %v5476_v0 = vunpack.c.h.b16 %v5155_v62  ;;  %4640 = vst [vmem:[#allocation2 + $0x84] sm:$0xf] %v4165_v61  ;;  %v4791_v38 = vrot.slane %v4790_v2, 4  ;;  %v4166_v2 = vrot.slane %v4161_v42, 4  ;;  %v16798_v62 = vld [vmem:[#allocation35_spill] sm:$0xff] }
 0x42c   : > { %v4168_v9 = vshrl.u32 %v4023_v11, 16  ;;  %v4171_v23 = vshll.u32 %v4023_v11, 16  ;;  %v3538_v34 = vadd.f32 %v13557_v27, %v3480_v43  ;;  %4700 = vst [vmem:[#allocation2 + $0x94] sm:$0xf] %v4023_v11 }
 0x42d   : > { %v13766_v59 = vpop.f32.mrf.mxu3  ;;  %v5625_v63 = vpack.c.b16 %v5475_v3, %v5472_v45  ;;  %v5626_v60 = vpack.c.b16 %v5476_v0, %v5473_v44  ;;  %v13774_v45 = vpack.c.b16 %v16187_v8, %v16188_v15  ;;  %v3743_v44 = vpop.permute.xlu1 %3742 }
 0x42e   : > { %v4170_v37 = vrot.slane %v4168_v9, 7  ;;  %v4792_v12 = vrot.slane %v4171_v23, 5  ;;  %v4794_v49 = vrot.slane %v4168_v9, 4  ;;  %v3592_v28 = vmax.f32 %v3538_v34, 0.0  ;;  %v9565_v9 = vld [vmem:[%s11495_s2 + $0x1ec] sm:$0xf0] }
 0x42f   : > { %v3362_v7 = vpop.f32.mrf.mxu0  ;;  %5945 = vmatmul.bf16.gmra.mxu1 %v5625_v63  ;;  %6089 = vmatmul.bf16.gmra.mxu2 %v5626_v60  ;;  %16797 = vst [vmem:[#allocation18_spill] sm:$0xff] %v13774_v45  ;;  %v9535_v60 = vld [vmem:[%s11495_s2 + $0x1a0] sm:$0xf] }
 0x430   : > { %v3363_v6 = vadd.f32 %v3362_v7, %v3219_v18  ;;  %v4173_v11 = vor.u32 %v4171_v23, %v4170_v37  ;;  %v4793_v22 = vsel %vm13592_vm11, %v4791_v38, %v4792_v12  ;;  %v3970_v43 = vmul.f32 %v3743_v44, %v3592_v28  ;;  %v10661_v18 = vld [vmem:[%s11495_s2 + $0x1e4] sm:$0xf]  ;;  %v10654_v7 = vld [vmem:[%s11495_s2 + $0x1a8] sm:$0xf0]  ;;  %v13788_v38 = vpop.f32.mrf.mxu2 }
 0x431   : > { %5086 = vst [vmem:[#allocation2 + $0x8c] sm:$0xf] %v4793_v22  ;;  %v4795_v63 = vor.u32 %v4794_v49, %v4792_v12  ;;  %v9568_v28 = vor.u32 %v10661_v18, %v9565_v9  ;;  %v3748_v12 = vpop.permute.xlu2 %3747  ;;  %v3222_v49 = vadd.f32 %v13670_v36, %v13127_v5 }
 0x432   : > { %v3481_v61 = vadd.f32 %v3363_v6, %v16798_v62  ;;  %v4174_v34 = vsel %vm13600_vm12, %v4166_v2, %v4173_v11  ;;  %v4024_v8 = vpack.c.bf16 %v3970_v43, %v3970_v43  ;;  %v5157_v23 = vld [vmem:[#allocation2 + $0x84] sm:$0xff]  ;;  %16799 = vst [vmem:[#allocation112_spill] sm:$0xff] %v13788_v38  ;;  %v9536_v2 = vor.u32 %v10654_v7, %v9535_v60  ;;  %v13801_v7 = vld [vmem:[#allocation2 + $0x80] sm:$0xf] }
 0x433   : > { %4641 = vst [vmem:[#allocation2 + $0x90] sm:$0xf] %v4174_v34  ;;  %v5478_v44 = vunpack.c.l.b16 %v5157_v23  ;;  %v5479_v6 = vunpack.c.h.b16 %v5157_v23  ;;  %v4796_v11 = vrot.slane %v4795_v63, 4  ;;  %v4175_v38 = vrot.slane %v4170_v37, 4 }
 0x434   : > { %v3539_v42 = vadd.f32 %v13557_v27, %v3481_v61  ;;  %v4177_v22 = vshrl.u32 %v4024_v8, 16  ;;  %v4180_v62 = vshll.u32 %v4024_v8, 16  ;;  %4701 = vst [vmem:[#allocation2 + $0xa0] sm:$0xf] %v4024_v8 }
 0x435   : > { %v13786_v15 = vpop.f32.mrf.mxu3  ;;  %v13792_v61 = vpack.c.b16 %v5478_v44, %v5475_v3  ;;  %v13794_v34 = vpack.c.b16 %v5479_v6, %v5476_v0  ;;  %v16802_v3 = vld [vmem:[#allocation39_spill] sm:$0xff] }
 0x436   : > { %v3593_v45 = vmax.f32 %v3539_v42, 0.0  ;;  %v4179_v54 = vrot.slane %v4177_v22, 7  ;;  %v4797_v30 = vrot.slane %v4180_v62, 5  ;;  %v4799_v18 = vrot.slane %v4177_v22, 4 }
 0x437   : > { %v3365_v43 = vpop.f32.mrf.mxu0  ;;  %16800 = vst [vmem:[#allocation117_spill] sm:$0xff] %v13792_v61 }
 0x438   : > { %16801 = vst [vmem:[#allocation19_spill] sm:$0xff] %v13794_v34  ;;  %v3971_v9 = vmul.f32 %v3748_v12, %v3593_v45  ;;  %v3366_v23 = vadd.f32 %v3365_v43, %v3222_v49  ;;  %v4182_v17 = vor.u32 %v4180_v62, %v4179_v54  ;;  %v4798_v8 = vsel %vm13592_vm11, %v4796_v11, %v4797_v30  ;;  %v13798_v5 = vld [vmem:[#allocation2 + $0x8c] sm:$0xf]  ;;  %v3758_v34 = vpop.permute.xlu1 %3757 }
 0x439   : > { %v4800_v60 = vor.u32 %v4799_v18, %v4797_v30  ;;  %5087 = vst [vmem:[#allocation2 + $0x98] sm:$0xf] %v4798_v8  ;;  %v3224_v45 = vadd.f32 %v13692_v51, %v13146_v1  ;;  %v16189_v12 = vunpack.c.l.b16 %v13798_v5  ;;  %v16190_v1 = vunpack.c.l.b16 %v13801_v7 }
 0x43a   : > { %3275 = vmatmul.bf16.gmra.mxu3 %v9568_v28  ;;  %3404 = vmatmul.bf16.gmra.mxu0 %v9536_v2  ;;  %v4025_v36 = vpack.c.bf16 %v3971_v9, %v3971_v9  ;;  %v3482_v0 = vadd.f32 %v3366_v23, %v16802_v3  ;;  %v5159_v63 = vld [vmem:[#allocation2 + $0x90] sm:$0xff]  ;;  %v4183_v37 = vsel %vm13600_vm12, %v4175_v38, %v4182_v17  ;;  %v13814_v23 = vpop.f32.mrf.mxu2 }
 0x43b   : > { %v5481_v42 = vunpack.c.l.b16 %v5159_v63  ;;  %v5482_v22 = vunpack.c.h.b16 %v5159_v63  ;;  %4642 = vst [vmem:[#allocation2 + $0x9c] sm:$0xf] %v4183_v37  ;;  %v4801_v49 = vrot.slane %v4800_v60, 4  ;;  %v4184_v60 = vrot.slane %v4179_v54, 4  ;;  %v16804_v63 = vld [vmem:[#allocation27_spill] sm:$0xff] }
 0x43c   : > { %v4186_v30 = vshrl.u32 %v4025_v36, 16  ;;  %v4189_v28 = vshll.u32 %v4025_v36, 16  ;;  %v3540_v62 = vadd.f32 %v13557_v27, %v3482_v0  ;;  %4702 = vst [vmem:[#allocation2 + $0xac] sm:$0xf] %v4025_v36  ;;  %v10664_v37 = vld [vmem:[%s11495_s2 + $0x1fc] sm:$0xf] }
 0x43d   : > { %v13808_v2 = vpop.f32.mrf.mxu3  ;;  %v5628_v11 = vpack.c.b16 %v5481_v42, %v5478_v44  ;;  %v5629_v43 = vpack.c.b16 %v5482_v22, %v5479_v6  ;;  %v13820_v44 = vpack.c.b16 %v16189_v12, %v16190_v1  ;;  %v3753_v6 = vpop.permute.xlu0 %3752 }
 0x43e   : > { %v13812_v51 = vrot.slane %v4186_v30, 7  ;;  %v4802_v17 = vrot.slane %v4189_v28, 5  ;;  %v4804_v38 = vrot.slane %v4186_v30, 4  ;;  %v3594_v18 = vmax.f32 %v3540_v62, 0.0  ;;  %v9577_v30 = vld [vmem:[%s11495_s2 + $0x204] sm:$0xf0] }
 0x43f   : > { %v3367_v9 = vpop.f32.mrf.mxu0  ;;  %5950 = vmatmul.bf16.gmra.mxu1 %v5628_v11  ;;  %6094 = vmatmul.bf16.gmra.mxu2 %v5629_v43  ;;  %16803 = vst [vmem:[#allocation20_spill] sm:$0xff] %v13820_v44  ;;  %v9547_v43 = vld [vmem:[%s11495_s2 + $0x1b8] sm:$0xf] }
 0x440   : > { %v3368_v8 = vadd.f32 %v3367_v9, %v3224_v45  ;;  %v4191_v36 = vor.u32 %v4189_v28, %v13812_v51  ;;  %v4803_v3 = vsel %vm13592_vm11, %v4801_v49, %v4802_v17  ;;  %v3972_v0 = vmul.f32 %v3753_v6, %v3594_v18  ;;  %v10657_v9 = vld [vmem:[%s11495_s2 + $0x1c0] sm:$0xf0] }
 0x441   : > { %5088 = vst [vmem:[#allocation2 + $0xa4] sm:$0xf] %v4803_v3  ;;  %v4805_v11 = vor.u32 %v4804_v38, %v4802_v17  ;;  %v9580_v49 = vor.u32 %v10664_v37, %v9577_v30  ;;  %v9548_v44 = vor.u32 %v10657_v9, %v9547_v43  ;;  %v3227_v17 = vadd.f32 %v13718_v47, %v13176_v4 }
 0x442   : > { %v3483_v45 = vadd.f32 %v3368_v8, %v16804_v63  ;;  %v4192_v62 = vsel %vm13600_vm12, %v4184_v60, %v4191_v36  ;;  %v4026_v12 = vpack.c.bf16 %v3972_v0, %v3972_v0  ;;  %v5161_v28 = vld [vmem:[#allocation2 + $0x9c] sm:$0xff]  ;;  %v13841_v61 = vpop.f32.mrf.mxu2 }
 0x443   : > { %4643 = vst [vmem:[#allocation2 + $0xa8] sm:$0xf] %v4192_v62  ;;  %v5484_v3 = vunpack.c.l.b16 %v5161_v28  ;;  %v5485_v18 = vunpack.c.h.b16 %v5161_v28  ;;  %v4806_v38 = vrot.slane %v4805_v11, 4 }
 0x444   : > { %v3541_v54 = vadd.f32 %v13557_v27, %v3483_v45  ;;  %v4195_v6 = vshrl.u32 %v4026_v12, 16  ;;  %v4198_v8 = vshll.u32 %v4026_v12, 16  ;;  %4703 = vst [vmem:[#allocation2 + $0xb8] sm:$0xf] %v4026_v12  ;;  %v4193_v12 = vrot.slane %v13812_v51, 4 }
 0x445   : > { %v13833_v1 = vpop.f32.mrf.mxu3  ;;  %v13837_v36 = vpack.c.b16 %v5484_v3, %v5481_v42  ;;  %v13839_v0 = vpack.c.b16 %v5485_v18, %v5482_v22  ;;  %16807 = vst [vmem:[#allocation21_spill] sm:$0xff] %v13841_v61  ;;  %v16808_v22 = vld [vmem:[#allocation28_spill] sm:$0xff] }
 0x446   : > { %v3595_v63 = vmax.f32 %v3541_v54, 0.0  ;;  %v4197_v45 = vrot.slane %v4195_v6, 7  ;;  %v4807_v62 = vrot.slane %v4198_v8, 5  ;;  %v4809_v37 = vrot.slane %v4195_v6, 4 }
 0x447   : > { %v3370_v60 = vpop.f32.mrf.mxu0  ;;  %16805 = vst [vmem:[#allocation118_spill] sm:$0xff] %v13837_v36  ;;  %v3229_v6 = vadd.f32 %v13743_v56, %v13199_v53 }
 0x448   : > { %16806 = vst [vmem:[#allocation59_spill] sm:$0xff] %v13839_v0  ;;  %v3973_v30 = vmul.f32 %v3758_v34, %v3595_v63  ;;  %v3371_v28 = vadd.f32 %v3370_v60, %v3227_v17  ;;  %v4200_v43 = vor.u32 %v4198_v8, %v4197_v45  ;;  %v4808_v9 = vsel %vm13592_vm11, %v4806_v38, %v4807_v62  ;;  %v13846_v47 = vld [vmem:[#allocation2 + $0xa4] sm:$0xf]  ;;  %v13849_v34 = vld [vmem:[#allocation2 + $0x98] sm:$0xf] }
 0x449   : > { %v4810_v4 = vor.u32 %v4809_v37, %v4807_v62  ;;  %5089 = vst [vmem:[#allocation2 + $0xb0] sm:$0xf] %v4808_v9  ;;  %v16191_v60 = vunpack.c.l.b16 %v13846_v47  ;;  %v16192_v53 = vunpack.c.l.b16 %v13849_v34 }
 0x44a   : > { %3280 = vmatmul.bf16.gmra.mxu3 %v9580_v49  ;;  %3409 = vmatmul.bf16.gmra.mxu0 %v9548_v44  ;;  %v4027_v42 = vpack.c.bf16 %v3973_v30, %v3973_v30  ;;  %v3484_v11 = vadd.f32 %v3371_v28, %v16808_v22  ;;  %v5163_v54 = vld [vmem:[#allocation2 + $0xa8] sm:$0xff]  ;;  %v4201_v51 = vsel %vm13600_vm12, %v4193_v12, %v4200_v43 }
 0x44b   : > { %v5487_v8 = vunpack.c.l.b16 %v5163_v54  ;;  %v5488_v63 = vunpack.c.h.b16 %v5163_v54  ;;  %4644 = vst [vmem:[#allocation2 + $0xb4] sm:$0xf] %v4201_v51  ;;  %v4811_v62 = vrot.slane %v4810_v4, 4  ;;  %v16810_v54 = vld [vmem:[#allocation50_spill] sm:$0xff] }
 0x44c   : > { %v4204_v49 = vshrl.u32 %v4027_v42, 16  ;;  %v4207_v44 = vshll.u32 %v4027_v42, 16  ;;  %v3542_v17 = vadd.f32 %v13557_v27, %v3484_v11  ;;  %4704 = vst [vmem:[#allocation2 + $0xc4] sm:$0xf] %v4027_v42  ;;  %v13866_v27 = vpack.c.b16 %v16191_v60, %v16192_v53  ;;  %v10667_v51 = vld [vmem:[%s11495_s2 + $0x214] sm:$0xf] }
 0x44d   : > { %v13856_v38 = vpop.f32.mrf.mxu3  ;;  %v5631_v37 = vpack.c.b16 %v5487_v8, %v5484_v3  ;;  %v5632_v30 = vpack.c.b16 %v5488_v63, %v5485_v18  ;;  %v3763_v3 = vpop.permute.xlu2 %3762  ;;  %v4202_v18 = vrot.slane %v4197_v45, 4  ;;  %v10660_v60 = vld [vmem:[%s11495_s2 + $0x1d8] sm:$0xf0]  ;;  %v3232_v53 = vadd.f32 %v13766_v59, %v13225_v46 }
 0x44e   : > { %v13860_v56 = vrot.slane %v4204_v49, 7  ;;  %v4812_v28 = vrot.slane %v4207_v44, 5  ;;  %v4814_v12 = vrot.slane %v4204_v49, 4  ;;  %v3596_v43 = vmax.f32 %v3542_v17, 0.0  ;;  %16809 = vst [vmem:[#allocation23_spill] sm:$0xff] %v13866_v27 }
 0x44f   : > { %v3372_v9 = vpop.f32.mrf.mxu0  ;;  %5955 = vmatmul.bf16.gmra.mxu1 %v5631_v37  ;;  %6099 = vmatmul.bf16.gmra.mxu2 %v5632_v30  ;;  %v9589_v49 = vld [vmem:[%s11495_s2 + $0x21c] sm:$0xf0]  ;;  %v13876_v30 = vpop.f32.mrf.mxu2 }
 0x450   : > { %v3373_v22 = vadd.f32 %v3372_v9, %v3229_v6  ;;  %v4209_v4 = vor.u32 %v4207_v44, %v13860_v56  ;;  %v4813_v42 = vsel %vm13592_vm11, %v4811_v62, %v4812_v28  ;;  %v3974_v11 = vmul.f32 %v3763_v3, %v3596_v43  ;;  %16811 = vst [vmem:[#allocation60_spill] sm:$0xff] %v13876_v30  ;;  %v9559_v9 = vld [vmem:[%s11495_s2 + $0x1d0] sm:$0xf] }
 0x451   : > { %5090 = vst [vmem:[#allocation2 + $0xbc] sm:$0xf] %v4813_v42  ;;  %v4815_v37 = vor.u32 %v4814_v12, %v4812_v28  ;;  %v13883_v44 = vld [vmem:[%s15948_s3] ss:$0 sm:$0xff]  ;;  %v9592_v42 = vor.u32 %v10667_v51, %v9589_v49 }
 0x452   : > { %v3485_v6 = vadd.f32 %v3373_v22, %v16810_v54  ;;  %v4210_v17 = vsel %vm13600_vm12, %v4202_v18, %v4209_v4  ;;  %v4028_v45 = vpack.c.bf16 %v3974_v11, %v3974_v11  ;;  %v5165_v43 = vld [vmem:[#allocation2 + $0xb4] sm:$0xff]  ;;  %v3768_v11 = vpop.permute.xlu0 %3767 }
 0x453   : > { %4645 = vst [vmem:[#allocation2 + $0xc0] sm:$0xf] %v4210_v17  ;;  %v10766_v22 = vld [vmem:[#allocation8 + $0x168] sm:$0xff]  ;;  %v5490_v18 = vunpack.c.l.b16 %v5165_v43  ;;  %v5491_v28 = vunpack.c.h.b16 %v5165_v43  ;;  %v9560_v17 = vor.u32 %v10660_v60, %v9559_v9  ;;  %v4816_v27 = vrot.slane %v4815_v37, 4 }
 0x454   : > { %v3543_v62 = vadd.f32 %v13883_v44, %v3485_v6  ;;  %v4213_v12 = vshrl.u32 %v4028_v45, 16  ;;  %v4216_v4 = vshll.u32 %v4028_v45, 16  ;;  %4705 = vst [vmem:[#allocation2 + $0xd0] sm:$0xf] %v4028_v45  ;;  %6212 = vmatpush.bf16.msrb.mxu3 %v10766_v22  ;;  %v4211_v45 = vrot.slane %v13860_v56, 4 }
 0x455   : > { %v13886_v3 = vpop.f32.mrf.mxu3  ;;  %v13890_v6 = vpack.c.b16 %v5490_v18, %v5487_v8  ;;  %v13892_v36 = vpack.c.b16 %v5491_v28, %v5488_v63  ;;  %v16814_v8 = vld [vmem:[#allocation55_spill] sm:$0xff]  ;;  %v13902_v22 = vld [vmem:[#allocation2 + $0xb0] sm:$0xf] }
 0x456   : > { %v3597_v54 = vmax.f32 %v3543_v62, 0.0  ;;  %v4215_v30 = vrot.slane %v4213_v12, 7  ;;  %v4817_v51 = vrot.slane %v4216_v4, 5  ;;  %v4819_v49 = vrot.slane %v4213_v12, 4 }
 0x457   : > { %v3375_v0 = vpop.f32.mrf.mxu0  ;;  %16812 = vst [vmem:[#allocation67_spill] sm:$0xff] %v13890_v6 }
 0x458   : > { %16813 = vst [vmem:[#allocation68_spill] sm:$0xff] %v13892_v36  ;;  %v3975_v43 = vmul.f32 %v3768_v11, %v3597_v54  ;;  %v3376_v61 = vadd.f32 %v3375_v0, %v3232_v53  ;;  %v4218_v62 = vor.u32 %v4216_v4, %v4215_v30  ;;  %v4818_v60 = vsel %vm13592_vm11, %v4816_v27, %v4817_v51  ;;  %v13897_v46 = vld [vmem:[#allocation2 + $0xbc] sm:$0xf] }
 0x459   : > { %v4820_v9 = vor.u32 %v4819_v49, %v4817_v51  ;;  %5091 = vst [vmem:[#allocation2 + $0xc8] sm:$0xf] %v4818_v60  ;;  %v3234_v0 = vadd.f32 %v13786_v15, %v13248_v24  ;;  %v10731_v11 = vld [vmem:[#allocation8 + $0x68] sm:$0xff]  ;;  %v16193_v24 = vunpack.c.l.b16 %v13897_v46 }
 0x45a   : > { %3285 = vmatmul.bf16.gmra.mxu3 %v9592_v42  ;;  %3414 = vmatmul.bf16.gmra.mxu0 %v9560_v17  ;;  %v4029_v59 = vpack.c.bf16 %v3975_v43, %v3975_v43  ;;  %v3486_v63 = vadd.f32 %v3376_v61, %v16814_v8  ;;  %v13900_v37 = vld [vmem:[#allocation2 + $0xc0] sm:$0xff]  ;;  %v4219_v53 = vsel %vm13600_vm12, %v4211_v45, %v4218_v62  ;;  %v13911_v61 = vpop.f32.mrf.mxu2  ;;  %v10723_v17 = vld [vmem:[#allocation8 + $0x28] sm:$0xff]  ;;  %v16194_v45 = vunpack.c.l.b16 %v13902_v22 }
 0x45b   : > { %v5493_v56 = vunpack.c.l.b16 %v13900_v37  ;;  %v5494_v27 = vunpack.c.h.b16 %v13900_v37  ;;  %4646 = vst [vmem:[#allocation2 + $0xcc] sm:$0xf] %v4219_v53  ;;  %v4821_v15 = vrot.slane %v4820_v9, 4  ;;  %v10739_v43 = vld [vmem:[#allocation8 + $0xa8] sm:$0xff]  ;;  %6677 = vmatpush.bf16.msrb.mxu0 %v10723_v17  ;;  %6821 = vmatpush.bf16.msrb.mxu1 %v10731_v11  ;;  %v4220_v9 = vrot.slane %v4215_v30, 4 }
 0x45c   : > { %v4222_v42 = vshrl.u32 %v4029_v59, 16  ;;  %v4225_v12 = vshll.u32 %v4029_v59, 16  ;;  %v3544_v4 = vadd.f32 %v13883_v44, %v3486_v63  ;;  %16815 = vst [vmem:[#allocation75_spill] sm:$0xff] %v13911_v61  ;;  %6965 = vmatpush.bf16.msrb.mxu2 %v10739_v43  ;;  %v10670_v11 = vld [vmem:[%s11495_s2 + $0x22c] sm:$0xf] }
 0x45d   : > { %v13913_v54 = vpop.f32.mrf.mxu3  ;;  %4706 = vst [vmem:[#allocation2 + $0xdc] sm:$0xf] %v4029_v59  ;;  %v5634_v51 = vpack.c.b16 %v5493_v56, %v5490_v18  ;;  %v5635_v49 = vpack.c.b16 %v5494_v27, %v5491_v28  ;;  %v13923_v18 = vpack.c.b16 %v16193_v24, %v16194_v45  ;;  %v3773_v28 = vpop.permute.xlu1 %3772  ;;  %v9571_v24 = vld [vmem:[%s11495_s2 + $0x1e8] sm:$0xf]  ;;  %v10663_v45 = vld [vmem:[%s11495_s2 + $0x1f0] sm:$0xf0] }
 0x45e   : > { %v13917_v62 = vrot.slane %v4222_v42, 7  ;;  %v4822_v60 = vrot.slane %v4225_v12, 5  ;;  %v4824_v8 = vrot.slane %v4222_v42, 4  ;;  %v3598_v63 = vmax.f32 %v3544_v4, 0.0  ;;  %v16817_v4 = vld [vmem:[#allocation45_spill] sm:$0xff] }
 0x45f   : > { %v3377_v37 = vpop.f32.mrf.mxu0  ;;  %5960 = vmatmul.bf16.gmra.mxu1 %v5634_v51  ;;  %6104 = vmatmul.bf16.gmra.mxu2 %v5635_v49  ;;  %16816 = vst [vmem:[#allocation76_spill] sm:$0xff] %v13923_v18  ;;  %v9601_v51 = vld [vmem:[%s11495_s2 + $0x234] sm:$0xf0]  ;;  %v9572_v6 = vor.u32 %v10663_v45, %v9571_v24 }
 0x460   : > { %v3378_v53 = vadd.f32 %v3377_v37, %v3234_v0  ;;  %v4227_v59 = vor.u32 %v4225_v12, %v13917_v62  ;;  %v4823_v42 = vsel %vm13592_vm11, %v4821_v15, %v4822_v60  ;;  %v3976_v0 = vmul.f32 %v3773_v28, %v3598_v63  ;;  %v3778_v28 = vpop.permute.xlu2 %3777 }
 0x461   : > { %5092 = vst [vmem:[#allocation2 + $0xd4] sm:$0xf] %v4823_v42  ;;  %v4825_v37 = vor.u32 %v4824_v8, %v4822_v60  ;;  %v9604_v15 = vor.u32 %v10670_v11, %v9601_v51  ;;  %v3237_v60 = vadd.f32 %v13808_v2, %v13274_v31 }
 0x462   : > { %v3487_v17 = vadd.f32 %v3378_v53, %v16817_v4  ;;  %v4228_v49 = vsel %vm13600_vm12, %v4220_v9, %v4227_v59  ;;  %v4030_v30 = vpack.c.bf16 %v3976_v0, %v3976_v0  ;;  %v5169_v18 = vld [vmem:[#allocation2 + $0xcc] sm:$0xff]  ;;  %v13940_v9 = vpop.f32.mrf.mxu2 }
 0x463   : > { %4647 = vst [vmem:[#allocation2 + $0xd8] sm:$0xf] %v4228_v49  ;;  %v5496_v43 = vunpack.c.l.b16 %v5169_v18  ;;  %v5497_v63 = vunpack.c.h.b16 %v5169_v18  ;;  %v4826_v8 = vrot.slane %v4825_v37, 4  ;;  %v13952_v37 = vld [vmem:[#allocation2 + $0xc8] sm:$0xf] }
 0x464   : > { %v3545_v12 = vadd.f32 %v13883_v44, %v3487_v17  ;;  %v4231_v53 = vshrl.u32 %v4030_v30, 16  ;;  %v4234_v42 = vshll.u32 %v4030_v30, 16  ;;  %4707 = vst [vmem:[#allocation2 + $0xe8] sm:$0xf] %v4030_v30  ;;  %v4229_v30 = vrot.slane %v13917_v62, 4 }
 0x465   : > { %v13936_v36 = vpop.f32.mrf.mxu3  ;;  %v13942_v0 = vpack.c.b16 %v5496_v43, %v5493_v56  ;;  %v13944_v17 = vpack.c.b16 %v5497_v63, %v5494_v27 }
 0x466   : > { %v3599_v4 = vmax.f32 %v3545_v12, 0.0  ;;  %v4233_v11 = vrot.slane %v4231_v53, 7  ;;  %v4827_v51 = vrot.slane %v4234_v42, 5  ;;  %v4829_v18 = vrot.slane %v4231_v53, 4 }
 0x467   : > { %v3380_v59 = vpop.f32.mrf.mxu0  ;;  %16818 = vst [vmem:[#allocation83_spill] sm:$0xff] %v13942_v0 }
 0x468   : > { %16819 = vst [vmem:[#allocation84_spill] sm:$0xff] %v13944_v17  ;;  %v3977_v49 = vmul.f32 %v3778_v28, %v3599_v4  ;;  %v3381_v61 = vadd.f32 %v3380_v59, %v3237_v60  ;;  %v4236_v12 = vor.u32 %v4234_v42, %v4233_v11  ;;  %v4828_v24 = vsel %vm13592_vm11, %v4826_v8, %v4827_v51  ;;  %v13949_v2 = vld [vmem:[#allocation2 + $0xd4] sm:$0xf] }
 0x469   : > { %v4830_v31 = vor.u32 %v4829_v18, %v4827_v51  ;;  %5093 = vst [vmem:[#allocation2 + $0xe0] sm:$0xf] %v4828_v24  ;;  %v3239_v28 = vadd.f32 %v13833_v1, %v13297_v20  ;;  %v16196_v20 = vunpack.c.l.b16 %v13952_v37  ;;  %v4238_v24 = vrot.slane %v4233_v11, 4 }
 0x46a   : > { %3290 = vmatmul.bf16.gmra.mxu3 %v9604_v15  ;;  %3419 = vmatmul.bf16.gmra.mxu0 %v9572_v6  ;;  %v4031_v56 = vpack.c.bf16 %v3977_v49, %v3977_v49  ;;  %v3488_v27 = vadd.f32 %v3381_v61, %v12907_v21  ;;  %v5171_v45 = vld [vmem:[#allocation2 + $0xd8] sm:$0xff]  ;;  %v4237_v62 = vsel %vm13600_vm12, %v4229_v30, %v4236_v12  ;;  %v16195_v21 = vunpack.c.l.b16 %v13949_v2 }
 0x46b   : > { %v5499_v53 = vunpack.c.l.b16 %v5171_v45  ;;  %v5500_v42 = vunpack.c.h.b16 %v5171_v45  ;;  %4648 = vst [vmem:[#allocation2 + $0xe4] sm:$0xf] %v4237_v62  ;;  %v4831_v61 = vrot.slane %v4830_v31, 4 }
 0x46c   : > { %v4240_v15 = vshrl.u32 %v4031_v56, 16  ;;  %v4243_v6 = vshll.u32 %v4031_v56, 16  ;;  %v3546_v4 = vadd.f32 %v13883_v44, %v3488_v27  ;;  %4708 = vst [vmem:[#allocation2 + $0xf4] sm:$0xf] %v4031_v56  ;;  %v13974_v27 = vpop.f32.mrf.mxu2 }
 0x46d   : > { %v13959_v60 = vpop.f32.mrf.mxu3  ;;  %v5637_v8 = vpack.c.b16 %v5499_v53, %v5496_v43  ;;  %v5638_v59 = vpack.c.b16 %v5500_v42, %v5497_v63  ;;  %v13969_v43 = vpack.c.b16 %v16195_v21, %v16196_v20  ;;  %v3783_v63 = vpop.permute.xlu0 %3782  ;;  %16821 = vst [vmem:[#allocation121_spill] sm:$0xff] %v13974_v27  ;;  %v10666_v21 = vld [vmem:[%s11495_s2 + $0x208] sm:$0xf0] }
 0x46e   : > { %v13963_v1 = vrot.slane %v4240_v15, 7  ;;  %v4832_v51 = vrot.slane %v4243_v6, 5  ;;  %v4834_v18 = vrot.slane %v4240_v15, 4  ;;  %v3600_v49 = vmax.f32 %v3546_v4, 0.0  ;;  %v10673_v15 = vld [vmem:[%s11495_s2 + $0x244] sm:$0xf] }
 0x46f   : > { %v3382_v30 = vpop.f32.mrf.mxu0  ;;  %5965 = vmatmul.bf16.gmra.mxu1 %v5637_v8  ;;  %6109 = vmatmul.bf16.gmra.mxu2 %v5638_v59  ;;  %16820 = vst [vmem:[#allocation91_spill] sm:$0xff] %v13969_v43  ;;  %v9613_v4 = vld [vmem:[%s11495_s2 + $0x24c] sm:$0xf0] }
 0x470   : > { %v3383_v12 = vadd.f32 %v3382_v30, %v3239_v28  ;;  %v4245_v31 = vor.u32 %v4243_v6, %v13963_v1  ;;  %v4833_v56 = vsel %vm13592_vm11, %v4831_v61, %v4832_v51  ;;  %v3978_v45 = vmul.f32 %v3783_v63, %v3600_v49  ;;  %v16822_v28 = vld [vmem:[#allocation32_spill] sm:$0xff]  ;;  %v13984_v61 = vpop.f32.mrf.mxu1  ;;  %v13994_v27 = vld [vmem:[#allocation2 + $0xe0] sm:$0xf] }
 0x471   : > { %5094 = vst [vmem:[#allocation2 + $0xec] sm:$0xf] %v4833_v56  ;;  %v4835_v59 = vor.u32 %v4834_v18, %v4832_v51  ;;  %v9583_v30 = vld [vmem:[%s11495_s2 + $0x200] sm:$0xf]  ;;  %v9616_v49 = vor.u32 %v10673_v15, %v9613_v4  ;;  %v3788_v51 = vpop.permute.xlu1 %3787  ;;  %v3242_v18 = vadd.f32 %v13856_v38, %v13323_v39 }
 0x472   : > { %v3489_v62 = vadd.f32 %v3383_v12, %v16822_v28  ;;  %v4246_v8 = vsel %vm13600_vm12, %v4238_v24, %v4245_v31  ;;  %v4032_v11 = vpack.c.bf16 %v3978_v45, %v3978_v45  ;;  %v5173_v20 = vld [vmem:[#allocation2 + $0xe4] sm:$0xff]  ;;  %16823 = vst [vmem:[#allocation122_spill] sm:$0xff] %v13984_v61  ;;  %v9584_v24 = vor.u32 %v10666_v21, %v9583_v30 }
 0x473   : > { %4649 = vst [vmem:[#allocation2 + $0xf0] sm:$0xf] %v4246_v8  ;;  %v5502_v63 = vunpack.c.l.b16 %v5173_v20  ;;  %v5503_v12 = vunpack.c.h.b16 %v5173_v20  ;;  %v4836_v31 = vrot.slane %v4835_v59, 4  ;;  %v4247_v21 = vrot.slane %v13963_v1, 4 }
 0x474   : > { %v3547_v6 = vadd.f32 %v13883_v44, %v3489_v62  ;;  %v4249_v56 = vshrl.u32 %v4032_v11, 16  ;;  %v4252_v28 = vshll.u32 %v4032_v11, 16  ;;  %4709 = vst [vmem:[#allocation2 + $0x100] sm:$0xf] %v4032_v11 }
 0x475   : > { %v13986_v43 = vpop.f32.mrf.mxu3  ;;  %v13990_v62 = vpack.c.b16 %v5502_v63, %v5499_v53  ;;  %v13992_v8 = vpack.c.b16 %v5503_v12, %v5500_v42  ;;  %v14001_v42 = vpop.f32.mrf.mxu2 }
 0x476   : > { %v3601_v17 = vmax.f32 %v3547_v6, 0.0  ;;  %v4251_v0 = vrot.slane %v4249_v56, 7  ;;  %v4837_v61 = vrot.slane %v4252_v28, 5  ;;  %v4839_v15 = vrot.slane %v4249_v56, 4  ;;  %16826 = vst [vmem:[#allocation125_spill] sm:$0xff] %v14001_v42 }
 0x477   : > { %v3385_v45 = vpop.f32.mrf.mxu0  ;;  %16824 = vst [vmem:[#allocation123_spill] sm:$0xff] %v13990_v62 }
 0x478   : > { %16825 = vst [vmem:[#allocation124_spill] sm:$0xff] %v13992_v8  ;;  %v3979_v4 = vmul.f32 %v3788_v51, %v3601_v17  ;;  %v3386_v20 = vadd.f32 %v3385_v45, %v3242_v18  ;;  %v13996_v11 = vld [vmem:[#allocation2 + $0xec] sm:$0xf]  ;;  %v4254_v30 = vor.u32 %v4252_v28, %v4251_v0  ;;  %v4838_v39 = vsel %vm13592_vm11, %v4836_v31, %v4837_v61 }
 0x479   : > { %v4840_v38 = vor.u32 %v4839_v15, %v4837_v61  ;;  %5095 = vst [vmem:[#allocation2 + $0xf8] sm:$0xf] %v4838_v39  ;;  %v16197_v6 = vunpack.c.l.b16 %v13996_v11  ;;  %v16198_v51 = vunpack.c.l.b16 %v13994_v27  ;;  %v3244_v61 = vadd.f32 %v13886_v3, %v13343_v29 }
 0x47a   : > { %3295 = vmatmul.bf16.gmra.mxu3 %v9616_v49  ;;  %3424 = vmatmul.bf16.gmra.mxu0 %v9584_v24  ;;  %v4033_v53 = vpack.c.bf16 %v3979_v4, %v3979_v4  ;;  %v3490_v17 = vadd.f32 %v3386_v20, %v12941_v50  ;;  %v5175_v59 = vld [vmem:[#allocation2 + $0xf0] sm:$0xff]  ;;  %v4255_v56 = vsel %vm13600_vm12, %v4247_v21, %v4254_v30 }
 0x47b   : > { %v5505_v1 = vunpack.c.l.b16 %v5175_v59  ;;  %v5506_v28 = vunpack.c.h.b16 %v5175_v59  ;;  %4650 = vst [vmem:[#allocation2 + $0xfc] sm:$0xf] %v4255_v56  ;;  %v4841_v45 = vrot.slane %v4840_v38, 4  ;;  %v14017_v20 = vpack.c.b16 %v16197_v6, %v16198_v51  ;;  %v10676_v6 = vld [vmem:[%s11495_s2 + $0x25c] sm:$0xf] }
 0x47c   : > { %v4258_v49 = vshrl.u32 %v4033_v53, 16  ;;  %v4261_v24 = vshll.u32 %v4033_v53, 16  ;;  %v3548_v18 = vadd.f32 %v13883_v44, %v3490_v17  ;;  %v5931_v31 = vpop.f32.mrf.mxu1  ;;  %4710 = vst [vmem:[#allocation2 + $0x10c] sm:$0xf] %v4033_v53 }
 0x47d   : > { %v14011_v50 = vpop.f32.mrf.mxu3  ;;  %v5640_v15 = vpack.c.b16 %v5505_v1, %v5502_v63  ;;  %v5641_v4 = vpack.c.b16 %v5506_v28, %v5503_v12  ;;  %16827 = vst [vmem:[#allocation126_spill] sm:$0xff] %v14017_v20  ;;  %v3793_v63 = vpop.permute.xlu2 %3792  ;;  %v4256_v12 = vrot.slane %v4251_v0, 4 }
 0x47e   : > { %v14019_v29 = vrot.slane %v4258_v49, 7  ;;  %v4842_v3 = vrot.slane %v4261_v24, 5  ;;  %v4844_v21 = vrot.slane %v4258_v49, 4  ;;  %v3602_v30 = vmax.f32 %v3548_v18, 0.0  ;;  %v9625_v49 = vld [vmem:[%s11495_s2 + $0x264] sm:$0xf0] }
 0x47f   : > { %v3387_v39 = vpop.f32.mrf.mxu0  ;;  %5970 = vmatmul.bf16.gmra.mxu1 %v5640_v15  ;;  %6114 = vmatmul.bf16.gmra.mxu2 %v5641_v4  ;;  %v9595_v15 = vld [vmem:[%s11495_s2 + $0x218] sm:$0xf]  ;;  %v10669_v4 = vld [vmem:[%s11495_s2 + $0x220] sm:$0xf0] }
 0x480   : > { %v3388_v17 = vadd.f32 %v3387_v39, %v3244_v61  ;;  %v4263_v38 = vor.u32 %v4261_v24, %v14019_v29  ;;  %v4843_v53 = vsel %vm13592_vm11, %v4841_v45, %v4842_v3  ;;  %v3980_v59 = vmul.f32 %v3793_v63, %v3602_v30  ;;  %v14042_v42 = vld [vmem:[#allocation2 + $0xf8] sm:$0xf] }
 0x481   : > { %5096 = vst [vmem:[#allocation2 + $0x104] sm:$0xf] %v4843_v53  ;;  %v4845_v61 = vor.u32 %v4844_v21, %v4842_v3  ;;  %v9596_v21 = vor.u32 %v10669_v4, %v9595_v15  ;;  %v4265_v15 = vrot.slane %v14019_v29, 4 }
 0x482   : > { %v3491_v56 = vadd.f32 %v3388_v17, %v12952_v52  ;;  %v4264_v18 = vsel %vm13600_vm12, %v4256_v12, %v4263_v38  ;;  %v6075_v39 = vpop.f32.mrf.mxu2  ;;  %v4034_v0 = vpack.c.bf16 %v3980_v59, %v3980_v59  ;;  %v5177_v45 = vld [vmem:[#allocation2 + $0xfc] sm:$0xff]  ;;  %v9628_v52 = vor.u32 %v10676_v6, %v9625_v49  ;;  %v3798_v12 = vpop.permute.xlu0 %3797 }
 0x483   : > { %4651 = vst [vmem:[#allocation2 + $0x108] sm:$0xf] %v4264_v18  ;;  %v14032_v51 = vadd.f32 %v6075_v39, %v5931_v31  ;;  %v5508_v17 = vunpack.c.l.b16 %v5177_v45  ;;  %v5509_v63 = vunpack.c.h.b16 %v5177_v45  ;;  %v3247_v38 = vadd.f32 %v13913_v54, %v13359_v57 }
 0x484   : > { %v3549_v24 = vadd.f32 %v13883_v44, %v3491_v56  ;;  %v5933_v53 = vpop.f32.mrf.mxu1  ;;  %v4267_v20 = vshrl.u32 %v4034_v0, 16  ;;  %v4270_v8 = vshll.u32 %v4034_v0, 16  ;;  %4711 = vst [vmem:[#allocation2 + $0x118] sm:$0xf] %v4034_v0  ;;  %v4846_v59 = vrot.slane %v4845_v61, 4 }
 0x485   : > { %v14034_v30 = vpop.f32.mrf.mxu3  ;;  %v14038_v31 = vpack.c.b16 %v5508_v17, %v5505_v1  ;;  %v14040_v18 = vpack.c.b16 %v5509_v63, %v5506_v28 }
 0x486   : > { %v3603_v3 = vmax.f32 %v3549_v24, 0.0  ;;  %v4269_v39 = vrot.slane %v4267_v20, 7  ;;  %v4847_v62 = vrot.slane %v4270_v8, 5  ;;  %v4849_v6 = vrot.slane %v4267_v20, 4 }
 0x487   : > { %v3390_v56 = vpop.f32.mrf.mxu0  ;;  %16828 = vst [vmem:[#allocation127_spill] sm:$0xff] %v14038_v31 }
 0x488   : > { %16829 = vst [vmem:[#allocation128_spill] sm:$0xff] %v14040_v18  ;;  %v3981_v49 = vmul.f32 %v3798_v12, %v3603_v3  ;;  %v3391_v45 = vadd.f32 %v3390_v56, %v3247_v38  ;;  %v14044_v0 = vld [vmem:[#allocation2 + $0x104] sm:$0xf]  ;;  %v4272_v4 = vor.u32 %v4270_v8, %v4269_v39  ;;  %v4848_v57 = vsel %vm13592_vm11, %v4846_v59, %v4847_v62  ;;  %v10765_v56 = vld [vmem:[#allocation8 + $0x160] sm:$0xff] }
 0x489   : > { %v4850_v54 = vor.u32 %v4849_v6, %v4847_v62  ;;  %5097 = vst [vmem:[#allocation2 + $0x110] sm:$0xf] %v4848_v57  ;;  %v16199_v24 = vunpack.c.l.b16 %v14044_v0  ;;  %v16200_v62 = vunpack.c.l.b16 %v14042_v42  ;;  %v3249_v6 = vadd.f32 %v13936_v36, %v13376_v40  ;;  %6213 = vmatpush.bf16.msrb.mxu3 %v10765_v56 }
 0x48a   : > { %3300 = vmatmul.bf16.gmra.mxu3 %v9628_v52  ;;  %3429 = vmatmul.bf16.gmra.mxu0 %v9596_v21  ;;  %v4035_v1 = vpack.c.bf16 %v3981_v49, %v3981_v49  ;;  %v3492_v28 = vadd.f32 %v3391_v45, %v12981_v32  ;;  %v6077_v20 = vpop.f32.mrf.mxu2  ;;  %v14050_v61 = vld [vmem:[#allocation2 + $0x108] sm:$0xff]  ;;  %v4273_v3 = vsel %vm13600_vm12, %v4265_v15, %v4272_v4 }
 0x48b   : > { %v14055_v29 = vadd.f32 %v6077_v20, %v5933_v53  ;;  %v16201_v8 = vunpack.c.l.b16 %v14050_v61  ;;  %4652 = vst [vmem:[#allocation2 + $0x114] sm:$0xf] %v4273_v3  ;;  %v5512_v59 = vunpack.c.h.b16 %v14050_v61  ;;  %v4851_v53 = vrot.slane %v4850_v54, 4 }
 0x48c   : > { %v4276_v52 = vshrl.u32 %v4035_v1, 16  ;;  %v4279_v21 = vshll.u32 %v4035_v1, 16  ;;  %v3550_v12 = vadd.f32 %v13883_v44, %v3492_v28  ;;  %v5936_v32 = vpop.f32.mrf.mxu1  ;;  %4712 = vst [vmem:[#allocation2 + $0x124] sm:$0xf] %v4035_v1  ;;  %v14071_v45 = vpack.c.b16 %v16199_v24, %v16200_v62  ;;  %v16831_v62 = vld [vmem:[#allocation57_spill] sm:$0xff] }
 0x48d   : > { %v14060_v38 = vpop.f32.mrf.mxu3  ;;  %v5643_v49 = vpack.c.b16 %v16201_v8, %v5508_v17  ;;  %v5644_v36 = vpack.c.b16 %v5512_v59, %v5509_v63  ;;  %v3803_v17 = vpop.permute.xlu1 %3802  ;;  %v4274_v54 = vrot.slane %v4269_v39, 4  ;;  %v9637_v8 = vld [vmem:[%s11495_s2 + $0x27c] sm:$0xf0]  ;;  %v9607_v63 = vld [vmem:[%s11495_s2 + $0x230] sm:$0xf] }
 0x48e   : > { %16830 = vst [vmem:[#allocation40_spill] sm:$0xff] %v14071_v45  ;;  %v14073_v15 = vrot.slane %v4276_v52, 7  ;;  %v4852_v4 = vrot.slane %v4279_v21, 5  ;;  %v4854_v57 = vrot.slane %v4276_v52, 4  ;;  %v3604_v28 = vmax.f32 %v3550_v12, 0.0 }
 0x48f   : > { %v3392_v20 = vpop.f32.mrf.mxu0  ;;  %5975 = vmatmul.bf16.gmra.mxu1 %v5643_v49  ;;  %6119 = vmatmul.bf16.gmra.mxu2 %v5644_v36  ;;  %v10679_v12 = vld [vmem:[%s11495_s2 + $0x274] sm:$0xf] }
 0x490   : > { %v3393_v40 = vadd.f32 %v3392_v20, %v3249_v6  ;;  %v4281_v1 = vor.u32 %v4279_v21, %v14073_v15  ;;  %v4853_v3 = vsel %vm13592_vm11, %v4851_v53, %v4852_v4  ;;  %v3982_v24 = vmul.f32 %v3803_v17, %v3604_v28  ;;  %v10672_v20 = vld [vmem:[%s11495_s2 + $0x238] sm:$0xf0]  ;;  %v10722_v28 = vld [vmem:[#allocation8 + $0x20] sm:$0xff] }
 0x491   : > { %5098 = vst [vmem:[#allocation2 + $0x11c] sm:$0xf] %v4853_v3  ;;  %v4855_v6 = vor.u32 %v4854_v57, %v4852_v4  ;;  %v9640_v17 = vor.u32 %v10679_v12, %v9637_v8  ;;  %v10738_v57 = vld [vmem:[#allocation8 + $0xa0] sm:$0xff]  ;;  %6678 = vmatpush.bf16.msrb.mxu0 %v10722_v28  ;;  %v16833_v8 = vunpack.c.l.b16 %v14050_v61 }
 0x492   : > { %v3493_v52 = vadd.f32 %v3393_v40, %v16831_v62  ;;  %v4282_v56 = vsel %vm13600_vm12, %v4274_v54, %v4281_v1  ;;  %v6080_v49 = vpop.f32.mrf.mxu2  ;;  %v4036_v39 = vpack.c.bf16 %v3982_v24, %v3982_v24  ;;  %v14088_v53 = vld [vmem:[#allocation2 + $0x114] sm:$0xff]  ;;  %6966 = vmatpush.bf16.msrb.mxu2 %v10738_v57 }
 0x493   : > { %4653 = vst [vmem:[#allocation2 + $0x120] sm:$0xf] %v4282_v56  ;;  %v14086_v45 = vadd.f32 %v6080_v49, %v5936_v32  ;;  %v10730_v62 = vld [vmem:[#allocation8 + $0x60] sm:$0xff]  ;;  %v5514_v54 = vunpack.c.l.b16 %v14088_v53  ;;  %v5515_v4 = vunpack.c.h.b16 %v14088_v53  ;;  %v3808_v32 = vpop.permute.xlu2 %3807  ;;  %v3252_v56 = vadd.f32 %v13959_v60, %v13389_v35 }
 0x494   : > { %v3551_v21 = vadd.f32 %v13883_v44, %v3493_v52  ;;  %v5938_v40 = vpop.f32.mrf.mxu1  ;;  %v4285_v1 = vshrl.u32 %v4036_v39, 16  ;;  %v4288_v3 = vshll.u32 %v4036_v39, 16  ;;  %4713 = vst [vmem:[#allocation2 + $0x130] sm:$0xf] %v4036_v39  ;;  %v9608_v52 = vor.u32 %v10672_v20, %v9607_v63  ;;  %6822 = vmatpush.bf16.msrb.mxu1 %v10730_v62  ;;  %v14102_v20 = vld [vmem:[#allocation2 + $0x110] sm:$0xf] }
 0x495   : > { %16832 = vst [vmem:[#allocation30_spill] sm:$0xff] %v14086_v45  ;;  %v14090_v36 = vpop.f32.mrf.mxu3  ;;  %v4856_v49 = vrot.slane %v4855_v6, 4  ;;  %v14098_v12 = vpack.c.b16 %v5514_v54, %v16833_v8  ;;  %v14100_v53 = vpack.c.b16 %v5515_v4, %v5512_v59  ;;  %v4283_v35 = vrot.slane %v14073_v15, 4  ;;  %v16836_v62 = vld [vmem:[#allocation63_spill] sm:$0xff] }
 0x496   : > { %v3605_v24 = vmax.f32 %v3551_v21, 0.0  ;;  %v4287_v31 = vrot.slane %v4285_v1, 7  ;;  %v4857_v45 = vrot.slane %v4288_v3, 5  ;;  %v4859_v39 = vrot.slane %v4285_v1, 4 }
 0x497   : > { %v3395_v18 = vpop.f32.mrf.mxu0  ;;  %16834 = vst [vmem:[#allocation29_spill] sm:$0xff] %v14098_v12 }
 0x498   : > { %16835 = vst [vmem:[#allocation22_spill] sm:$0xff] %v14100_v53  ;;  %v3983_v21 = vmul.f32 %v3808_v32, %v3605_v24  ;;  %v3396_v63 = vadd.f32 %v3395_v18, %v3252_v56  ;;  %v14104_v28 = vld [vmem:[#allocation2 + $0x11c] sm:$0xf]  ;;  %v4290_v60 = vor.u32 %v4288_v3, %v4287_v31  ;;  %v4858_v6 = vsel %vm13592_vm11, %v4856_v49, %v4857_v45 }
 0x499   : > { %v4860_v61 = vor.u32 %v4859_v39, %v4857_v45  ;;  %5099 = vst [vmem:[#allocation2 + $0x128] sm:$0xf] %v4858_v6  ;;  %v16202_v18 = vunpack.c.l.b16 %v14104_v28  ;;  %v16203_v3 = vunpack.c.l.b16 %v14102_v20 }
 0x49a   : > { %3305 = vmatmul.bf16.gmra.mxu3 %v9640_v17  ;;  %3434 = vmatmul.bf16.gmra.mxu0 %v9608_v52  ;;  %v4037_v59 = vpack.c.bf16 %v3983_v21, %v3983_v21  ;;  %v3494_v57 = vadd.f32 %v3396_v63, %v16836_v62  ;;  %v6082_v1 = vpop.f32.mrf.mxu2  ;;  %v5183_v24 = vld [vmem:[#allocation2 + $0x120] sm:$0xff]  ;;  %v4291_v32 = vsel %vm13600_vm12, %v4283_v35, %v4290_v60 }
 0x49b   : > { %v14113_v56 = vadd.f32 %v6082_v1, %v5938_v40  ;;  %v5517_v15 = vunpack.c.l.b16 %v5183_v24  ;;  %4654 = vst [vmem:[#allocation2 + $0x12c] sm:$0xf] %v4291_v32  ;;  %v5518_v39 = vunpack.c.h.b16 %v5183_v24  ;;  %v3254_v21 = vadd.f32 %v13986_v43, %v13406_v19  ;;  %v3813_v43 = vpop.permute.xlu0 %3812 }
 0x49c   : > { %v4294_v45 = vshrl.u32 %v4037_v59, 16  ;;  %v4297_v17 = vshll.u32 %v4037_v59, 16  ;;  %v3552_v52 = vadd.f32 %v13883_v44, %v3494_v57  ;;  %v5941_v49 = vpop.f32.mrf.mxu1  ;;  %v4861_v63 = vrot.slane %v4860_v61, 4  ;;  %4714 = vst [vmem:[#allocation2 + $0x13c] sm:$0xf] %v4037_v59 }
 0x49d   : > { %16837 = vst [vmem:[#allocation24_spill] sm:$0xff] %v14113_v56  ;;  %v14117_v8 = vpop.f32.mrf.mxu3  ;;  %v5646_v35 = vpack.c.b16 %v5517_v15, %v5514_v54  ;;  %v14125_v40 = vpack.c.b16 %v16202_v18, %v16203_v3  ;;  %v5647_v19 = vpack.c.b16 %v5518_v39, %v5515_v4  ;;  %v4292_v54 = vrot.slane %v4287_v31, 4  ;;  %v16839_v18 = vld [vmem:[#allocation46_spill] sm:$0xff]  ;;  %v9619_v4 = vld [vmem:[%s11495_s2 + $0x248] sm:$0xf] }
 0x49e   : > { %v14127_v60 = vrot.slane %v4294_v45, 7  ;;  %v4862_v6 = vrot.slane %v4297_v17, 5  ;;  %v4864_v62 = vrot.slane %v4294_v45, 4  ;;  %v3606_v57 = vmax.f32 %v3552_v52, 0.0  ;;  %v10682_v45 = vld [vmem:[%s11495_s2 + $0x28c] sm:$0xf] }
 0x49f   : > { %16838 = vst [vmem:[#allocation38_spill] sm:$0xff] %v14125_v40  ;;  %v3397_v1 = vpop.f32.mrf.mxu0  ;;  %5980 = vmatmul.bf16.gmra.mxu1 %v5646_v35  ;;  %6124 = vmatmul.bf16.gmra.mxu2 %v5647_v19  ;;  %v9649_v52 = vld [vmem:[%s11495_s2 + $0x294] sm:$0xf0]  ;;  %v10675_v40 = vld [vmem:[%s11495_s2 + $0x250] sm:$0xf0] }
 0x4a0   : > { %v3398_v24 = vadd.f32 %v3397_v1, %v3254_v21  ;;  %v4299_v61 = vor.u32 %v4297_v17, %v14127_v60  ;;  %v4863_v59 = vsel %vm13592_vm11, %v4861_v63, %v4862_v6  ;;  %v3984_v32 = vmul.f32 %v3813_v43, %v3606_v57 }
 0x4a1   : > { %5100 = vst [vmem:[#allocation2 + $0x134] sm:$0xf] %v4863_v59  ;;  %v4865_v35 = vor.u32 %v4864_v62, %v4862_v6  ;;  %v9620_v62 = vor.u32 %v10675_v40, %v9619_v4 }
 0x4a2   : > { %v3495_v3 = vadd.f32 %v3398_v24, %v16839_v18  ;;  %v4300_v21 = vsel %vm13600_vm12, %v4292_v54, %v4299_v61  ;;  %v6085_v1 = vpop.f32.mrf.mxu2  ;;  %v4038_v31 = vpack.c.bf16 %v3984_v32, %v3984_v32  ;;  %v5185_v63 = vld [vmem:[#allocation2 + $0x12c] sm:$0xff]  ;;  %v9652_v18 = vor.u32 %v10682_v45, %v9649_v52  ;;  %v3818_v54 = vpop.permute.xlu1 %3817 }
 0x4a3   : > { %4655 = vst [vmem:[#allocation2 + $0x138] sm:$0xf] %v4300_v21  ;;  %v14140_v53 = vadd.f32 %v6085_v1, %v5941_v49  ;;  %v5520_v24 = vunpack.c.l.b16 %v5185_v63  ;;  %v5521_v19 = vunpack.c.h.b16 %v5185_v63  ;;  %v3257_v61 = vadd.f32 %v14011_v50, %v13419_v33 }
 0x4a4   : > { %v3553_v17 = vadd.f32 %v13883_v44, %v3495_v3  ;;  %v5943_v57 = vpop.f32.mrf.mxu1  ;;  %v4303_v59 = vshrl.u32 %v4038_v31, 16  ;;  %v4306_v12 = vshll.u32 %v4038_v31, 16  ;;  %4715 = vst [vmem:[#allocation2 + $0x148] sm:$0xf] %v4038_v31  ;;  %v4866_v32 = vrot.slane %v4865_v35, 4 }
 0x4a5   : > { %16840 = vst [vmem:[#allocation43_spill] sm:$0xff] %v14140_v53  ;;  %v14142_v43 = vpop.f32.mrf.mxu3  ;;  %v14146_v49 = vpack.c.b16 %v5520_v24, %v5517_v15  ;;  %v14148_v21 = vpack.c.b16 %v5521_v19, %v5518_v39  ;;  %v4301_v31 = vrot.slane %v14127_v60, 4  ;;  %v16844_v15 = vld [vmem:[#allocation51_spill] sm:$0xff] }
 0x4a6   : > { %v3607_v6 = vmax.f32 %v3553_v17, 0.0  ;;  %v4305_v1 = vrot.slane %v4303_v59, 7  ;;  %v4867_v53 = vrot.slane %v4306_v12, 5  ;;  %v4869_v45 = vrot.slane %v4303_v59, 4  ;;  %v14158_v59 = vld [vmem:[#allocation2 + $0x128] sm:$0xf] }
 0x4a7   : > { %v3400_v3 = vpop.f32.mrf.mxu0  ;;  %16841 = vst [vmem:[#allocation31_spill] sm:$0xff] %v14146_v49 }
 0x4a8   : > { %16842 = vst [vmem:[#allocation34_spill] sm:$0xff] %v14148_v21  ;;  %v3985_v52 = vmul.f32 %v3818_v54, %v3607_v6  ;;  %v3401_v63 = vadd.f32 %v3400_v3, %v3257_v61  ;;  %v14150_v56 = vld [vmem:[#allocation2 + $0x134] sm:$0xf]  ;;  %v4308_v40 = vor.u32 %v4306_v12, %v4305_v1  ;;  %v4868_v4 = vsel %vm13592_vm11, %v4866_v32, %v4867_v53  ;;  %v10764_v54 = vld [vmem:[#allocation8 + $0x158] sm:$0xff] }
 0x4a9   : > { %16843 = vst [vmem:[#allocation25_spill] sm:$0xff] %v14150_v56  ;;  %v4870_v33 = vor.u32 %v4869_v45, %v4867_v53  ;;  %6214 = vmatpush.bf16.msrb.mxu3 %v10764_v54 }
 0x4aa   : > { %3310 = vmatmul.bf16.gmra.mxu3 %v9652_v18  ;;  %3439 = vmatmul.bf16.gmra.mxu0 %v9620_v62  ;;  %5101 = vst [vmem:[#allocation2 + $0x140] sm:$0xf] %v4868_v4  ;;  %v4039_v50 = vpack.c.bf16 %v3985_v52, %v3985_v52  ;;  %v3496_v39 = vadd.f32 %v3401_v63, %v16844_v15  ;;  %v6087_v35 = vpop.f32.mrf.mxu2  ;;  %v14156_v17 = vld [vmem:[#allocation2 + $0x138] sm:$0xff] }
 0x4ab   : > { %v4309_v6 = vsel %vm13600_vm12, %v4301_v31, %v4308_v40  ;;  %v14162_v60 = vadd.f32 %v6087_v35, %v5943_v57  ;;  %v16205_v12 = vunpack.c.l.b16 %v14156_v17  ;;  %v5524_v45 = vunpack.c.h.b16 %v14156_v17 }
 0x4ac   : > { %4656 = vst [vmem:[#allocation2 + $0x144] sm:$0xf] %v4309_v6  ;;  %v4312_v18 = vshrl.u32 %v4039_v50, 16  ;;  %v4315_v62 = vshll.u32 %v4039_v50, 16  ;;  %v3554_v61 = vadd.f32 %v13883_v44, %v3496_v39  ;;  %v5946_v32 = vpop.f32.mrf.mxu1  ;;  %v3259_v52 = vadd.f32 %v14034_v30, %v13436_v48  ;;  %v10763_v48 = vld [vmem:[#allocation8 + $0x150] sm:$0xff] }
 0x4ad   : > { %16845 = vst [vmem:[#allocation26_spill] sm:$0xff] %v14162_v60  ;;  %v14167_v3 = vpop.f32.mrf.mxu3  ;;  %v4871_v57 = vrot.slane %v4870_v33, 4  ;;  %v5649_v63 = vpack.c.b16 %v16205_v12, %v5520_v24  ;;  %v16204_v31 = vunpack.c.l.b16 %v14158_v59  ;;  %v5650_v53 = vpack.c.b16 %v5524_v45, %v5521_v19  ;;  %v3823_v33 = vpop.permute.xlu2 %3822  ;;  %6215 = vmatpush.bf16.msrb.mxu3 %v10763_v48 }
 0x4ae   : > { %4716 = vst [vmem:[#allocation2 + $0x154] sm:$0xf] %v4039_v50  ;;  %v14175_v40 = vrot.slane %v4312_v18, 7  ;;  %v4872_v4 = vrot.slane %v4315_v62, 5  ;;  %v4874_v15 = vrot.slane %v4312_v18, 4  ;;  %v3608_v39 = vmax.f32 %v3554_v61, 0.0 }
 0x4af   : > { %v3402_v35 = vpop.f32.mrf.mxu0  ;;  %5985 = vmatmul.bf16.gmra.mxu1 %v5649_v63  ;;  %v16846_v30 = vunpack.c.l.b16 %v14150_v56  ;;  %v4310_v50 = vrot.slane %v4305_v1, 4  ;;  %6129 = vmatmul.bf16.gmra.mxu2 %v5650_v53  ;;  %v10685_v63 = vld [vmem:[%s11495_s2 + $0x2a4] sm:$0xf]  ;;  %v10678_v1 = vld [vmem:[%s11495_s2 + $0x268] sm:$0xf0] }
 0x4b0   : > { %v3403_v6 = vadd.f32 %v3402_v35, %v3259_v52  ;;  %v4317_v54 = vor.u32 %v4315_v62, %v14175_v40  ;;  %v4873_v18 = vsel %vm13592_vm11, %v4871_v57, %v4872_v4  ;;  %v3986_v61 = vmul.f32 %v3823_v33, %v3608_v39  ;;  %v16848_v52 = vld [vmem:[#allocation33_spill] sm:$0xff]  ;;  %v9661_v35 = vld [vmem:[%s11495_s2 + $0x2ac] sm:$0xf0] }
 0x4b1   : > { %v14181_v24 = vpack.c.b16 %v16846_v30, %v16204_v31  ;;  %5102 = vst [vmem:[#allocation2 + $0x14c] sm:$0xf] %v4873_v18  ;;  %v4875_v31 = vor.u32 %v4874_v15, %v4872_v4  ;;  %v9664_v48 = vor.u32 %v10685_v63, %v9661_v35 }
 0x4b2   : > { %v3497_v19 = vadd.f32 %v3403_v6, %v16848_v52  ;;  %v4318_v30 = vsel %vm13600_vm12, %v4310_v50, %v4317_v54  ;;  %v6090_v12 = vpop.f32.mrf.mxu2  ;;  %v4040_v62 = vpack.c.bf16 %v3986_v61, %v3986_v61  ;;  %v10762_v6 = vld [vmem:[#allocation8 + $0x148] sm:$0xff] }
 0x4b3   : > { %16847 = vst [vmem:[#allocation44_spill] sm:$0xff] %v14181_v24  ;;  %v9631_v24 = vld [vmem:[%s11495_s2 + $0x260] sm:$0xf]  ;;  %v14194_v57 = vadd.f32 %v6090_v12, %v5946_v32  ;;  %v14196_v39 = vld [vmem:[#allocation2 + $0x144] sm:$0xff]  ;;  %6216 = vmatpush.bf16.msrb.mxu3 %v10762_v6  ;;  %v3262_v12 = vadd.f32 %v14060_v38, %v13446_v10  ;;  %v4876_v32 = vrot.slane %v4875_v31, 4  ;;  %v4319_v10 = vrot.slane %v14175_v40, 4 }
 0x4b4   : > { %4657 = vst [vmem:[#allocation2 + $0x150] sm:$0xf] %v4318_v30  ;;  %v3555_v21 = vadd.f32 %v13883_v44, %v3497_v19  ;;  %v5948_v53 = vpop.f32.mrf.mxu1  ;;  %v5526_v18 = vunpack.c.l.b16 %v14196_v39  ;;  %v5527_v4 = vunpack.c.h.b16 %v14196_v39  ;;  %v4321_v15 = vshrl.u32 %v4040_v62, 16  ;;  %v3828_v44 = vpop.permute.xlu0 %3827  ;;  %v16855_v6 = vld [vmem:[#allocation36_spill] sm:$0xff] }
 0x4b5   : > { %16849 = vst [vmem:[#allocation49_spill] sm:$0xff] %v14194_v57  ;;  %v14198_v33 = vpop.f32.mrf.mxu3  ;;  %v4324_v50 = vshll.u32 %v4040_v62, 16  ;;  %v9632_v61 = vor.u32 %v10678_v1, %v9631_v24  ;;  %v16850_v19 = vunpack.c.l.b16 %v14156_v17  ;;  %v14210_v24 = vld [vmem:[#allocation2 + $0x140] sm:$0xf] }
 0x4b6   : > { %4717 = vst [vmem:[#allocation2 + $0x160] sm:$0xf] %v4040_v62  ;;  %v3609_v54 = vmax.f32 %v3555_v21, 0.0  ;;  %v14208_v63 = vpack.c.b16 %v5527_v4, %v5524_v45  ;;  %v4323_v35 = vrot.slane %v4321_v15, 7  ;;  %v4879_v49 = vrot.slane %v4321_v15, 4  ;;  %v10761_v62 = vld [vmem:[#allocation8 + $0x140] sm:$0xff] }
 0x4b7   : > { %v3405_v52 = vpop.f32.mrf.mxu0  ;;  %v14206_v30 = vpack.c.b16 %v5526_v18, %v16850_v19  ;;  %v4877_v39 = vrot.slane %v4324_v50, 5  ;;  %16853 = vst [vmem:[#allocation27_spill] sm:$0xff] %v14210_v24  ;;  %6217 = vmatpush.bf16.msrb.mxu3 %v10761_v62  ;;  %v16857_v62 = vld [vmem:[#allocation100_spill] sm:$0xff] }
 0x4b8   : > { %16852 = vst [vmem:[#allocation39_spill] sm:$0xff] %v14208_v63  ;;  %v3987_v57 = vmul.f32 %v3828_v44, %v3609_v54  ;;  %v3406_v21 = vadd.f32 %v3405_v52, %v3262_v12  ;;  %v14212_v1 = vld [vmem:[#allocation2 + $0x14c] sm:$0xf]  ;;  %v4326_v38 = vor.u32 %v4324_v50, %v4323_v35 }
 0x4b9   : > { %16851 = vst [vmem:[#allocation35_spill] sm:$0xff] %v14206_v30  ;;  %v4878_v17 = vsel %vm13592_vm11, %v4876_v32, %v4877_v39  ;;  %v4880_v31 = vor.u32 %v4879_v49, %v4877_v39  ;;  %v16206_v12 = vunpack.c.l.b16 %v14212_v1  ;;  %v16207_v49 = vunpack.c.l.b16 %v14210_v24  ;;  %v10681_v30 = vld [vmem:[%s11495_s2 + $0x280] sm:$0xf0] }
 0x4ba   : > { %16854 = vst [vmem:[#allocation28_spill] sm:$0xff] %v14212_v1  ;;  %3315 = vmatmul.bf16.gmra.mxu3 %v9664_v48  ;;  %3444 = vmatmul.bf16.gmra.mxu0 %v9632_v61  ;;  %v4041_v45 = vpack.c.bf16 %v3987_v57, %v3987_v57  ;;  %v3498_v15 = vadd.f32 %v3406_v21, %v16855_v6  ;;  %v6092_v54 = vpop.f32.mrf.mxu2  ;;  %v14230_v61 = vld [vmem:[%s15948_s3] ss:$0 sm:$0xff] }
 0x4bb   : > { %5103 = vst [vmem:[#allocation2 + $0x158] sm:$0xf] %v4878_v17  ;;  %v14218_v44 = vld [vmem:[#allocation2 + $0x150] sm:$0xff]  ;;  %v4327_v40 = vsel %vm13600_vm12, %v4319_v10, %v4326_v38  ;;  %v14223_v50 = vadd.f32 %v6092_v54, %v5948_v53  ;;  %v3264_v21 = vadd.f32 %v14090_v36, %v16857_v62  ;;  %v4881_v10 = vrot.slane %v4880_v31, 4 }
 0x4bc   : > { %v5529_v32 = vunpack.c.l.b16 %v14218_v44  ;;  %4658 = vst [vmem:[#allocation2 + $0x15c] sm:$0xf] %v4327_v40  ;;  %v4330_v48 = vshrl.u32 %v4041_v45, 16  ;;  %v4333_v57 = vshll.u32 %v4041_v45, 16  ;;  %v3556_v52 = vadd.f32 %v14230_v61, %v3498_v15  ;;  %v5951_v19 = vpop.f32.mrf.mxu1 }
 0x4bd   : > { %16856 = vst [vmem:[#allocation50_spill] sm:$0xff] %v14223_v50  ;;  %v14233_v39 = vpop.f32.mrf.mxu3  ;;  %v5530_v53 = vunpack.c.h.b16 %v14218_v44  ;;  %v14242_v17 = vpack.c.b16 %v16206_v12, %v16207_v49  ;;  %v4328_v31 = vrot.slane %v4323_v35, 4  ;;  %v16859_v49 = vld [vmem:[#allocation65_spill] sm:$0xff] }
 0x4be   : > { %4718 = vst [vmem:[#allocation2 + $0x16c] sm:$0xf] %v4041_v45  ;;  %v5652_v38 = vpack.c.b16 %v5529_v32, %v5526_v18  ;;  %v14244_v6 = vrot.slane %v4330_v48, 7  ;;  %v4882_v15 = vrot.slane %v4333_v57, 5  ;;  %v4884_v54 = vrot.slane %v4330_v48, 4  ;;  %v3833_v18 = vpop.permute.xlu1 %3832 }
 0x4bf   : > { %16858 = vst [vmem:[#allocation55_spill] sm:$0xff] %v14242_v17  ;;  %v3610_v40 = vmax.f32 %v3556_v52, 0.0  ;;  %v3407_v44 = vpop.f32.mrf.mxu0  ;;  %v5653_v36 = vpack.c.b16 %v5530_v53, %v5527_v4  ;;  %v10688_v48 = vld [vmem:[%s11495_s2 + $0x2bc] sm:$0xf]  ;;  %v9673_v52 = vld [vmem:[%s11495_s2 + $0x2c4] sm:$0xf0] }
 0x4c0   : > { %v3408_v63 = vadd.f32 %v3407_v44, %v3264_v21  ;;  %5990 = vmatmul.bf16.gmra.mxu1 %v5652_v38  ;;  %v4335_v45 = vor.u32 %v4333_v57, %v14244_v6  ;;  %v4883_v62 = vsel %vm13592_vm11, %v4881_v10, %v4882_v15  ;;  %v4885_v38 = vor.u32 %v4884_v54, %v4882_v15  ;;  %v9643_v4 = vld [vmem:[%s11495_s2 + $0x278] sm:$0xf] }
 0x4c1   : > { %5104 = vst [vmem:[#allocation2 + $0x164] sm:$0xf] %v4883_v62  ;;  %v3988_v12 = vmul.f32 %v3833_v18, %v3610_v40  ;;  %6134 = vmatmul.bf16.gmra.mxu2 %v5653_v36  ;;  %v10721_v40 = vld [vmem:[#allocation8 + $0x18] sm:$0xff]  ;;  %v9676_v36 = vor.u32 %v10688_v48, %v9673_v52 }
 0x4c2   : > { %v3499_v17 = vadd.f32 %v3408_v63, %v16859_v49  ;;  %v4336_v21 = vsel %vm13600_vm12, %v4328_v31, %v4335_v45  ;;  %v6095_v44 = vpop.f32.mrf.mxu2  ;;  %6679 = vmatpush.bf16.msrb.mxu0 %v10721_v40  ;;  %v14271_v56 = vld [vmem:[#allocation2 + $0x158] sm:$0xf] }
 0x4c3   : > { %4659 = vst [vmem:[#allocation2 + $0x168] sm:$0xf] %v4336_v21  ;;  %v4042_v35 = vpack.c.bf16 %v3988_v12, %v3988_v12  ;;  %v14257_v1 = vadd.f32 %v6095_v44, %v5951_v19  ;;  %v14259_v10 = vld [vmem:[#allocation2 + $0x15c] sm:$0xff]  ;;  %v9644_v12 = vor.u32 %v10681_v30, %v9643_v4  ;;  %v16861_v19 = vld [vmem:[#allocation88_spill] sm:$0xff]  ;;  %v4886_v21 = vrot.slane %v4885_v38, 4 }
 0x4c4   : > { %v3557_v57 = vadd.f32 %v14230_v61, %v3499_v17  ;;  %v5953_v63 = vpop.f32.mrf.mxu1  ;;  %v5532_v18 = vunpack.c.l.b16 %v14259_v10  ;;  %v5533_v15 = vunpack.c.h.b16 %v14259_v10  ;;  %v3838_v17 = vpop.permute.xlu2 %3837  ;;  %v3267_v62 = vadd.f32 %v14117_v8, %v16861_v19 }
 0x4c5   : > { %16860 = vst [vmem:[#allocation45_spill] sm:$0xff] %v14257_v1  ;;  %v14261_v49 = vpop.f32.mrf.mxu3  ;;  %v4339_v54 = vshrl.u32 %v4042_v35, 16  ;;  %v4342_v31 = vshll.u32 %v4042_v35, 16  ;;  %v4337_v30 = vrot.slane %v14244_v6, 4 }
 0x4c6   : > { %4719 = vst [vmem:[#allocation2 + $0x178] sm:$0xf] %v4042_v35  ;;  %v3611_v45 = vmax.f32 %v3557_v57, 0.0  ;;  %v14267_v1 = vpack.c.b16 %v5532_v18, %v5529_v32  ;;  %v14269_v50 = vpack.c.b16 %v5533_v15, %v5530_v53  ;;  %v16865_v53 = vld [vmem:[#allocation71_spill] sm:$0xff] }
 0x4c7   : > { %v3410_v44 = vpop.f32.mrf.mxu0  ;;  %v4341_v48 = vrot.slane %v4339_v54, 7  ;;  %v4887_v52 = vrot.slane %v4342_v31, 5  ;;  %v4889_v60 = vrot.slane %v4339_v54, 4 }
 0x4c8   : > { %16862 = vst [vmem:[#allocation32_spill] sm:$0xff] %v14267_v1  ;;  %v3989_v10 = vmul.f32 %v3838_v17, %v3611_v45  ;;  %v3411_v24 = vadd.f32 %v3410_v44, %v3267_v62  ;;  %v14273_v35 = vld [vmem:[#allocation2 + $0x164] sm:$0xf]  ;;  %v10729_v44 = vld [vmem:[#allocation8 + $0x58] sm:$0xff]  ;;  %v16869_v1 = vld [vmem:[#allocation56_spill] sm:$0xff] }
 0x4c9   : > { %16863 = vst [vmem:[#allocation57_spill] sm:$0xff] %v14269_v50  ;;  %v4344_v4 = vor.u32 %v4342_v31, %v4341_v48  ;;  %v4888_v8 = vsel %vm13592_vm11, %v4886_v21, %v4887_v52  ;;  %v4890_v38 = vor.u32 %v4889_v60, %v4887_v52  ;;  %v16211_v45 = vunpack.c.l.b16 %v14273_v35  ;;  %v10737_v52 = vld [vmem:[#allocation8 + $0x98] sm:$0xff]  ;;  %6823 = vmatpush.bf16.msrb.mxu1 %v10729_v44  ;;  %v16868_v50 = vld [vmem:[#allocation52_spill] sm:$0xff] }
 0x4ca   : > { %16864 = vst [vmem:[#allocation63_spill] sm:$0xff] %v14273_v35  ;;  %3320 = vmatmul.bf16.gmra.mxu3 %v9676_v36  ;;  %3449 = vmatmul.bf16.gmra.mxu0 %v9644_v12  ;;  %v4043_v32 = vpack.c.bf16 %v3989_v10, %v3989_v10  ;;  %v3500_v57 = vadd.f32 %v3411_v24, %v16865_v53  ;;  %v6097_v40 = vpop.f32.mrf.mxu2  ;;  %v14279_v54 = vld [vmem:[#allocation2 + $0x168] sm:$0xff]  ;;  %v16212_v60 = vunpack.c.l.b16 %v14271_v56  ;;  %v16866_v10 = vld [vmem:[#allocation101_spill] sm:$0xff] }
 0x4cb   : > { %5105 = vst [vmem:[#allocation2 + $0x170] sm:$0xf] %v4888_v8  ;;  %v4345_v17 = vsel %vm13600_vm12, %v4337_v30, %v4344_v4  ;;  %v14284_v6 = vadd.f32 %v6097_v40, %v5953_v63  ;;  %v5535_v31 = vunpack.c.l.b16 %v14279_v54  ;;  %v5536_v21 = vunpack.c.h.b16 %v14279_v54  ;;  %6967 = vmatpush.bf16.msrb.mxu2 %v10737_v52 }
 0x4cc   : > { %4660 = vst [vmem:[#allocation2 + $0x174] sm:$0xf] %v4345_v17  ;;  %v4348_v36 = vshrl.u32 %v4043_v32, 16  ;;  %v4351_v12 = vshll.u32 %v4043_v32, 16  ;;  %v3558_v19 = vadd.f32 %v14230_v61, %v3500_v57  ;;  %v5956_v24 = vpop.f32.mrf.mxu1  ;;  %v3269_v63 = vadd.f32 %v14142_v43, %v16866_v10  ;;  %v3843_v10 = vpop.permute.xlu0 %3842 }
 0x4cd   : > { %v14289_v62 = vpop.f32.mrf.mxu3  ;;  %v4891_v30 = vrot.slane %v4890_v38, 4  ;;  %4720 = vst [vmem:[#allocation2 + $0x184] sm:$0xf] %v4043_v32  ;;  %v5655_v4 = vpack.c.b16 %v5535_v31, %v5532_v18  ;;  %v14298_v8 = vpack.c.b16 %v16211_v45, %v16212_v60  ;;  %v2248_v43 = vadd.f32 %v16869_v1, %v16868_v50  ;;  %v14304_v32 = vld [vmem:[#allocation2 + $0x2c] sm:$0xf] }
 0x4ce   : > { %v14300_v53 = vrot.slane %v4348_v36, 7  ;;  %v4892_v57 = vrot.slane %v4351_v12, 5  ;;  %v4894_v40 = vrot.slane %v4348_v36, 4  ;;  %v3612_v17 = vmax.f32 %v3558_v19, 0.0  ;;  %16870 = vst [vmem:[#allocation51_spill] sm:$0xff] %v14304_v32 }
 0x4cf   : > { %16867 = vst [vmem:[#allocation46_spill] sm:$0xff] %v14298_v8  ;;  %v3412_v54 = vpop.f32.mrf.mxu0  ;;  %v5656_v18 = vpack.c.b16 %v5536_v21, %v5533_v15  ;;  %v4346_v45 = vrot.slane %v4341_v48, 4  ;;  %v10684_v15 = vld [vmem:[%s11495_s2 + $0x298] sm:$0xf0] }
 0x4d0   : > { %v3413_v38 = vadd.f32 %v3412_v54, %v3269_v63  ;;  %5995 = vmatmul.bf16.gmra.mxu1 %v5655_v4  ;;  %v4353_v60 = vor.u32 %v4351_v12, %v14300_v53  ;;  %v4893_v36 = vsel %vm13592_vm11, %v4891_v30, %v4892_v57  ;;  %v3990_v19 = vmul.f32 %v3843_v10, %v3612_v17  ;;  %v9655_v63 = vld [vmem:[%s11495_s2 + $0x290] sm:$0xf] }
 0x4d1   : > { %5106 = vst [vmem:[#allocation2 + $0x17c] sm:$0xf] %v4893_v36  ;;  %6139 = vmatmul.bf16.gmra.mxu2 %v5656_v18  ;;  %v4895_v50 = vor.u32 %v4894_v40, %v4892_v57  ;;  %v16214_v4 = vunpack.c.l.b16 %v14304_v32  ;;  %v9656_v10 = vor.u32 %v10684_v15, %v9655_v63  ;;  %v4355_v63 = vrot.slane %v14300_v53, 4 }
 0x4d2   : > { %v3501_v44 = vadd.f32 %v3413_v38, %v2248_v43  ;;  %v4354_v1 = vsel %vm13600_vm12, %v4346_v45, %v4353_v60  ;;  %v6100_v52 = vpop.f32.mrf.mxu2  ;;  %v4044_v48 = vpack.c.bf16 %v3990_v19, %v3990_v19  ;;  %v16872_v45 = vunpack.c.l.b16 %v13663_v58  ;;  %v3848_v19 = vpop.permute.xlu1 %3847  ;;  %v14329_v35 = vld [vmem:[#allocation2 + $0x170] sm:$0xf] }
 0x4d3   : > { %4661 = vst [vmem:[#allocation2 + $0x180] sm:$0xf] %v4354_v1  ;;  %v14315_v54 = vadd.f32 %v6100_v52, %v5956_v24  ;;  %v5197_v30 = vld [vmem:[#allocation2 + $0x174] sm:$0xff]  ;;  %v4896_v1 = vrot.slane %v4895_v50, 4 }
 0x4d4   : > { %v3559_v12 = vadd.f32 %v14230_v61, %v3501_v44  ;;  %v5958_v36 = vpop.f32.mrf.mxu1  ;;  %v5618_v60 = vpack.c.b16 %v16872_v45, %v16214_v4  ;;  %v5538_v57 = vunpack.c.l.b16 %v5197_v30  ;;  %v5539_v40 = vunpack.c.h.b16 %v5197_v30  ;;  %4721 = vst [vmem:[#allocation2 + $0x190] sm:$0xf] %v4044_v48  ;;  %v16873_v44 = vld [vmem:[#allocation107_spill] sm:$0xff] }
 0x4d5   : > { %16871 = vst [vmem:[#allocation33_spill] sm:$0xff] %v14315_v54  ;;  %v14317_v17 = vpop.f32.mrf.mxu3  ;;  %v4357_v43 = vshrl.u32 %v4044_v48, 16  ;;  %v4360_v38 = vshll.u32 %v4044_v48, 16  ;;  %v3272_v24 = vadd.f32 %v14167_v3, %v16873_v44 }
 0x4d6   : > { %v3613_v18 = vmax.f32 %v3559_v12, 0.0  ;;  %v14325_v8 = vpack.c.b16 %v5538_v57, %v5535_v31  ;;  %v14327_v54 = vpack.c.b16 %v5539_v40, %v5536_v21  ;;  %v16877_v21 = vld [vmem:[#allocation37_spill] sm:$0xff] }
 0x4d7   : > { %v3415_v52 = vpop.f32.mrf.mxu0  ;;  %v4359_v32 = vrot.slane %v4357_v43, 7  ;;  %v4897_v58 = vrot.slane %v4360_v38, 5  ;;  %v4899_v45 = vrot.slane %v4357_v43, 4 }
 0x4d8   : > { %16874 = vst [vmem:[#allocation36_spill] sm:$0xff] %v14325_v8  ;;  %v3991_v4 = vmul.f32 %v3848_v19, %v3613_v18  ;;  %v3416_v30 = vadd.f32 %v3415_v52, %v3272_v24  ;;  %v14331_v48 = vld [vmem:[#allocation2 + $0x17c] sm:$0xf]  ;;  %v16217_v24 = vunpack.c.l.b16 %v14329_v35 }
 0x4d9   : > { %16875 = vst [vmem:[#allocation100_spill] sm:$0xff] %v14327_v54  ;;  %v4362_v15 = vor.u32 %v4360_v38, %v4359_v32  ;;  %v4898_v3 = vsel %vm13592_vm11, %v4896_v1, %v4897_v58  ;;  %v4900_v50 = vor.u32 %v4899_v45, %v4897_v58  ;;  %v16216_v19 = vunpack.c.l.b16 %v14331_v48  ;;  %v16879_v45 = vld [vmem:[#allocation70_spill] sm:$0xff]  ;;  %v16881_v54 = vld [vmem:[#allocation41_spill] sm:$0xff] }
 0x4da   : > { %16876 = vst [vmem:[#allocation65_spill] sm:$0xff] %v14331_v48  ;;  %3454 = vmatmul.bf16.gmra.mxu0 %v9656_v10  ;;  %6218 = vmatmul.bf16.vlgmr.msrb.gmra.mxu3 %v5618_v60  ;;  %v4045_v31 = vpack.c.bf16 %v3991_v4, %v3991_v4  ;;  %v3502_v12 = vadd.f32 %v3416_v30, %v16877_v21  ;;  %v6102_v43 = vpop.f32.mrf.mxu2  ;;  %v14337_v18 = vld [vmem:[#allocation2 + $0x180] sm:$0xff] }
 0x4db   : > { %5107 = vst [vmem:[#allocation2 + $0x188] sm:$0xf] %v4898_v3  ;;  %v4363_v44 = vsel %vm13600_vm12, %v4355_v63, %v4362_v15  ;;  %v14342_v53 = vadd.f32 %v6102_v43, %v5958_v36  ;;  %v5541_v38 = vunpack.c.l.b16 %v14337_v18  ;;  %v5542_v58 = vunpack.c.h.b16 %v14337_v18  ;;  %v16882_v18 = vld [vmem:[#allocation74_spill] sm:$0xff] }
 0x4dc   : > { %4662 = vst [vmem:[#allocation2 + $0x18c] sm:$0xf] %v4363_v44  ;;  %v4366_v60 = vshrl.u32 %v4045_v31, 16  ;;  %v4369_v10 = vshll.u32 %v4045_v31, 16  ;;  %v3560_v4 = vadd.f32 %v14230_v61, %v3502_v12  ;;  %v5961_v1 = vpop.f32.mrf.mxu1  ;;  %v3274_v30 = vadd.f32 %v14198_v33, %v16879_v45 }
 0x4dd   : > { %16878 = vst [vmem:[#allocation88_spill] sm:$0xff] %v14342_v53  ;;  %v14347_v52 = vpop.f32.mrf.mxu3  ;;  %v4901_v63 = vrot.slane %v4900_v50, 4  ;;  %v5658_v36 = vpack.c.b16 %v5541_v38, %v5538_v57  ;;  %v14356_v15 = vpack.c.b16 %v16216_v19, %v16217_v24  ;;  %v2253_v8 = vadd.f32 %v16882_v18, %v16881_v54  ;;  %v3853_v50 = vpop.permute.xlu2 %3852  ;;  %v10720_v24 = vld [vmem:[#allocation8 + $0x10] sm:$0xff]  ;;  %v10718_v53 = vld [vmem:[#allocation8] sm:$0xff] }
 0x4de   : > { %4722 = vst [vmem:[#allocation2 + $0x19c] sm:$0xf] %v4045_v31  ;;  %v14358_v3 = vrot.slane %v4366_v60, 7  ;;  %v4902_v21 = vrot.slane %v4369_v10, 5  ;;  %v4904_v12 = vrot.slane %v4366_v60, 4  ;;  %v3614_v43 = vmax.f32 %v3560_v4, 0.0  ;;  %6680 = vmatpush.bf16.msrb.mxu0 %v10720_v24 }
 0x4df   : > { %16880 = vst [vmem:[#allocation71_spill] sm:$0xff] %v14356_v15  ;;  %v3417_v44 = vpop.f32.mrf.mxu0  ;;  %v5659_v57 = vpack.c.b16 %v5542_v58, %v5539_v40  ;;  %v4364_v31 = vrot.slane %v4359_v32, 4 }
 0x4e0   : > { %v3418_v33 = vadd.f32 %v3417_v44, %v3274_v30  ;;  %6000 = vmatmul.bf16.gmra.mxu1 %v5658_v36  ;;  %v4371_v45 = vor.u32 %v4369_v10, %v14358_v3  ;;  %v4903_v19 = vsel %vm13592_vm11, %v4901_v63, %v4902_v21  ;;  %v3992_v60 = vmul.f32 %v3853_v50, %v3614_v43  ;;  %v9667_v44 = vld [vmem:[%s11495_s2 + $0x2a8] sm:$0xf]  ;;  %v10687_v36 = vld [vmem:[%s11495_s2 + $0x2b0] sm:$0xf0] }
 0x4e1   : > { %5108 = vst [vmem:[#allocation2 + $0x194] sm:$0xf] %v4903_v19  ;;  %6144 = vmatmul.bf16.gmra.mxu2 %v5659_v57  ;;  %v4905_v18 = vor.u32 %v4904_v12, %v4902_v21  ;;  %v10719_v57 = vld [vmem:[#allocation8 + $0x8] sm:$0xff] }
 0x4e2   : > { %v3503_v4 = vadd.f32 %v3418_v33, %v2253_v8  ;;  %v4372_v54 = vsel %vm13600_vm12, %v4364_v31, %v4371_v45  ;;  %v6105_v30 = vpop.f32.mrf.mxu2  ;;  %v4046_v32 = vpack.c.bf16 %v3992_v60, %v3992_v60  ;;  %v16884_v8 = vunpack.c.l.b16 %v13660_v16  ;;  %v3858_v60 = vpop.permute.xlu0 %3857  ;;  %6681 = vmatpush.bf16.msrb.mxu0 %v10719_v57 }
 0x4e3   : > { %4663 = vst [vmem:[#allocation2 + $0x198] sm:$0xf] %v4372_v54  ;;  %v14370_v10 = vadd.f32 %v6105_v30, %v5961_v1  ;;  %v14372_v63 = vld [vmem:[#allocation2 + $0x18c] sm:$0xff]  ;;  %v16885_v33 = vunpack.c.l.b16 %v13709_v13  ;;  %v9668_v45 = vor.u32 %v10687_v36, %v9667_v44  ;;  %v4906_v30 = vrot.slane %v4905_v18, 4 }
 0x4e4   : > { %v3561_v40 = vadd.f32 %v14230_v61, %v3503_v4  ;;  %v5963_v19 = vpop.f32.mrf.mxu1  ;;  %v5544_v12 = vunpack.c.l.b16 %v14372_v63  ;;  %v5545_v24 = vunpack.c.h.b16 %v14372_v63  ;;  %v4375_v50 = vshrl.u32 %v4046_v32, 16  ;;  %4723 = vst [vmem:[#allocation2 + $0x1a8] sm:$0xf] %v4046_v32  ;;  %v16886_v4 = vld [vmem:[#allocation108_spill] sm:$0xff] }
 0x4e5   : > { %16883 = vst [vmem:[#allocation101_spill] sm:$0xff] %v14370_v10  ;;  %v14374_v43 = vpop.f32.mrf.mxu3  ;;  %v5621_v21 = vpack.c.b16 %v16885_v33, %v16884_v8  ;;  %v4378_v31 = vshll.u32 %v4046_v32, 16  ;;  %v3277_v54 = vadd.f32 %v14233_v39, %v16886_v4  ;;  %v14388_v32 = vld [vmem:[#allocation2 + $0x188] sm:$0xf]  ;;  %v4373_v36 = vrot.slane %v14358_v3, 4 }
 0x4e6   : > { %v3615_v1 = vmax.f32 %v3561_v40, 0.0  ;;  %v14384_v16 = vpack.c.b16 %v5544_v12, %v5541_v38  ;;  %v14386_v13 = vpack.c.b16 %v5545_v24, %v5542_v58  ;;  %v4377_v8 = vrot.slane %v4375_v50, 7  ;;  %v16889_v40 = vld [vmem:[#allocation79_spill] sm:$0xff]  ;;  %6682 = vmatpush.bf16.msrb.mxu0 %v10718_v53  ;;  %v16890_v53 = vld [vmem:[#allocation97_spill] sm:$0xff] }
 0x4e7   : > { %v3420_v15 = vpop.f32.mrf.mxu0  ;;  %v4907_v33 = vrot.slane %v4378_v31, 5  ;;  %v4909_v63 = vrot.slane %v4375_v50, 4  ;;  %v16220_v4 = vunpack.c.l.b16 %v14388_v32 }
 0x4e8   : > { %16887 = vst [vmem:[#allocation52_spill] sm:$0xff] %v14384_v16  ;;  %v3993_v10 = vmul.f32 %v3858_v60, %v3615_v1  ;;  %v3421_v48 = vadd.f32 %v3420_v15, %v3277_v54  ;;  %v14390_v44 = vld [vmem:[#allocation2 + $0x194] sm:$0xf]  ;;  %v4380_v39 = vor.u32 %v4378_v31, %v4377_v8 }
 0x4e9   : > { %16888 = vst [vmem:[#allocation56_spill] sm:$0xff] %v14386_v13  ;;  %v4908_v18 = vsel %vm13592_vm11, %v4906_v30, %v4907_v33  ;;  %v4910_v38 = vor.u32 %v4909_v63, %v4907_v33  ;;  %v16219_v1 = vunpack.c.l.b16 %v14390_v44  ;;  %v3279_v33 = vadd.f32 %v14261_v49, %v16890_v53 }
 0x4ea   : > { %3459 = vmatmul.bf16.gmra.mxu0 %v9668_v45  ;;  %6223 = vmatmul.bf16.gmra.mxu3 %v5621_v21  ;;  %5109 = vst [vmem:[#allocation2 + $0x1a0] sm:$0xf] %v4908_v18  ;;  %v4047_v58 = vpack.c.bf16 %v3993_v10, %v3993_v10  ;;  %v3504_v57 = vadd.f32 %v3421_v48, %v16889_v40  ;;  %v6107_v50 = vpop.f32.mrf.mxu2  ;;  %v5203_v15 = vld [vmem:[#allocation2 + $0x198] sm:$0xff] }
 0x4eb   : > { %v4381_v60 = vsel %vm13600_vm12, %v4373_v36, %v4380_v39  ;;  %v14399_v3 = vadd.f32 %v6107_v50, %v5963_v19  ;;  %v5547_v31 = vunpack.c.l.b16 %v5203_v15  ;;  %v5548_v30 = vunpack.c.h.b16 %v5203_v15  ;;  %v16893_v15 = vld [vmem:[#allocation64_spill] sm:$0xff] }
 0x4ec   : > { %4664 = vst [vmem:[#allocation2 + $0x1a4] sm:$0xf] %v4381_v60  ;;  %v4384_v45 = vshrl.u32 %v4047_v58, 16  ;;  %v4387_v21 = vshll.u32 %v4047_v58, 16  ;;  %v3562_v10 = vadd.f32 %v14230_v61, %v3504_v57  ;;  %v5966_v54 = vpop.f32.mrf.mxu1  ;;  %v4911_v63 = vrot.slane %v4910_v38, 4  ;;  %v16892_v60 = vld [vmem:[#allocation58_spill] sm:$0xff]  ;;  %v3863_v38 = vpop.permute.xlu1 %3862 }
 0x4ed   : > { %v14403_v48 = vpop.f32.mrf.mxu3  ;;  %4724 = vst [vmem:[#allocation2 + $0x1b4] sm:$0xf] %v4047_v58  ;;  %v5661_v36 = vpack.c.b16 %v5547_v31, %v5544_v12  ;;  %v14411_v19 = vpack.c.b16 %v16219_v1, %v16220_v4  ;;  %v2258_v13 = vadd.f32 %v16893_v15, %v16892_v60  ;;  %v5662_v12 = vpack.c.b16 %v5548_v30, %v5545_v24  ;;  %v9679_v15 = vld [vmem:[%s11495_s2 + $0x2c0] sm:$0xf] }
 0x4ee   : > { %v14413_v39 = vrot.slane %v4384_v45, 7  ;;  %v4912_v18 = vrot.slane %v4387_v21, 5  ;;  %v4914_v40 = vrot.slane %v4384_v45, 4  ;;  %v3616_v57 = vmax.f32 %v3562_v10, 0.0 }
 0x4ef   : > { %16891 = vst [vmem:[#allocation107_spill] sm:$0xff] %v14411_v19  ;;  %v3422_v50 = vpop.f32.mrf.mxu0  ;;  %v4382_v58 = vrot.slane %v4377_v8, 4 }
 0x4f0   : > { %v3423_v49 = vadd.f32 %v3422_v50, %v3279_v33  ;;  %6005 = vmatmul.bf16.gmra.mxu1 %v5661_v36  ;;  %v4389_v53 = vor.u32 %v4387_v21, %v14413_v39  ;;  %v4913_v1 = vsel %vm13592_vm11, %v4911_v63, %v4912_v18  ;;  %v3994_v4 = vmul.f32 %v3863_v38, %v3616_v57  ;;  %v10690_v33 = vld [vmem:[%s11495_s2 + $0x2c8] sm:$0xf0]  ;;  %v3868_v38 = vpop.permute.xlu2 %3867 }
 0x4f1   : > { %5110 = vst [vmem:[#allocation2 + $0x1ac] sm:$0xf] %v4913_v1  ;;  %6149 = vmatmul.bf16.gmra.mxu2 %v5662_v12  ;;  %v4915_v19 = vor.u32 %v4914_v40, %v4912_v18  ;;  %v16896_v57 = vunpack.c.l.b16 %v13759_v41 }
 0x4f2   : > { %v3505_v45 = vadd.f32 %v3423_v49, %v2258_v13  ;;  %v4390_v10 = vsel %vm13600_vm12, %v4382_v58, %v4389_v53  ;;  %v6110_v60 = vpop.f32.mrf.mxu2  ;;  %v4048_v24 = vpack.c.bf16 %v3994_v4, %v3994_v4  ;;  %v16895_v13 = vunpack.c.l.b16 %v13704_v14  ;;  %v16897_v58 = vld [vmem:[#allocation115_spill] sm:$0xff] }
 0x4f3   : > { %4665 = vst [vmem:[#allocation2 + $0x1b0] sm:$0xf] %v4390_v10  ;;  %v14425_v36 = vadd.f32 %v6110_v60, %v5966_v54  ;;  %v14427_v21 = vld [vmem:[#allocation2 + $0x1a4] sm:$0xff]  ;;  %v9680_v54 = vor.u32 %v10690_v33, %v9679_v15  ;;  %v3282_v53 = vadd.f32 %v14289_v62, %v16897_v58  ;;  %v4391_v15 = vrot.slane %v14413_v39, 4 }
 0x4f4   : > { %v3563_v8 = vadd.f32 %v14230_v61, %v3505_v45  ;;  %v5968_v63 = vpop.f32.mrf.mxu1  ;;  %v5624_v50 = vpack.c.b16 %v16896_v57, %v16895_v13  ;;  %v5550_v18 = vunpack.c.l.b16 %v14427_v21  ;;  %v5551_v40 = vunpack.c.h.b16 %v14427_v21  ;;  %4725 = vst [vmem:[#allocation2 + $0x1c0] sm:$0xf] %v4048_v24 }
 0x4f5   : > { %16894 = vst [vmem:[#allocation37_spill] sm:$0xff] %v14425_v36  ;;  %v14429_v1 = vpop.f32.mrf.mxu3  ;;  %v4393_v49 = vshrl.u32 %v4048_v24, 16  ;;  %v4396_v4 = vshll.u32 %v4048_v24, 16  ;;  %v4916_v45 = vrot.slane %v4915_v19, 4  ;;  %v14443_v36 = vld [vmem:[#allocation2 + $0x1a0] sm:$0xf] }
 0x4f6   : > { %v3617_v12 = vmax.f32 %v3563_v8, 0.0  ;;  %v14439_v60 = vpack.c.b16 %v5550_v18, %v5547_v31  ;;  %v14441_v14 = vpack.c.b16 %v5551_v40, %v5548_v30  ;;  %v16901_v30 = vld [vmem:[#allocation42_spill] sm:$0xff] }
 0x4f7   : > { %v3425_v10 = vpop.f32.mrf.mxu0  ;;  %v4395_v41 = vrot.slane %v4393_v49, 7  ;;  %v4917_v13 = vrot.slane %v4396_v4, 5  ;;  %v4919_v57 = vrot.slane %v4393_v49, 4 }
 0x4f8   : > { %16898 = vst [vmem:[#allocation70_spill] sm:$0xff] %v14439_v60  ;;  %v3995_v16 = vmul.f32 %v3868_v38, %v3617_v12  ;;  %v3426_v21 = vadd.f32 %v3425_v10, %v3282_v53  ;;  %v14445_v24 = vld [vmem:[#allocation2 + $0x1ac] sm:$0xf]  ;;  %v16223_v53 = vunpack.c.l.b16 %v14443_v36 }
 0x4f9   : > { %16899 = vst [vmem:[#allocation41_spill] sm:$0xff] %v14441_v14  ;;  %v4398_v33 = vor.u32 %v4396_v4, %v4395_v41  ;;  %v4918_v62 = vsel %vm13592_vm11, %v4916_v45, %v4917_v13  ;;  %v4920_v19 = vor.u32 %v4919_v57, %v4917_v13  ;;  %v16222_v38 = vunpack.c.l.b16 %v14445_v24  ;;  %v10728_v57 = vld [vmem:[#allocation8 + $0x50] sm:$0xff]  ;;  %v16905_v60 = vld [vmem:[#allocation47_spill] sm:$0xff] }
 0x4fa   : > { %16900 = vst [vmem:[#allocation74_spill] sm:$0xff] %v14445_v24  ;;  %3464 = vmatmul.bf16.gmra.mxu0 %v9680_v54  ;;  %6228 = vmatmul.bf16.gmra.mxu3 %v5624_v50  ;;  %v4049_v31 = vpack.c.bf16 %v3995_v16, %v3995_v16  ;;  %v3506_v8 = vadd.f32 %v3426_v21, %v16901_v30  ;;  %v6112_v49 = vpop.f32.mrf.mxu2  ;;  %v14451_v12 = vld [vmem:[#allocation2 + $0x1b0] sm:$0xff]  ;;  %v10736_v21 = vld [vmem:[#allocation8 + $0x90] sm:$0xff] }
 0x4fb   : > { %5111 = vst [vmem:[#allocation2 + $0x1b8] sm:$0xf] %v4918_v62  ;;  %v4399_v58 = vsel %vm13600_vm12, %v4391_v15, %v4398_v33  ;;  %v14456_v39 = vadd.f32 %v6112_v49, %v5968_v63  ;;  %v5553_v4 = vunpack.c.l.b16 %v14451_v12  ;;  %v5554_v13 = vunpack.c.h.b16 %v14451_v12  ;;  %v16903_v62 = vld [vmem:[#allocation119_spill] sm:$0xff]  ;;  %6824 = vmatpush.bf16.msrb.mxu1 %v10728_v57  ;;  %6968 = vmatpush.bf16.msrb.mxu2 %v10736_v21 }
 0x4fc   : > { %4666 = vst [vmem:[#allocation2 + $0x1bc] sm:$0xf] %v4399_v58  ;;  %v4402_v50 = vshrl.u32 %v4049_v31, 16  ;;  %v4405_v54 = vshll.u32 %v4049_v31, 16  ;;  %v3564_v16 = vadd.f32 %v14230_v61, %v3506_v8  ;;  %v5971_v45 = vpop.f32.mrf.mxu1  ;;  %v3284_v63 = vadd.f32 %v14317_v17, %v16903_v62 }
 0x4fd   : > { %16902 = vst [vmem:[#allocation108_spill] sm:$0xff] %v14456_v39  ;;  %v14461_v10 = vpop.f32.mrf.mxu3  ;;  %v4921_v15 = vrot.slane %v4920_v19, 4  ;;  %v5664_v33 = vpack.c.b16 %v5553_v4, %v5550_v18  ;;  %v14470_v30 = vpack.c.b16 %v16222_v38, %v16223_v53  ;;  %v16906_v39 = vld [vmem:[#allocation81_spill] sm:$0xff]  ;;  %v5665_v18 = vpack.c.b16 %v5554_v13, %v5551_v40 }
 0x4fe   : > { %4726 = vst [vmem:[#allocation2 + $0x1cc] sm:$0xf] %v4049_v31  ;;  %v14472_v8 = vrot.slane %v4402_v50, 7  ;;  %v4922_v49 = vrot.slane %v4405_v54, 5  ;;  %v4924_v58 = vrot.slane %v4402_v50, 4  ;;  %v3618_v14 = vmax.f32 %v3564_v16, 0.0  ;;  %v3873_v31 = vpop.permute.xlu0 %3872 }
 0x4ff   : > { %16904 = vst [vmem:[#allocation79_spill] sm:$0xff] %v14470_v30  ;;  %v3427_v12 = vpop.f32.mrf.mxu0  ;;  %v2263_v17 = vadd.f32 %v16906_v39, %v16905_v60  ;;  %v4400_v62 = vrot.slane %v4395_v41, 4  ;;  %v9887_v60 = vld [vmem:[#allocation2] sm:$0xf]  ;;  %v10716_v39 = vld [vmem:[#allocation2 + $0x8] sm:$0xf0] }
 0x500   : > { %v3428_v19 = vadd.f32 %v3427_v12, %v3284_v63  ;;  %6010 = vmatmul.bf16.gmra.mxu1 %v5664_v33  ;;  %v4407_v24 = vor.u32 %v4405_v54, %v14472_v8  ;;  %v4923_v38 = vsel %vm13592_vm11, %v4921_v15, %v4922_v49  ;;  %v3996_v53 = vmul.f32 %v3873_v31, %v3618_v14  ;;  %v16909_v31 = vld [vmem:[#allocation120_spill] sm:$0xff] }
 0x501   : > { %5112 = vst [vmem:[#allocation2 + $0x1c4] sm:$0xf] %v4923_v38  ;;  %6154 = vmatmul.bf16.gmra.mxu2 %v5665_v18  ;;  %v4925_v57 = vor.u32 %v4924_v58, %v4922_v49  ;;  %v16907_v14 = vunpack.c.l.b16 %v13754_v25  ;;  %v16908_v38 = vunpack.c.l.b16 %v13801_v7  ;;  %v3878_v18 = vpop.permute.xlu1 %3877 }
 0x502   : > { %v3507_v50 = vadd.f32 %v3428_v19, %v2263_v17  ;;  %v4408_v16 = vsel %vm13600_vm12, %v4400_v62, %v4407_v24  ;;  %v6115_v21 = vpop.f32.mrf.mxu2  ;;  %v4050_v40 = vpack.c.bf16 %v3996_v53, %v3996_v53  ;;  %v9888_v53 = vor.u32 %v10716_v39, %v9887_v60  ;;  %v14496_v30 = vld [vmem:[#allocation2 + $0x1b8] sm:$0xf] }
 0x503   : > { %4667 = vst [vmem:[#allocation2 + $0x1c8] sm:$0xf] %v4408_v16  ;;  %v14482_v63 = vadd.f32 %v6115_v21, %v5971_v45  ;;  %v5209_v54 = vld [vmem:[#allocation2 + $0x1bc] sm:$0xff]  ;;  %v5627_v12 = vpack.c.b16 %v16908_v38, %v16907_v14  ;;  %v3287_v45 = vadd.f32 %v14347_v52, %v16909_v31  ;;  %v4926_v62 = vrot.slane %v4925_v57, 4 }
 0x504   : > { %v3565_v41 = vadd.f32 %v14230_v61, %v3507_v50  ;;  %v5973_v33 = vpop.f32.mrf.mxu1  ;;  %v5556_v24 = vunpack.c.l.b16 %v5209_v54  ;;  %v5557_v49 = vunpack.c.h.b16 %v5209_v54  ;;  %v4411_v58 = vshrl.u32 %v4050_v40, 16  ;;  %4727 = vst [vmem:[#allocation2 + $0x1d8] sm:$0xf] %v4050_v40 }
 0x505   : > { %v14484_v15 = vpop.f32.mrf.mxu3  ;;  %v4414_v17 = vshll.u32 %v4050_v40, 16  ;;  %v4409_v60 = vrot.slane %v14472_v8, 4 }
 0x506   : > { %v3619_v19 = vmax.f32 %v3565_v41, 0.0  ;;  %v14492_v16 = vpack.c.b16 %v5556_v24, %v5553_v4  ;;  %v14494_v21 = vpack.c.b16 %v5557_v49, %v5554_v13  ;;  %v4413_v25 = vrot.slane %v4411_v58, 7  ;;  %v16913_v13 = vld [vmem:[#allocation87_spill] sm:$0xff] }
 0x507   : > { %v3430_v50 = vpop.f32.mrf.mxu0  ;;  %v4927_v7 = vrot.slane %v4414_v17, 5  ;;  %v4929_v14 = vrot.slane %v4411_v58, 4 }
 0x508   : > { %16910 = vst [vmem:[#allocation97_spill] sm:$0xff] %v14492_v16  ;;  %v3997_v38 = vmul.f32 %v3878_v18, %v3619_v19  ;;  %v3431_v54 = vadd.f32 %v3430_v50, %v3287_v45  ;;  %v14498_v40 = vld [vmem:[#allocation2 + $0x1c4] sm:$0xf]  ;;  %v4416_v39 = vor.u32 %v4414_v17, %v4413_v25  ;;  %v16225_v17 = vunpack.c.l.b16 %v14496_v30 }
 0x509   : > { %16911 = vst [vmem:[#allocation58_spill] sm:$0xff] %v14494_v21  ;;  %v4928_v52 = vsel %vm13592_vm11, %v4926_v62, %v4927_v7  ;;  %v4930_v57 = vor.u32 %v4929_v14, %v4927_v7  ;;  %v16224_v18 = vunpack.c.l.b16 %v14498_v40  ;;  %v16917_v21 = vld [vmem:[#allocation66_spill] sm:$0xff] }
 0x50a   : > { %16912 = vst [vmem:[#allocation64_spill] sm:$0xff] %v14498_v40  ;;  %6233 = vmatmul.bf16.gmra.mxu3 %v5627_v12  ;;  %6683 = vmatmul.bf16.vlgmr.msrb.gmra.mxu0 %v9888_v53  ;;  %v4051_v4 = vpack.c.bf16 %v3997_v38, %v3997_v38  ;;  %v3508_v41 = vadd.f32 %v3431_v54, %v16913_v13  ;;  %v6117_v58 = vpop.f32.mrf.mxu2  ;;  %v5211_v19 = vld [vmem:[#allocation2 + $0x1c8] sm:$0xff] }
 0x50b   : > { %5113 = vst [vmem:[#allocation2 + $0x1d0] sm:$0xf] %v4928_v52  ;;  %v4417_v31 = vsel %vm13600_vm12, %v4409_v60, %v4416_v39  ;;  %v14507_v45 = vadd.f32 %v6117_v58, %v5973_v33  ;;  %v5559_v8 = vunpack.c.l.b16 %v5211_v19  ;;  %v5560_v14 = vunpack.c.h.b16 %v5211_v19  ;;  %v16915_v38 = vld [vmem:[#allocation103_spill] sm:$0xff]  ;;  %v16918_v19 = vld [vmem:[#allocation72_spill] sm:$0xff] }
 0x50c   : > { %4668 = vst [vmem:[#allocation2 + $0x1d4] sm:$0xf] %v4417_v31  ;;  %v4420_v62 = vshrl.u32 %v4051_v4, 16  ;;  %v4423_v12 = vshll.u32 %v4051_v4, 16  ;;  %v3566_v53 = vadd.f32 %v14230_v61, %v3508_v41  ;;  %v5976_v50 = vpop.f32.mrf.mxu1  ;;  %v3289_v54 = vadd.f32 %v14374_v43, %v16915_v38 }
 0x50d   : > { %16914 = vst [vmem:[#allocation115_spill] sm:$0xff] %v14507_v45  ;;  %v14511_v7 = vpop.f32.mrf.mxu3  ;;  %v4931_v52 = vrot.slane %v4930_v57, 4  ;;  %v5667_v60 = vpack.c.b16 %v5559_v8, %v5556_v24  ;;  %v14519_v33 = vpack.c.b16 %v16224_v18, %v16225_v17  ;;  %v2268_v16 = vadd.f32 %v16918_v19, %v16917_v21  ;;  %v3883_v57 = vpop.permute.xlu2 %3882  ;;  %v11180_v18 = vld [vmem:[#allocation2] sm:$0xff]  ;;  %v16921_v19 = vld [vmem:[#allocation109_spill] sm:$0xff] }
 0x50e   : > { %4728 = vst [vmem:[#allocation2 + $0x1e4] sm:$0xf] %v4051_v4  ;;  %v14521_v39 = vrot.slane %v4420_v62, 7  ;;  %v4932_v13 = vrot.slane %v4423_v12, 5  ;;  %v4934_v41 = vrot.slane %v4420_v62, 4  ;;  %v3620_v58 = vmax.f32 %v3566_v53, 0.0 }
 0x50f   : > { %16916 = vst [vmem:[#allocation42_spill] sm:$0xff] %v14519_v33  ;;  %v3432_v31 = vpop.f32.mrf.mxu0  ;;  %v5668_v43 = vpack.c.b16 %v5560_v14, %v5557_v49  ;;  %v4418_v24 = vrot.slane %v4413_v25, 4  ;;  %v6366_v17 = vunpack.c.l.b16 %v11180_v18 }
 0x510   : > { %v3433_v45 = vadd.f32 %v3432_v31, %v3289_v54  ;;  %6015 = vmatmul.bf16.gmra.mxu1 %v5667_v60  ;;  %v4425_v4 = vor.u32 %v4423_v12, %v14521_v39  ;;  %v4933_v38 = vsel %vm13592_vm11, %v4931_v52, %v4932_v13  ;;  %v3998_v33 = vmul.f32 %v3883_v57, %v3620_v58 }
 0x511   : > { %5114 = vst [vmem:[#allocation2 + $0x1dc] sm:$0xf] %v4933_v38  ;;  %6159 = vmatmul.bf16.gmra.mxu2 %v5668_v43  ;;  %v4935_v21 = vor.u32 %v4934_v41, %v4932_v13  ;;  %v16919_v31 = vunpack.c.l.b16 %v13798_v5  ;;  %v16920_v52 = vunpack.c.l.b16 %v13849_v34  ;;  %v16922_v58 = vunpack.c.l.b16 %v16921_v19  ;;  %v16924_v38 = vld [vmem:[#allocation86_spill] sm:$0xff] }
 0x512   : > { %v3509_v62 = vadd.f32 %v3433_v45, %v2268_v16  ;;  %v4426_v53 = vsel %vm13600_vm12, %v4418_v24, %v4425_v4  ;;  %v4052_v54 = vpack.c.bf16 %v3998_v33, %v3998_v33  ;;  %v6120_v60 = vpop.f32.mrf.mxu2  ;;  %v3888_v4 = vpop.permute.xlu0 %3887  ;;  %v3292_v5 = vadd.f32 %v14403_v48, %v16924_v38 }
 0x513   : > { %4669 = vst [vmem:[#allocation2 + $0x1e0] sm:$0xf] %v4426_v53  ;;  %v5213_v25 = vld [vmem:[#allocation2 + $0x1d4] sm:$0xff]  ;;  %v5630_v18 = vpack.c.b16 %v16920_v52, %v16919_v31  ;;  %v6372_v16 = vpack.c.b16 %v16922_v58, %v6366_v17  ;;  %v14537_v33 = vadd.f32 %v6120_v60, %v5976_v50  ;;  %v4427_v60 = vrot.slane %v14521_v39, 4 }
 0x514   : > { %v3567_v49 = vadd.f32 %v14230_v61, %v3509_v62  ;;  %v5978_v12 = vpop.f32.mrf.mxu1  ;;  %v5562_v45 = vunpack.c.l.b16 %v5213_v25  ;;  %v5563_v43 = vunpack.c.h.b16 %v5213_v25  ;;  %v4429_v57 = vshrl.u32 %v4052_v54, 16  ;;  %4729 = vst [vmem:[#allocation2 + $0x1f0] sm:$0xf] %v4052_v54 }
 0x515   : > { %v4432_v24 = vshll.u32 %v4052_v54, 16  ;;  %16923 = vst [vmem:[#allocation119_spill] sm:$0xff] %v14537_v33  ;;  %v14539_v41 = vpop.f32.mrf.mxu3  ;;  %v4936_v62 = vrot.slane %v4935_v21, 4  ;;  %v14547_v54 = vld [vmem:[#allocation2 + $0x1d0] sm:$0xf] }
 0x516   : > { %v3621_v13 = vmax.f32 %v3567_v49, 0.0  ;;  %v14543_v53 = vpack.c.b16 %v5562_v45, %v5559_v8  ;;  %v14545_v31 = vpack.c.b16 %v5563_v43, %v5560_v14  ;;  %v4431_v17 = vrot.slane %v4429_v57, 7  ;;  %16927 = vst [vmem:[#allocation120_spill] sm:$0xff] %v14547_v54  ;;  %v16928_v14 = vld [vmem:[#allocation48_spill] sm:$0xff] }
 0x517   : > { %v3435_v34 = vpop.f32.mrf.mxu0  ;;  %v4937_v25 = vrot.slane %v4432_v24, 5  ;;  %v4939_v52 = vrot.slane %v4429_v57, 4 }
 0x518   : > { %16925 = vst [vmem:[#allocation47_spill] sm:$0xff] %v14543_v53  ;;  %v3999_v58 = vmul.f32 %v3888_v4, %v3621_v13  ;;  %v3436_v50 = vadd.f32 %v3435_v34, %v3292_v5  ;;  %v14549_v49 = vld [vmem:[#allocation2 + $0x1dc] sm:$0xf]  ;;  %v4434_v33 = vor.u32 %v4432_v24, %v4431_v17  ;;  %v16229_v13 = vunpack.c.l.b16 %v14547_v54  ;;  %v16929_v5 = vld [vmem:[#allocation92_spill] sm:$0xff] }
 0x519   : > { %16926 = vst [vmem:[#allocation81_spill] sm:$0xff] %v14545_v31  ;;  %v4938_v48 = vsel %vm13592_vm11, %v4936_v62, %v4937_v25  ;;  %v4940_v21 = vor.u32 %v4939_v52, %v4937_v25  ;;  %v16228_v4 = vunpack.c.l.b16 %v14549_v49  ;;  %v3294_v34 = vadd.f32 %v14429_v1, %v16929_v5  ;;  %v16931_v31 = vld [vmem:[#allocation53_spill] sm:$0xff] }
 0x51a   : > { %6238 = vmatmul.bf16.gmra.mxu3 %v5630_v18  ;;  %6688 = vmatmul.bf16.gmra.mxu0 %v6372_v16  ;;  %5115 = vst [vmem:[#allocation2 + $0x1e8] sm:$0xf] %v4938_v48  ;;  %v4053_v8 = vpack.c.bf16 %v3999_v58, %v3999_v58  ;;  %v3510_v38 = vadd.f32 %v3436_v50, %v16928_v14  ;;  %v5215_v57 = vld [vmem:[#allocation2 + $0x1e0] sm:$0xff]  ;;  %v6122_v52 = vpop.f32.mrf.mxu2  ;;  %v16932_v53 = vld [vmem:[#allocation89_spill] sm:$0xff] }
 0x51b   : > { %v4435_v39 = vsel %vm13600_vm12, %v4427_v60, %v4434_v33  ;;  %v5565_v24 = vunpack.c.l.b16 %v5215_v57  ;;  %v5566_v62 = vunpack.c.h.b16 %v5215_v57  ;;  %v14566_v50 = vpack.c.b16 %v16228_v4, %v16229_v13  ;;  %v3893_v4 = vpop.permute.xlu1 %3892 }
 0x51c   : > { %4670 = vst [vmem:[#allocation2 + $0x1ec] sm:$0xf] %v4435_v39  ;;  %v4438_v18 = vshrl.u32 %v4053_v8, 16  ;;  %v4441_v16 = vshll.u32 %v4053_v8, 16  ;;  %v3568_v25 = vadd.f32 %v14230_v61, %v3510_v38  ;;  %v5981_v58 = vpop.f32.mrf.mxu1  ;;  %v4941_v48 = vrot.slane %v4940_v21, 4 }
 0x51d   : > { %16930 = vst [vmem:[#allocation87_spill] sm:$0xff] %v14566_v50  ;;  %v14568_v1 = vadd.f32 %v6122_v52, %v5978_v12  ;;  %v14570_v33 = vpop.f32.mrf.mxu3  ;;  %v5670_v60 = vpack.c.b16 %v5565_v24, %v5562_v45  ;;  %v5671_v14 = vpack.c.b16 %v5566_v62, %v5563_v43  ;;  %v2273_v54 = vadd.f32 %v16932_v53, %v16931_v31  ;;  %v14581_v53 = vld [vmem:[%s15948_s3] ss:$0 sm:$0xff] }
 0x51e   : > { %4730 = vst [vmem:[#allocation2 + $0x1fc] sm:$0xf] %v4053_v8  ;;  %v4440_v57 = vrot.slane %v4438_v18, 7  ;;  %v4942_v5 = vrot.slane %v4441_v16, 5  ;;  %v4944_v39 = vrot.slane %v4438_v18, 4  ;;  %v3622_v61 = vmax.f32 %v3568_v25, 0.0 }
 0x51f   : > { %v3437_v38 = vpop.f32.mrf.mxu0  ;;  %v4436_v13 = vrot.slane %v4431_v17, 4 }
 0x520   : > { %v3438_v40 = vadd.f32 %v3437_v38, %v3294_v34  ;;  %6020 = vmatmul.bf16.gmra.mxu1 %v5670_v60  ;;  %v4443_v21 = vor.u32 %v4441_v16, %v4440_v57  ;;  %v4943_v12 = vsel %vm13592_vm11, %v4941_v48, %v4942_v5  ;;  %v4000_v8 = vmul.f32 %v3893_v4, %v3622_v61  ;;  %v3898_v61 = vpop.permute.xlu2 %3897  ;;  %v16936_v38 = vld [vmem:[#allocation98_spill] sm:$0xff] }
 0x521   : > { %5116 = vst [vmem:[#allocation2 + $0x1f4] sm:$0xf] %v4943_v12  ;;  %6164 = vmatmul.bf16.gmra.mxu2 %v5671_v14  ;;  %v4945_v18 = vor.u32 %v4944_v39, %v4942_v5  ;;  %v16933_v4 = vunpack.c.l.b16 %v13846_v47 }
 0x522   : > { %v3511_v45 = vadd.f32 %v3438_v40, %v2273_v54  ;;  %v4444_v43 = vsel %vm13600_vm12, %v4436_v13, %v4443_v21  ;;  %v4054_v25 = vpack.c.bf16 %v4000_v8, %v4000_v8  ;;  %v6125_v34 = vpop.f32.mrf.mxu2  ;;  %v16934_v40 = vunpack.c.l.b16 %v13902_v22 }
 0x523   : > { %4671 = vst [vmem:[#allocation2 + $0x1f8] sm:$0xf] %v4444_v43  ;;  %v5217_v17 = vld [vmem:[#allocation2 + $0x1ec] sm:$0xff]  ;;  %v14588_v5 = vadd.f32 %v6125_v34, %v5981_v58  ;;  %v3297_v21 = vadd.f32 %v14461_v10, %v16936_v38  ;;  %v4946_v12 = vrot.slane %v4945_v18, 4  ;;  %v4445_v34 = vrot.slane %v4440_v57, 4  ;;  %v16942_v38 = vld [vmem:[#allocation94_spill] sm:$0xff] }
 0x524   : > { %v3569_v31 = vadd.f32 %v14581_v53, %v3511_v45  ;;  %v5983_v16 = vpop.f32.mrf.mxu1  ;;  %v5633_v54 = vpack.c.b16 %v16934_v40, %v16933_v4  ;;  %v5568_v52 = vunpack.c.l.b16 %v5217_v17  ;;  %v5569_v13 = vunpack.c.h.b16 %v5217_v17  ;;  %4731 = vst [vmem:[#allocation2 + $0x208] sm:$0xf] %v4054_v25 }
 0x525   : > { %v4447_v48 = vshrl.u32 %v4054_v25, 16  ;;  %v4450_v60 = vshll.u32 %v4054_v25, 16  ;;  %16935 = vst [vmem:[#allocation103_spill] sm:$0xff] %v14588_v5  ;;  %v14590_v39 = vpop.f32.mrf.mxu3  ;;  %v14598_v25 = vld [vmem:[#allocation2 + $0x1e8] sm:$0xf]  ;;  %v16946_v5 = vld [vmem:[#allocation80_spill] sm:$0xff] }
 0x526   : > { %v3623_v14 = vmax.f32 %v3569_v31, 0.0  ;;  %v14594_v47 = vpack.c.b16 %v5568_v52, %v5565_v24  ;;  %v14596_v22 = vpack.c.b16 %v5569_v13, %v5566_v62  ;;  %16939 = vst [vmem:[#allocation109_spill] sm:$0xff] %v14598_v25  ;;  %v16941_v24 = vld [vmem:[#allocation110_spill] sm:$0xff] }
 0x527   : > { %v3440_v8 = vpop.f32.mrf.mxu0  ;;  %v4449_v45 = vrot.slane %v4447_v48, 7  ;;  %v4947_v43 = vrot.slane %v4450_v60, 5  ;;  %v4949_v17 = vrot.slane %v4447_v48, 4 }
 0x528   : > { %16937 = vst [vmem:[#allocation66_spill] sm:$0xff] %v14594_v47  ;;  %v4001_v4 = vmul.f32 %v3898_v61, %v3623_v14  ;;  %v3441_v58 = vadd.f32 %v3440_v8, %v3297_v21  ;;  %v14600_v31 = vld [vmem:[#allocation2 + $0x1f4] sm:$0xf]  ;;  %v16233_v14 = vunpack.c.l.b16 %v14598_v25  ;;  %v16943_v21 = vld [vmem:[#allocation14_spill] sm:$0xff]  ;;  %v16945_v47 = vld [vmem:[#allocation73_spill] sm:$0xff] }
 0x529   : > { %16938 = vst [vmem:[#allocation72_spill] sm:$0xff] %v14596_v22  ;;  %v4452_v40 = vor.u32 %v4450_v60, %v4449_v45  ;;  %v4948_v10 = vsel %vm13592_vm11, %v4946_v12, %v4947_v43  ;;  %v4950_v18 = vor.u32 %v4949_v17, %v4947_v43  ;;  %v16232_v61 = vunpack.c.l.b16 %v14600_v31 }
 0x52a   : > { %16940 = vst [vmem:[#allocation86_spill] sm:$0xff] %v14600_v31  ;;  %6243 = vmatmul.bf16.gmra.mxu3 %v5633_v54  ;;  %6693 = vmatmul.bf16.gmra.mxu0 %v16941_v24  ;;  %v4055_v62 = vpack.c.bf16 %v4001_v4, %v4001_v4  ;;  %v3512_v22 = vadd.f32 %v3441_v58, %v16942_v38  ;;  %v14606_v48 = vld [vmem:[#allocation2 + $0x1f8] sm:$0xff]  ;;  %v6127_v4 = vpop.f32.mrf.mxu2 }
 0x52b   : > { %5117 = vst [vmem:[#allocation2 + $0x200] sm:$0xf] %v4948_v10  ;;  %v3299_v57 = vadd.f32 %v14484_v15, %v16943_v21  ;;  %v4453_v60 = vsel %vm13600_vm12, %v4445_v34, %v4452_v40  ;;  %v5571_v54 = vunpack.c.l.b16 %v14606_v48  ;;  %v5572_v12 = vunpack.c.h.b16 %v14606_v48 }
 0x52c   : > { %4672 = vst [vmem:[#allocation2 + $0x204] sm:$0xf] %v4453_v60  ;;  %v4456_v8 = vshrl.u32 %v4055_v62, 16  ;;  %v4459_v43 = vshll.u32 %v4055_v62, 16  ;;  %v3570_v17 = vadd.f32 %v14581_v53, %v3512_v22  ;;  %v5986_v58 = vpop.f32.mrf.mxu1  ;;  %v14621_v10 = vpack.c.b16 %v16232_v61, %v16233_v14  ;;  %v3903_v61 = vpop.permute.xlu0 %3902 }
 0x52d   : > { %v4951_v15 = vrot.slane %v4950_v18, 4  ;;  %4732 = vst [vmem:[#allocation2 + $0x214] sm:$0xf] %v4055_v62  ;;  %v14623_v34 = vadd.f32 %v6127_v4, %v5983_v16  ;;  %v14625_v40 = vpop.f32.mrf.mxu3  ;;  %v5673_v24 = vpack.c.b16 %v5571_v54, %v5568_v52  ;;  %v5674_v38 = vpack.c.b16 %v5572_v12, %v5569_v13 }
 0x52e   : > { %16944 = vst [vmem:[#allocation48_spill] sm:$0xff] %v14621_v10  ;;  %v14627_v48 = vrot.slane %v4456_v8, 7  ;;  %v4952_v21 = vrot.slane %v4459_v43, 5  ;;  %v4954_v22 = vrot.slane %v4456_v8, 4  ;;  %v3624_v60 = vmax.f32 %v3570_v17, 0.0  ;;  %v16958_v10 = vld [vmem:[#allocation61_spill] sm:$0xff] }
 0x52f   : > { %v3442_v50 = vpop.f32.mrf.mxu0  ;;  %v2278_v25 = vadd.f32 %v16946_v5, %v16945_v47  ;;  %v4454_v18 = vrot.slane %v4449_v45, 4  ;;  %v10727_v47 = vld [vmem:[#allocation8 + $0x48] sm:$0xff] }
 0x530   : > { %v3443_v31 = vadd.f32 %v3442_v50, %v3299_v57  ;;  %6025 = vmatmul.bf16.gmra.mxu1 %v5673_v24  ;;  %v4461_v16 = vor.u32 %v4459_v43, %v14627_v48  ;;  %v4953_v62 = vsel %vm13592_vm11, %v4951_v15, %v4952_v21  ;;  %v4002_v52 = vmul.f32 %v3903_v61, %v3624_v60  ;;  %v10735_v45 = vld [vmem:[#allocation8 + $0x88] sm:$0xff] }
 0x531   : > { %5118 = vst [vmem:[#allocation2 + $0x20c] sm:$0xf] %v4953_v62  ;;  %6169 = vmatmul.bf16.gmra.mxu2 %v5674_v38  ;;  %v4955_v17 = vor.u32 %v4954_v22, %v4952_v21  ;;  %v16947_v24 = vunpack.c.l.b16 %v13897_v46  ;;  %v16948_v15 = vunpack.c.l.b16 %v13952_v37  ;;  %6825 = vmatpush.bf16.msrb.mxu1 %v10727_v47  ;;  %v16950_v62 = vld [vmem:[#allocation16_spill] sm:$0xff]  ;;  %v4463_v47 = vrot.slane %v14627_v48, 4 }
 0x532   : > { %v3513_v13 = vadd.f32 %v3443_v31, %v2278_v25  ;;  %v4462_v8 = vsel %vm13600_vm12, %v4454_v18, %v4461_v16  ;;  %v4056_v4 = vpack.c.bf16 %v4002_v52, %v4002_v52  ;;  %v6130_v57 = vpop.f32.mrf.mxu2  ;;  %6969 = vmatpush.bf16.msrb.mxu2 %v10735_v45  ;;  %v3908_v16 = vpop.permute.xlu1 %3907  ;;  %v3302_v52 = vadd.f32 %v14511_v7, %v16950_v62  ;;  %v16955_v62 = vld [vmem:[#allocation54_spill] sm:$0xff] }
 0x533   : > { %4673 = vst [vmem:[#allocation2 + $0x210] sm:$0xf] %v4462_v8  ;;  %v5221_v5 = vld [vmem:[#allocation2 + $0x204] sm:$0xff]  ;;  %v5636_v61 = vpack.c.b16 %v16948_v15, %v16947_v24  ;;  %v14641_v22 = vadd.f32 %v6130_v57, %v5986_v58  ;;  %v4956_v46 = vrot.slane %v4955_v17, 4  ;;  %v14651_v58 = vld [vmem:[#allocation2 + $0x200] sm:$0xf] }
 0x534   : > { %v3571_v50 = vadd.f32 %v14581_v53, %v3513_v13  ;;  %v5988_v43 = vpop.f32.mrf.mxu1  ;;  %v5574_v25 = vunpack.c.l.b16 %v5221_v5  ;;  %v5575_v31 = vunpack.c.h.b16 %v5221_v5  ;;  %v4465_v38 = vshrl.u32 %v4056_v4, 16  ;;  %4733 = vst [vmem:[#allocation2 + $0x220] sm:$0xf] %v4056_v4 }
 0x535   : > { %v4468_v60 = vshll.u32 %v4056_v4, 16  ;;  %16949 = vst [vmem:[#allocation92_spill] sm:$0xff] %v14641_v22  ;;  %v14643_v18 = vpop.f32.mrf.mxu3 }
 0x536   : > { %v3625_v21 = vmax.f32 %v3571_v50, 0.0  ;;  %v14647_v37 = vpack.c.b16 %v5574_v25, %v5571_v54  ;;  %v14649_v8 = vpack.c.b16 %v5575_v31, %v5572_v12  ;;  %v4467_v5 = vrot.slane %v4465_v38, 7  ;;  %16953 = vst [vmem:[#allocation98_spill] sm:$0xff] %v14651_v58  ;;  %v16954_v54 = vld [vmem:[#allocation99_spill] sm:$0xff] }
 0x537   : > { %v3445_v13 = vpop.f32.mrf.mxu0  ;;  %v4957_v24 = vrot.slane %v4468_v60, 5  ;;  %v4959_v4 = vrot.slane %v4465_v38, 4 }
 0x538   : > { %16951 = vst [vmem:[#allocation53_spill] sm:$0xff] %v14647_v37  ;;  %v4003_v50 = vmul.f32 %v3908_v16, %v3625_v21  ;;  %v3446_v57 = vadd.f32 %v3445_v13, %v3302_v52  ;;  %v14653_v15 = vld [vmem:[#allocation2 + $0x20c] sm:$0xf]  ;;  %v4470_v45 = vor.u32 %v4468_v60, %v4467_v5  ;;  %v16236_v16 = vunpack.c.l.b16 %v14651_v58  ;;  %v16956_v13 = vld [vmem:[#allocation17_spill] sm:$0xff]  ;;  %v16959_v37 = vld [vmem:[#allocation96_spill] sm:$0xff] }
 0x539   : > { %16952 = vst [vmem:[#allocation89_spill] sm:$0xff] %v14649_v8  ;;  %v4958_v7 = vsel %vm13592_vm11, %v4956_v46, %v4957_v24  ;;  %v4960_v17 = vor.u32 %v4959_v4, %v4957_v24  ;;  %v16235_v52 = vunpack.c.l.b16 %v14653_v15  ;;  %v3304_v48 = vadd.f32 %v14539_v41, %v16956_v13 }
 0x53a   : > { %6248 = vmatmul.bf16.gmra.mxu3 %v5636_v61  ;;  %6698 = vmatmul.bf16.gmra.mxu0 %v16954_v54  ;;  %5119 = vst [vmem:[#allocation2 + $0x218] sm:$0xf] %v4958_v7  ;;  %v4057_v12 = vpack.c.bf16 %v4003_v50, %v4003_v50  ;;  %v3514_v38 = vadd.f32 %v3446_v57, %v16955_v62  ;;  %v5223_v21 = vld [vmem:[#allocation2 + $0x210] sm:$0xff]  ;;  %v6132_v7 = vpop.f32.mrf.mxu2 }
 0x53b   : > { %v4471_v60 = vsel %vm13600_vm12, %v4463_v47, %v4470_v45  ;;  %v5577_v46 = vunpack.c.l.b16 %v5223_v21  ;;  %v5578_v24 = vunpack.c.h.b16 %v5223_v21  ;;  %v14671_v54 = vpack.c.b16 %v16235_v52, %v16236_v16  ;;  %v3913_v52 = vpop.permute.xlu2 %3912 }
 0x53c   : > { %4674 = vst [vmem:[#allocation2 + $0x21c] sm:$0xf] %v4471_v60  ;;  %v4474_v61 = vshrl.u32 %v4057_v12, 16  ;;  %v4477_v4 = vshll.u32 %v4057_v12, 16  ;;  %v3572_v50 = vadd.f32 %v14581_v53, %v3514_v38  ;;  %v4961_v62 = vrot.slane %v4960_v17, 4 }
 0x53d   : > { %v5991_v57 = vpop.f32.mrf.mxu1  ;;  %16957 = vst [vmem:[#allocation110_spill] sm:$0xff] %v14671_v54  ;;  %v14673_v41 = vadd.f32 %v6132_v7, %v5988_v43  ;;  %v14675_v47 = vpop.f32.mrf.mxu3  ;;  %v5676_v45 = vpack.c.b16 %v5577_v46, %v5574_v25  ;;  %v5677_v21 = vpack.c.b16 %v5578_v24, %v5575_v31  ;;  %v2283_v22 = vadd.f32 %v16959_v37, %v16958_v10  ;;  %v16970_v54 = vld [vmem:[#allocation69_spill] sm:$0xff] }
 0x53e   : > { %4734 = vst [vmem:[#allocation2 + $0x22c] sm:$0xf] %v4057_v12  ;;  %v4476_v13 = vrot.slane %v4474_v61, 7  ;;  %v4962_v60 = vrot.slane %v4477_v4, 5  ;;  %v4964_v14 = vrot.slane %v4474_v61, 4  ;;  %v3626_v38 = vmax.f32 %v3572_v50, 0.0 }
 0x53f   : > { %v3447_v8 = vpop.f32.mrf.mxu0  ;;  %v4472_v16 = vrot.slane %v4467_v5, 4  ;;  %v16960_v5 = vunpack.c.l.b16 %v13949_v2 }
 0x540   : > { %v3448_v58 = vadd.f32 %v3447_v8, %v3304_v48  ;;  %6030 = vmatmul.bf16.gmra.mxu1 %v5676_v45  ;;  %v4479_v17 = vor.u32 %v4477_v4, %v4476_v13  ;;  %v4963_v43 = vsel %vm13592_vm11, %v4961_v62, %v4962_v60  ;;  %v4004_v12 = vmul.f32 %v3913_v52, %v3626_v38 }
 0x541   : > { %5120 = vst [vmem:[#allocation2 + $0x224] sm:$0xf] %v4963_v43  ;;  %6174 = vmatmul.bf16.gmra.mxu2 %v5677_v21  ;;  %v4965_v61 = vor.u32 %v4964_v14, %v4962_v60  ;;  %v16961_v4 = vunpack.c.l.b16 %v13994_v27  ;;  %v3918_v21 = vpop.permute.xlu0 %3917  ;;  %v16963_v60 = vld [vmem:[#allocation112_spill] sm:$0xff] }
 0x542   : > { %v3515_v25 = vadd.f32 %v3448_v58, %v2283_v22  ;;  %v4480_v31 = vsel %vm13600_vm12, %v4472_v16, %v4479_v17  ;;  %v4058_v50 = vpack.c.bf16 %v4004_v12, %v4004_v12  ;;  %v3307_v38 = vadd.f32 %v14570_v33, %v16963_v60 }
 0x543   : > { %4675 = vst [vmem:[#allocation2 + $0x228] sm:$0xf] %v4480_v31  ;;  %v5225_v37 = vld [vmem:[#allocation2 + $0x21c] sm:$0xff]  ;;  %v5639_v7 = vpack.c.b16 %v16961_v4, %v16960_v5  ;;  %v4966_v17 = vrot.slane %v4965_v61, 4 }
 0x544   : > { %v3573_v10 = vadd.f32 %v14581_v53, %v3515_v25  ;;  %v6135_v8 = vpop.f32.mrf.mxu2  ;;  %v5580_v62 = vunpack.c.l.b16 %v5225_v37  ;;  %v5581_v52 = vunpack.c.h.b16 %v5225_v37  ;;  %v4483_v22 = vshrl.u32 %v4058_v50, 16  ;;  %4735 = vst [vmem:[#allocation2 + $0x238] sm:$0xf] %v4058_v50  ;;  %v16967_v4 = vld [vmem:[#allocation82_spill] sm:$0xff] }
 0x545   : > { %v5993_v48 = vpop.f32.mrf.mxu1  ;;  %v4486_v58 = vshll.u32 %v4058_v50, 16  ;;  %v14688_v16 = vadd.f32 %v6135_v8, %v5991_v57  ;;  %v14690_v14 = vpop.f32.mrf.mxu3  ;;  %v14698_v50 = vld [vmem:[#allocation2 + $0x218] sm:$0xf]  ;;  %v4481_v8 = vrot.slane %v4476_v13, 4  ;;  %v3309_v13 = vadd.f32 %v14590_v39, %v13814_v23 }
 0x546   : > { %v3627_v45 = vmax.f32 %v3573_v10, 0.0  ;;  %v14694_v2 = vpack.c.b16 %v5580_v62, %v5577_v46  ;;  %v14696_v27 = vpack.c.b16 %v5581_v52, %v5578_v24  ;;  %v4485_v12 = vrot.slane %v4483_v22, 7  ;;  %v16966_v46 = vld [vmem:[#allocation105_spill] sm:$0xff] }
 0x547   : > { %16962 = vst [vmem:[#allocation94_spill] sm:$0xff] %v14688_v16  ;;  %v3450_v43 = vpop.f32.mrf.mxu0  ;;  %v4967_v25 = vrot.slane %v4486_v58, 5  ;;  %v4969_v31 = vrot.slane %v4483_v22, 4 }
 0x548   : > { %16964 = vst [vmem:[#allocation14_spill] sm:$0xff] %v14694_v2  ;;  %v4005_v37 = vmul.f32 %v3918_v21, %v3627_v45  ;;  %v3451_v57 = vadd.f32 %v3450_v43, %v3307_v38  ;;  %v14700_v10 = vld [vmem:[#allocation2 + $0x224] sm:$0xf]  ;;  %v4488_v5 = vor.u32 %v4486_v58, %v4485_v12  ;;  %v16238_v45 = vunpack.c.l.b16 %v14698_v50 }
 0x549   : > { %16965 = vst [vmem:[#allocation73_spill] sm:$0xff] %v14696_v27  ;;  %v4968_v33 = vsel %vm13592_vm11, %v4966_v17, %v4967_v25  ;;  %v4970_v61 = vor.u32 %v4969_v31, %v4967_v25  ;;  %v16237_v21 = vunpack.c.l.b16 %v14700_v10  ;;  %v16969_v27 = vld [vmem:[#allocation62_spill] sm:$0xff] }
 0x54a   : > { %6253 = vmatmul.bf16.gmra.mxu3 %v5639_v7  ;;  %6703 = vmatmul.bf16.gmra.mxu0 %v16966_v46  ;;  %5121 = vst [vmem:[#allocation2 + $0x230] sm:$0xf] %v4968_v33  ;;  %v4059_v24 = vpack.c.bf16 %v4005_v37, %v4005_v37  ;;  %v3516_v60 = vadd.f32 %v3451_v57, %v16967_v4  ;;  %v5227_v22 = vld [vmem:[#allocation2 + $0x228] sm:$0xff] }
 0x54b   : > { %v4489_v58 = vsel %vm13600_vm12, %v4481_v8, %v4488_v5  ;;  %v5583_v38 = vunpack.c.l.b16 %v5227_v22  ;;  %v5584_v17 = vunpack.c.h.b16 %v5227_v22  ;;  %v14717_v57 = vpack.c.b16 %v16237_v21, %v16238_v45  ;;  %v3923_v21 = vpop.permute.xlu1 %3922 }
 0x54c   : > { %4676 = vst [vmem:[#allocation2 + $0x234] sm:$0xf] %v4489_v58  ;;  %v4492_v7 = vshrl.u32 %v4059_v24, 16  ;;  %v4495_v43 = vshll.u32 %v4059_v24, 16  ;;  %v3574_v25 = vadd.f32 %v14581_v53, %v3516_v60  ;;  %v6137_v31 = vpop.f32.mrf.mxu2  ;;  %v4971_v33 = vrot.slane %v4970_v61, 4 }
 0x54d   : > { %v5996_v37 = vpop.f32.mrf.mxu1  ;;  %16968 = vst [vmem:[#allocation80_spill] sm:$0xff] %v14717_v57  ;;  %v14719_v23 = vadd.f32 %v6137_v31, %v5993_v48  ;;  %v14721_v39 = vpop.f32.mrf.mxu3  ;;  %v5679_v8 = vpack.c.b16 %v5583_v38, %v5580_v62  ;;  %v5680_v5 = vpack.c.b16 %v5584_v17, %v5581_v52  ;;  %v2288_v2 = vadd.f32 %v16970_v54, %v16969_v27  ;;  %v16982_v57 = vld [vmem:[#allocation90_spill] sm:$0xff] }
 0x54e   : > { %4736 = vst [vmem:[#allocation2 + $0x244] sm:$0xf] %v4059_v24  ;;  %v4494_v46 = vrot.slane %v4492_v7, 7  ;;  %v4972_v4 = vrot.slane %v4495_v43, 5  ;;  %v4974_v22 = vrot.slane %v4492_v7, 4  ;;  %v3628_v60 = vmax.f32 %v3574_v25, 0.0 }
 0x54f   : > { %v3452_v58 = vpop.f32.mrf.mxu0  ;;  %v4490_v45 = vrot.slane %v4485_v12, 4  ;;  %v16971_v12 = vunpack.c.l.b16 %v13996_v11 }
 0x550   : > { %v3453_v16 = vadd.f32 %v3452_v58, %v3309_v13  ;;  %6035 = vmatmul.bf16.gmra.mxu1 %v5679_v8  ;;  %v4497_v61 = vor.u32 %v4495_v43, %v4494_v46  ;;  %v4973_v48 = vsel %vm13592_vm11, %v4971_v33, %v4972_v4  ;;  %v4006_v24 = vmul.f32 %v3923_v21, %v3628_v60  ;;  %v16974_v60 = vld [vmem:[#allocation21_spill] sm:$0xff] }
 0x551   : > { %5122 = vst [vmem:[#allocation2 + $0x23c] sm:$0xf] %v4973_v48  ;;  %6179 = vmatmul.bf16.gmra.mxu2 %v5680_v5  ;;  %v4975_v7 = vor.u32 %v4974_v22, %v4972_v4  ;;  %v16972_v43 = vunpack.c.l.b16 %v14042_v42  ;;  %v3928_v22 = vpop.permute.xlu2 %3927  ;;  %v3312_v58 = vadd.f32 %v14625_v40, %v16974_v60 }
 0x552   : > { %v3517_v62 = vadd.f32 %v3453_v16, %v2288_v2  ;;  %v4498_v52 = vsel %vm13600_vm12, %v4490_v45, %v4497_v61  ;;  %v4060_v25 = vpack.c.bf16 %v4006_v24, %v4006_v24 }
 0x553   : > { %4677 = vst [vmem:[#allocation2 + $0x240] sm:$0xf] %v4498_v52  ;;  %v5229_v27 = vld [vmem:[#allocation2 + $0x234] sm:$0xff]  ;;  %v5642_v33 = vpack.c.b16 %v16972_v43, %v16971_v12  ;;  %v4976_v61 = vrot.slane %v4975_v7, 4  ;;  %v16979_v43 = vld [vmem:[#allocation106_spill] sm:$0xff] }
 0x554   : > { %v3575_v54 = vadd.f32 %v14581_v53, %v3517_v62  ;;  %v6140_v13 = vpop.f32.mrf.mxu2  ;;  %v5586_v8 = vunpack.c.l.b16 %v5229_v27  ;;  %v5587_v21 = vunpack.c.h.b16 %v5229_v27  ;;  %v4501_v16 = vshrl.u32 %v4060_v25, 16  ;;  %4737 = vst [vmem:[#allocation2 + $0x250] sm:$0xf] %v4060_v25 }
 0x555   : > { %v5998_v31 = vpop.f32.mrf.mxu1  ;;  %v4504_v2 = vshll.u32 %v4060_v25, 16  ;;  %v14734_v45 = vadd.f32 %v6140_v13, %v5996_v37  ;;  %v14736_v4 = vpop.f32.mrf.mxu3  ;;  %v14744_v25 = vld [vmem:[#allocation2 + $0x230] sm:$0xf]  ;;  %v4499_v13 = vrot.slane %v4494_v46, 4 }
 0x556   : > { %v3629_v5 = vmax.f32 %v3575_v54, 0.0  ;;  %v14740_v11 = vpack.c.b16 %v5586_v8, %v5583_v38  ;;  %v14742_v42 = vpack.c.b16 %v5587_v21, %v5584_v17  ;;  %v4503_v24 = vrot.slane %v4501_v16, 7  ;;  %v16978_v38 = vld [vmem:[#allocation117_spill] sm:$0xff] }
 0x557   : > { %16973 = vst [vmem:[#allocation16_spill] sm:$0xff] %v14734_v45  ;;  %v3455_v48 = vpop.f32.mrf.mxu0  ;;  %v4977_v62 = vrot.slane %v4504_v2, 5  ;;  %v4979_v52 = vrot.slane %v4501_v16, 4 }
 0x558   : > { %16975 = vst [vmem:[#allocation99_spill] sm:$0xff] %v14740_v11  ;;  %v4007_v27 = vmul.f32 %v3928_v22, %v3629_v5  ;;  %v3456_v37 = vadd.f32 %v3455_v48, %v3312_v58  ;;  %v14746_v54 = vld [vmem:[#allocation2 + $0x23c] sm:$0xf]  ;;  %v4506_v12 = vor.u32 %v4504_v2, %v4503_v24  ;;  %v16241_v5 = vunpack.c.l.b16 %v14744_v25  ;;  %v16980_v58 = vld [vmem:[#allocation60_spill] sm:$0xff]  ;;  %v16983_v11 = vld [vmem:[#allocation95_spill] sm:$0xff] }
 0x559   : > { %16976 = vst [vmem:[#allocation54_spill] sm:$0xff] %v14742_v42  ;;  %v4978_v40 = vsel %vm13592_vm11, %v4976_v61, %v4977_v62  ;;  %v4980_v7 = vor.u32 %v4979_v52, %v4977_v62  ;;  %v16240_v22 = vunpack.c.l.b16 %v14746_v54  ;;  %v3314_v46 = vadd.f32 %v14643_v18, %v16980_v58 }
 0x55a   : > { %16977 = vst [vmem:[#allocation17_spill] sm:$0xff] %v14746_v54  ;;  %6258 = vmatmul.bf16.gmra.mxu3 %v5642_v33  ;;  %6708 = vmatmul.bf16.gmra.mxu0 %v16978_v38  ;;  %v4061_v17 = vpack.c.bf16 %v4007_v27, %v4007_v27  ;;  %v3518_v60 = vadd.f32 %v3456_v37, %v16979_v43  ;;  %v5231_v16 = vld [vmem:[#allocation2 + $0x240] sm:$0xff] }
 0x55b   : > { %5123 = vst [vmem:[#allocation2 + $0x248] sm:$0xf] %v4978_v40  ;;  %v4507_v2 = vsel %vm13600_vm12, %v4499_v13, %v4506_v12  ;;  %v5589_v61 = vunpack.c.l.b16 %v5231_v16  ;;  %v5590_v48 = vunpack.c.h.b16 %v5231_v16  ;;  %v14763_v40 = vpack.c.b16 %v16240_v22, %v16241_v5 }
 0x55c   : > { %4678 = vst [vmem:[#allocation2 + $0x24c] sm:$0xf] %v4507_v2  ;;  %v4510_v33 = vshrl.u32 %v4061_v17, 16  ;;  %v4513_v62 = vshll.u32 %v4061_v17, 16  ;;  %v3576_v52 = vadd.f32 %v14581_v53, %v3518_v60  ;;  %v6142_v27 = vpop.f32.mrf.mxu2  ;;  %v4981_v38 = vrot.slane %v4980_v7, 4  ;;  %v3933_v7 = vpop.permute.xlu0 %3932 }
 0x55d   : > { %v6001_v37 = vpop.f32.mrf.mxu1  ;;  %16981 = vst [vmem:[#allocation61_spill] sm:$0xff] %v14763_v40  ;;  %v14765_v18 = vadd.f32 %v6142_v27, %v5998_v31  ;;  %v6219_v13 = vpop.f32.mrf.mxu3  ;;  %v5682_v12 = vpack.c.b16 %v5589_v61, %v5586_v8  ;;  %v5683_v43 = vpack.c.b16 %v5590_v48, %v5587_v21  ;;  %v2293_v45 = vadd.f32 %v16983_v11, %v16982_v57  ;;  %v16993_v40 = vld [vmem:[#allocation114_spill] sm:$0xff] }
 0x55e   : > { %4738 = vst [vmem:[#allocation2 + $0x25c] sm:$0xf] %v4061_v17  ;;  %v14767_v16 = vrot.slane %v4510_v33, 7  ;;  %v4982_v58 = vrot.slane %v4513_v62, 5  ;;  %v4984_v2 = vrot.slane %v4510_v33, 4  ;;  %v3630_v60 = vmax.f32 %v3576_v52, 0.0 }
 0x55f   : > { %v3457_v42 = vpop.f32.mrf.mxu0  ;;  %v14772_v54 = vadd.f32 %v6219_v13, %v14032_v51  ;;  %v4508_v31 = vrot.slane %v4503_v24, 4  ;;  %v16986_v13 = vunpack.c.l.b16 %v14102_v20 }
 0x560   : > { %v3458_v22 = vadd.f32 %v3457_v42, %v3314_v46  ;;  %6040 = vmatmul.bf16.gmra.mxu1 %v5682_v12  ;;  %v4515_v17 = vor.u32 %v4513_v62, %v14767_v16  ;;  %v4983_v8 = vsel %vm13592_vm11, %v4981_v38, %v4982_v58  ;;  %v4008_v21 = vmul.f32 %v3933_v7, %v3630_v60  ;;  %v16984_v46 = vld [vmem:[#allocation75_spill] sm:$0xff] }
 0x561   : > { %5124 = vst [vmem:[#allocation2 + $0x254] sm:$0xf] %v4983_v8  ;;  %6184 = vmatmul.bf16.gmra.mxu2 %v5683_v43  ;;  %v4985_v57 = vor.u32 %v4984_v2, %v4982_v58  ;;  %v3317_v24 = vadd.f32 %v14675_v47, %v16984_v46  ;;  %v16985_v38 = vunpack.c.l.b16 %v14044_v0 }
 0x562   : > { %v3519_v33 = vadd.f32 %v3458_v22, %v2293_v45  ;;  %v4516_v52 = vsel %vm13600_vm12, %v4508_v31, %v4515_v17  ;;  %v4062_v51 = vpack.c.bf16 %v4008_v21, %v4008_v21  ;;  %v3938_v31 = vpop.permute.xlu1 %3937  ;;  %v14795_v46 = vld [vmem:[#allocation2 + $0x248] sm:$0xf] }
 0x563   : > { %4679 = vst [vmem:[#allocation2 + $0x258] sm:$0xf] %v4516_v52  ;;  %v5233_v42 = vld [vmem:[#allocation2 + $0x24c] sm:$0xff]  ;;  %v5645_v45 = vpack.c.b16 %v16986_v13, %v16985_v38  ;;  %v4986_v17 = vrot.slane %v4985_v57, 4  ;;  %v16990_v38 = vld [vmem:[#allocation77_spill] sm:$0xff] }
 0x564   : > { %v3577_v11 = vadd.f32 %v14581_v53, %v3519_v33  ;;  %v6145_v62 = vpop.f32.mrf.mxu2  ;;  %v5592_v22 = vunpack.c.l.b16 %v5233_v42  ;;  %v5593_v12 = vunpack.c.h.b16 %v5233_v42  ;;  %v4519_v43 = vshrl.u32 %v4062_v51, 16  ;;  %4739 = vst [vmem:[#allocation2 + $0x268] sm:$0xf] %v4062_v51 }
 0x565   : > { %v6003_v27 = vpop.f32.mrf.mxu1  ;;  %v4522_v60 = vshll.u32 %v4062_v51, 16  ;;  %v14786_v2 = vadd.f32 %v6145_v62, %v6001_v37  ;;  %v6221_v7 = vpop.f32.mrf.mxu3 }
 0x566   : > { %v3631_v58 = vmax.f32 %v3577_v11, 0.0  ;;  %v14789_v47 = vadd.f32 %v6221_v7, %v14055_v29  ;;  %v14791_v21 = vpack.c.b16 %v5592_v22, %v5589_v61  ;;  %v14793_v0 = vpack.c.b16 %v5593_v12, %v5590_v48  ;;  %v16989_v61 = vld [vmem:[#allocation118_spill] sm:$0xff] }
 0x567   : > { %v3460_v8 = vpop.f32.mrf.mxu0  ;;  %v4521_v20 = vrot.slane %v4519_v43, 7  ;;  %v4987_v33 = vrot.slane %v4522_v60, 5  ;;  %v4989_v52 = vrot.slane %v4519_v43, 4  ;;  %v4517_v11 = vrot.slane %v14767_v16, 4 }
 0x568   : > { %16987 = vst [vmem:[#allocation96_spill] sm:$0xff] %v14791_v21  ;;  %v4009_v42 = vmul.f32 %v3938_v31, %v3631_v58  ;;  %v3461_v51 = vadd.f32 %v3460_v8, %v3317_v24  ;;  %v14797_v37 = vld [vmem:[#allocation2 + $0x254] sm:$0xf]  ;;  %v16243_v24 = vunpack.c.l.b16 %v14795_v46  ;;  %v3319_v16 = vadd.f32 %v14690_v14, %v13940_v9 }
 0x569   : > { %16988 = vst [vmem:[#allocation112_spill] sm:$0xff] %v14793_v0  ;;  %v4524_v57 = vor.u32 %v4522_v60, %v4521_v20  ;;  %v4988_v29 = vsel %vm13592_vm11, %v4986_v17, %v4987_v33  ;;  %v4990_v62 = vor.u32 %v4989_v52, %v4987_v33  ;;  %v16242_v58 = vunpack.c.l.b16 %v14797_v37  ;;  %v16992_v0 = vld [vmem:[#allocation113_spill] sm:$0xff] }
 0x56a   : > { %6263 = vmatmul.bf16.gmra.mxu3 %v5645_v45  ;;  %6713 = vmatmul.bf16.gmra.mxu0 %v16989_v61  ;;  %5125 = vst [vmem:[#allocation2 + $0x260] sm:$0xf] %v4988_v29  ;;  %v4063_v48 = vpack.c.bf16 %v4009_v42, %v4009_v42  ;;  %v3520_v13 = vadd.f32 %v3461_v51, %v16990_v38  ;;  %v14804_v43 = vld [vmem:[#allocation2 + $0x258] sm:$0xff]  ;;  %v10726_v42 = vld [vmem:[#allocation8 + $0x40] sm:$0xff] }
 0x56b   : > { %v4525_v60 = vsel %vm13600_vm12, %v4517_v11, %v4524_v57  ;;  %v5595_v45 = vunpack.c.l.b16 %v14804_v43  ;;  %v5596_v7 = vunpack.c.h.b16 %v14804_v43  ;;  %v10734_v51 = vld [vmem:[#allocation8 + $0x80] sm:$0xff]  ;;  %v14819_v9 = vpack.c.b16 %v16242_v58, %v16243_v24  ;;  %6826 = vmatpush.bf16.msrb.mxu1 %v10726_v42  ;;  %v16994_v58 = vld [vmem:[#allocation30_spill] sm:$0xff] }
 0x56c   : > { %4680 = vst [vmem:[#allocation2 + $0x264] sm:$0xf] %v4525_v60  ;;  %v4528_v31 = vshrl.u32 %v4063_v48, 16  ;;  %v4531_v17 = vshll.u32 %v4063_v48, 16  ;;  %v3578_v8 = vadd.f32 %v14581_v53, %v3520_v13  ;;  %v6147_v33 = vpop.f32.mrf.mxu2  ;;  %v4991_v14 = vrot.slane %v4990_v62, 4  ;;  %6970 = vmatpush.bf16.msrb.mxu2 %v10734_v51 }
 0x56d   : > { %v6006_v52 = vpop.f32.mrf.mxu1  ;;  %16991 = vst [vmem:[#allocation105_spill] sm:$0xff] %v14819_v9  ;;  %v14821_v11 = vadd.f32 %v6147_v33, %v6003_v27  ;;  %v6224_v57 = vpop.f32.mrf.mxu3  ;;  %v5685_v29 = vpack.c.b16 %v5595_v45, %v5592_v22  ;;  %v5686_v61 = vpack.c.b16 %v5596_v7, %v5593_v12  ;;  %v2298_v21 = vadd.f32 %v16993_v40, %v16992_v0  ;;  %v17008_v9 = vld [vmem:[#allocation122_spill] sm:$0xff] }
 0x56e   : > { %4740 = vst [vmem:[#allocation2 + $0x274] sm:$0xf] %v4063_v48  ;;  %v14823_v38 = vrot.slane %v4528_v31, 7  ;;  %v4992_v13 = vrot.slane %v4531_v17, 5  ;;  %v4994_v43 = vrot.slane %v4528_v31, 4  ;;  %v3632_v60 = vmax.f32 %v3578_v8, 0.0  ;;  %v3943_v27 = vpop.permute.xlu2 %3942 }
 0x56f   : > { %v3462_v5 = vpop.f32.mrf.mxu0  ;;  %v14828_v24 = vadd.f32 %v6224_v57, %v16994_v58  ;;  %v4526_v48 = vrot.slane %v4521_v20, 4  ;;  %v16996_v51 = vunpack.c.l.b16 %v14104_v28 }
 0x570   : > { %v3463_v62 = vadd.f32 %v3462_v5, %v3319_v16  ;;  %6045 = vmatmul.bf16.gmra.mxu1 %v5685_v29  ;;  %v4533_v22 = vor.u32 %v4531_v17, %v14823_v38  ;;  %v4993_v12 = vsel %vm13592_vm11, %v4991_v14, %v4992_v13  ;;  %v4010_v31 = vmul.f32 %v3943_v27, %v3632_v60  ;;  %v16995_v16 = vld [vmem:[#allocation121_spill] sm:$0xff]  ;;  %v3948_v27 = vpop.permute.xlu0 %3947 }
 0x571   : > { %5126 = vst [vmem:[#allocation2 + $0x26c] sm:$0xf] %v4993_v12  ;;  %6189 = vmatmul.bf16.gmra.mxu2 %v5686_v61  ;;  %v4995_v40 = vor.u32 %v4994_v43, %v4992_v13  ;;  %v3322_v20 = vadd.f32 %v14721_v39, %v16995_v16  ;;  %v16997_v14 = vunpack.c.l.b16 %v14158_v59  ;;  %v14851_v16 = vld [vmem:[#allocation2 + $0x260] sm:$0xf] }
 0x572   : > { %v3521_v8 = vadd.f32 %v3463_v62, %v2298_v21  ;;  %v4534_v33 = vsel %vm13600_vm12, %v4526_v48, %v4533_v22  ;;  %v4064_v0 = vpack.c.bf16 %v4010_v31, %v4010_v31  ;;  %v16999_v22 = vld [vmem:[#allocation24_spill] sm:$0xff]  ;;  %17002 = vst [vmem:[#allocation21_spill] sm:$0xff] %v14851_v16 }
 0x573   : > { %4681 = vst [vmem:[#allocation2 + $0x270] sm:$0xf] %v4534_v33  ;;  %v5237_v58 = vld [vmem:[#allocation2 + $0x264] sm:$0xff]  ;;  %v5648_v21 = vpack.c.b16 %v16997_v14, %v16996_v51  ;;  %v4996_v48 = vrot.slane %v4995_v40, 4 }
 0x574   : > { %v3579_v5 = vadd.f32 %v14581_v53, %v3521_v8  ;;  %v6150_v17 = vpop.f32.mrf.mxu2  ;;  %v5598_v57 = vunpack.c.l.b16 %v5237_v58  ;;  %v5599_v29 = vunpack.c.h.b16 %v5237_v58  ;;  %v4537_v61 = vshrl.u32 %v4064_v0, 16  ;;  %4741 = vst [vmem:[#allocation2 + $0x280] sm:$0xf] %v4064_v0  ;;  %v17004_v14 = vld [vmem:[#allocation102_spill] sm:$0xff] }
 0x575   : > { %v6008_v42 = vpop.f32.mrf.mxu1  ;;  %v4540_v60 = vshll.u32 %v4064_v0, 16  ;;  %v14842_v43 = vadd.f32 %v6150_v17, %v6006_v52  ;;  %v6226_v62 = vpop.f32.mrf.mxu3 }
 0x576   : > { %v3633_v13 = vmax.f32 %v3579_v5, 0.0  ;;  %v14845_v39 = vadd.f32 %v6226_v62, %v16999_v22  ;;  %v14847_v31 = vpack.c.b16 %v5598_v57, %v5595_v45  ;;  %v14849_v28 = vpack.c.b16 %v5599_v29, %v5596_v7  ;;  %v17003_v45 = vld [vmem:[#allocation67_spill] sm:$0xff] }
 0x577   : > { %16998 = vst [vmem:[#allocation82_spill] sm:$0xff] %v14842_v43  ;;  %v3465_v12 = vpop.f32.mrf.mxu0  ;;  %v4539_v59 = vrot.slane %v4537_v61, 7  ;;  %v4997_v8 = vrot.slane %v4540_v60, 5  ;;  %v4999_v33 = vrot.slane %v4537_v61, 4  ;;  %v4535_v5 = vrot.slane %v14823_v38, 4  ;;  %v17009_v43 = vld [vmem:[#allocation43_spill] sm:$0xff] }
 0x578   : > { %17000 = vst [vmem:[#allocation62_spill] sm:$0xff] %v14847_v31  ;;  %v4011_v58 = vmul.f32 %v3948_v27, %v3633_v13  ;;  %v3466_v0 = vadd.f32 %v3465_v12, %v3322_v20  ;;  %v14853_v52 = vld [vmem:[#allocation2 + $0x26c] sm:$0xf]  ;;  %v16246_v62 = vunpack.c.l.b16 %v14851_v16  ;;  %v17005_v27 = vld [vmem:[#allocation125_spill] sm:$0xff] }
 0x579   : > { %17001 = vst [vmem:[#allocation69_spill] sm:$0xff] %v14849_v28  ;;  %v4542_v40 = vor.u32 %v4540_v60, %v4539_v59  ;;  %v4998_v17 = vsel %vm13592_vm11, %v4996_v48, %v4997_v8  ;;  %v5000_v51 = vor.u32 %v4999_v33, %v4997_v8  ;;  %v16245_v20 = vunpack.c.l.b16 %v14853_v52  ;;  %v17007_v28 = vld [vmem:[#allocation85_spill] sm:$0xff] }
 0x57a   : > { %6268 = vmatmul.bf16.gmra.mxu3 %v5648_v21  ;;  %6718 = vmatmul.bf16.gmra.mxu0 %v17003_v45  ;;  %5127 = vst [vmem:[#allocation2 + $0x278] sm:$0xf] %v4998_v17  ;;  %v4065_v7 = vpack.c.bf16 %v4011_v58, %v4011_v58  ;;  %v3522_v61 = vadd.f32 %v3466_v0, %v17004_v14  ;;  %v5239_v13 = vld [vmem:[#allocation2 + $0x270] sm:$0xff] }
 0x57b   : > { %v3324_v38 = vadd.f32 %v14736_v4, %v17005_v27  ;;  %v4543_v60 = vsel %vm13600_vm12, %v4535_v5, %v4542_v40  ;;  %v5601_v48 = vunpack.c.l.b16 %v5239_v13  ;;  %v5602_v22 = vunpack.c.h.b16 %v5239_v13 }
 0x57c   : > { %4682 = vst [vmem:[#allocation2 + $0x27c] sm:$0xf] %v4543_v60  ;;  %v4546_v21 = vshrl.u32 %v4065_v7, 16  ;;  %v4549_v12 = vshll.u32 %v4065_v7, 16  ;;  %v3580_v8 = vadd.f32 %v14581_v53, %v3522_v61  ;;  %v6152_v33 = vpop.f32.mrf.mxu2  ;;  %v14871_v0 = vpack.c.b16 %v16245_v20, %v16246_v62  ;;  %v17020_v62 = vld [vmem:[#allocation49_spill] sm:$0xff] }
 0x57d   : > { %v6011_v58 = vpop.f32.mrf.mxu1  ;;  %v5001_v17 = vrot.slane %v5000_v51, 4  ;;  %4742 = vst [vmem:[#allocation2 + $0x28c] sm:$0xf] %v4065_v7  ;;  %v14873_v4 = vadd.f32 %v6152_v33, %v6008_v42  ;;  %v6229_v5 = vpop.f32.mrf.mxu3  ;;  %v5688_v40 = vpack.c.b16 %v5601_v48, %v5598_v57  ;;  %v5689_v45 = vpack.c.b16 %v5602_v22, %v5599_v29 }
 0x57e   : > { %17006 = vst [vmem:[#allocation117_spill] sm:$0xff] %v14871_v0  ;;  %v4548_v14 = vrot.slane %v4546_v21, 7  ;;  %v5002_v13 = vrot.slane %v4549_v12, 5  ;;  %v5004_v27 = vrot.slane %v4546_v21, 4  ;;  %v3634_v60 = vmax.f32 %v3580_v8, 0.0  ;;  %v3953_v51 = vpop.permute.xlu1 %3952 }
 0x57f   : > { %v3467_v61 = vpop.f32.mrf.mxu0  ;;  %v2303_v31 = vadd.f32 %v17008_v9, %v17007_v28  ;;  %v14878_v16 = vadd.f32 %v6229_v5, %v17009_v43  ;;  %v4544_v7 = vrot.slane %v4539_v59, 4  ;;  %v17010_v59 = vld [vmem:[#allocation25_spill] sm:$0xff] }
 0x580   : > { %v3468_v20 = vadd.f32 %v3467_v61, %v3324_v38  ;;  %6050 = vmatmul.bf16.gmra.mxu1 %v5688_v40  ;;  %v4551_v42 = vor.u32 %v4549_v12, %v4548_v14  ;;  %v5003_v57 = vsel %vm13592_vm11, %v5001_v17, %v5002_v13  ;;  %v4012_v29 = vmul.f32 %v3953_v51, %v3634_v60  ;;  %v17012_v40 = vld [vmem:[#allocation27_spill] sm:$0xff] }
 0x581   : > { %5128 = vst [vmem:[#allocation2 + $0x284] sm:$0xf] %v5003_v57  ;;  %6194 = vmatmul.bf16.gmra.mxu2 %v5689_v45  ;;  %v5005_v8 = vor.u32 %v5004_v27, %v5002_v13  ;;  %v17011_v12 = vunpack.c.l.b16 %v17010_v59  ;;  %v17013_v61 = vunpack.c.l.b16 %v17012_v40  ;;  %v3958_v27 = vpop.permute.xlu2 %3957 }
 0x582   : > { %v3523_v33 = vadd.f32 %v3468_v20, %v2303_v31  ;;  %v4552_v21 = vsel %vm13600_vm12, %v4544_v7, %v4551_v42  ;;  %v4066_v9 = vpack.c.bf16 %v4012_v29, %v4012_v29 }
 0x583   : > { %4683 = vst [vmem:[#allocation2 + $0x288] sm:$0xf] %v4552_v21  ;;  %v5241_v28 = vld [vmem:[#allocation2 + $0x27c] sm:$0xff]  ;;  %v5651_v17 = vpack.c.b16 %v17013_v61, %v17011_v12  ;;  %v5006_v7 = vrot.slane %v5005_v8, 4  ;;  %v10857_v61 = vld [vmem:[#allocation8 + $0x1b8] sm:$0xff]  ;;  %v4553_v8 = vrot.slane %v4548_v14, 4 }
 0x584   : > { %v3581_v43 = vadd.f32 %v14581_v53, %v3523_v33  ;;  %v6155_v38 = vpop.f32.mrf.mxu2  ;;  %v5604_v57 = vunpack.c.l.b16 %v5241_v28  ;;  %v5605_v60 = vunpack.c.h.b16 %v5241_v28  ;;  %v4555_v31 = vshrl.u32 %v4066_v9, 16  ;;  %4743 = vst [vmem:[#allocation2 + $0x298] sm:$0xf] %v4066_v9  ;;  %v17015_v53 = vld [vmem:[#allocation26_spill] sm:$0xff]  ;;  %7840 = vmatpush.bf16.msra.mxu3 %v10857_v61 }
 0x585   : > { %v6013_v5 = vpop.f32.mrf.mxu1  ;;  %v4558_v20 = vshll.u32 %v4066_v9, 16  ;;  %v14889_v51 = vadd.f32 %v6155_v38, %v6011_v58  ;;  %v6231_v13 = vpop.f32.mrf.mxu3  ;;  %v14898_v9 = vld [vmem:[#allocation2 + $0x278] sm:$0xf] }
 0x586   : > { %v3635_v45 = vmax.f32 %v3581_v43, 0.0  ;;  %v14892_v42 = vadd.f32 %v6231_v13, %v17015_v53  ;;  %v14894_v33 = vpack.c.b16 %v5604_v57, %v5601_v48  ;;  %v14896_v21 = vpack.c.b16 %v5605_v60, %v5602_v22  ;;  %v17018_v22 = vld [vmem:[#allocation83_spill] sm:$0xff] }
 0x587   : > { %17014 = vst [vmem:[#allocation106_spill] sm:$0xff] %v14889_v51  ;;  %v6684_v29 = vpop.f32.mrf.mxu0  ;;  %v4557_v59 = vrot.slane %v4555_v31, 7  ;;  %v5007_v12 = vrot.slane %v4558_v20, 5  ;;  %v5009_v28 = vrot.slane %v4555_v31, 4 }
 0x588   : > { %17016 = vst [vmem:[#allocation60_spill] sm:$0xff] %v14894_v33  ;;  %v4013_v40 = vmul.f32 %v3958_v27, %v3635_v45  ;;  %v14901_v58 = vadd.f32 %v6684_v29, %v14772_v54  ;;  %v14903_v43 = vld [vmem:[#allocation2 + $0x284] sm:$0xf]  ;;  %v16248_v27 = vunpack.c.l.b16 %v14898_v9  ;;  %v10865_v33 = vld [vmem:[#allocation8 + $0x1f8] sm:$0xff] }
 0x589   : > { %17017 = vst [vmem:[#allocation90_spill] sm:$0xff] %v14896_v21  ;;  %v4560_v38 = vor.u32 %v4558_v20, %v4557_v59  ;;  %v5008_v48 = vsel %vm13592_vm11, %v5006_v7, %v5007_v12  ;;  %v5010_v13 = vor.u32 %v5009_v28, %v5007_v12  ;;  %v16247_v54 = vunpack.c.l.b16 %v14903_v43  ;;  %7984 = vmatpush.bf16.msra.mxu0 %v10865_v33 }
 0x58a   : > { %6273 = vmatmul.bf16.gmra.mxu3 %v5651_v17  ;;  %6723 = vmatmul.bf16.gmra.mxu0 %v17018_v22  ;;  %5129 = vst [vmem:[#allocation2 + $0x290] sm:$0xf] %v5008_v48  ;;  %v4067_v31 = vpack.c.bf16 %v4013_v40, %v4013_v40  ;;  %v5291_v45 = vld [vmem:[#allocation2 + $0x288] sm:$0xff]  ;;  %v4562_v51 = vrot.slane %v4557_v59, 4  ;;  %v10908_v59 = vld [vmem:[%s15951_s6 + $0x38] sm:$0xff] }
 0x58b   : > { %v4561_v53 = vsel %vm13600_vm12, %v4553_v8, %v4560_v38  ;;  %v5607_v14 = vunpack.c.l.b16 %v5291_v45  ;;  %v5608_v20 = vunpack.c.h.b16 %v5291_v45  ;;  %v14916_v28 = vpack.c.b16 %v16247_v54, %v16248_v27  ;;  %v4688_v54 = vld [vmem:[#allocation2 + $0x2ac] sm:$0x1]  ;;  %8606 = vmatpush.bf16.msra.mxu2 %v10908_v59 }
 0x58c   : > { %4684 = vst [vmem:[#allocation2 + $0x294] sm:$0xf] %v4561_v53  ;;  %v4564_v29 = vshrl.u32 %v4067_v31, 16  ;;  %v4567_v7 = vshll.u32 %v4067_v31, 16  ;;  %v6157_v17 = vpop.f32.mrf.mxu2  ;;  %v5011_v40 = vrot.slane %v5010_v13, 4 }
 0x58d   : > { %v6016_v12 = vpop.f32.mrf.mxu1  ;;  %17019 = vst [vmem:[#allocation95_spill] sm:$0xff] %v14916_v28  ;;  %v14918_v61 = vadd.f32 %v6157_v17, %v6013_v5  ;;  %v6234_v48 = vpop.f32.mrf.mxu3  ;;  %v5691_v8 = vpack.c.b16 %v5607_v14, %v5604_v57  ;;  %v5692_v38 = vpack.c.b16 %v5608_v20, %v5605_v60  ;;  %v10873_v14 = vld [vmem:[#allocation8 + $0x238] sm:$0xff] }
 0x58e   : > { %4744 = vst [vmem:[#allocation2 + $0x2a4] sm:$0xf] %v4067_v31  ;;  %v4566_v22 = vrot.slane %v4564_v29, 7  ;;  %v5012_v45 = vrot.slane %v4567_v7, 5  ;;  %v5014_v53 = vrot.slane %v4564_v29, 4  ;;  %v14921_v21 = vadd.f32 %v6234_v48, %v17020_v62  ;;  %8128 = vmatpush.bf16.msra.mxu1 %v10873_v14  ;;  %v17022_v48 = vld [vmem:[#allocation50_spill] sm:$0xff] }
 0x58f   : > { %v6686_v0 = vpop.f32.mrf.mxu0  ;;  %v5132_v62 = vld [vmem:[#allocation2 + $0x2a8] sm:$0xf] }
 0x590   : > { %6055 = vmatmul.bf16.gmra.mxu1 %v5691_v8  ;;  %v14926_v5 = vadd.f32 %v6686_v0, %v14789_v47  ;;  %v4569_v13 = vor.u32 %v4567_v7, %v4566_v22  ;;  %v4571_v57 = vrot.slane %v4566_v22, 4  ;;  %v5013_v60 = vsel %vm13592_vm11, %v5011_v40, %v5012_v45 }
 0x591   : > { %v5015_v31 = vor.u32 %v5014_v53, %v5012_v45  ;;  %5130 = vst [vmem:[#allocation2 + $0x29c] sm:$0xf] %v5013_v60  ;;  %6199 = vmatmul.bf16.gmra.mxu2 %v5692_v38  ;;  %v17025_v22 = vunpack.c.l.b16 %v14271_v56  ;;  %v17026_v53 = vld [vmem:[#allocation123_spill] sm:$0xff] }
 0x592   : > { %v4570_v20 = vsel %vm13600_vm12, %v4562_v51, %v4569_v13  ;;  %v4689_v47 = vsel %vm4687_vm14, %v4571_v57, %v4688_v54  ;;  %v17023_v54 = vld [vmem:[#allocation28_spill] sm:$0xff] }
 0x593   : > { %v5016_v0 = vrot.slane %v5015_v31, 4  ;;  %4685 = vst [vmem:[#allocation2 + $0x2a0] sm:$0xf] %v4570_v20  ;;  %v17024_v38 = vunpack.c.l.b16 %v17023_v54  ;;  %v9779_v60 = vld [vmem:[#allocation2 + $0x294] sm:$0xf]  ;;  %v17027_v20 = vld [vmem:[#allocation45_spill] sm:$0xff] }
 0x594   : > { %4690 = vst [vmem:[#allocation2 + $0x2ac] sm:$0x1] %v4689_v47  ;;  %v6160_v29 = vpop.f32.mrf.mxu2  ;;  %v10742_v47 = vld [vmem:[#allocation2 + $0x298] sm:$0xf] }
 0x595   : > { %v5133_v33 = vsel %vm13538_vm2, %v5016_v0, %v5132_v62  ;;  %v6018_v7 = vpop.f32.mrf.mxu1  ;;  %v14937_v17 = vadd.f32 %v6160_v29, %v6016_v12  ;;  %v6236_v40 = vpop.f32.mrf.mxu3  ;;  %v5654_v45 = vpack.c.b16 %v17025_v22, %v17024_v38  ;;  %v9781_v31 = vld [vmem:[#allocation2 + $0x2a0] sm:$0xf0]  ;;  %v17028_v38 = vld [vmem:[#allocation63_spill] sm:$0xff] }
 0x596   : > { %5134 = vst [vmem:[#allocation2 + $0x2a8] sm:$0xf] %v5133_v33  ;;  %v14940_v8 = vadd.f32 %v6236_v40, %v17022_v48  ;;  %v9784_v56 = vor.u32 %v10742_v47, %v9781_v31  ;;  %v17029_v22 = vunpack.c.l.b16 %v17028_v38  ;;  %v17032_v47 = vld [vmem:[#allocation33_spill] sm:$0xff] }
 0x597   : > { %v6689_v55 = vpop.f32.mrf.mxu0 }
 0x598   : > { %v14943_v51 = vadd.f32 %v6689_v55, %v14828_v24 }
 0x59a   : > { %6278 = vmatmul.bf16.gmra.mxu3 %v5654_v45  ;;  %6728 = vmatmul.bf16.gmra.mxu0 %v17026_v53  ;;  %v10743_v13 = vld [vmem:[#allocation2 + $0x29c] sm:$0xf0]  ;;  %v17030_v45 = vunpack.c.l.b16 %v14329_v35 }
 0x59b   : > { %v9780_v59 = vor.u32 %v10743_v13, %v9779_v60  ;;  %v9889_v13 = vld [vmem:[#allocation2 + $0xc] sm:$0xf0]  ;;  %v10717_v60 = vld [vmem:[#allocation2 + $0x10] sm:$0xf0] }
 0x59c   : > { %v6162_v57 = vpop.f32.mrf.mxu2  ;;  %v5657_v53 = vpack.c.b16 %v17030_v45, %v17029_v22  ;;  %v17033_v22 = vld [vmem:[#allocation88_spill] sm:$0xff] }
 0x59d   : > { %v6021_v12 = vpop.f32.mrf.mxu1  ;;  %v14950_v62 = vadd.f32 %v6162_v57, %v6018_v7  ;;  %v6239_v14 = vpop.f32.mrf.mxu3  ;;  %v17031_v57 = vld [vmem:[#allocation127_spill] sm:$0xff] }
 0x59e   : > { %v14953_v24 = vadd.f32 %v6239_v14, %v17027_v20 }
 0x59f   : > { %v6691_v0 = vpop.f32.mrf.mxu0 }
 0x5a0   : > { %6060 = vmatmul.bf16.gmra.mxu1 %v9780_v59  ;;  %v14956_v26 = vadd.f32 %v6691_v0, %v14845_v39  ;;  %v10715_v39 = vld [vmem:[#allocation2 + $0x4] sm:$0xf] }
 0x5a1   : > { %6204 = vmatmul.bf16.gmra.mxu2 %v9784_v56  ;;  %v9892_v31 = vor.u32 %v10715_v39, %v9889_v13  ;;  %v17034_v39 = vld [vmem:[#allocation65_spill] sm:$0xff] }
 0x5a2   : > { %v17035_v13 = vunpack.c.l.b16 %v17034_v39 }
 0x5a4   : > { %v6165_v33 = vpop.f32.mrf.mxu2 }
 0x5a5   : > { %v6023_v29 = vpop.f32.mrf.mxu1  ;;  %v14958_v40 = vadd.f32 %v6165_v33, %v6021_v12  ;;  %v6241_v48 = vpop.f32.mrf.mxu3  ;;  %v9895_v12 = vld [vmem:[#allocation2 + $0x8] sm:$0xf] }
 0x5a6   : > { %v14961_v7 = vadd.f32 %v6241_v48, %v14284_v6 }
 0x5a7   : > { %v6694_v55 = vpop.f32.mrf.mxu0 }
 0x5a8   : > { %v14964_v54 = vadd.f32 %v6694_v55, %v14878_v16  ;;  %v9896_v16 = vor.u32 %v10717_v60, %v9895_v12  ;;  %v17037_v12 = vld [vmem:[#allocation29_spill] sm:$0xff]  ;;  %v11182_v60 = vld [vmem:[#allocation2] sm:$0xff] }
 0x5aa   : > { %6283 = vmatmul.bf16.gmra.mxu3 %v5657_v53  ;;  %6733 = vmatmul.bf16.gmra.mxu0 %v17031_v57  ;;  %v17036_v57 = vunpack.c.l.b16 %v14388_v32  ;;  %v10856_v32 = vld [vmem:[#allocation8 + $0x1b0] sm:$0xff] }
 0x5ab   : > { %7841 = vmatpush.bf16.msra.mxu3 %v10856_v32 }
 0x5ac   : > { %v6167_v14 = vpop.f32.mrf.mxu2 }
 0x5ad   : > { %v6026_v6 = vpop.f32.mrf.mxu1  ;;  %v14971_v59 = vadd.f32 %v6167_v14, %v6023_v29  ;;  %v6244_v20 = vpop.f32.mrf.mxu3  ;;  %v5140_v14 = vld [vmem:[#allocation2 + $0x20] sm:$0xf] }
 0x5ae   : > { %v14974_v0 = vadd.f32 %v6244_v20, %v17032_v47 }
 0x5af   : > { %v6696_v56 = vpop.f32.mrf.mxu0 }
 0x5b0   : > { %v14977_v35 = vadd.f32 %v6696_v56, %v14892_v42  ;;  %6827 = vmatmul.bf16.vlgmr.msrb.gmra.mxu1 %v9892_v31  ;;  %v5660_v42 = vpack.c.b16 %v17036_v57, %v17035_v13  ;;  %v6367_v31 = vunpack.c.h.b16 %v11182_v60  ;;  %v17038_v56 = vunpack.c.h.b16 %v16921_v19  ;;  %v17040_v13 = vld [vmem:[#allocation51_spill] sm:$0xff] }
 0x5b1   : > { %6971 = vmatmul.bf16.vlgmr.msrb.gmra.mxu2 %v9896_v16  ;;  %v17041_v57 = vunpack.c.l.b16 %v17040_v13 }
 0x5b4   : > { %v6170_v33 = vpop.f32.mrf.mxu2 }
 0x5b5   : > { %v6028_v48 = vpop.f32.mrf.mxu1  ;;  %v14979_v55 = vadd.f32 %v6170_v33, %v6026_v6  ;;  %v6246_v38 = vpop.f32.mrf.mxu3  ;;  %v6368_v33 = vunpack.c.l.b16 %v5140_v14 }
 0x5b6   : > { %v14982_v45 = vadd.f32 %v6246_v38, %v17033_v22  ;;  %v17039_v38 = vld [vmem:[#allocation101_spill] sm:$0xff] }
 0x5b7   : > { %v6699_v29 = vpop.f32.mrf.mxu0 }
 0x5b8   : > { %v14985_v53 = vadd.f32 %v6699_v29, %v14921_v21  ;;  %v6373_v21 = vpack.c.b16 %v17038_v56, %v6367_v31  ;;  %v10864_v31 = vld [vmem:[#allocation8 + $0x1f0] sm:$0xff] }
 0x5b9   : > { %7985 = vmatpush.bf16.msra.mxu0 %v10864_v31 }
 0x5ba   : > { %6288 = vmatmul.bf16.gmra.mxu3 %v5660_v42  ;;  %6738 = vmatmul.bf16.gmra.mxu0 %v17037_v12  ;;  %v6374_v42 = vpack.c.b16 %v17041_v57, %v6368_v33  ;;  %v17043_v33 = vunpack.c.l.b16 %v14443_v36  ;;  %v17045_v57 = vld [vmem:[#allocation37_spill] sm:$0xff]  ;;  %v17047_v36 = vld [vmem:[#allocation116_spill] sm:$0xff] }
 0x5bc   : > { %v6172_v6 = vpop.f32.mrf.mxu2 }
 0x5bd   : > { %v6031_v20 = vpop.f32.mrf.mxu1  ;;  %v14992_v16 = vadd.f32 %v6172_v6, %v6028_v48  ;;  %v6249_v47 = vpop.f32.mrf.mxu3 }
 0x5be   : > { %v6250_v22 = vadd.f32 %v6249_v47, %v17039_v38  ;;  %v10872_v47 = vld [vmem:[#allocation8 + $0x230] sm:$0xff] }
 0x5bf   : > { %v6701_v29 = vpop.f32.mrf.mxu0  ;;  %8129 = vmatpush.bf16.msra.mxu1 %v10872_v47 }
 0x5c0   : > { %v14998_v39 = vadd.f32 %v6701_v29, %v14940_v8  ;;  %6832 = vmatmul.bf16.gmra.mxu1 %v6373_v21  ;;  %v10907_v8 = vld [vmem:[%s15951_s6 + $0x30] sm:$0xff]  ;;  %v17042_v21 = vunpack.c.l.b16 %v14390_v44  ;;  %v17046_v44 = vld [vmem:[#allocation93_spill] sm:$0xff] }
 0x5c1   : > { %6976 = vmatmul.bf16.gmra.mxu2 %v6374_v42 }
 0x5c2   : > { %v5663_v38 = vpack.c.b16 %v17043_v33, %v17042_v21  ;;  %8607 = vmatpush.bf16.msra.mxu2 %v10907_v8  ;;  %v17049_v8 = vld [vmem:[#allocation108_spill] sm:$0xff] }
 0x5c4   : > { %v6175_v48 = vpop.f32.mrf.mxu2 }
 0x5c5   : > { %v6033_v12 = vpop.f32.mrf.mxu1  ;;  %v15002_v60 = vadd.f32 %v6175_v48, %v6031_v20  ;;  %v6251_v19 = vpop.f32.mrf.mxu3  ;;  %v17044_v20 = vld [vmem:[#allocation31_spill] sm:$0xff] }
 0x5c6   : > { %v6252_v14 = vadd.f32 %v6251_v19, %v14399_v3 }
 0x5c7   : > { %v6704_v6 = vpop.f32.mrf.mxu0 }
 0x5c8   : > { %v15009_v56 = vadd.f32 %v6704_v6, %v14953_v24 }
 0x5ca   : > { %6293 = vmatmul.bf16.gmra.mxu3 %v5663_v38  ;;  %6743 = vmatmul.bf16.gmra.mxu0 %v17044_v20  ;;  %v17050_v38 = vld [vmem:[#allocation74_spill] sm:$0xff] }
 0x5cb   : > { %v17051_v20 = vunpack.c.l.b16 %v17050_v38 }
 0x5cc   : > { %v6177_v3 = vpop.f32.mrf.mxu2 }
 0x5cd   : > { %v6036_v29 = vpop.f32.mrf.mxu1  ;;  %v15016_v32 = vadd.f32 %v6177_v3, %v6033_v12  ;;  %v6254_v13 = vpop.f32.mrf.mxu3 }
 0x5ce   : > { %v6255_v42 = vadd.f32 %v6254_v13, %v17045_v57  ;;  %v17053_v13 = vld [vmem:[#allocation35_spill] sm:$0xff] }
 0x5cf   : > { %v6706_v24 = vpop.f32.mrf.mxu0 }
 0x5d0   : > { %v15020_v48 = vadd.f32 %v6706_v24, %v14961_v7  ;;  %6837 = vmatmul.bf16.gmra.mxu1 %v17046_v44  ;;  %v17052_v7 = vunpack.c.l.b16 %v14496_v30 }
 0x5d1   : > { %6981 = vmatmul.bf16.gmra.mxu2 %v17047_v36 }
 0x5d2   : > { %v5666_v3 = vpack.c.b16 %v17052_v7, %v17051_v20  ;;  %v17058_v7 = vld [vmem:[#allocation115_spill] sm:$0xff] }
 0x5d4   : > { %v6180_v19 = vpop.f32.mrf.mxu2 }
 0x5d5   : > { %v6038_v31 = vpop.f32.mrf.mxu1  ;;  %v15024_v6 = vadd.f32 %v6180_v19, %v6036_v29  ;;  %v6256_v47 = vpop.f32.mrf.mxu3 }
 0x5d6   : > { %v6257_v21 = vadd.f32 %v6256_v47, %v17049_v8  ;;  %v17056_v8 = vld [vmem:[#allocation15_spill] sm:$0xff] }
 0x5d7   : > { %17048 = vst [vmem:[#allocation75_spill] sm:$0xff] %v15024_v6  ;;  %v6709_v12 = vpop.f32.mrf.mxu0 }
 0x5d8   : > { %v15028_v33 = vadd.f32 %v6709_v12, %v14974_v0  ;;  %v17055_v0 = vld [vmem:[#allocation104_spill] sm:$0xff] }
 0x5da   : > { %6298 = vmatmul.bf16.gmra.mxu3 %v5666_v3  ;;  %6748 = vmatmul.bf16.gmra.mxu0 %v17053_v13 }
 0x5dc   : > { %v6182_v57 = vpop.f32.mrf.mxu2 }
 0x5dd   : > { %v6041_v24 = vpop.f32.mrf.mxu1  ;;  %v15035_v44 = vadd.f32 %v6182_v57, %v6038_v31  ;;  %v6259_v29 = vpop.f32.mrf.mxu3  ;;  %v17059_v57 = vld [vmem:[#allocation64_spill] sm:$0xff] }
 0x5de   : > { %v6260_v36 = vadd.f32 %v6259_v29, %v14482_v63  ;;  %v17060_v63 = vunpack.c.l.b16 %v17059_v57  ;;  %v17061_v29 = vld [vmem:[#allocation120_spill] sm:$0xff] }
 0x5df   : > { %17054 = vst [vmem:[#allocation118_spill] sm:$0xff] %v15035_v44  ;;  %v6711_v19 = vpop.f32.mrf.mxu0  ;;  %v17062_v27 = vunpack.c.l.b16 %v17061_v29  ;;  %v10855_v29 = vld [vmem:[#allocation8 + $0x1a8] sm:$0xff] }
 0x5e0   : > { %v15039_v47 = vadd.f32 %v6711_v19, %v14982_v45  ;;  %6842 = vmatmul.bf16.gmra.mxu1 %v17055_v0  ;;  %v17063_v19 = vld [vmem:[#allocation32_spill] sm:$0xff]  ;;  %7842 = vmatpush.bf16.msra.mxu3 %v10855_v29  ;;  %v17075_v29 = vld [vmem:[#allocation19_spill] sm:$0xff] }
 0x5e1   : > { %6986 = vmatmul.bf16.gmra.mxu2 %v17056_v8  ;;  %v5669_v45 = vpack.c.b16 %v17062_v27, %v17060_v63 }
 0x5e4   : > { %v6185_v30 = vpop.f32.mrf.mxu2 }
 0x5e5   : > { %v6043_v12 = vpop.f32.mrf.mxu1  ;;  %v15043_v38 = vadd.f32 %v6185_v30, %v6041_v24  ;;  %v6261_v20 = vpop.f32.mrf.mxu3  ;;  %v17065_v30 = vld [vmem:[#allocation119_spill] sm:$0xff] }
 0x5e6   : > { %v6262_v3 = vadd.f32 %v6261_v20, %v17058_v7  ;;  %v17067_v7 = vld [vmem:[#allocation18_spill] sm:$0xff] }
 0x5e7   : > { %17057 = vst [vmem:[#allocation77_spill] sm:$0xff] %v15043_v38  ;;  %v6714_v31 = vpop.f32.mrf.mxu0 }
 0x5e8   : > { %v15046_v13 = vadd.f32 %v6714_v31, %v6250_v22  ;;  %v17066_v22 = vld [vmem:[#allocation111_spill] sm:$0xff] }
 0x5ea   : > { %6303 = vmatmul.bf16.gmra.mxu3 %v5669_v45  ;;  %6753 = vmatmul.bf16.gmra.mxu0 %v17063_v19 }
 0x5ec   : > { %v6187_v0 = vpop.f32.mrf.mxu2 }
 0x5ed   : > { %v6046_v8 = vpop.f32.mrf.mxu1  ;;  %v15053_v28 = vadd.f32 %v6187_v0, %v6043_v12  ;;  %v6264_v24 = vpop.f32.mrf.mxu3  ;;  %v17069_v0 = vunpack.c.l.b16 %v14549_v49  ;;  %v17074_v49 = vld [vmem:[#allocation103_spill] sm:$0xff] }
 0x5ee   : > { %v6265_v38 = vadd.f32 %v6264_v24, %v17065_v30  ;;  %v17070_v24 = vld [vmem:[#allocation109_spill] sm:$0xff] }
 0x5ef   : > { %17064 = vst [vmem:[#allocation113_spill] sm:$0xff] %v15053_v28  ;;  %v6716_v44 = vpop.f32.mrf.mxu0  ;;  %v10863_v30 = vld [vmem:[#allocation8 + $0x1e8] sm:$0xff] }
 0x5f0   : > { %v15056_v20 = vadd.f32 %v6716_v44, %v6252_v14  ;;  %6847 = vmatmul.bf16.gmra.mxu1 %v17066_v22  ;;  %v17071_v14 = vunpack.c.l.b16 %v17070_v24  ;;  %v17072_v22 = vld [vmem:[#allocation36_spill] sm:$0xff]  ;;  %7986 = vmatpush.bf16.msra.mxu0 %v10863_v30 }
 0x5f1   : > { %6991 = vmatmul.bf16.gmra.mxu2 %v17067_v7  ;;  %v17076_v24 = vld [vmem:[#allocation20_spill] sm:$0xff] }
 0x5f2   : > { %v5672_v44 = vpack.c.b16 %v17071_v14, %v17069_v0 }
 0x5f4   : > { %v6190_v31 = vpop.f32.mrf.mxu2 }
 0x5f5   : > { %v6048_v57 = vpop.f32.mrf.mxu1  ;;  %v15060_v27 = vadd.f32 %v6190_v31, %v6046_v8  ;;  %v6266_v63 = vpop.f32.mrf.mxu3 }
 0x5f6   : > { %v6267_v45 = vadd.f32 %v6266_v63, %v14568_v1  ;;  %v10871_v1 = vld [vmem:[#allocation8 + $0x228] sm:$0xff] }
 0x5f7   : > { %17068 = vst [vmem:[#allocation114_spill] sm:$0xff] %v15060_v27  ;;  %v6719_v12 = vpop.f32.mrf.mxu0  ;;  %8130 = vmatpush.bf16.msra.mxu1 %v10871_v1 }
 0x5f8   : > { %v15063_v19 = vadd.f32 %v6719_v12, %v6255_v42  ;;  %v10906_v42 = vld [vmem:[%s15951_s6 + $0x28] sm:$0xff] }
 0x5f9   : > { %8608 = vmatpush.bf16.msra.mxu2 %v10906_v42  ;;  %v17082_v42 = vld [vmem:[#allocation52_spill] sm:$0xff] }
 0x5fa   : > { %6308 = vmatmul.bf16.gmra.mxu3 %v5672_v44  ;;  %6758 = vmatmul.bf16.gmra.mxu0 %v17072_v22 }
 0x5fc   : > { %v6192_v8 = vpop.f32.mrf.mxu2 }
 0x5fd   : > { %v6051_v7 = vpop.f32.mrf.mxu1  ;;  %v15070_v31 = vadd.f32 %v6192_v8, %v6048_v57  ;;  %v6269_v27 = vpop.f32.mrf.mxu3 }
 0x5fe   : > { %v6270_v63 = vadd.f32 %v6269_v27, %v17074_v49  ;;  %v17078_v27 = vld [vmem:[#allocation86_spill] sm:$0xff] }
 0x5ff   : > { %17073 = vst [vmem:[#allocation30_spill] sm:$0xff] %v15070_v31  ;;  %v6721_v12 = vpop.f32.mrf.mxu0  ;;  %v17079_v49 = vunpack.c.l.b16 %v17078_v27 }
 0x600   : > { %v15076_v0 = vadd.f32 %v6721_v12, %v6257_v21  ;;  %6852 = vmatmul.bf16.gmra.mxu1 %v17075_v29  ;;  %v17080_v21 = vld [vmem:[#allocation98_spill] sm:$0xff] }
 0x601   : > { %6996 = vmatmul.bf16.gmra.mxu2 %v17076_v24  ;;  %v17081_v12 = vunpack.c.l.b16 %v17080_v21 }
 0x603   : > { %v5675_v28 = vpack.c.b16 %v17081_v12, %v17079_v49 }
 0x604   : > { %v6195_v14 = vpop.f32.mrf.mxu2 }
 0x605   : > { %v6053_v57 = vpop.f32.mrf.mxu1  ;;  %v15080_v44 = vadd.f32 %v6195_v14, %v6051_v7  ;;  %v6271_v30 = vpop.f32.mrf.mxu3  ;;  %v17083_v14 = vld [vmem:[#allocation92_spill] sm:$0xff] }
 0x606   : > { %v6272_v22 = vadd.f32 %v6271_v30, %v14623_v34  ;;  %v17085_v30 = vld [vmem:[#allocation23_spill] sm:$0xff] }
 0x607   : > { %17077 = vst [vmem:[#allocation121_spill] sm:$0xff] %v15080_v44  ;;  %v6724_v8 = vpop.f32.mrf.mxu0 }
 0x608   : > { %v15083_v31 = vadd.f32 %v6724_v8, %v6260_v36  ;;  %v17084_v36 = vld [vmem:[#allocation59_spill] sm:$0xff] }
 0x60a   : > { %6313 = vmatmul.bf16.gmra.mxu3 %v5675_v28  ;;  %6763 = vmatmul.bf16.gmra.mxu0 %v17082_v42  ;;  %v17087_v42 = vunpack.c.l.b16 %v14653_v15 }
 0x60c   : > { %v6197_v1 = vpop.f32.mrf.mxu2 }
 0x60d   : > { %v6056_v29 = vpop.f32.mrf.mxu1  ;;  %v15090_v24 = vadd.f32 %v6197_v1, %v6053_v57  ;;  %v6274_v7 = vpop.f32.mrf.mxu3  ;;  %v17088_v1 = vunpack.c.l.b16 %v14698_v50 }
 0x60e   : > { %v6275_v44 = vadd.f32 %v6274_v7, %v17083_v14 }
 0x60f   : > { %v6726_v6 = vpop.f32.mrf.mxu0 }
 0x610   : > { %v15093_v34 = vadd.f32 %v6726_v6, %v6262_v3  ;;  %6857 = vmatmul.bf16.gmra.mxu1 %v17084_v36  ;;  %v5678_v6 = vpack.c.b16 %v17088_v1, %v17087_v42  ;;  %v17089_v3 = vld [vmem:[#allocation70_spill] sm:$0xff] }
 0x611   : > { %7001 = vmatmul.bf16.gmra.mxu2 %v17085_v30  ;;  %v17090_v30 = vld [vmem:[#allocation94_spill] sm:$0xff] }
 0x614   : > { %v6200_v8 = vpop.f32.mrf.mxu2 }
 0x615   : > { %v6058_v27 = vpop.f32.mrf.mxu1  ;;  %v15097_v49 = vadd.f32 %v6200_v8, %v6056_v29  ;;  %v6276_v28 = vpop.f32.mrf.mxu3 }
 0x616   : > { %v6277_v21 = vadd.f32 %v6276_v28, %v14673_v41  ;;  %v17092_v28 = vld [vmem:[#allocation76_spill] sm:$0xff] }
 0x617   : > { %17086 = vst [vmem:[#allocation24_spill] sm:$0xff] %v15097_v49  ;;  %v6729_v12 = vpop.f32.mrf.mxu0 }
 0x618   : > { %v15100_v57 = vadd.f32 %v6729_v12, %v6265_v38  ;;  %v17091_v38 = vld [vmem:[#allocation68_spill] sm:$0xff] }
 0x61a   : > { %6318 = vmatmul.bf16.gmra.mxu3 %v5678_v6  ;;  %6768 = vmatmul.bf16.gmra.mxu0 %v17089_v3  ;;  %v17093_v3 = vunpack.c.l.b16 %v14700_v10  ;;  %v17097_v10 = vld [vmem:[#allocation84_spill] sm:$0xff] }
 0x61c   : > { %v6202_v7 = vpop.f32.mrf.mxu2 }
 0x61d   : > { %v6061_v14 = vpop.f32.mrf.mxu1  ;;  %v15107_v36 = vadd.f32 %v6202_v7, %v6058_v27  ;;  %v6279_v29 = vpop.f32.mrf.mxu3  ;;  %v10854_v7 = vld [vmem:[#allocation8 + $0x1a0] sm:$0xff] }
 0x61e   : > { %v6280_v8 = vadd.f32 %v6279_v29, %v17090_v30  ;;  %v17095_v29 = vld [vmem:[#allocation97_spill] sm:$0xff]  ;;  %7843 = vmatpush.bf16.msra.mxu3 %v10854_v7 }
 0x61f   : > { %v6731_v49 = vpop.f32.mrf.mxu0 }
 0x620   : > { %v15110_v41 = vadd.f32 %v6731_v49, %v6267_v45  ;;  %6862 = vmatmul.bf16.gmra.mxu1 %v17091_v38  ;;  %v17094_v45 = vunpack.c.l.b16 %v14744_v25  ;;  %v17098_v25 = vld [vmem:[#allocation91_spill] sm:$0xff] }
 0x621   : > { %7006 = vmatmul.bf16.gmra.mxu2 %v17092_v28 }
 0x622   : > { %v5681_v49 = vpack.c.b16 %v17094_v45, %v17093_v3  ;;  %v10862_v3 = vld [vmem:[#allocation8 + $0x1e0] sm:$0xff] }
 0x623   : > { %v10870_v45 = vld [vmem:[#allocation8 + $0x220] sm:$0xff]  ;;  %7987 = vmatpush.bf16.msra.mxu0 %v10862_v3  ;;  %v17102_v3 = vld [vmem:[#allocation47_spill] sm:$0xff] }
 0x624   : > { %v6205_v15 = vpop.f32.mrf.mxu2  ;;  %8131 = vmatpush.bf16.msra.mxu1 %v10870_v45 }
 0x625   : > { %v6063_v50 = vpop.f32.mrf.mxu1  ;;  %v15114_v12 = vadd.f32 %v6205_v15, %v6061_v14  ;;  %v6281_v42 = vpop.f32.mrf.mxu3  ;;  %v17096_v15 = vld [vmem:[#allocation16_spill] sm:$0xff] }
 0x626   : > { %v15117_v1 = vadd.f32 %v6281_v42, %v14719_v23 }
 0x627   : > { %v6734_v27 = vpop.f32.mrf.mxu0 }
 0x628   : > { %v15119_v6 = vadd.f32 %v6734_v27, %v6270_v63 }
 0x62a   : > { %6323 = vmatmul.bf16.gmra.mxu3 %v5681_v49  ;;  %6773 = vmatmul.bf16.gmra.mxu0 %v17095_v29  ;;  %v10905_v49 = vld [vmem:[%s15951_s6 + $0x20] sm:$0xff] }
 0x62b   : > { %8609 = vmatpush.bf16.msra.mxu2 %v10905_v49 }
 0x62c   : > { %v6207_v30 = vpop.f32.mrf.mxu2 }
 0x62d   : > { %v6828_v14 = vpop.f32.mrf.mxu1  ;;  %v15126_v38 = vadd.f32 %v6207_v30, %v6063_v50  ;;  %v6284_v28 = vpop.f32.mrf.mxu3 }
 0x62e   : > { %v6829_v23 = vadd.f32 %v6828_v14, %v14901_v58  ;;  %v6285_v63 = vadd.f32 %v6284_v28, %v17096_v15  ;;  %v17099_v15 = vld [vmem:[#allocation17_spill] sm:$0xff] }
 0x62f   : > { %v6736_v42 = vpop.f32.mrf.mxu0 }
 0x630   : > { %v15130_v27 = vadd.f32 %v6736_v42, %v6272_v22  ;;  %6867 = vmatmul.bf16.gmra.mxu1 %v17097_v10  ;;  %v17100_v42 = vunpack.c.l.b16 %v17099_v15  ;;  %v17101_v10 = vunpack.c.l.b16 %v14795_v46 }
 0x631   : > { %7011 = vmatmul.bf16.gmra.mxu2 %v17098_v25 }
 0x632   : > { %v5684_v25 = vpack.c.b16 %v17101_v10, %v17100_v42 }
 0x634   : > { %v6972_v50 = vpop.f32.mrf.mxu2 }
 0x635   : > { %v6830_v58 = vpop.f32.mrf.mxu1  ;;  %v15137_v7 = vadd.f32 %v6972_v50, %v6829_v23  ;;  %v6286_v29 = vpop.f32.mrf.mxu3 }
 0x636   : > { %v6831_v22 = vadd.f32 %v6830_v58, %v14926_v5  ;;  %v6287_v30 = vadd.f32 %v6286_v29, %v14765_v18  ;;  %v17103_v29 = vld [vmem:[#allocation124_spill] sm:$0xff] }
 0x637   : > { %v6739_v14 = vpop.f32.mrf.mxu0 }
 0x638   : > { %v15141_v28 = vadd.f32 %v6739_v14, %v6275_v44  ;;  %v17104_v14 = vld [vmem:[#allocation126_spill] sm:$0xff] }
 0x63a   : > { %6328 = vmatmul.bf16.gmra.mxu3 %v5684_v25  ;;  %6778 = vmatmul.bf16.gmra.mxu0 %v17102_v3 }
 0x63c   : > { %v6974_v45 = vpop.f32.mrf.mxu2 }
 0x63d   : > { %v6833_v49 = vpop.f32.mrf.mxu1  ;;  %v15148_v23 = vadd.f32 %v6974_v45, %v6831_v22  ;;  %v6289_v50 = vpop.f32.mrf.mxu3 }
 0x63e   : > { %v6834_v5 = vadd.f32 %v6833_v49, %v14943_v51  ;;  %v6290_v18 = vadd.f32 %v6289_v50, %v14786_v2  ;;  %v17105_v2 = vunpack.c.l.b16 %v14797_v37  ;;  %v17108_v50 = vld [vmem:[#allocation66_spill] sm:$0xff]  ;;  %v17110_v37 = vld [vmem:[#allocation128_spill] sm:$0xff] }
 0x63f   : > { %v6741_v58 = vpop.f32.mrf.mxu0 }
 0x640   : > { %v15152_v44 = vadd.f32 %v6741_v58, %v6277_v21  ;;  %6872 = vmatmul.bf16.gmra.mxu1 %v17103_v29  ;;  %v17106_v21 = vld [vmem:[#allocation21_spill] sm:$0xff] }
 0x641   : > { %7016 = vmatmul.bf16.gmra.mxu2 %v17104_v14  ;;  %v17107_v45 = vunpack.c.l.b16 %v17106_v21 }
 0x643   : > { %v5687_v49 = vpack.c.b16 %v17107_v45, %v17105_v2 }
 0x644   : > { %v6977_v46 = vpop.f32.mrf.mxu2 }
 0x645   : > { %v6835_v15 = vpop.f32.mrf.mxu1  ;;  %v15156_v42 = vadd.f32 %v6977_v46, %v6834_v5  ;;  %v6291_v22 = vpop.f32.mrf.mxu3 }
 0x646   : > { %v6836_v10 = vadd.f32 %v6835_v15, %v14956_v26  ;;  %v15160_v25 = vadd.f32 %v6291_v22, %v14821_v11  ;;  %v17109_v11 = vld [vmem:[#allocation82_spill] sm:$0xff]  ;;  %v17111_v22 = vld [vmem:[#allocation40_spill] sm:$0xff] }
 0x647   : > { %v6744_v51 = vpop.f32.mrf.mxu0 }
 0x648   : > { %v15162_v3 = vadd.f32 %v6744_v51, %v6280_v8 }
 0x64a   : > { %6333 = vmatmul.bf16.gmra.mxu3 %v5687_v49  ;;  %6783 = vmatmul.bf16.gmra.mxu0 %v17108_v50 }
 0x64c   : > { %v6979_v58 = vpop.f32.mrf.mxu2 }
 0x64d   : > { %v6838_v5 = vpop.f32.mrf.mxu1  ;;  %v15169_v29 = vadd.f32 %v6979_v58, %v6836_v10  ;;  %v6294_v14 = vpop.f32.mrf.mxu3  ;;  %v17113_v58 = vunpack.c.l.b16 %v14898_v9  ;;  %v5292_v9 = vld [vmem:[#allocation2 + $0x290] sm:$0xf] }
 0x64e   : > { %v6839_v26 = vadd.f32 %v6838_v5, %v14964_v54  ;;  %v15173_v46 = vadd.f32 %v6294_v14, %v17109_v11  ;;  %v17114_v14 = vld [vmem:[#allocation53_spill] sm:$0xff] }
 0x64f   : > { %v6746_v8 = vpop.f32.mrf.mxu0 }
 0x650   : > { %v15176_v15 = vadd.f32 %v6746_v8, %v15117_v1  ;;  %6877 = vmatmul.bf16.gmra.mxu1 %v17110_v37  ;;  %v17112_v1 = vunpack.c.l.b16 %v14853_v52  ;;  %v17116_v52 = vld [vmem:[#allocation22_spill] sm:$0xff] }
 0x651   : > { %7021 = vmatmul.bf16.gmra.mxu2 %v17111_v22  ;;  %v17115_v22 = vld [vmem:[#allocation106_spill] sm:$0xff] }
 0x652   : > { %v5690_v5 = vpack.c.b16 %v17113_v58, %v17112_v1  ;;  %v5609_v1 = vunpack.c.l.b16 %v5292_v9  ;;  %v10869_v9 = vld [vmem:[#allocation8 + $0x218] sm:$0xff] }
 0x653   : > { %8132 = vmatpush.bf16.msra.mxu1 %v10869_v9  ;;  %v9787_v9 = vld [vmem:[#allocation2 + $0x29c] sm:$0xf] }
 0x654   : > { %v6982_v51 = vpop.f32.mrf.mxu2 }
 0x655   : > { %v6840_v2 = vpop.f32.mrf.mxu1  ;;  %v15180_v21 = vadd.f32 %v6982_v51, %v6839_v26  ;;  %v6296_v45 = vpop.f32.mrf.mxu3 }
 0x656   : > { %v6841_v10 = vadd.f32 %v6840_v2, %v14977_v35  ;;  %v15184_v54 = vadd.f32 %v6296_v45, %v14873_v4  ;;  %v10853_v4 = vld [vmem:[#allocation8 + $0x198] sm:$0xff]  ;;  %v17117_v45 = vld [vmem:[#allocation38_spill] sm:$0xff] }
 0x657   : > { %v6749_v49 = vpop.f32.mrf.mxu0  ;;  %7844 = vmatpush.bf16.msra.mxu3 %v10853_v4 }
 0x658   : > { %v15186_v50 = vadd.f32 %v6749_v49, %v6285_v63  ;;  %v10852_v49 = vld [vmem:[#allocation8 + $0x190] sm:$0xff] }
 0x65a   : > { %6338 = vmatmul.bf16.gmra.mxu3 %v5690_v5  ;;  %6788 = vmatmul.bf16.gmra.mxu0 %v17114_v14 }
 0x65b   : > { %7845 = vmatpush.bf16.msra.mxu3 %v10852_v49 }
 0x65c   : > { %v6984_v11 = vpop.f32.mrf.mxu2 }
 0x65d   : > { %v6843_v26 = vpop.f32.mrf.mxu1  ;;  %v15193_v8 = vadd.f32 %v6984_v11, %v6841_v10  ;;  %v6299_v37 = vpop.f32.mrf.mxu3  ;;  %v10851_v11 = vld [vmem:[#allocation8 + $0x188] sm:$0xff] }
 0x65e   : > { %v6844_v35 = vadd.f32 %v6843_v26, %v14985_v53  ;;  %v15197_v51 = vadd.f32 %v6299_v37, %v17115_v22  ;;  %v10861_v37 = vld [vmem:[#allocation8 + $0x1d8] sm:$0xff]  ;;  %v17118_v22 = vunpack.c.l.b16 %v14903_v43 }
 0x65f   : > { %v6751_v63 = vpop.f32.mrf.mxu0  ;;  %7846 = vmatpush.bf16.msra.mxu3 %v10851_v11  ;;  %7988 = vmatpush.bf16.msra.mxu0 %v10861_v37  ;;  %v17121_v11 = vld [vmem:[#allocation44_spill] sm:$0xff] }
 0x660   : > { %v15199_v2 = vadd.f32 %v6751_v63, %v6287_v30  ;;  %6882 = vmatmul.bf16.gmra.mxu1 %v17116_v52  ;;  %v5693_v63 = vpack.c.b16 %v5609_v1, %v17118_v22  ;;  %v10850_v52 = vld [vmem:[#allocation8 + $0x180] sm:$0xff]  ;;  %v10744_v22 = vld [vmem:[#allocation2 + $0x2a4] sm:$0xf0] }
 0x661   : > { %7026 = vmatmul.bf16.gmra.mxu2 %v17117_v45 }
 0x663   : > { %7847 = vmatpush.bf16.msra.mxu3 %v10850_v52 }
 0x664   : > { %v6987_v10 = vpop.f32.mrf.mxu2 }
 0x665   : > { %v6845_v58 = vpop.f32.mrf.mxu1  ;;  %v15203_v53 = vadd.f32 %v6987_v10, %v6844_v35  ;;  %v6301_v14 = vpop.f32.mrf.mxu3  ;;  %v10904_v35 = vld [vmem:[%s15951_s6 + $0x18] sm:$0xff] }
 0x666   : > { %v6846_v5 = vadd.f32 %v6845_v58, %v14998_v39  ;;  %v15207_v30 = vadd.f32 %v6301_v14, %v14918_v61  ;;  %v17119_v39 = vld [vmem:[#allocation14_spill] sm:$0xff]  ;;  %8610 = vmatpush.bf16.msra.mxu2 %v10904_v35  ;;  %v9788_v35 = vor.u32 %v10744_v22, %v9787_v9  ;;  %v10770_v22 = vld [vmem:[#allocation2 + $0x50] sm:$0xf0]  ;;  %v9995_v9 = vld [vmem:[#allocation2 + $0x48] sm:$0xf] }
 0x667   : > { %v6754_v26 = vpop.f32.mrf.mxu0  ;;  %v17120_v14 = vld [vmem:[#allocation34_spill] sm:$0xff] }
 0x668   : > { %v15209_v4 = vadd.f32 %v6754_v26, %v6290_v18 }
 0x66a   : > { %6343 = vmatmul.bf16.gmra.mxu3 %v5693_v63  ;;  %6793 = vmatmul.bf16.gmra.mxu0 %v17119_v39  ;;  %v17122_v39 = vld [vmem:[#allocation99_spill] sm:$0xff] }
 0x66c   : > { %v6989_v61 = vpop.f32.mrf.mxu2 }
 0x66d   : > { %v6848_v18 = vpop.f32.mrf.mxu1  ;;  %v15217_v45 = vadd.f32 %v6989_v61, %v6846_v5  ;;  %v6304_v49 = vpop.f32.mrf.mxu3 }
 0x66e   : > { %v6849_v43 = vadd.f32 %v6848_v18, %v15009_v56  ;;  %v15221_v1 = vadd.f32 %v6304_v49, %v14937_v17 }
 0x66f   : > { %v6756_v10 = vpop.f32.mrf.mxu0 }
 0x670   : > { %v15224_v58 = vadd.f32 %v6756_v10, %v15160_v25  ;;  %6887 = vmatmul.bf16.gmra.mxu1 %v17120_v14 }
 0x671   : > { %7031 = vmatmul.bf16.gmra.mxu2 %v17121_v11  ;;  %v17124_v11 = vld [vmem:[#allocation55_spill] sm:$0xff] }
 0x674   : > { %v6992_v26 = vpop.f32.mrf.mxu2 }
 0x675   : > { %v6850_v37 = vpop.f32.mrf.mxu1  ;;  %v15228_v63 = vadd.f32 %v6992_v26, %v6849_v43  ;;  %v6306_v56 = vpop.f32.mrf.mxu3 }
 0x676   : > { %v6851_v5 = vadd.f32 %v6850_v37, %v15020_v48  ;;  %v15232_v52 = vadd.f32 %v6306_v56, %v14950_v62 }
 0x677   : > { %v6759_v17 = vpop.f32.mrf.mxu0 }
 0x678   : > { %v15235_v25 = vadd.f32 %v6759_v17, %v15173_v46  ;;  %v17123_v46 = vld [vmem:[#allocation39_spill] sm:$0xff] }
 0x67a   : > { %6348 = vmatmul.bf16.gmra.mxu3 %v9788_v35  ;;  %6798 = vmatmul.bf16.gmra.mxu0 %v17122_v39  ;;  %v9996_v35 = vor.u32 %v10770_v22, %v9995_v9  ;;  %v17125_v39 = vld [vmem:[#allocation96_spill] sm:$0xff] }
 0x67c   : > { %v6994_v61 = vpop.f32.mrf.mxu2 }
 0x67d   : > { %v6853_v18 = vpop.f32.mrf.mxu1  ;;  %v15238_v49 = vadd.f32 %v6994_v61, %v6851_v5  ;;  %v6309_v48 = vpop.f32.mrf.mxu3 }
 0x67e   : > { %v6854_v43 = vadd.f32 %v6853_v18, %v15028_v33  ;;  %v15242_v10 = vadd.f32 %v6309_v48, %v14958_v40 }
 0x67f   : > { %v6761_v62 = vpop.f32.mrf.mxu0 }
 0x680   : > { %v15245_v14 = vadd.f32 %v6761_v62, %v15184_v54  ;;  %6892 = vmatmul.bf16.gmra.mxu1 %v17123_v46 }
 0x681   : > { %7036 = vmatmul.bf16.gmra.mxu2 %v17124_v11  ;;  %v17127_v11 = vld [vmem:[#allocation46_spill] sm:$0xff] }
 0x684   : > { %v6997_v26 = vpop.f32.mrf.mxu2 }
 0x685   : > { %v6855_v37 = vpop.f32.mrf.mxu1  ;;  %v15249_v56 = vadd.f32 %v6997_v26, %v6854_v43  ;;  %v6311_v33 = vpop.f32.mrf.mxu3  ;;  %v10860_v26 = vld [vmem:[#allocation8 + $0x1d0] sm:$0xff] }
 0x686   : > { %v6856_v5 = vadd.f32 %v6855_v37, %v15039_v47  ;;  %v15253_v17 = vadd.f32 %v6311_v33, %v14971_v59  ;;  %7989 = vmatpush.bf16.msra.mxu0 %v10860_v26 }
 0x687   : > { %v6764_v40 = vpop.f32.mrf.mxu0 }
 0x688   : > { %v15256_v54 = vadd.f32 %v6764_v40, %v15197_v51  ;;  %v17126_v51 = vld [vmem:[#allocation57_spill] sm:$0xff] }
 0x68a   : > { %6803 = vmatmul.bf16.gmra.mxu0 %v17125_v39  ;;  %7848 = vmatmul.bf16.vlgmr.msra.gmra.mxu3 %v9996_v35  ;;  %v10007_v35 = vld [vmem:[#allocation2 + $0x60] sm:$0xf] }
 0x68c   : > { %v6999_v61 = vpop.f32.mrf.mxu2 }
 0x68d   : > { %v6858_v18 = vpop.f32.mrf.mxu1  ;;  %v15259_v48 = vadd.f32 %v6999_v61, %v6856_v5  ;;  %v6314_v47 = vpop.f32.mrf.mxu3  ;;  %v10773_v5 = vld [vmem:[#allocation2 + $0x68] sm:$0xf0] }
 0x68e   : > { %v6859_v43 = vadd.f32 %v6858_v18, %v15046_v13  ;;  %v15263_v62 = vadd.f32 %v6314_v47, %v14979_v55  ;;  %v10859_v55 = vld [vmem:[#allocation8 + $0x1c8] sm:$0xff]  ;;  %v10008_v61 = vor.u32 %v10773_v5, %v10007_v35  ;;  %v10858_v18 = vld [vmem:[#allocation8 + $0x1c0] sm:$0xff]  ;;  %v17128_v47 = vld [vmem:[#allocation62_spill] sm:$0xff] }
 0x68f   : > { %v6766_v59 = vpop.f32.mrf.mxu0  ;;  %7990 = vmatpush.bf16.msra.mxu0 %v10859_v55  ;;  %v17129_v5 = vld [vmem:[#allocation100_spill] sm:$0xff]  ;;  %v10776_v55 = vld [vmem:[#allocation2 + $0x80] sm:$0xf0] }
 0x690   : > { %v15266_v46 = vadd.f32 %v6766_v59, %v15207_v30  ;;  %6897 = vmatmul.bf16.gmra.mxu1 %v17126_v51 }
 0x691   : > { %7041 = vmatmul.bf16.gmra.mxu2 %v17127_v11 }
 0x693   : > { %7991 = vmatpush.bf16.msra.mxu0 %v10858_v18 }
 0x694   : > { %v7002_v37 = vpop.f32.mrf.mxu2 }
 0x695   : > { %v6860_v22 = vpop.f32.mrf.mxu1  ;;  %v15270_v33 = vadd.f32 %v7002_v37, %v6859_v43  ;;  %v6316_v40 = vpop.f32.mrf.mxu3  ;;  %v10903_v37 = vld [vmem:[%s15951_s6 + $0x10] sm:$0xff] }
 0x696   : > { %v6861_v13 = vadd.f32 %v6860_v22, %v15056_v20  ;;  %v15274_v9 = vadd.f32 %v6316_v40, %v14992_v16  ;;  %8611 = vmatpush.bf16.msra.mxu2 %v10903_v37  ;;  %v17133_v37 = vld [vmem:[#allocation75_spill] sm:$0xff] }
 0x697   : > { %v6769_v30 = vpop.f32.mrf.mxu0 }
 0x698   : > { %v15277_v39 = vadd.f32 %v6769_v30, %v15221_v1  ;;  %v10868_v1 = vld [vmem:[#allocation8 + $0x210] sm:$0xff] }
 0x699   : > { %8133 = vmatpush.bf16.msra.mxu1 %v10868_v1 }
 0x69a   : > { %6808 = vmatmul.bf16.gmra.mxu0 %v17128_v47  ;;  %7853 = vmatmul.bf16.gmra.mxu3 %v10008_v61 }
 0x69c   : > { %v7004_v43 = vpop.f32.mrf.mxu2 }
 0x69d   : > { %v6863_v59 = vpop.f32.mrf.mxu1  ;;  %v15280_v20 = vadd.f32 %v7004_v43, %v6861_v13  ;;  %v6319_v16 = vpop.f32.mrf.mxu3  ;;  %v17130_v13 = vld [vmem:[#allocation71_spill] sm:$0xff] }
 0x69e   : > { %v6864_v51 = vadd.f32 %v6863_v59, %v15063_v19  ;;  %v15284_v11 = vadd.f32 %v6319_v16, %v15002_v60  ;;  %v17131_v59 = vld [vmem:[#allocation60_spill] sm:$0xff] }
 0x69f   : > { %v6771_v26 = vpop.f32.mrf.mxu0 }
 0x6a0   : > { %v15290_v22 = vadd.f32 %v6771_v26, %v15232_v52  ;;  %6902 = vmatmul.bf16.gmra.mxu1 %v17129_v5  ;;  %v10019_v52 = vld [vmem:[#allocation2 + $0x78] sm:$0xf] }
 0x6a1   : > { %7046 = vmatmul.bf16.gmra.mxu2 %v17130_v13  ;;  %v10020_v43 = vor.u32 %v10776_v55, %v10019_v52 }
 0x6a4   : > { %v7007_v19 = vpop.f32.mrf.mxu2 }
 0x6a5   : > { %v6865_v40 = vpop.f32.mrf.mxu1  ;;  %v15294_v60 = vadd.f32 %v7007_v19, %v6864_v51  ;;  %v6321_v35 = vpop.f32.mrf.mxu3  ;;  %v17135_v19 = vld [vmem:[#allocation107_spill] sm:$0xff] }
 0x6a6   : > { %v6866_v30 = vadd.f32 %v6865_v40, %v15076_v0  ;;  %v15298_v61 = vadd.f32 %v6321_v35, %v15016_v32  ;;  %v10779_v35 = vld [vmem:[#allocation2 + $0x98] sm:$0xf0] }
 0x6a7   : > { %v6774_v18 = vpop.f32.mrf.mxu0 }
 0x6a8   : > { %v15301_v47 = vadd.f32 %v6774_v18, %v15242_v10  ;;  %v17134_v10 = vld [vmem:[#allocation56_spill] sm:$0xff]  ;;  %v9997_v18 = vld [vmem:[#allocation2 + $0x54] sm:$0xf0] }
 0x6aa   : > { %6813 = vmatmul.bf16.gmra.mxu0 %v17131_v59  ;;  %7858 = vmatmul.bf16.gmra.mxu3 %v10020_v43  ;;  %v17137_v43 = vld [vmem:[#allocation118_spill] sm:$0xff] }
 0x6ac   : > { %v7009_v16 = vpop.f32.mrf.mxu2 }
 0x6ad   : > { %v6868_v26 = vpop.f32.mrf.mxu1  ;;  %v15304_v1 = vadd.f32 %v7009_v16, %v6866_v30  ;;  %v6324_v0 = vpop.f32.mrf.mxu3 }
 0x6ae   : > { %v6869_v51 = vadd.f32 %v6868_v26, %v15083_v31  ;;  %v15308_v5 = vadd.f32 %v6324_v0, %v17133_v37  ;;  %v10031_v26 = vld [vmem:[#allocation2 + $0x90] sm:$0xf] }
 0x6af   : > { %17132 = vst [vmem:[#allocation67_spill] sm:$0xff] %v15304_v1  ;;  %v6776_v32 = vpop.f32.mrf.mxu0  ;;  %v10032_v37 = vor.u32 %v10779_v35, %v10031_v26  ;;  %v17141_v35 = vld [vmem:[#allocation79_spill] sm:$0xff]  ;;  %v10782_v26 = vld [vmem:[#allocation2 + $0xb0] sm:$0xf0] }
 0x6b0   : > { %v15311_v13 = vadd.f32 %v6776_v32, %v15253_v17  ;;  %6907 = vmatmul.bf16.gmra.mxu1 %v17134_v10  ;;  %v10769_v17 = vld [vmem:[#allocation2 + $0x4c] sm:$0xf] }
 0x6b1   : > { %7051 = vmatmul.bf16.gmra.mxu2 %v17135_v19  ;;  %v10000_v32 = vor.u32 %v10769_v17, %v9997_v18  ;;  %v10009_v17 = vld [vmem:[#allocation2 + $0x6c] sm:$0xf0] }
 0x6b4   : > { %v7012_v40 = vpop.f32.mrf.mxu2 }
 0x6b5   : > { %v6870_v55 = vpop.f32.mrf.mxu1  ;;  %v15315_v30 = vadd.f32 %v7012_v40, %v6869_v51  ;;  %v6326_v52 = vpop.f32.mrf.mxu3 }
 0x6b6   : > { %v6871_v31 = vadd.f32 %v6870_v55, %v15093_v34  ;;  %v15319_v59 = vadd.f32 %v6326_v52, %v17137_v43  ;;  %v17139_v55 = vld [vmem:[#allocation77_spill] sm:$0xff] }
 0x6b7   : > { %17136 = vst [vmem:[#allocation102_spill] sm:$0xff] %v15315_v30  ;;  %v6779_v16 = vpop.f32.mrf.mxu0 }
 0x6b8   : > { %v15322_v0 = vadd.f32 %v6779_v16, %v15263_v62  ;;  %v17140_v62 = vld [vmem:[#allocation41_spill] sm:$0xff] }
 0x6ba   : > { %7863 = vmatmul.bf16.gmra.mxu3 %v10032_v37  ;;  %7992 = vmatmul.bf16.vlgmr.msra.gmra.mxu0 %v10000_v32  ;;  %v17143_v32 = vld [vmem:[#allocation113_spill] sm:$0xff] }
 0x6bc   : > { %v7014_v10 = vpop.f32.mrf.mxu2 }
 0x6bd   : > { %v6873_v19 = vpop.f32.mrf.mxu1  ;;  %v15324_v51 = vadd.f32 %v7014_v10, %v6871_v31  ;;  %v6329_v40 = vpop.f32.mrf.mxu3 }
 0x6be   : > { %v6874_v34 = vadd.f32 %v6873_v19, %v15100_v57  ;;  %v15328_v52 = vadd.f32 %v6329_v40, %v17139_v55  ;;  %v10043_v40 = vld [vmem:[#allocation2 + $0xa8] sm:$0xf] }
 0x6bf   : > { %17138 = vst [vmem:[#allocation125_spill] sm:$0xff] %v15324_v51  ;;  %v6781_v43 = vpop.f32.mrf.mxu0 }
 0x6c0   : > { %v15331_v30 = vadd.f32 %v6781_v43, %v15274_v9  ;;  %6912 = vmatmul.bf16.gmra.mxu1 %v17140_v62  ;;  %v10772_v9 = vld [vmem:[#allocation2 + $0x64] sm:$0xf]  ;;  %v10044_v43 = vor.u32 %v10782_v26, %v10043_v40  ;;  %v10785_v40 = vld [vmem:[#allocation2 + $0xc8] sm:$0xf0] }
 0x6c1   : > { %7056 = vmatmul.bf16.gmra.mxu2 %v17141_v35  ;;  %v10012_v62 = vor.u32 %v10772_v9, %v10009_v17  ;;  %v17147_v26 = vld [vmem:[#allocation42_spill] sm:$0xff]  ;;  %v10021_v9 = vld [vmem:[#allocation2 + $0x84] sm:$0xf0] }
 0x6c4   : > { %v7017_v18 = vpop.f32.mrf.mxu2 }
 0x6c5   : > { %v6875_v16 = vpop.f32.mrf.mxu1  ;;  %v15335_v31 = vadd.f32 %v7017_v18, %v6874_v34  ;;  %v6331_v37 = vpop.f32.mrf.mxu3 }
 0x6c6   : > { %v6876_v57 = vadd.f32 %v6875_v16, %v15110_v41  ;;  %v15339_v10 = vadd.f32 %v6331_v37, %v17143_v32  ;;  %v17145_v16 = vld [vmem:[#allocation114_spill] sm:$0xff] }
 0x6c7   : > { %17142 = vst [vmem:[#allocation85_spill] sm:$0xff] %v15335_v31  ;;  %v6784_v19 = vpop.f32.mrf.mxu0 }
 0x6c8   : > { %v15342_v55 = vadd.f32 %v6784_v19, %v15284_v11  ;;  %v17146_v11 = vld [vmem:[#allocation58_spill] sm:$0xff] }
 0x6ca   : > { %7868 = vmatmul.bf16.gmra.mxu3 %v10044_v43  ;;  %7997 = vmatmul.bf16.gmra.mxu0 %v10012_v62  ;;  %v10867_v43 = vld [vmem:[#allocation8 + $0x208] sm:$0xff]  ;;  %v10902_v62 = vld [vmem:[%s15951_s6 + $0x8] sm:$0xff] }
 0x6cb   : > { %8134 = vmatpush.bf16.msra.mxu1 %v10867_v43  ;;  %8612 = vmatpush.bf16.msra.mxu2 %v10902_v62 }
 0x6cc   : > { %v7019_v35 = vpop.f32.mrf.mxu2 }
 0x6cd   : > { %v6878_v51 = vpop.f32.mrf.mxu1  ;;  %v15344_v34 = vadd.f32 %v7019_v35, %v6876_v57  ;;  %v6334_v18 = vpop.f32.mrf.mxu3 }
 0x6ce   : > { %v6879_v41 = vadd.f32 %v6878_v51, %v15119_v6  ;;  %v15348_v37 = vadd.f32 %v6334_v18, %v17145_v16  ;;  %v10055_v16 = vld [vmem:[#allocation2 + $0xc0] sm:$0xf] }
 0x6cf   : > { %17144 = vst [vmem:[#allocation122_spill] sm:$0xff] %v15344_v34  ;;  %v6786_v32 = vpop.f32.mrf.mxu0 }
 0x6d0   : > { %v15351_v31 = vadd.f32 %v6786_v32, %v15298_v61  ;;  %6917 = vmatmul.bf16.gmra.mxu1 %v17146_v11  ;;  %v17149_v61 = vld [vmem:[#allocation30_spill] sm:$0xff]  ;;  %v10775_v32 = vld [vmem:[#allocation2 + $0x7c] sm:$0xf] }
 0x6d1   : > { %7061 = vmatmul.bf16.gmra.mxu2 %v17147_v26  ;;  %v10056_v26 = vor.u32 %v10785_v40, %v10055_v16  ;;  %v17151_v40 = vld [vmem:[#allocation81_spill] sm:$0xff]  ;;  %v10033_v16 = vld [vmem:[#allocation2 + $0x9c] sm:$0xf0] }
 0x6d4   : > { %v7022_v17 = vpop.f32.mrf.mxu2 }
 0x6d5   : > { %v6880_v19 = vpop.f32.mrf.mxu1  ;;  %v15355_v57 = vadd.f32 %v7022_v17, %v6879_v41  ;;  %v6336_v51 = vpop.f32.mrf.mxu3  ;;  %v10024_v41 = vor.u32 %v10775_v32, %v10021_v9  ;;  %v17152_v9 = vld [vmem:[#allocation87_spill] sm:$0xff] }
 0x6d6   : > { %v6881_v6 = vadd.f32 %v6880_v19, %v15130_v27  ;;  %v15362_v35 = vadd.f32 %v6336_v51, %v17149_v61  ;;  %v17150_v61 = vld [vmem:[#allocation121_spill] sm:$0xff] }
 0x6d7   : > { %17148 = vst [vmem:[#allocation43_spill] sm:$0xff] %v15355_v57  ;;  %v6789_v18 = vpop.f32.mrf.mxu0 }
 0x6d8   : > { %v15365_v11 = vadd.f32 %v6789_v18, %v15308_v5  ;;  %v10788_v18 = vld [vmem:[#allocation2 + $0xe0] sm:$0xf0] }
 0x6da   : > { %7873 = vmatmul.bf16.gmra.mxu3 %v10056_v26  ;;  %8002 = vmatmul.bf16.gmra.mxu0 %v10024_v41 }
 0x6dc   : > { %v7024_v27 = vpop.f32.mrf.mxu2 }
 0x6dd   : > { %v6883_v17 = vpop.f32.mrf.mxu1  ;;  %v15367_v19 = vadd.f32 %v7024_v27, %v6881_v6  ;;  %v6339_v51 = vpop.f32.mrf.mxu3  ;;  %v10067_v27 = vld [vmem:[#allocation2 + $0xd8] sm:$0xf] }
 0x6de   : > { %v6884_v57 = vadd.f32 %v6883_v17, %v15141_v28  ;;  %v15371_v34 = vadd.f32 %v6339_v51, %v17150_v61  ;;  %v10068_v17 = vor.u32 %v10788_v18, %v10067_v27  ;;  %v17155_v18 = vld [vmem:[#allocation48_spill] sm:$0xff]  ;;  %v10791_v27 = vld [vmem:[#allocation2 + $0xf8] sm:$0xf0] }
 0x6df   : > { %v6791_v1 = vpop.f32.mrf.mxu0 }
 0x6e0   : > { %v15374_v5 = vadd.f32 %v6791_v1, %v15319_v59  ;;  %6922 = vmatmul.bf16.gmra.mxu1 %v17151_v40  ;;  %v10778_v1 = vld [vmem:[#allocation2 + $0x94] sm:$0xf] }
 0x6e1   : > { %7066 = vmatmul.bf16.gmra.mxu2 %v17152_v9  ;;  %v10036_v51 = vor.u32 %v10778_v1, %v10033_v16  ;;  %v10045_v1 = vld [vmem:[#allocation2 + $0xb4] sm:$0xf0] }
 0x6e4   : > { %v7027_v43 = vpop.f32.mrf.mxu2 }
 0x6e5   : > { %v6885_v62 = vpop.f32.mrf.mxu1  ;;  %v15378_v6 = vadd.f32 %v7027_v43, %v6884_v57  ;;  %v6341_v32 = vpop.f32.mrf.mxu3  ;;  %v17153_v43 = vld [vmem:[#allocation24_spill] sm:$0xff] }
 0x6e6   : > { %v6886_v28 = vadd.f32 %v6885_v62, %v15152_v44  ;;  %v15382_v26 = vadd.f32 %v6341_v32, %v15090_v24 }
 0x6e7   : > { %v6794_v41 = vpop.f32.mrf.mxu0 }
 0x6e8   : > { %v15385_v59 = vadd.f32 %v6794_v41, %v15328_v52  ;;  %v17154_v52 = vld [vmem:[#allocation72_spill] sm:$0xff] }
 0x6ea   : > { %7878 = vmatmul.bf16.gmra.mxu3 %v10068_v17  ;;  %8007 = vmatmul.bf16.gmra.mxu0 %v10036_v51 }
 0x6ec   : > { %v7029_v61 = vpop.f32.mrf.mxu2 }
 0x6ed   : > { %v6888_v40 = vpop.f32.mrf.mxu1  ;;  %v15387_v57 = vadd.f32 %v7029_v61, %v6886_v28  ;;  %v6344_v9 = vpop.f32.mrf.mxu3 }
 0x6ee   : > { %v6889_v44 = vadd.f32 %v6888_v40, %v15162_v3  ;;  %v15391_v24 = vadd.f32 %v6344_v9, %v17153_v43  ;;  %v10079_v40 = vld [vmem:[#allocation2 + $0xf0] sm:$0xf] }
 0x6ef   : > { %v6796_v62 = vpop.f32.mrf.mxu0  ;;  %v10080_v43 = vor.u32 %v10791_v27, %v10079_v40  ;;  %v17158_v27 = vld [vmem:[#allocation110_spill] sm:$0xff]  ;;  %v10794_v40 = vld [vmem:[#allocation2 + $0x110] sm:$0xf0] }
 0x6f0   : > { %v15394_v32 = vadd.f32 %v6796_v62, %v15339_v10  ;;  %6927 = vmatmul.bf16.gmra.mxu1 %v17154_v52  ;;  %v10781_v10 = vld [vmem:[#allocation2 + $0xac] sm:$0xf] }
 0x6f1   : > { %7071 = vmatmul.bf16.gmra.mxu2 %v17155_v18  ;;  %v10048_v62 = vor.u32 %v10781_v10, %v10045_v1  ;;  %v10057_v10 = vld [vmem:[#allocation2 + $0xcc] sm:$0xf0] }
 0x6f4   : > { %v7032_v16 = vpop.f32.mrf.mxu2 }
 0x6f5   : > { %v6890_v41 = vpop.f32.mrf.mxu1  ;;  %v15398_v28 = vadd.f32 %v7032_v16, %v6889_v44  ;;  %v6346_v17 = vpop.f32.mrf.mxu3 }
 0x6f6   : > { %v6891_v3 = vadd.f32 %v6890_v41, %v15176_v15  ;;  %v15402_v51 = vadd.f32 %v6346_v17, %v15107_v36 }
 0x6f7   : > { %v6799_v61 = vpop.f32.mrf.mxu0 }
 0x6f8   : > { %v15405_v9 = vadd.f32 %v6799_v61, %v15348_v37  ;;  %v17157_v37 = vld [vmem:[#allocation89_spill] sm:$0xff] }
 0x6fa   : > { %7883 = vmatmul.bf16.gmra.mxu3 %v10080_v43  ;;  %8012 = vmatmul.bf16.gmra.mxu0 %v10048_v62 }
 0x6fc   : > { %v7034_v52 = vpop.f32.mrf.mxu2 }
 0x6fd   : > { %v6893_v18 = vpop.f32.mrf.mxu1  ;;  %v15407_v44 = vadd.f32 %v7034_v52, %v6891_v3  ;;  %v6349_v16 = vpop.f32.mrf.mxu3  ;;  %v10091_v52 = vld [vmem:[#allocation2 + $0x108] sm:$0xf] }
 0x6fe   : > { %v6894_v15 = vadd.f32 %v6893_v18, %v15186_v50  ;;  %v15411_v36 = vadd.f32 %v6349_v16, %v15114_v12  ;;  %v10092_v16 = vor.u32 %v10794_v40, %v10091_v52 }
 0x6ff   : > { %17156 = vst [vmem:[#allocation25_spill] sm:$0xff] %v15407_v44  ;;  %v6801_v41 = vpop.f32.mrf.mxu0 }
 0x700   : > { %v15414_v17 = vadd.f32 %v6801_v41, %v15362_v35  ;;  %6932 = vmatmul.bf16.gmra.mxu1 %v17157_v37  ;;  %v10784_v35 = vld [vmem:[#allocation2 + $0xc4] sm:$0xf]  ;;  %v10866_v37 = vld [vmem:[#allocation8 + $0x200] sm:$0xff] }
 0x701   : > { %7076 = vmatmul.bf16.gmra.mxu2 %v17158_v27  ;;  %v10060_v41 = vor.u32 %v10784_v35, %v10057_v10  ;;  %8135 = vmatpush.bf16.msra.mxu1 %v10866_v37  ;;  %v17161_v10 = vld [vmem:[#allocation73_spill] sm:$0xff]  ;;  %v10797_v35 = vld [vmem:[#allocation2 + $0x128] sm:$0xf0] }
 0x704   : > { %v7037_v1 = vpop.f32.mrf.mxu2 }
 0x705   : > { %v6895_v61 = vpop.f32.mrf.mxu1  ;;  %v15418_v3 = vadd.f32 %v7037_v1, %v6894_v15  ;;  %v6351_v43 = vpop.f32.mrf.mxu3  ;;  %v10901_v15 = vld [vmem:[%s15951_s6] sm:$0xff] }
 0x706   : > { %v6896_v50 = vadd.f32 %v6895_v61, %v15199_v2  ;;  %v15422_v12 = vadd.f32 %v6351_v43, %v15126_v38  ;;  %8613 = vmatpush.bf16.msra.mxu2 %v10901_v15  ;;  %v17162_v43 = vld [vmem:[#allocation80_spill] sm:$0xff]  ;;  %v10103_v15 = vld [vmem:[#allocation2 + $0x120] sm:$0xf] }
 0x707   : > { %17159 = vst [vmem:[#allocation27_spill] sm:$0xff] %v15418_v3  ;;  %v6804_v62 = vpop.f32.mrf.mxu0  ;;  %v17170_v3 = vld [vmem:[#allocation105_spill] sm:$0xff] }
 0x708   : > { %v15425_v18 = vadd.f32 %v6804_v62, %v15371_v34 }
 0x70a   : > { %7888 = vmatmul.bf16.gmra.mxu3 %v10092_v16  ;;  %8017 = vmatmul.bf16.gmra.mxu0 %v10060_v41  ;;  %v10069_v16 = vld [vmem:[#allocation2 + $0xe4] sm:$0xf0] }
 0x70c   : > { %v7039_v2 = vpop.f32.mrf.mxu2 }
 0x70d   : > { %v6898_v38 = vpop.f32.mrf.mxu1  ;;  %v15430_v27 = vadd.f32 %v7039_v2, %v6896_v50  ;;  %v15433_v61 = vpop.f32.mrf.mxu3  ;;  %v10787_v2 = vld [vmem:[#allocation2 + $0xdc] sm:$0xf] }
 0x70e   : > { %v6899_v1 = vadd.f32 %v6898_v38, %v15209_v4  ;;  %v10104_v38 = vor.u32 %v10797_v35, %v10103_v15  ;;  %v10081_v15 = vld [vmem:[#allocation2 + $0xfc] sm:$0xf0] }
 0x70f   : > { %17160 = vst [vmem:[#allocation26_spill] sm:$0xff] %v15430_v27  ;;  %v6806_v34 = vpop.f32.mrf.mxu0 }
 0x710   : > { %v15436_v40 = vadd.f32 %v6806_v34, %v15382_v26  ;;  %6937 = vmatmul.bf16.gmra.mxu1 %v17161_v10  ;;  %v10072_v34 = vor.u32 %v10787_v2, %v10069_v16 }
 0x711   : > { %7081 = vmatmul.bf16.gmra.mxu2 %v17162_v43 }
 0x714   : > { %v7042_v62 = vpop.f32.mrf.mxu2 }
 0x715   : > { %v6900_v52 = vpop.f32.mrf.mxu1  ;;  %v15440_v41 = vadd.f32 %v7042_v62, %v6899_v1  ;;  %v15443_v37 = vpop.f32.mrf.mxu3 }
 0x716   : > { %v6901_v50 = vadd.f32 %v6900_v52, %v15224_v58 }
 0x717   : > { %17163 = vst [vmem:[#allocation83_spill] sm:$0xff] %v15440_v41  ;;  %v6809_v4 = vpop.f32.mrf.mxu0  ;;  %v17165_v41 = vld [vmem:[#allocation54_spill] sm:$0xff] }
 0x718   : > { %v15446_v26 = vadd.f32 %v6809_v4, %v15391_v24  ;;  %v17166_v24 = vld [vmem:[#allocation61_spill] sm:$0xff]  ;;  %v10800_v4 = vld [vmem:[#allocation2 + $0x140] sm:$0xf0] }
 0x71a   : > { %7893 = vmatmul.bf16.gmra.mxu3 %v10104_v38  ;;  %8022 = vmatmul.bf16.gmra.mxu0 %v10072_v34  ;;  %v10115_v34 = vld [vmem:[#allocation2 + $0x138] sm:$0xf] }
 0x71c   : > { %v7044_v10 = vpop.f32.mrf.mxu2 }
 0x71d   : > { %v6903_v43 = vpop.f32.mrf.mxu1  ;;  %v15448_v27 = vadd.f32 %v7044_v10, %v6901_v50  ;;  %v15451_v62 = vpop.f32.mrf.mxu3  ;;  %v10790_v10 = vld [vmem:[#allocation2 + $0xf4] sm:$0xf] }
 0x71e   : > { %v6904_v1 = vadd.f32 %v6903_v43, %v15235_v25  ;;  %v10116_v43 = vor.u32 %v10800_v4, %v10115_v34 }
 0x71f   : > { %17164 = vst [vmem:[#allocation49_spill] sm:$0xff] %v15448_v27  ;;  %v6811_v58 = vpop.f32.mrf.mxu0 }
 0x720   : > { %v15454_v52 = vadd.f32 %v6811_v58, %v15402_v51  ;;  %6942 = vmatmul.bf16.gmra.mxu1 %v17165_v41  ;;  %v10084_v41 = vor.u32 %v10790_v10, %v10081_v15  ;;  %v10803_v15 = vld [vmem:[#allocation2 + $0x158] sm:$0xf0] }
 0x721   : > { %7086 = vmatmul.bf16.gmra.mxu2 %v17166_v24 }
 0x724   : > { %v7047_v35 = vpop.f32.mrf.mxu2 }
 0x725   : > { %v6905_v16 = vpop.f32.mrf.mxu1  ;;  %v15458_v2 = vadd.f32 %v7047_v35, %v6904_v1  ;;  %v15461_v38 = vpop.f32.mrf.mxu3 }
 0x726   : > { %v6906_v50 = vadd.f32 %v6905_v16, %v15245_v14 }
 0x727   : > { %17167 = vst [vmem:[#allocation78_spill] sm:$0xff] %v15458_v2  ;;  %v6814_v25 = vpop.f32.mrf.mxu0  ;;  %v17169_v2 = vld [vmem:[#allocation112_spill] sm:$0xff] }
 0x728   : > { %v15464_v51 = vadd.f32 %v6814_v25, %v15411_v36  ;;  %v10093_v25 = vld [vmem:[#allocation2 + $0x114] sm:$0xf0] }
 0x72a   : > { %7898 = vmatmul.bf16.gmra.mxu3 %v10116_v43  ;;  %8027 = vmatmul.bf16.gmra.mxu0 %v10084_v41  ;;  %v10127_v43 = vld [vmem:[#allocation2 + $0x150] sm:$0xf]  ;;  %v10793_v41 = vld [vmem:[#allocation2 + $0x10c] sm:$0xf] }
 0x72c   : > { %v7049_v58 = vpop.f32.mrf.mxu2 }
 0x72d   : > { %v6908_v24 = vpop.f32.mrf.mxu1  ;;  %v15466_v27 = vadd.f32 %v7049_v58, %v6906_v50  ;;  %v7859_v35 = vpop.f32.mrf.mxu3  ;;  %v10128_v58 = vor.u32 %v10803_v15, %v10127_v43  ;;  %v10105_v43 = vld [vmem:[#allocation2 + $0x12c] sm:$0xf0] }
 0x72e   : > { %v6909_v1 = vadd.f32 %v6908_v24, %v15256_v54 }
 0x72f   : > { %17168 = vst [vmem:[#allocation50_spill] sm:$0xff] %v15466_v27  ;;  %v6816_v14 = vpop.f32.mrf.mxu0 }
 0x730   : > { %v15470_v16 = vadd.f32 %v6816_v14, %v15422_v12  ;;  %6947 = vmatmul.bf16.gmra.mxu1 %v17169_v2  ;;  %v10096_v2 = vor.u32 %v10793_v41, %v10093_v25 }
 0x731   : > { %7091 = vmatmul.bf16.gmra.mxu2 %v17170_v3 }
 0x734   : > { %v7052_v36 = vpop.f32.mrf.mxu2 }
 0x735   : > { %v6910_v4 = vpop.f32.mrf.mxu1  ;;  %v15474_v34 = vadd.f32 %v7052_v36, %v6909_v1  ;;  %v15477_v10 = vpop.f32.mrf.mxu3 }
 0x736   : > { %v6911_v50 = vadd.f32 %v6910_v4, %v15266_v46  ;;  %v17173_v4 = vld [vmem:[#allocation69_spill] sm:$0xff] }
 0x737   : > { %17171 = vst [vmem:[#allocation28_spill] sm:$0xff] %v15474_v34  ;;  %v7993_v54 = vpop.f32.mrf.mxu0 }
 0x738   : > { %v15480_v12 = vadd.f32 %v7993_v54, %v15433_v61  ;;  %v17174_v61 = vld [vmem:[#allocation117_spill] sm:$0xff]  ;;  %v10806_v54 = vld [vmem:[#allocation2 + $0x170] sm:$0xf0] }
 0x73a   : > { %7903 = vmatmul.bf16.gmra.mxu3 %v10128_v58  ;;  %8032 = vmatmul.bf16.gmra.mxu0 %v10096_v2  ;;  %v10139_v2 = vld [vmem:[#allocation2 + $0x168] sm:$0xf] }
 0x73c   : > { %v7054_v3 = vpop.f32.mrf.mxu2 }
 0x73d   : > { %v6913_v24 = vpop.f32.mrf.mxu1  ;;  %v15482_v14 = vadd.f32 %v7054_v3, %v6911_v50  ;;  %v15485_v36 = vpop.f32.mrf.mxu3  ;;  %v10796_v3 = vld [vmem:[#allocation2 + $0x124] sm:$0xf] }
 0x73e   : > { %v6914_v1 = vadd.f32 %v6913_v24, %v15277_v39 }
 0x73f   : > { %17172 = vst [vmem:[#allocation123_spill] sm:$0xff] %v15482_v14  ;;  %v7995_v46 = vpop.f32.mrf.mxu0 }
 0x740   : > { %6952 = vmatmul.bf16.gmra.mxu1 %v17173_v4  ;;  %v15489_v34 = vadd.f32 %v7995_v46, %v15443_v37  ;;  %v10140_v37 = vor.u32 %v10806_v54, %v10139_v2  ;;  %v10108_v46 = vor.u32 %v10796_v3, %v10105_v43  ;;  %v10117_v2 = vld [vmem:[#allocation2 + $0x144] sm:$0xf0] }
 0x741   : > { %7096 = vmatmul.bf16.gmra.mxu2 %v17174_v61 }
 0x744   : > { %v7057_v15 = vpop.f32.mrf.mxu2 }
 0x745   : > { %v6915_v25 = vpop.f32.mrf.mxu1  ;;  %v15492_v41 = vadd.f32 %v7057_v15, %v6914_v1  ;;  %v15495_v58 = vpop.f32.mrf.mxu3 }
 0x746   : > { %v6916_v50 = vadd.f32 %v6915_v25, %v15290_v22  ;;  %v17177_v25 = vld [vmem:[#allocation90_spill] sm:$0xff] }
 0x747   : > { %17175 = vst [vmem:[#allocation45_spill] sm:$0xff] %v15492_v41  ;;  %v7998_v39 = vpop.f32.mrf.mxu0 }
 0x748   : > { %v15498_v24 = vadd.f32 %v7998_v39, %v15451_v62  ;;  %v17178_v62 = vld [vmem:[#allocation95_spill] sm:$0xff] }
 0x749   : > { %v10809_v39 = vld [vmem:[#allocation2 + $0x188] sm:$0xf0] }
 0x74a   : > { %7908 = vmatmul.bf16.gmra.mxu3 %v10140_v37  ;;  %8037 = vmatmul.bf16.gmra.mxu0 %v10108_v46  ;;  %v10151_v37 = vld [vmem:[#allocation2 + $0x180] sm:$0xf]  ;;  %v10799_v46 = vld [vmem:[#allocation2 + $0x13c] sm:$0xf] }
 0x74c   : > { %v7059_v4 = vpop.f32.mrf.mxu2 }
 0x74d   : > { %v6918_v61 = vpop.f32.mrf.mxu1  ;;  %v15500_v14 = vadd.f32 %v7059_v4, %v6916_v50  ;;  %v15503_v22 = vpop.f32.mrf.mxu3 }
 0x74e   : > { %v6919_v1 = vadd.f32 %v6918_v61, %v15301_v47  ;;  %v10152_v61 = vor.u32 %v10809_v39, %v10151_v37 }
 0x74f   : > { %17176 = vst [vmem:[#allocation63_spill] sm:$0xff] %v15500_v14  ;;  %v8000_v15 = vpop.f32.mrf.mxu0  ;;  %v10874_v14 = vld [vmem:[%s11495_s2 + $0x30] sm:$0xf0] }
 0x750   : > { %6957 = vmatmul.bf16.gmra.mxu1 %v17177_v25  ;;  %v15507_v41 = vadd.f32 %v8000_v15, %v15461_v38  ;;  %v10120_v38 = vor.u32 %v10799_v46, %v10117_v2  ;;  %v10771_v25 = vld [vmem:[#allocation2 + $0x58] sm:$0xf0]  ;;  %v10812_v46 = vld [vmem:[#allocation2 + $0x1a0] sm:$0xf0] }
 0x751   : > { %7101 = vmatmul.bf16.gmra.mxu2 %v17178_v62  ;;  %v10415_v62 = vld [vmem:[%s11495_s2 + $0x28] sm:$0xf] }
 0x754   : > { %v7062_v54 = vpop.f32.mrf.mxu2 }
 0x755   : > { %v6920_v43 = vpop.f32.mrf.mxu1  ;;  %v15510_v50 = vadd.f32 %v7062_v54, %v6919_v1  ;;  %v15515_v15 = vpop.f32.mrf.mxu3  ;;  %v10003_v1 = vld [vmem:[#allocation2 + $0x50] sm:$0xf] }
 0x756   : > { %v6921_v47 = vadd.f32 %v6920_v43, %v15311_v13  ;;  %v10004_v43 = vor.u32 %v10771_v25, %v10003_v1  ;;  %v10774_v25 = vld [vmem:[#allocation2 + $0x70] sm:$0xf0]  ;;  %v10875_v1 = vld [vmem:[%s11495_s2 + $0x48] sm:$0xf0] }
 0x757   : > { %17179 = vst [vmem:[#allocation127_spill] sm:$0xff] %v15510_v50  ;;  %v8003_v3 = vpop.f32.mrf.mxu0  ;;  %v10416_v50 = vor.u32 %v10874_v14, %v10415_v62  ;;  %v10163_v14 = vld [vmem:[#allocation2 + $0x198] sm:$0xf]  ;;  %v10419_v62 = vld [vmem:[%s11495_s2 + $0x40] sm:$0xf] }
 0x758   : > { %v15513_v4 = vadd.f32 %v8003_v3, %v7859_v35 }
 0x75a   : > { %7913 = vmatmul.bf16.gmra.mxu3 %v10152_v61  ;;  %8042 = vmatmul.bf16.gmra.mxu0 %v10120_v38  ;;  %v10129_v61 = vld [vmem:[#allocation2 + $0x15c] sm:$0xf0]  ;;  %v10164_v38 = vor.u32 %v10812_v46, %v10163_v14  ;;  %v10815_v14 = vld [vmem:[#allocation2 + $0x1b8] sm:$0xf0] }
 0x75c   : > { %v7064_v27 = vpop.f32.mrf.mxu2 }
 0x75d   : > { %v6923_v44 = vpop.f32.mrf.mxu1  ;;  %v15519_v54 = vadd.f32 %v7064_v27, %v6921_v47  ;;  %v15525_v2 = vpop.f32.mrf.mxu3  ;;  %v10802_v47 = vld [vmem:[#allocation2 + $0x154] sm:$0xf] }
 0x75e   : > { %v6924_v13 = vadd.f32 %v6923_v44, %v15322_v0 }
 0x75f   : > { %17180 = vst [vmem:[#allocation33_spill] sm:$0xff] %v15519_v54  ;;  %v8005_v35 = vpop.f32.mrf.mxu0  ;;  %v10015_v54 = vld [vmem:[#allocation2 + $0x68] sm:$0xf] }
 0x760   : > { %v15523_v39 = vadd.f32 %v8005_v35, %v15477_v10  ;;  %8136 = vmatmul.bf16.vlgmr.msra.gmra.mxu1 %v10004_v43 }
 0x761   : > { %8614 = vmatmul.bf16.vlgmr.msra.gmra.mxu2 %v10416_v50  ;;  %v10132_v50 = vor.u32 %v10802_v47, %v10129_v61  ;;  %v10141_v47 = vld [vmem:[#allocation2 + $0x174] sm:$0xf0] }
 0x764   : > { %v7067_v3 = vpop.f32.mrf.mxu2 }
 0x765   : > { %v6925_v37 = vpop.f32.mrf.mxu1  ;;  %v15527_v27 = vadd.f32 %v7067_v3, %v6924_v13  ;;  %v15535_v13 = vpop.f32.mrf.mxu3 }
 0x766   : > { %v6926_v0 = vadd.f32 %v6925_v37, %v15331_v30  ;;  %v10016_v37 = vor.u32 %v10774_v25, %v10015_v54  ;;  %v10805_v54 = vld [vmem:[#allocation2 + $0x16c] sm:$0xf] }
 0x767   : > { %17181 = vst [vmem:[#allocation88_spill] sm:$0xff] %v15527_v27  ;;  %v8008_v44 = vpop.f32.mrf.mxu0  ;;  %v10420_v27 = vor.u32 %v10875_v1, %v10419_v62  ;;  %v10144_v1 = vor.u32 %v10805_v54, %v10141_v47  ;;  %v10153_v54 = vld [vmem:[#allocation2 + $0x18c] sm:$0xf0] }
 0x768   : > { %v15531_v10 = vadd.f32 %v8008_v44, %v15485_v36 }
 0x76a   : > { %7918 = vmatmul.bf16.gmra.mxu3 %v10164_v38  ;;  %8047 = vmatmul.bf16.gmra.mxu0 %v10132_v50 }
 0x76c   : > { %v7069_v43 = vpop.f32.mrf.mxu2 }
 0x76d   : > { %v6928_v35 = vpop.f32.mrf.mxu1  ;;  %v15537_v3 = vadd.f32 %v7069_v43, %v6926_v0  ;;  %v7879_v25 = vpop.f32.mrf.mxu3  ;;  %v10423_v43 = vld [vmem:[%s11495_s2 + $0x58] sm:$0xf] }
 0x76e   : > { %v6929_v30 = vadd.f32 %v6928_v35, %v15342_v55  ;;  %v10175_v55 = vld [vmem:[#allocation2 + $0x1b0] sm:$0xf]  ;;  %v10876_v35 = vld [vmem:[%s11495_s2 + $0x60] sm:$0xf0] }
 0x76f   : > { %17182 = vst [vmem:[#allocation65_spill] sm:$0xff] %v15537_v3  ;;  %v8010_v36 = vpop.f32.mrf.mxu0 }
 0x770   : > { %v15541_v46 = vadd.f32 %v8010_v36, %v15495_v58  ;;  %8141 = vmatmul.bf16.gmra.mxu1 %v10016_v37  ;;  %v10176_v58 = vor.u32 %v10815_v14, %v10175_v55  ;;  %v10818_v55 = vld [vmem:[#allocation2 + $0x1d0] sm:$0xf0] }
 0x771   : > { %8619 = vmatmul.bf16.gmra.mxu2 %v10420_v27  ;;  %v10777_v27 = vld [vmem:[#allocation2 + $0x88] sm:$0xf0] }
 0x774   : > { %v7072_v61 = vpop.f32.mrf.mxu2 }
 0x775   : > { %v6930_v44 = vpop.f32.mrf.mxu1  ;;  %v15543_v38 = vadd.f32 %v7072_v61, %v6929_v30  ;;  %v10027_v30 = vld [vmem:[#allocation2 + $0x80] sm:$0xf]  ;;  %v7881_v14 = vpop.f32.mrf.mxu3 }
 0x776   : > { %v6931_v0 = vadd.f32 %v6930_v44, %v15351_v31  ;;  %v10028_v44 = vor.u32 %v10777_v27, %v10027_v30  ;;  %v10808_v27 = vld [vmem:[#allocation2 + $0x184] sm:$0xf] }
 0x777   : > { %17183 = vst [vmem:[#allocation29_spill] sm:$0xff] %v15543_v38  ;;  %v8013_v50 = vpop.f32.mrf.mxu0  ;;  %v10424_v38 = vor.u32 %v10876_v35, %v10423_v43  ;;  %v10427_v35 = vld [vmem:[%s11495_s2 + $0x70] sm:$0xf] }
 0x778   : > { %v15547_v62 = vadd.f32 %v8013_v50, %v15503_v22 }
 0x77a   : > { %7923 = vmatmul.bf16.gmra.mxu3 %v10176_v58  ;;  %8052 = vmatmul.bf16.gmra.mxu0 %v10144_v1  ;;  %v10187_v1 = vld [vmem:[#allocation2 + $0x1c8] sm:$0xf] }
 0x77c   : > { %v7074_v37 = vpop.f32.mrf.mxu2 }
 0x77d   : > { %v6933_v36 = vpop.f32.mrf.mxu1  ;;  %v15551_v61 = vadd.f32 %v7074_v37, %v6931_v0  ;;  %v10877_v37 = vld [vmem:[%s11495_s2 + $0x78] sm:$0xf0] }
 0x77e   : > { %v6934_v31 = vadd.f32 %v6933_v36, %v15365_v11  ;;  %v7884_v36 = vpop.f32.mrf.mxu3 }
 0x77f   : > { %17184 = vst [vmem:[#allocation101_spill] sm:$0xff] %v15551_v61  ;;  %v8015_v3 = vpop.f32.mrf.mxu0 }
 0x780   : > { %v15555_v22 = vadd.f32 %v8015_v3, %v15515_v15  ;;  %8146 = vmatmul.bf16.gmra.mxu1 %v10028_v44  ;;  %v10188_v15 = vor.u32 %v10818_v55, %v10187_v1  ;;  %v10156_v3 = vor.u32 %v10808_v27, %v10153_v54  ;;  %v10165_v1 = vld [vmem:[#allocation2 + $0x1a4] sm:$0xf0] }
 0x781   : > { %8624 = vmatmul.bf16.gmra.mxu2 %v10424_v38  ;;  %v10780_v38 = vld [vmem:[#allocation2 + $0xa0] sm:$0xf0] }
 0x784   : > { %v7077_v47 = vpop.f32.mrf.mxu2 }
 0x785   : > { %v6935_v50 = vpop.f32.mrf.mxu1  ;;  %v15557_v58 = vadd.f32 %v7077_v47, %v6934_v31  ;;  %v10039_v31 = vld [vmem:[#allocation2 + $0x98] sm:$0xf] }
 0x786   : > { %v6936_v0 = vadd.f32 %v6935_v50, %v15374_v5  ;;  %v10040_v50 = vor.u32 %v10780_v38, %v10039_v31  ;;  %v7886_v27 = vpop.f32.mrf.mxu3  ;;  %v10811_v38 = vld [vmem:[#allocation2 + $0x19c] sm:$0xf] }
 0x787   : > { %17185 = vst [vmem:[#allocation51_spill] sm:$0xff] %v15557_v58  ;;  %v8018_v11 = vpop.f32.mrf.mxu0  ;;  %v10428_v58 = vor.u32 %v10877_v37, %v10427_v35  ;;  %v10431_v37 = vld [vmem:[%s11495_s2 + $0x88] sm:$0xf] }
 0x788   : > { %v15561_v43 = vadd.f32 %v8018_v11, %v15525_v2  ;;  %v10821_v11 = vld [vmem:[#allocation2 + $0x1e8] sm:$0xf0] }
 0x78a   : > { %7928 = vmatmul.bf16.gmra.mxu3 %v10188_v15  ;;  %8057 = vmatmul.bf16.gmra.mxu0 %v10156_v3  ;;  %v10199_v3 = vld [vmem:[#allocation2 + $0x1e0] sm:$0xf] }
 0x78c   : > { %v7079_v30 = vpop.f32.mrf.mxu2 }
 0x78d   : > { %v6938_v44 = vpop.f32.mrf.mxu1  ;;  %v15565_v47 = vadd.f32 %v7079_v30, %v6936_v0  ;;  %v10878_v30 = vld [vmem:[%s11495_s2 + $0x90] sm:$0xf0] }
 0x78e   : > { %v6939_v5 = vadd.f32 %v6938_v44, %v15385_v59 }
 0x78f   : > { %17186 = vst [vmem:[#allocation31_spill] sm:$0xff] %v15565_v47  ;;  %v8020_v61 = vpop.f32.mrf.mxu0 }
 0x790   : > { %v15569_v2 = vadd.f32 %v8020_v61, %v15535_v13  ;;  %8151 = vmatmul.bf16.gmra.mxu1 %v10040_v50  ;;  %v10200_v13 = vor.u32 %v10821_v11, %v10199_v3  ;;  %v10168_v61 = vor.u32 %v10811_v38, %v10165_v1  ;;  %v10051_v50 = vld [vmem:[#allocation2 + $0xb0] sm:$0xf]  ;;  %v10177_v3 = vld [vmem:[#allocation2 + $0x1bc] sm:$0xf0] }
 0x791   : > { %8629 = vmatmul.bf16.gmra.mxu2 %v10428_v58  ;;  %v10783_v58 = vld [vmem:[#allocation2 + $0xb8] sm:$0xf0] }
 0x794   : > { %v7082_v55 = vpop.f32.mrf.mxu2 }
 0x795   : > { %v6940_v54 = vpop.f32.mrf.mxu1  ;;  %v15571_v15 = vadd.f32 %v7082_v55, %v6939_v5  ;;  %v10432_v55 = vor.u32 %v10878_v30, %v10431_v37 }
 0x796   : > { %v6941_v0 = vadd.f32 %v6940_v54, %v15394_v32  ;;  %v10052_v32 = vor.u32 %v10783_v58, %v10051_v50  ;;  %v10879_v50 = vld [vmem:[%s11495_s2 + $0xa8] sm:$0xf0] }
 0x797   : > { %17187 = vst [vmem:[#allocation37_spill] sm:$0xff] %v15571_v15  ;;  %v8023_v59 = vpop.f32.mrf.mxu0  ;;  %v7889_v15 = vpop.f32.mrf.mxu3 }
 0x798   : > { %v15574_v35 = vadd.f32 %v8023_v59, %v7879_v25  ;;  %v10824_v59 = vld [vmem:[#allocation2 + $0x200] sm:$0xf0] }
 0x79a   : > { %7933 = vmatmul.bf16.gmra.mxu3 %v10200_v13  ;;  %8062 = vmatmul.bf16.gmra.mxu0 %v10168_v61  ;;  %v10814_v61 = vld [vmem:[#allocation2 + $0x1b4] sm:$0xf] }
 0x79c   : > { %v7084_v44 = vpop.f32.mrf.mxu2 }
 0x79d   : > { %v6943_v31 = vpop.f32.mrf.mxu1  ;;  %v15578_v47 = vadd.f32 %v7084_v44, %v6941_v0  ;;  %v10786_v44 = vld [vmem:[#allocation2 + $0xd0] sm:$0xf0] }
 0x79e   : > { %v6944_v5 = vadd.f32 %v6943_v31, %v15405_v9  ;;  %v10211_v9 = vld [vmem:[#allocation2 + $0x1f8] sm:$0xf]  ;;  %v10435_v31 = vld [vmem:[%s11495_s2 + $0xa0] sm:$0xf] }
 0x79f   : > { %v8025_v54 = vpop.f32.mrf.mxu0  ;;  %v10212_v37 = vor.u32 %v10824_v59, %v10211_v9  ;;  %v7891_v30 = vpop.f32.mrf.mxu3  ;;  %v10827_v9 = vld [vmem:[#allocation2 + $0x218] sm:$0xf0] }
 0x7a0   : > { %v15581_v25 = vadd.f32 %v8025_v54, %v7881_v14  ;;  %8156 = vmatmul.bf16.gmra.mxu1 %v10052_v32  ;;  %v10180_v14 = vor.u32 %v10814_v61, %v10177_v3  ;;  %v10063_v54 = vld [vmem:[#allocation2 + $0xc8] sm:$0xf]  ;;  %v10189_v61 = vld [vmem:[#allocation2 + $0x1d4] sm:$0xf0] }
 0x7a1   : > { %8634 = vmatmul.bf16.gmra.mxu2 %v10432_v55 }
 0x7a4   : > { %v7087_v11 = vpop.f32.mrf.mxu2 }
 0x7a5   : > { %v6945_v1 = vpop.f32.mrf.mxu1  ;;  %v15583_v38 = vadd.f32 %v7087_v11, %v6944_v5  ;;  %v10064_v11 = vor.u32 %v10786_v44, %v10063_v54  ;;  %v10817_v44 = vld [vmem:[#allocation2 + $0x1cc] sm:$0xf] }
 0x7a6   : > { %v6946_v0 = vadd.f32 %v6945_v1, %v15414_v17  ;;  %v10436_v1 = vor.u32 %v10879_v50, %v10435_v31  ;;  %v10789_v50 = vld [vmem:[#allocation2 + $0xe8] sm:$0xf0] }
 0x7a7   : > { %17188 = vst [vmem:[#allocation93_spill] sm:$0xff] %v15583_v38  ;;  %v8028_v13 = vpop.f32.mrf.mxu0  ;;  %v7894_v59 = vpop.f32.mrf.mxu3 }
 0x7a8   : > { %v15586_v58 = vadd.f32 %v8028_v13, %v7884_v36 }
 0x7aa   : > { %7938 = vmatmul.bf16.gmra.mxu3 %v10212_v37  ;;  %8067 = vmatmul.bf16.gmra.mxu0 %v10180_v14 }
 0x7ac   : > { %v7089_v32 = vpop.f32.mrf.mxu2 }
 0x7ad   : > { %v6948_v55 = vpop.f32.mrf.mxu1  ;;  %v15590_v5 = vadd.f32 %v7089_v32, %v6946_v0  ;;  %v10439_v32 = vld [vmem:[%s11495_s2 + $0xb8] sm:$0xf] }
 0x7ae   : > { %v6949_v17 = vadd.f32 %v6948_v55, %v15425_v18  ;;  %v10223_v18 = vld [vmem:[#allocation2 + $0x210] sm:$0xf]  ;;  %v10880_v55 = vld [vmem:[%s11495_s2 + $0xc0] sm:$0xf0] }
 0x7af   : > { %17189 = vst [vmem:[#allocation116_spill] sm:$0xff] %v15590_v5  ;;  %v8030_v38 = vpop.f32.mrf.mxu0  ;;  %v7896_v5 = vpop.f32.mrf.mxu3 }
 0x7b0   : > { %v15593_v36 = vadd.f32 %v8030_v38, %v7886_v27  ;;  %8161 = vmatmul.bf16.gmra.mxu1 %v10064_v11  ;;  %v10224_v27 = vor.u32 %v10827_v9, %v10223_v18  ;;  %v10192_v38 = vor.u32 %v10817_v44, %v10189_v61  ;;  %v10201_v18 = vld [vmem:[#allocation2 + $0x1ec] sm:$0xf0] }
 0x7b1   : > { %8639 = vmatmul.bf16.gmra.mxu2 %v10436_v1  ;;  %v10075_v1 = vld [vmem:[#allocation2 + $0xe0] sm:$0xf] }
 0x7b4   : > { %v7092_v3 = vpop.f32.mrf.mxu2 }
 0x7b5   : > { %v6950_v13 = vpop.f32.mrf.mxu1  ;;  %v15595_v37 = vadd.f32 %v7092_v3, %v6949_v17  ;;  %v10076_v3 = vor.u32 %v10789_v50, %v10075_v1 }
 0x7b6   : > { %v6951_v0 = vadd.f32 %v6950_v13, %v15436_v40  ;;  %v10440_v13 = vor.u32 %v10880_v55, %v10439_v32  ;;  %v10792_v55 = vld [vmem:[#allocation2 + $0x100] sm:$0xf0] }
 0x7b7   : > { %17190 = vst [vmem:[#allocation108_spill] sm:$0xff] %v15595_v37  ;;  %v8033_v14 = vpop.f32.mrf.mxu0  ;;  %v7899_v50 = vpop.f32.mrf.mxu3 }
 0x7b8   : > { %v15598_v31 = vadd.f32 %v8033_v14, %v7889_v15  ;;  %v10830_v14 = vld [vmem:[#allocation2 + $0x230] sm:$0xf0] }
 0x7ba   : > { %7943 = vmatmul.bf16.gmra.mxu3 %v10224_v27  ;;  %8072 = vmatmul.bf16.gmra.mxu0 %v10192_v38  ;;  %v10235_v38 = vld [vmem:[#allocation2 + $0x228] sm:$0xf] }
 0x7bc   : > { %v7094_v54 = vpop.f32.mrf.mxu2 }
 0x7bd   : > { %v6953_v11 = vpop.f32.mrf.mxu1  ;;  %v15602_v17 = vadd.f32 %v7094_v54, %v6951_v0  ;;  %v10443_v54 = vld [vmem:[%s11495_s2 + $0xd0] sm:$0xf] }
 0x7be   : > { %v6954_v40 = vadd.f32 %v6953_v11, %v15446_v26  ;;  %v10820_v26 = vld [vmem:[#allocation2 + $0x1e4] sm:$0xf]  ;;  %v10881_v11 = vld [vmem:[%s11495_s2 + $0xd8] sm:$0xf0] }
 0x7bf   : > { %17191 = vst [vmem:[#allocation74_spill] sm:$0xff] %v15602_v17  ;;  %v8035_v37 = vpop.f32.mrf.mxu0 }
 0x7c0   : > { %v15605_v15 = vadd.f32 %v8035_v37, %v7891_v30  ;;  %8166 = vmatmul.bf16.gmra.mxu1 %v10076_v3  ;;  %v10236_v30 = vor.u32 %v10830_v14, %v10235_v38  ;;  %v10204_v37 = vor.u32 %v10820_v26, %v10201_v18  ;;  %v10213_v38 = vld [vmem:[#allocation2 + $0x204] sm:$0xf0] }
 0x7c1   : > { %8644 = vmatmul.bf16.gmra.mxu2 %v10440_v13  ;;  %v10087_v13 = vld [vmem:[#allocation2 + $0xf8] sm:$0xf] }
 0x7c4   : > { %v7097_v9 = vpop.f32.mrf.mxu2 }
 0x7c5   : > { %v6955_v61 = vpop.f32.mrf.mxu1  ;;  %v15607_v44 = vadd.f32 %v7097_v9, %v6954_v40  ;;  %v10088_v9 = vor.u32 %v10792_v55, %v10087_v13 }
 0x7c6   : > { %v6956_v0 = vadd.f32 %v6955_v61, %v15454_v52  ;;  %v10444_v61 = vor.u32 %v10881_v11, %v10443_v54  ;;  %v10795_v54 = vld [vmem:[#allocation2 + $0x118] sm:$0xf0]  ;;  %v10447_v11 = vld [vmem:[%s11495_s2 + $0xe8] sm:$0xf] }
 0x7c7   : > { %17192 = vst [vmem:[#allocation35_spill] sm:$0xff] %v15607_v44  ;;  %v8038_v27 = vpop.f32.mrf.mxu0 }
 0x7c8   : > { %v15610_v32 = vadd.f32 %v8038_v27, %v7894_v59  ;;  %v7901_v59 = vpop.f32.mrf.mxu3  ;;  %v10833_v27 = vld [vmem:[#allocation2 + $0x248] sm:$0xf0] }
 0x7ca   : > { %7948 = vmatmul.bf16.gmra.mxu3 %v10236_v30  ;;  %8077 = vmatmul.bf16.gmra.mxu0 %v10204_v37  ;;  %v10823_v37 = vld [vmem:[#allocation2 + $0x1fc] sm:$0xf] }
 0x7cc   : > { %v7099_v1 = vpop.f32.mrf.mxu2 }
 0x7cd   : > { %v6958_v3 = vpop.f32.mrf.mxu1  ;;  %v15614_v40 = vadd.f32 %v7099_v1, %v6956_v0  ;;  %v10882_v1 = vld [vmem:[%s11495_s2 + $0xf0] sm:$0xf0] }
 0x7ce   : > { %v6959_v52 = vadd.f32 %v6958_v3, %v15464_v51  ;;  %v10247_v51 = vld [vmem:[#allocation2 + $0x240] sm:$0xf] }
 0x7cf   : > { %v8040_v44 = vpop.f32.mrf.mxu0 }
 0x7d0   : > { %v15617_v17 = vadd.f32 %v8040_v44, %v7896_v5  ;;  %8171 = vmatmul.bf16.gmra.mxu1 %v10088_v9  ;;  %v10248_v5 = vor.u32 %v10833_v27, %v10247_v51  ;;  %v10216_v44 = vor.u32 %v10823_v37, %v10213_v38  ;;  %v7904_v3 = vpop.f32.mrf.mxu3  ;;  %v15635_v38 = vld [vmem:[%s15950_s5] ss:$0 sm:$0xff]  ;;  %v10836_v37 = vld [vmem:[#allocation2 + $0x260] sm:$0xf0] }
 0x7d1   : > { %8649 = vmatmul.bf16.gmra.mxu2 %v10444_v61  ;;  %v10099_v61 = vld [vmem:[#allocation2 + $0x110] sm:$0xf] }
 0x7d4   : > { %v7102_v14 = vpop.f32.mrf.mxu2 }
 0x7d5   : > { %v6960_v18 = vpop.f32.mrf.mxu1  ;;  %v15619_v26 = vadd.f32 %v7102_v14, %v6959_v52  ;;  %v10100_v14 = vor.u32 %v10795_v54, %v10099_v61  ;;  %v10798_v61 = vld [vmem:[#allocation2 + $0x130] sm:$0xf0] }
 0x7d6   : > { %v6961_v0 = vadd.f32 %v6960_v18, %v15470_v16  ;;  %v10448_v18 = vor.u32 %v10882_v1, %v10447_v11 }
 0x7d7   : > { %17193 = vst [vmem:[#allocation104_spill] sm:$0xff] %v15619_v26  ;;  %v8043_v30 = vpop.f32.mrf.mxu0 }
 0x7d8   : > { %v15622_v55 = vadd.f32 %v8043_v30, %v7899_v50  ;;  %v10225_v30 = vld [vmem:[#allocation2 + $0x21c] sm:$0xf0] }
 0x7da   : > { %7953 = vmatmul.bf16.gmra.mxu3 %v10248_v5  ;;  %8082 = vmatmul.bf16.gmra.mxu0 %v10216_v44 }
 0x7dc   : > { %v7104_v13 = vpop.f32.mrf.mxu2 }
 0x7dd   : > { %v8137_v9 = vpop.f32.mrf.mxu1  ;;  %v15626_v52 = vadd.f32 %v7104_v13, %v6961_v0 }
 0x7de   : > { %v8138_v16 = vadd.f32 %v8137_v9, %v15480_v12  ;;  %v7906_v12 = vpop.f32.mrf.mxu3 }
 0x7df   : > { %17194 = vst [vmem:[#allocation15_spill] sm:$0xff] %v15626_v52  ;;  %v8045_v26 = vpop.f32.mrf.mxu0  ;;  %v10111_v52 = vld [vmem:[#allocation2 + $0x128] sm:$0xf] }
 0x7e0   : > { %v8272_v50 = vadd.f32 %v8138_v16, %v15137_v7  ;;  %v15630_v27 = vadd.f32 %v8045_v26, %v7901_v59  ;;  %8176 = vmatmul.bf16.gmra.mxu1 %v10100_v14  ;;  %v10826_v7 = vld [vmem:[#allocation2 + $0x214] sm:$0xf]  ;;  %v10259_v26 = vld [vmem:[#allocation2 + $0x258] sm:$0xf]  ;;  %v10451_v16 = vld [vmem:[%s11495_s2 + $0x100] sm:$0xf] }
 0x7e1   : > { %8654 = vmatmul.bf16.gmra.mxu2 %v10448_v18  ;;  %v10228_v44 = vor.u32 %v10826_v7, %v10225_v30  ;;  %v10260_v13 = vor.u32 %v10836_v37, %v10259_v26  ;;  %v10883_v14 = vld [vmem:[%s11495_s2 + $0x108] sm:$0xf0]  ;;  %v10112_v7 = vor.u32 %v10798_v61, %v10111_v52 }
 0x7e2   : > { %v8754_v54 = vadd.f32 %v15635_v38, %v8272_v50  ;;  %v10839_v52 = vld [vmem:[#allocation2 + $0x278] sm:$0xf0] }
 0x7e4   : > { %v8615_v51 = vpop.f32.mrf.mxu2 }
 0x7e5   : > { %v8139_v0 = vpop.f32.mrf.mxu1 }
 0x7e6   : > { %v8140_v5 = vadd.f32 %v8139_v0, %v15489_v34  ;;  %v8808_v34 = vadd.f32 %v8754_v54, %v8615_v51  ;;  %v10237_v51 = vld [vmem:[#allocation2 + $0x234] sm:$0xf0] }
 0x7e7   : > { %v8048_v59 = vpop.f32.mrf.mxu0 }
 0x7e8   : > { %v8273_v11 = vadd.f32 %v8140_v5, %v15148_v23  ;;  %v15640_v1 = vadd.f32 %v8048_v59, %v7904_v3  ;;  %v10452_v23 = vor.u32 %v10883_v14, %v10451_v16  ;;  %v7909_v5 = vpop.f32.mrf.mxu3  ;;  %v8862_v37 = vmax.f32 %v8808_v34, 0.0 }
 0x7ea   : > { %7958 = vmatmul.bf16.gmra.mxu3 %v10260_v13  ;;  %8087 = vmatmul.bf16.gmra.mxu0 %v10228_v44  ;;  %v8755_v9 = vadd.f32 %v15635_v38, %v8273_v11 }
 0x7ec   : > { %v8617_v18 = vpop.f32.mrf.mxu2 }
 0x7ed   : > { %v8142_v0 = vpop.f32.mrf.mxu1  ;;  %v8809_v30 = vadd.f32 %v8755_v9, %v8617_v18  ;;  %v10829_v9 = vld [vmem:[#allocation2 + $0x22c] sm:$0xf] }
 0x7ee   : > { %v8143_v50 = vadd.f32 %v8142_v0, %v15498_v24 }
 0x7ef   : > { %v8050_v3 = vpop.f32.mrf.mxu0  ;;  %v8863_v59 = vmax.f32 %v8809_v30, 0.0 }
 0x7f0   : > { %v8274_v26 = vadd.f32 %v8143_v50, %v15156_v42  ;;  %v15648_v44 = vadd.f32 %v8050_v3, %v7906_v12  ;;  %8181 = vmatmul.bf16.gmra.mxu1 %v10112_v7  ;;  %v10271_v42 = vld [vmem:[#allocation2 + $0x270] sm:$0xf]  ;;  %v10240_v12 = vor.u32 %v10829_v9, %v10237_v51  ;;  %v7911_v0 = vpop.f32.mrf.mxu3  ;;  %v10801_v50 = vld [vmem:[#allocation2 + $0x148] sm:$0xf0]  ;;  %v10455_v7 = vld [vmem:[%s11495_s2 + $0x118] sm:$0xf] }
 0x7f1   : > { %v10912_v11 = vpack.c.bf16 %v8863_v59, %v8862_v37  ;;  %8659 = vmatmul.bf16.gmra.mxu2 %v10452_v23  ;;  %v10272_v18 = vor.u32 %v10839_v52, %v10271_v42  ;;  %v10884_v23 = vld [vmem:[%s11495_s2 + $0x120] sm:$0xf0]  ;;  %v10123_v59 = vld [vmem:[#allocation2 + $0x140] sm:$0xf]  ;;  %v10249_v42 = vld [vmem:[#allocation2 + $0x24c] sm:$0xf0] }
 0x7f2   : > { %v8756_v16 = vadd.f32 %v15635_v38, %v8274_v26 }
 0x7f3   : > { %10913 = vst [vmem:[%s15650_s30] sm:$0xff] %v10912_v11  }
 0x7f4   : > { %v8620_v54 = vpop.f32.mrf.mxu2 }
 0x7f5   : > { %v8144_v24 = vpop.f32.mrf.mxu1 }
 0x7f6   : > { %v8145_v13 = vadd.f32 %v8144_v24, %v15507_v41  ;;  %v8810_v41 = vadd.f32 %v8756_v16, %v8620_v54 }
 0x7f7   : > { %v8053_v61 = vpop.f32.mrf.mxu0 }
 0x7f8   : > { %v8275_v14 = vadd.f32 %v8145_v13, %v15169_v29  ;;  %v15656_v34 = vadd.f32 %v8053_v61, %v7909_v5  ;;  %v10124_v29 = vor.u32 %v10801_v50, %v10123_v59  ;;  %v10456_v5 = vor.u32 %v10884_v23, %v10455_v7  ;;  %v7914_v54 = vpop.f32.mrf.mxu3  ;;  %v10283_v50 = vld [vmem:[#allocation2 + $0x288] sm:$0xf]  ;;  %v10459_v59 = vld [vmem:[%s11495_s2 + $0x130] sm:$0xf] }
 0x7f9   : > { %v8864_v24 = vmax.f32 %v8810_v41, 0.0 }
 0x7fa   : > { %7963 = vmatmul.bf16.gmra.mxu3 %v10272_v18  ;;  %8092 = vmatmul.bf16.gmra.mxu0 %v10240_v12  ;;  %v8757_v30 = vadd.f32 %v15635_v38, %v8275_v14  ;;  %v10832_v18 = vld [vmem:[#allocation2 + $0x244] sm:$0xf] }
 0x7fb   : > { %v10252_v7 = vor.u32 %v10832_v18, %v10249_v42 }
 0x7fc   : > { %v8622_v3 = vpop.f32.mrf.mxu2 }
 0x7fd   : > { %v8147_v37 = vpop.f32.mrf.mxu1  ;;  %v8811_v11 = vadd.f32 %v8757_v30, %v8622_v3 }
 0x7fe   : > { %v8148_v26 = vadd.f32 %v8147_v37, %v15513_v4  ;;  %v10842_v4 = vld [vmem:[#allocation2 + $0x290] sm:$0xf0]  ;;  %v10804_v37 = vld [vmem:[#allocation2 + $0x160] sm:$0xf0] }
 0x7ff   : > { %v8055_v51 = vpop.f32.mrf.mxu0  ;;  %v8865_v52 = vmax.f32 %v8811_v11, 0.0  ;;  %v10284_v41 = vor.u32 %v10842_v4, %v10283_v50  ;;  %v10885_v11 = vld [vmem:[%s11495_s2 + $0x138] sm:$0xf0]  ;;  %v10261_v50 = vld [vmem:[#allocation2 + $0x264] sm:$0xf0] }
 0x800   : > { %v8276_v13 = vadd.f32 %v8148_v26, %v15180_v21  ;;  %v15663_v9 = vadd.f32 %v8055_v51, %v7911_v0  ;;  %8186 = vmatmul.bf16.gmra.mxu1 %v10124_v29 }
 0x801   : > { %v10917_v61 = vpack.c.bf16 %v8865_v52, %v8864_v24  ;;  %8664 = vmatmul.bf16.gmra.mxu2 %v10456_v5  ;;  %v10135_v5 = vld [vmem:[#allocation2 + $0x158] sm:$0xf] }
 0x802   : > { %v8758_v21 = vadd.f32 %v15635_v38, %v8276_v13  ;;  %v10136_v52 = vor.u32 %v10804_v37, %v10135_v5  ;;  %v7916_v13 = vpop.f32.mrf.mxu3 }
 0x803   : > { %11044 = vst [vmem:[%s15650_s30 + $0x8] sm:$0xff] %v10917_v61  }
 0x804   : > { %v8625_v12 = vpop.f32.mrf.mxu2 }
 0x805   : > { %v8149_v16 = vpop.f32.mrf.mxu1  ;;  %v8812_v26 = vadd.f32 %v8758_v21, %v8625_v12  ;;  %v10835_v21 = vld [vmem:[#allocation2 + $0x25c] sm:$0xf] }
 0x806   : > { %v8150_v14 = vadd.f32 %v8149_v16, %v15523_v39 }
 0x807   : > { %v8058_v30 = vpop.f32.mrf.mxu0 }
 0x808   : > { %v8277_v0 = vadd.f32 %v8150_v14, %v15193_v8  ;;  %v15669_v23 = vadd.f32 %v8058_v30, %v7914_v54  ;;  %v10460_v8 = vor.u32 %v10885_v11, %v10459_v59  ;;  %v8866_v54 = vmax.f32 %v8812_v26, 0.0  ;;  %v10295_v30 = vld [vmem:[#allocation2 + $0x2a0] sm:$0xf]  ;;  %v10807_v59 = vld [vmem:[#allocation2 + $0x178] sm:$0xf0] }
 0x809   : > { %v10463_v11 = vld [vmem:[%s11495_s2 + $0x148] sm:$0xf]  ;;  %v10886_v26 = vld [vmem:[%s11495_s2 + $0x150] sm:$0xf0] }
 0x80a   : > { %7968 = vmatmul.bf16.gmra.mxu3 %v10284_v41  ;;  %8097 = vmatmul.bf16.gmra.mxu0 %v10252_v7  ;;  %v8759_v3 = vadd.f32 %v15635_v38, %v8277_v0 }
 0x80c   : > { %v8627_v39 = vpop.f32.mrf.mxu2 }
 0x80d   : > { %v8152_v29 = vpop.f32.mrf.mxu1  ;;  %v8813_v51 = vadd.f32 %v8759_v3, %v8627_v39  ;;  %v10264_v3 = vor.u32 %v10835_v21, %v10261_v50  ;;  %v10810_v50 = vld [vmem:[#allocation2 + $0x190] sm:$0xf0]  ;;  %v10887_v21 = vld [vmem:[%s11495_s2 + $0x168] sm:$0xf0] }
 0x80e   : > { %v8153_v24 = vadd.f32 %v8152_v29, %v15531_v10  ;;  %v10845_v10 = vld [vmem:[#allocation2 + $0x2a8] sm:$0xf0] }
 0x80f   : > { %v8060_v61 = vpop.f32.mrf.mxu0  ;;  %v8867_v42 = vmax.f32 %v8813_v51, 0.0  ;;  %v10296_v41 = vor.u32 %v10845_v10, %v10295_v30  ;;  %v10147_v51 = vld [vmem:[#allocation2 + $0x170] sm:$0xf] }
 0x810   : > { %v8278_v16 = vadd.f32 %v8153_v24, %v15203_v53  ;;  %v15676_v4 = vadd.f32 %v8060_v61, %v7916_v13  ;;  %8191 = vmatmul.bf16.gmra.mxu1 %v10136_v52  ;;  %v10148_v52 = vor.u32 %v10807_v59, %v10147_v51 }
 0x811   : > { %v10922_v14 = vpack.c.bf16 %v8867_v42, %v8866_v54  ;;  %8669 = vmatmul.bf16.gmra.mxu2 %v10460_v8  ;;  %v10464_v8 = vor.u32 %v10886_v26, %v10463_v11 }
 0x812   : > { %v8760_v0 = vadd.f32 %v15635_v38, %v8278_v16 }
 0x813   : > { %11045 = vst [vmem:[%s15650_s30 + $0x10] sm:$0xff] %v10922_v14   ;;  %v10273_v14 = vld [vmem:[#allocation2 + $0x27c] sm:$0xf0] }
 0x814   : > { %v8630_v12 = vpop.f32.mrf.mxu2 }
 0x815   : > { %v8154_v18 = vpop.f32.mrf.mxu1  ;;  %v8814_v39 = vadd.f32 %v8760_v0, %v8630_v12 }
 0x816   : > { %v8155_v7 = vadd.f32 %v8154_v18, %v15541_v46  ;;  %v10838_v18 = vld [vmem:[#allocation2 + $0x274] sm:$0xf] }
 0x817   : > { %v10276_v10 = vor.u32 %v10838_v18, %v10273_v14 }
 0x818   : > { %v8279_v53 = vadd.f32 %v8155_v7, %v15217_v45  ;;  %v8868_v45 = vmax.f32 %v8814_v39, 0.0  ;;  %v10467_v7 = vld [vmem:[%s11495_s2 + $0x160] sm:$0xf] }
 0x819   : > { %v10468_v11 = vor.u32 %v10887_v21, %v10467_v7 }
 0x81a   : > { %7973 = vmatmul.bf16.gmra.mxu3 %v10296_v41  ;;  %8102 = vmatmul.bf16.gmra.mxu0 %v10264_v3  ;;  %v8761_v37 = vadd.f32 %v15635_v38, %v8279_v53  ;;  %v10159_v3 = vld [vmem:[#allocation2 + $0x188] sm:$0xf] }
 0x81b   : > { %v10160_v59 = vor.u32 %v10810_v50, %v10159_v3 }
 0x81c   : > { %v8632_v29 = vpop.f32.mrf.mxu2 }
 0x81d   : > { %v8157_v5 = vpop.f32.mrf.mxu1  ;;  %v8815_v46 = vadd.f32 %v8761_v37, %v8632_v29 }
 0x81e   : > { %v8158_v24 = vadd.f32 %v8157_v5, %v15547_v62 }
 0x81f   : > { %v8869_v13 = vmax.f32 %v8815_v46, 0.0  ;;  %v10285_v46 = vld [vmem:[#allocation2 + $0x294] sm:$0xf0] }
 0x820   : > { %v8280_v61 = vadd.f32 %v8158_v24, %v15228_v63  ;;  %8196 = vmatmul.bf16.gmra.mxu1 %v10148_v52  ;;  %v10841_v52 = vld [vmem:[#allocation2 + $0x28c] sm:$0xf] }
 0x821   : > { %v10927_v54 = vpack.c.bf16 %v8869_v13, %v8868_v45  ;;  %8674 = vmatmul.bf16.gmra.mxu2 %v10464_v8  ;;  %v10288_v45 = vor.u32 %v10841_v52, %v10285_v46  ;;  %v10813_v13 = vld [vmem:[#allocation2 + $0x1a8] sm:$0xf0] }
 0x822   : > { %v8762_v62 = vadd.f32 %v15635_v38, %v8280_v61  ;;  %v10471_v61 = vld [vmem:[%s11495_s2 + $0x178] sm:$0xf] }
 0x823   : > { %11046 = vst [vmem:[%s15650_s30 + $0x18] sm:$0xff] %v10927_v54   ;;  %v10888_v54 = vld [vmem:[%s11495_s2 + $0x180] sm:$0xf0] }
 0x824   : > { %v8635_v42 = vpop.f32.mrf.mxu2 }
 0x825   : > { %v8159_v16 = vpop.f32.mrf.mxu1  ;;  %v8816_v0 = vadd.f32 %v8762_v62, %v8635_v42 }
 0x826   : > { %v8160_v12 = vadd.f32 %v8159_v16, %v15555_v22 }
 0x827   : > { %v8870_v26 = vmax.f32 %v8816_v0, 0.0  ;;  %v10844_v0 = vld [vmem:[#allocation2 + $0x2a4] sm:$0xf] }
 0x828   : > { %v8281_v30 = vadd.f32 %v8160_v12, %v15238_v49  ;;  %v10171_v12 = vld [vmem:[#allocation2 + $0x1a0] sm:$0xf] }
 0x829   : > { %v10172_v62 = vor.u32 %v10813_v13, %v10171_v12 }
 0x82a   : > { %8107 = vmatmul.bf16.gmra.mxu0 %v10276_v10  ;;  %v8763_v63 = vadd.f32 %v15635_v38, %v8281_v30  ;;  %v10472_v30 = vor.u32 %v10888_v54, %v10471_v61  ;;  %v17195_v61 = vld [vmem:[#allocation67_spill] sm:$0xff] }
 0x82c   : > { %v8637_v53 = vpop.f32.mrf.mxu2 }
 0x82d   : > { %v8162_v41 = vpop.f32.mrf.mxu1  ;;  %v8817_v37 = vadd.f32 %v8763_v63, %v8637_v53  ;;  %v10297_v53 = vld [vmem:[#allocation2 + $0x2ac] sm:$0xf0] }
 0x82e   : > { %v8163_v22 = vadd.f32 %v8162_v41, %v15561_v43 }
 0x82f   : > { %v8871_v39 = vmax.f32 %v8817_v37, 0.0  ;;  %v10300_v37 = vor.u32 %v10844_v0, %v10297_v53 }
 0x830   : > { %v8282_v49 = vadd.f32 %v8163_v22, %v15249_v56  ;;  %8201 = vmatmul.bf16.gmra.mxu1 %v10160_v59  ;;  %v10816_v22 = vld [vmem:[#allocation2 + $0x1c0] sm:$0xf0]  ;;  %v10475_v59 = vld [vmem:[%s11495_s2 + $0x190] sm:$0xf] }
 0x831   : > { %v10932_v29 = vpack.c.bf16 %v8871_v39, %v8870_v26  ;;  %8679 = vmatmul.bf16.gmra.mxu2 %v10468_v11  ;;  %v10889_v11 = vld [vmem:[%s11495_s2 + $0x198] sm:$0xf0] }
 0x832   : > { %v8764_v43 = vadd.f32 %v15635_v38, %v8282_v49  ;;  %v10476_v46 = vor.u32 %v10889_v11, %v10475_v59  ;;  %v10891_v59 = vld [vmem:[%s11495_s2 + $0x1c8] sm:$0xf0] }
 0x833   : > { %11047 = vst [vmem:[%s15650_s30 + $0x20] sm:$0xff] %v10932_v29   ;;  %v10183_v29 = vld [vmem:[#allocation2 + $0x1b8] sm:$0xf] }
 0x834   : > { %v8640_v5 = vpop.f32.mrf.mxu2 }
 0x835   : > { %v8164_v51 = vpop.f32.mrf.mxu1  ;;  %v8818_v42 = vadd.f32 %v8764_v43, %v8640_v5 }
 0x836   : > { %v8165_v24 = vadd.f32 %v8164_v51, %v15569_v2 }
 0x837   : > { %v8872_v10 = vmax.f32 %v8818_v42, 0.0  ;;  %v10819_v42 = vld [vmem:[#allocation2 + $0x1d8] sm:$0xf0] }
 0x838   : > { %v8283_v8 = vadd.f32 %v8165_v24, %v15259_v48 }
 0x83a   : > { %8112 = vmatmul.bf16.gmra.mxu0 %v10288_v45  ;;  %v8765_v56 = vadd.f32 %v15635_v38, %v8283_v8 }
 0x83c   : > { %v8642_v16 = vpop.f32.mrf.mxu2 }
 0x83d   : > { %v8167_v14 = vpop.f32.mrf.mxu1  ;;  %v8819_v18 = vadd.f32 %v8765_v56, %v8642_v16  ;;  %v10479_v16 = vld [vmem:[%s11495_s2 + $0x1a8] sm:$0xf] }
 0x83e   : > { %v8168_v2 = vadd.f32 %v8167_v14, %v15574_v35  ;;  %v10890_v14 = vld [vmem:[%s11495_s2 + $0x1b0] sm:$0xf0] }
 0x83f   : > { %v8873_v63 = vmax.f32 %v8819_v18, 0.0 }
 0x840   : > { %v8284_v48 = vadd.f32 %v8168_v2, %v15270_v33  ;;  %8206 = vmatmul.bf16.gmra.mxu1 %v10172_v62  ;;  %v10195_v2 = vld [vmem:[#allocation2 + $0x1d0] sm:$0xf] }
 0x841   : > { %v10937_v50 = vpack.c.bf16 %v8873_v63, %v8872_v10  ;;  %8684 = vmatmul.bf16.gmra.mxu2 %v10472_v30  ;;  %v10196_v10 = vor.u32 %v10819_v42, %v10195_v2  ;;  %v10892_v42 = vld [vmem:[%s11495_s2 + $0x1e0] sm:$0xf0] }
 0x842   : > { %v8766_v35 = vadd.f32 %v15635_v38, %v8284_v48 }
 0x843   : > { %11048 = vst [vmem:[%s15650_s30 + $0x28] sm:$0xff] %v10937_v50   ;;  %v17196_v50 = vld [vmem:[#allocation102_spill] sm:$0xff] }
 0x844   : > { %v8645_v7 = vpop.f32.mrf.mxu2 }
 0x845   : > { %v8169_v21 = vpop.f32.mrf.mxu1  ;;  %v8820_v26 = vadd.f32 %v8766_v35, %v8645_v7 }
 0x846   : > { %v8170_v41 = vadd.f32 %v8169_v21, %v15581_v25  ;;  %v10184_v25 = vor.u32 %v10816_v22, %v10183_v29  ;;  %v10483_v22 = vld [vmem:[%s11495_s2 + $0x1c0] sm:$0xf] }
 0x848   : > { %v8285_v3 = vadd.f32 %v8170_v41, %v15280_v20  ;;  %v8874_v20 = vmax.f32 %v8820_v26, 0.0 }
 0x84a   : > { %8117 = vmatmul.bf16.gmra.mxu0 %v10300_v37  ;;  %v8767_v33 = vadd.f32 %v15635_v38, %v8285_v3  ;;  %v17197_v3 = vld [vmem:[#allocation125_spill] sm:$0xff] }
 0x84c   : > { %v8647_v39 = vpop.f32.mrf.mxu2 }
 0x84d   : > { %v8172_v49 = vpop.f32.mrf.mxu1  ;;  %v8821_v5 = vadd.f32 %v8767_v33, %v8647_v39  ;;  %v10822_v33 = vld [vmem:[#allocation2 + $0x1f0] sm:$0xf0] }
 0x84e   : > { %v8173_v51 = vadd.f32 %v8172_v49, %v15586_v58  ;;  %v10207_v49 = vld [vmem:[#allocation2 + $0x1e8] sm:$0xf] }
 0x84f   : > { %v8875_v24 = vmax.f32 %v8821_v5, 0.0 }
 0x850   : > { %v8286_v52 = vadd.f32 %v8173_v51, %v15294_v60  ;;  %8211 = vmatmul.bf16.gmra.mxu1 %v10184_v25  ;;  %v10208_v51 = vor.u32 %v10822_v33, %v10207_v49 }
 0x851   : > { %v10942_v43 = vpack.c.bf16 %v8875_v24, %v8874_v20  ;;  %8689 = vmatmul.bf16.gmra.mxu2 %v10476_v46  ;;  %v17198_v20 = vld [vmem:[#allocation85_spill] sm:$0xff] }
 0x852   : > { %v8768_v13 = vadd.f32 %v15635_v38, %v8286_v52 }
 0x853   : > { %11049 = vst [vmem:[%s15650_s30 + $0x30] sm:$0xff] %v10942_v43  }
 0x854   : > { %v8650_v8 = vpop.f32.mrf.mxu2 }
 0x855   : > { %v8174_v45 = vpop.f32.mrf.mxu1  ;;  %v8822_v12 = vadd.f32 %v8768_v13, %v8650_v8  ;;  %v17199_v13 = vld [vmem:[#allocation122_spill] sm:$0xff] }
 0x856   : > { %v8175_v56 = vadd.f32 %v8174_v45, %v15593_v36  ;;  %v10480_v36 = vor.u32 %v10890_v14, %v10479_v16 }
 0x857   : > { %v8876_v63 = vmax.f32 %v8822_v12, 0.0 }
 0x858   : > { %v8287_v58 = vadd.f32 %v8175_v56, %v17195_v61 }
 0x85a   : > { %v8769_v54 = vadd.f32 %v15635_v38, %v8287_v58  ;;  %v10825_v58 = vld [vmem:[#allocation2 + $0x208] sm:$0xf0] }
 0x85c   : > { %v8652_v60 = vpop.f32.mrf.mxu2 }
 0x85d   : > { %v8177_v18 = vpop.f32.mrf.mxu1  ;;  %v8823_v62 = vadd.f32 %v8769_v54, %v8652_v60  ;;  %v10487_v54 = vld [vmem:[%s11495_s2 + $0x1d8] sm:$0xf]  ;;  %v10219_v60 = vld [vmem:[#allocation2 + $0x200] sm:$0xf] }
 0x85e   : > { %v8178_v30 = vadd.f32 %v8177_v18, %v15598_v31 }
 0x85f   : > { %v8877_v48 = vmax.f32 %v8823_v62, 0.0  ;;  %v10220_v62 = vor.u32 %v10825_v58, %v10219_v60 }
 0x860   : > { %v8288_v7 = vadd.f32 %v8178_v30, %v17196_v50  ;;  %8216 = vmatmul.bf16.gmra.mxu1 %v10196_v10  ;;  %v10488_v30 = vor.u32 %v10892_v42, %v10487_v54  ;;  %v10243_v54 = vld [vmem:[#allocation2 + $0x230] sm:$0xf] }
 0x861   : > { %v10947_v21 = vpack.c.bf16 %v8877_v48, %v8876_v63  ;;  %8694 = vmatmul.bf16.gmra.mxu2 %v10480_v36  ;;  %v17200_v36 = vld [vmem:[#allocation43_spill] sm:$0xff] }
 0x862   : > { %v8770_v35 = vadd.f32 %v15635_v38, %v8288_v7 }
 0x863   : > { %11050 = vst [vmem:[%s15650_s30 + $0x38] sm:$0xff] %v10947_v21  }
 0x864   : > { %v8655_v0 = vpop.f32.mrf.mxu2 }
 0x865   : > { %v8179_v53 = vpop.f32.mrf.mxu1  ;;  %v8824_v11 = vadd.f32 %v8770_v35, %v8655_v0  ;;  %v15743_v0 = vpop.f32.mrf.mxu3 }
 0x866   : > { %v8180_v41 = vadd.f32 %v8179_v53, %v15605_v15  ;;  %v10484_v15 = vor.u32 %v10891_v59, %v10483_v22  ;;  %v15745_v53 = vpop.f32.mrf.mxu0 }
 0x867   : > { %v8878_v25 = vmax.f32 %v8824_v11, 0.0  ;;  %v10231_v11 = vld [vmem:[#allocation2 + $0x218] sm:$0xf] }
 0x868   : > { %v8289_v31 = vadd.f32 %v8180_v41, %v17197_v3  ;;  %v10828_v3 = vld [vmem:[#allocation2 + $0x220] sm:$0xf0] }
 0x86a   : > { %v8771_v37 = vadd.f32 %v15635_v38, %v8289_v31  ;;  %v10491_v31 = vld [vmem:[%s11495_s2 + $0x1f0] sm:$0xf] }
 0x86c   : > { %v8657_v26 = vpop.f32.mrf.mxu2 }
 0x86d   : > { %v8182_v39 = vpop.f32.mrf.mxu1  ;;  %v8825_v29 = vadd.f32 %v8771_v37, %v8657_v26  ;;  %v10893_v37 = vld [vmem:[%s11495_s2 + $0x1f8] sm:$0xf0] }
 0x86e   : > { %v8183_v5 = vadd.f32 %v8182_v39, %v15610_v32  ;;  %v10232_v39 = vor.u32 %v10828_v3, %v10231_v11  ;;  %v10492_v49 = vor.u32 %v10893_v37, %v10491_v31 }
 0x86f   : > { %v8879_v46 = vmax.f32 %v8825_v29, 0.0 }
 0x870   : > { %v8290_v24 = vadd.f32 %v8183_v5, %v17198_v20  ;;  %8221 = vmatmul.bf16.gmra.mxu1 %v10208_v51  ;;  %v15754_v51 = vpop.f32.mrf.mxu3 }
 0x871   : > { %v10952_v52 = vpack.c.bf16 %v8879_v46, %v8878_v25  ;;  %8699 = vmatmul.bf16.gmra.mxu2 %v10484_v15  ;;  %v15756_v15 = vpop.f32.mrf.mxu0 }
 0x872   : > { %v8772_v56 = vadd.f32 %v15635_v38, %v8290_v24 }
 0x873   : > { %11051 = vst [vmem:[%s15650_s30 + $0x40] sm:$0xff] %v10952_v52  }
 0x874   : > { %v8660_v43 = vpop.f32.mrf.mxu2 }
 0x875   : > { %v8184_v8 = vpop.f32.mrf.mxu1  ;;  %v8826_v16 = vadd.f32 %v8772_v56, %v8660_v43 }
 0x876   : > { %v8185_v45 = vadd.f32 %v8184_v8, %v15617_v17  ;;  %v10831_v8 = vld [vmem:[#allocation2 + $0x238] sm:$0xf0] }
 0x877   : > { %v8880_v17 = vmax.f32 %v8826_v16, 0.0  ;;  %v10244_v16 = vor.u32 %v10831_v8, %v10243_v54 }
 0x878   : > { %v8291_v32 = vadd.f32 %v8185_v45, %v17199_v13  ;;  %v10894_v45 = vld [vmem:[%s11495_s2 + $0x210] sm:$0xf0]  ;;  %v15765_v56 = vpop.f32.mrf.mxu3 }
 0x879   : > { %v15767_v13 = vpop.f32.mrf.mxu0 }
 0x87a   : > { %v8773_v61 = vadd.f32 %v15635_v38, %v8291_v32 }
 0x87c   : > { %v8662_v14 = vpop.f32.mrf.mxu2 }
 0x87d   : > { %v8187_v12 = vpop.f32.mrf.mxu1  ;;  %v8827_v18 = vadd.f32 %v8773_v61, %v8662_v14 }
 0x87e   : > { %v8188_v2 = vadd.f32 %v8187_v12, %v15622_v55 }
 0x87f   : > { %v8881_v10 = vmax.f32 %v8827_v18, 0.0 }
 0x880   : > { %v8292_v63 = vadd.f32 %v8188_v2, %v17200_v36  ;;  %8226 = vmatmul.bf16.gmra.mxu1 %v10220_v62  ;;  %v17201_v36 = vld [vmem:[#allocation25_spill] sm:$0xff] }
 0x881   : > { %v10957_v48 = vpack.c.bf16 %v8881_v10, %v8880_v17  ;;  %8704 = vmatmul.bf16.gmra.mxu2 %v10488_v30  ;;  %v15772_v30 = vpop.f32.mrf.mxu3  ;;  %v15774_v17 = vpop.f32.mrf.mxu0 }
 0x882   : > { %v8774_v55 = vadd.f32 %v15635_v38, %v8292_v63 }
 0x883   : > { %11052 = vst [vmem:[%s15650_s30 + $0x48] sm:$0xff] %v10957_v48  }
 0x884   : > { %v8665_v50 = vpop.f32.mrf.mxu2 }
 0x885   : > { %v8189_v7 = vpop.f32.mrf.mxu1  ;;  %v8828_v33 = vadd.f32 %v8774_v55, %v8665_v50  ;;  %v10834_v50 = vld [vmem:[#allocation2 + $0x250] sm:$0xf0] }
 0x886   : > { %v8190_v21 = vadd.f32 %v8189_v7, %v15630_v27  ;;  %v10895_v7 = vld [vmem:[%s11495_s2 + $0x228] sm:$0xf0] }
 0x887   : > { %v8882_v29 = vmax.f32 %v8828_v33, 0.0 }
 0x888   : > { %v8293_v41 = vadd.f32 %v8190_v21, %v15367_v19 }
 0x88a   : > { %v8775_v35 = vadd.f32 %v15635_v38, %v8293_v41 }
 0x88c   : > { %v8667_v22 = vpop.f32.mrf.mxu2 }
 0x88d   : > { %v8192_v59 = vpop.f32.mrf.mxu1  ;;  %v8829_v26 = vadd.f32 %v8775_v35, %v8667_v22  ;;  %v10255_v35 = vld [vmem:[#allocation2 + $0x248] sm:$0xf]  ;;  %v15785_v22 = vpop.f32.mrf.mxu0 }
 0x88e   : > { %v8193_v27 = vadd.f32 %v8192_v59, %v15640_v1  ;;  %v10256_v37 = vor.u32 %v10834_v50, %v10255_v35  ;;  %v10507_v50 = vld [vmem:[%s11495_s2 + $0x250] sm:$0xf] }
 0x88f   : > { %v8883_v5 = vmax.f32 %v8829_v26, 0.0  ;;  %v17202_v26 = vld [vmem:[#allocation27_spill] sm:$0xff] }
 0x890   : > { %v8294_v19 = vadd.f32 %v8193_v27, %v15378_v6  ;;  %8231 = vmatmul.bf16.gmra.mxu1 %v10232_v39  ;;  %v10495_v6 = vld [vmem:[%s11495_s2 + $0x208] sm:$0xf] }
 0x891   : > { %v10962_v25 = vpack.c.bf16 %v8883_v5, %v8882_v29  ;;  %8709 = vmatmul.bf16.gmra.mxu2 %v10492_v49  ;;  %v10496_v14 = vor.u32 %v10894_v45, %v10495_v6 }
 0x892   : > { %v8776_v24 = vadd.f32 %v15635_v38, %v8294_v19  ;;  %v17203_v19 = vld [vmem:[#allocation26_spill] sm:$0xff] }
 0x893   : > { %11053 = vst [vmem:[%s15650_s30 + $0x50] sm:$0xff] %v10962_v25  }
 0x894   : > { %v8670_v46 = vpop.f32.mrf.mxu2 }
 0x895   : > { %v8194_v20 = vpop.f32.mrf.mxu1  ;;  %v8830_v32 = vadd.f32 %v8776_v24, %v8670_v46  ;;  %v10837_v24 = vld [vmem:[#allocation2 + $0x268] sm:$0xf0] }
 0x896   : > { %v8195_v1 = vadd.f32 %v8194_v20, %v15648_v44  ;;  %v15794_v20 = vpop.f32.mrf.mxu0 }
 0x898   : > { %v8295_v52 = vadd.f32 %v8195_v1, %v15387_v57  ;;  %v8884_v57 = vmax.f32 %v8830_v32, 0.0  ;;  %v10267_v32 = vld [vmem:[#allocation2 + $0x260] sm:$0xf] }
 0x89a   : > { %v8777_v43 = vadd.f32 %v15635_v38, %v8295_v52  ;;  %v10503_v52 = vld [vmem:[%s11495_s2 + $0x238] sm:$0xf] }
 0x89c   : > { %v8672_v61 = vpop.f32.mrf.mxu2 }
 0x89d   : > { %v8197_v58 = vpop.f32.mrf.mxu1  ;;  %v8831_v42 = vadd.f32 %v8777_v43, %v8672_v61  ;;  %v10896_v43 = vld [vmem:[%s11495_s2 + $0x240] sm:$0xf0] }
 0x89e   : > { %v8198_v44 = vadd.f32 %v8197_v58, %v15656_v34  ;;  %v10268_v58 = vor.u32 %v10837_v24, %v10267_v32  ;;  %v10504_v54 = vor.u32 %v10896_v43, %v10503_v52  ;;  %v17207_v52 = vld [vmem:[#allocation50_spill] sm:$0xff]  ;;  %v10309_v43 = vld [vmem:[#allocation2 + $0x2c4] sm:$0xf0] }
 0x89f   : > { %v8885_v12 = vmax.f32 %v8831_v42, 0.0  ;;  %v10511_v32 = vld [vmem:[%s11495_s2 + $0x268] sm:$0xf] }
 0x8a0   : > { %v8296_v60 = vadd.f32 %v8198_v44, %v15398_v28  ;;  %8236 = vmatmul.bf16.gmra.mxu1 %v10244_v16  ;;  %v10499_v28 = vld [vmem:[%s11495_s2 + $0x220] sm:$0xf] }
 0x8a1   : > { %v10967_v18 = vpack.c.bf16 %v8885_v12, %v8884_v57  ;;  %8714 = vmatmul.bf16.gmra.mxu2 %v10496_v14  ;;  %v10500_v33 = vor.u32 %v10895_v7, %v10499_v28  ;;  %v8066_v12 = vadd.f32 %v15756_v15, %v15754_v51  ;;  %v10897_v28 = vld [vmem:[%s11495_s2 + $0x258] sm:$0xf0]  ;;  %v10279_v15 = vld [vmem:[#allocation2 + $0x278] sm:$0xf] }
 0x8a2   : > { %v8778_v10 = vadd.f32 %v15635_v38, %v8296_v60  ;;  %v15805_v60 = vpop.f32.mrf.mxu0 }
 0x8a3   : > { %11054 = vst [vmem:[%s15650_s30 + $0x58] sm:$0xff] %v10967_v18  }
 0x8a4   : > { %v8675_v2 = vpop.f32.mrf.mxu2 }
 0x8a5   : > { %v8199_v62 = vpop.f32.mrf.mxu1  ;;  %v8832_v21 = vadd.f32 %v8778_v10, %v8675_v2  ;;  %v17205_v10 = vld [vmem:[#allocation49_spill] sm:$0xff] }
 0x8a6   : > { %v8200_v34 = vadd.f32 %v8199_v62, %v15663_v9  ;;  %v15783_v9 = vpop.f32.mrf.mxu3 }
 0x8a7   : > { %v8886_v59 = vmax.f32 %v8832_v21, 0.0 }
 0x8a8   : > { %v8297_v63 = vadd.f32 %v8200_v34, %v17201_v36 }
 0x8aa   : > { %v8779_v48 = vadd.f32 %v15635_v38, %v8297_v63  ;;  %v15818_v35 = vpop.f32.mrf.mxu0 }
 0x8ac   : > { %v8677_v55 = vpop.f32.mrf.mxu2 }
 0x8ad   : > { %v8202_v41 = vpop.f32.mrf.mxu1  ;;  %v8833_v3 = vadd.f32 %v8779_v48, %v8677_v55  ;;  %v10840_v48 = vld [vmem:[#allocation2 + $0x280] sm:$0xf0] }
 0x8ae   : > { %v8203_v31 = vadd.f32 %v8202_v41, %v15669_v23  ;;  %v15792_v46 = vpop.f32.mrf.mxu3  ;;  %v8069_v41 = vadd.f32 %v15767_v13, %v15765_v56  ;;  %v10848_v56 = vld [vmem:[#allocation2 + $0x2c0] sm:$0xf0] }
 0x8af   : > { %v8887_v11 = vmax.f32 %v8833_v3, 0.0 }
 0x8b0   : > { %v8298_v27 = vadd.f32 %v8203_v31, %v17202_v26  ;;  %8241 = vmatmul.bf16.gmra.mxu1 %v10256_v37  ;;  %v10280_v31 = vor.u32 %v10840_v48, %v10279_v15  ;;  %v10508_v37 = vor.u32 %v10897_v28, %v10507_v50  ;;  %v17209_v28 = vld [vmem:[#allocation123_spill] sm:$0xff] }
 0x8b1   : > { %v10972_v39 = vpack.c.bf16 %v8887_v11, %v8886_v59  ;;  %8719 = vmatmul.bf16.gmra.mxu2 %v10500_v33  ;;  %v10303_v15 = vld [vmem:[#allocation2 + $0x2a8] sm:$0xf] }
 0x8b2   : > { %v8780_v5 = vadd.f32 %v15635_v38, %v8298_v27  ;;  %v8071_v27 = vadd.f32 %v15774_v17, %v15772_v30  ;;  %v10847_v17 = vld [vmem:[#allocation2 + $0x2bc] sm:$0xf] }
 0x8b3   : > { %11055 = vst [vmem:[%s15650_s30 + $0x60] sm:$0xff] %v10972_v39   ;;  %v17206_v39 = vld [vmem:[#allocation78_spill] sm:$0xff] }
 0x8b4   : > { %v8680_v49 = vpop.f32.mrf.mxu2 }
 0x8b5   : > { %v8204_v29 = vpop.f32.mrf.mxu1  ;;  %v8834_v8 = vadd.f32 %v8780_v5, %v8680_v49 }
 0x8b6   : > { %v8205_v23 = vadd.f32 %v8204_v29, %v15676_v4  ;;  %v8064_v4 = vadd.f32 %v15745_v53, %v15743_v0  ;;  %v15801_v57 = vpop.f32.mrf.mxu3  ;;  %v17204_v0 = vld [vmem:[#allocation83_spill] sm:$0xff]  ;;  %v10307_v29 = vld [vmem:[#allocation2 + $0x2b8] sm:$0xf] }
 0x8b7   : > { %v8888_v42 = vmax.f32 %v8834_v8, 0.0  ;;  %v10308_v5 = vor.u32 %v10848_v56, %v10307_v29  ;;  %v10312_v8 = vor.u32 %v10847_v17, %v10309_v43  ;;  %v17211_v17 = vld [vmem:[#allocation63_spill] sm:$0xff] }
 0x8b8   : > { %v8299_v25 = vadd.f32 %v8205_v23, %v17203_v19 }
 0x8b9   : > { %7978 = vmatmul.bf16.gmra.mxu3 %v10308_v5  ;;  %8122 = vmatmul.bf16.gmra.mxu0 %v10312_v8  ;;  %v10315_v8 = vld [vmem:[#allocation2 + $0x2c0] sm:$0xf] }
 0x8ba   : > { %v8781_v1 = vadd.f32 %v15635_v38, %v8299_v25 }
 0x8bc   : > { %v8682_v6 = vpop.f32.mrf.mxu2 }
 0x8bd   : > { %v8207_v45 = vpop.f32.mrf.mxu1  ;;  %v8835_v61 = vadd.f32 %v8781_v1, %v8682_v6  ;;  %v15826_v1 = vpop.f32.mrf.mxu0 }
 0x8be   : > { %v8208_v16 = vadd.f32 %v8207_v45, %v8064_v4  ;;  %v15814_v55 = vpop.f32.mrf.mxu3  ;;  %v10843_v45 = vld [vmem:[#allocation2 + $0x298] sm:$0xf0]  ;;  %v10898_v4 = vld [vmem:[%s11495_s2 + $0x270] sm:$0xf0] }
 0x8bf   : > { %v8889_v44 = vmax.f32 %v8835_v61, 0.0  ;;  %v8081_v56 = vadd.f32 %v15818_v35, %v15814_v55  ;;  %v10519_v35 = vld [vmem:[%s11495_s2 + $0x298] sm:$0xf] }
 0x8c0   : > { %8246 = vmatmul.bf16.gmra.mxu1 %v10268_v58  ;;  %v8300_v53 = vadd.f32 %v8208_v16, %v17204_v0 }
 0x8c1   : > { %v10977_v14 = vpack.c.bf16 %v8889_v44, %v8888_v42  ;;  %8724 = vmatmul.bf16.gmra.mxu2 %v10504_v54  ;;  %v10291_v42 = vld [vmem:[#allocation2 + $0x290] sm:$0xf]  ;;  %v8074_v44 = vadd.f32 %v15785_v22, %v15783_v9 }
 0x8c2   : > { %v8782_v34 = vadd.f32 %v15635_v38, %v8300_v53 }
 0x8c3   : > { %11056 = vst [vmem:[%s15650_s30 + $0x68] sm:$0xff] %v10977_v14   ;;  %v10292_v14 = vor.u32 %v10843_v45, %v10291_v42  ;;  %v10900_v45 = vld [vmem:[%s11495_s2 + $0x2a0] sm:$0xf0] }
 0x8c4   : > { %v8685_v18 = vpop.f32.mrf.mxu2 }
 0x8c5   : > { %v8209_v2 = vpop.f32.mrf.mxu1  ;;  %v8836_v7 = vadd.f32 %v8782_v34, %v8685_v18 }
 0x8c6   : > { %v8210_v62 = vadd.f32 %v8209_v2, %v8066_v12  ;;  %v15824_v25 = vpop.f32.mrf.mxu3  ;;  %v10512_v12 = vor.u32 %v10898_v4, %v10511_v32 }
 0x8c7   : > { %v8890_v33 = vmax.f32 %v8836_v7, 0.0 }
 0x8c8   : > { %v8301_v36 = vadd.f32 %v8210_v62, %v17205_v10  ;;  %v8085_v62 = vpop.f32.mrf.mxu0  ;;  %v8076_v10 = vadd.f32 %v15794_v20, %v15792_v46 }
 0x8ca   : > { %v8783_v63 = vadd.f32 %v15635_v38, %v8301_v36  ;;  %v17208_v36 = vld [vmem:[#allocation28_spill] sm:$0xff] }
 0x8cc   : > { %v8687_v21 = vpop.f32.mrf.mxu2 }
 0x8cd   : > { %v8212_v51 = vpop.f32.mrf.mxu1  ;;  %v8837_v3 = vadd.f32 %v8783_v63, %v8687_v21 }
 0x8ce   : > { %v8213_v11 = vadd.f32 %v8212_v51, %v8069_v41  ;;  %v15835_v2 = vpop.f32.mrf.mxu3  ;;  %v10846_v51 = vld [vmem:[#allocation2 + $0x2b0] sm:$0xf0]  ;;  %v10515_v41 = vld [vmem:[%s11495_s2 + $0x280] sm:$0xf] }
 0x8cf   : > { %v8891_v59 = vmax.f32 %v8837_v3, 0.0  ;;  %v10899_v3 = vld [vmem:[%s11495_s2 + $0x288] sm:$0xf0]  ;;  %s11098_s2 = smul.u32 216, %s11416_s28 }
 0x8d0   : > { %8251 = vmatmul.bf16.gmra.mxu1 %v10280_v31  ;;  %v8302_v49 = vadd.f32 %v8213_v11, %v17206_v39 }
 0x8d1   : > { %v10982_v26 = vpack.c.bf16 %v8891_v59, %v8890_v33  ;;  %8729 = vmatmul.bf16.gmra.mxu2 %v10508_v37  ;;  %v8088_v37 = vpop.f32.mrf.mxu0  ;;  %v8079_v59 = vadd.f32 %v15805_v60, %v15801_v57  ;;  %s9036_s21 = scalar_lea.hbm %s15952_s7, %s11098_s2 }
 0x8d2   : > { %v8784_v24 = vadd.f32 %v15635_v38, %v8302_v49  ;;  %s9039_s29 = sshll.u32 %s9036_s21, 4  ;;  %s9040_s29 = int_to_ptr.hbm [resolvable:$true] %s9039_s29 }
 0x8d3   : > { %11057 = vst [vmem:[%s15650_s30 + $0x70] sm:$0xff] %v10982_v26   ;;  %v10304_v26 = vor.u32 %v10846_v51, %v10303_v15  ;;  %s11288_s28 = sshra.s32 %s9040_s29, 4  ;;  %s11289_s28 = int_to_ptr.hbm [resolvable:$true] %s11288_s28 }
 0x8d4   : > { %v8690_v13 = vpop.f32.mrf.mxu2  ;;  %s11290_s17 = scalar_lea.hbm %s11289_s28, 216  ;;  %p11295_p11 = scmp.lt.s32.totalorder %s11289_s28, %s15952_s7 }
 0x8d5   : > { %v8214_v23 = vpop.f32.mrf.mxu1  ;;  %v8838_v61 = vadd.f32 %v8784_v24, %v8690_v13  ;;  %v17210_v13 = vld [vmem:[#allocation45_spill] sm:$0xff]  ;;  %p11291_p1 = scmp.ne.s32.totalorder %s11289_s28, %s11290_s17  ;;  %p11296_p9 = scmp.lt.s32.totalorder %s11294_s13, %s11290_s17 }
 0x8d6   : > { %v8215_v19 = vadd.f32 %v8214_v23, %v8071_v27  ;;  %v7944_v31 = vpop.f32.mrf.mxu3  ;;  %v10516_v27 = vor.u32 %v10899_v3, %v10515_v41 }
 0x8d7   : > { %v8892_v0 = vmax.f32 %v8838_v61, 0.0  ;;  %v8089_v41 = vadd.f32 %v8088_v37, %v7944_v31  ;;  %p11292_p4 = pnand %p11291_p1, %p11461_p3  ;;  %p11297_p2 = por %p11296_p9, %p11295_p11 }
 0x8d8   : > { %v8303_v30 = vadd.f32 %v8215_v19, %v17207_v52  ;;  %v15855_v52 = vld [vmem:[%s15950_s5] ss:$0 sm:$0xff] }
 0x8d9   : > { %v8090_v60 = vpop.f32.mrf.mxu0  ;;  %p11293_p8 = pneg %p11292_p4 }
 0x8da   : > { %v8785_v6 = vadd.f32 %v15635_v38, %v8303_v30 }
 0x8db   : > { %p11298_p10 = pnand %p11297_p2, %p11293_p8 }
 0x8dc   : > { %v8692_v58 = vpop.f32.mrf.mxu2 }
 0x8dd   : > { %v8217_v54 = vpop.f32.mrf.mxu1  ;;  %v8839_v16 = vadd.f32 %v8785_v6, %v8692_v58  ;;  %v10849_v6 = vld [vmem:[#allocation2 + $0x2c8] sm:$0xf0] }
 0x8de   : > { %v8218_v18 = vadd.f32 %v8217_v54, %v8074_v44  ;;  %v7946_v57 = vpop.f32.mrf.mxu3  ;;  %v10316_v4 = vor.u32 %v10849_v6, %v10315_v8  ;;  %v8084_v54 = vadd.f32 %v15826_v1, %v15824_v25  ;;  %v10520_v44 = vor.u32 %v10900_v45, %v10519_v35  ;;  %v17213_v1 = vld [vmem:[#allocation33_spill] sm:$0xff] }
 0x8df   : > { %v8893_v53 = vmax.f32 %v8839_v16, 0.0 }
 0x8e0   : > { %8256 = vmatmul.bf16.gmra.mxu1 %v10292_v14  ;;  %v8304_v9 = vadd.f32 %v8218_v18, %v17208_v36 }
 0x8e1   : > { %v10987_v34 = vpack.c.bf16 %v8893_v53, %v8892_v0  ;;  %8734 = vmatmul.bf16.gmra.mxu2 %v10512_v12  ;;  %v8093_v14 = vpop.f32.mrf.mxu0 }
 0x8e2   : > { %v8786_v50 = vadd.f32 %v15635_v38, %v8304_v9 }
 0x8e3   : > { %11058 = vst [vmem:[%s15650_s30 + $0x78] sm:$0xff] %v10987_v34   ;;  %v8086_v34 = vadd.f32 %v8085_v62, %v15835_v2 }
 0x8e4   : > { %v8695_v22 = vpop.f32.mrf.mxu2 }
 0x8e5   : > { %v8219_v63 = vpop.f32.mrf.mxu1  ;;  %v8840_v46 = vadd.f32 %v8786_v50, %v8695_v22 }
 0x8e6   : > { %v8220_v48 = vadd.f32 %v8219_v63, %v8076_v10  ;;  %v7949_v16 = vpop.f32.mrf.mxu3  ;;  %v17212_v10 = vld [vmem:[#allocation127_spill] sm:$0xff] }
 0x8e7   : > { %v8894_v39 = vmax.f32 %v8840_v46, 0.0 }
 0x8e8   : > { %v8305_v7 = vadd.f32 %v8220_v48, %v17209_v28 }
 0x8e9   : > { %v8095_v28 = vpop.f32.mrf.mxu0 }
 0x8ea   : > { %v8787_v21 = vadd.f32 %v15635_v38, %v8305_v7 }
 0x8ec   : > { %v8697_v20 = vpop.f32.mrf.mxu2 }
 0x8ed   : > { %v8222_v33 = vpop.f32.mrf.mxu1  ;;  %v8841_v11 = vadd.f32 %v8787_v21, %v8697_v20 }
 0x8ee   : > { %v8223_v29 = vadd.f32 %v8222_v33, %v8079_v59  ;;  %v7951_v50 = vpop.f32.mrf.mxu3  ;;  %v8091_v59 = vadd.f32 %v8090_v60, %v7946_v57 }
 0x8ef   : > { %v8895_v49 = vmax.f32 %v8841_v11, 0.0  ;;  %v8096_v6 = vadd.f32 %v8095_v28, %v7951_v50 }
 0x8f0   : > { %8261 = vmatmul.bf16.gmra.mxu1 %v10304_v26  ;;  %v8306_v23 = vadd.f32 %v8223_v29, %v17210_v13  ;;  %v17214_v26 = vld [vmem:[#allocation88_spill] sm:$0xff] }
 0x8f1   : > { %v10992_v38 = vpack.c.bf16 %v8895_v49, %v8894_v39  ;;  %8739 = vmatmul.bf16.gmra.mxu2 %v10516_v27  ;;  %v8098_v11 = vpop.f32.mrf.mxu0 }
 0x8f2   : > { %v8788_v30 = vadd.f32 %v15855_v52, %v8306_v23 }
 0x8f3   : > { %11059 = vst [vmem:[%s15650_s30 + $0x80] sm:$0xff] %v10992_v38  }
 0x8f4   : > { %v8700_v5 = vpop.f32.mrf.mxu2 }
 0x8f5   : > { %v8224_v19 = vpop.f32.mrf.mxu1  ;;  %v8842_v32 = vadd.f32 %v8788_v30, %v8700_v5 }
 0x8f6   : > { %v8225_v24 = vadd.f32 %v8224_v19, %v8081_v56  ;;  %v7954_v33 = vpop.f32.mrf.mxu3  ;;  %v17215_v56 = vld [vmem:[#allocation65_spill] sm:$0xff] }
 0x8f7   : > { %v8896_v12 = vmax.f32 %v8842_v32, 0.0 }
 0x8f8   : > { %v8307_v43 = vadd.f32 %v8225_v24, %v17211_v17  ;;  %v8094_v24 = vadd.f32 %v8093_v14, %v7949_v16 }
 0x8f9   : > { %v8100_v57 = vpop.f32.mrf.mxu0 }
 0x8fa   : > { %v8789_v55 = vadd.f32 %v15855_v52, %v8307_v43 }
 0x8fc   : > { %v8702_v61 = vpop.f32.mrf.mxu2 }
 0x8fd   : > { %v8227_v58 = vpop.f32.mrf.mxu1  ;;  %v8843_v42 = vadd.f32 %v8789_v55, %v8702_v61  ;;  %v17216_v55 = vld [vmem:[#allocation29_spill] sm:$0xff] }
 0x8fe   : > { %v8228_v53 = vadd.f32 %v8227_v58, %v8084_v54  ;;  %v7956_v19 = vpop.f32.mrf.mxu3 }
 0x8ff   : > { %v8897_v0 = vmax.f32 %v8843_v42, 0.0  ;;  %v17217_v42 = vld [vmem:[#allocation101_spill] sm:$0xff] }
 0x900   : > { %8266 = vmatmul.bf16.gmra.mxu1 %v10316_v4  ;;  %v8308_v36 = vadd.f32 %v8228_v53, %v17212_v10  ;;  %v8099_v53 = vadd.f32 %v8098_v11, %v7954_v33 }
 0x901   : > { %v10997_v18 = vpack.c.bf16 %v8897_v0, %v8896_v12  ;;  %8744 = vmatmul.bf16.gmra.mxu2 %v10520_v44  ;;  %v8103_v58 = vpop.f32.mrf.mxu0 }
 0x902   : > { %v8790_v25 = vadd.f32 %v15855_v52, %v8308_v36 }
 0x903   : > { %11060 = vst [vmem:[%s15650_s30 + $0x88] sm:$0xff] %v10997_v18  }
 0x904   : > { %v8705_v9 = vpop.f32.mrf.mxu2 }
 0x905   : > { %v8229_v22 = vpop.f32.mrf.mxu1  ;;  %v8844_v21 = vadd.f32 %v8790_v25, %v8705_v9  ;;  %v8101_v25 = vadd.f32 %v8100_v57, %v7956_v19 }
 0x906   : > { %v8230_v63 = vadd.f32 %v8229_v22, %v8086_v34  ;;  %v7959_v61 = vpop.f32.mrf.mxu3 }
 0x907   : > { %v8898_v62 = vmax.f32 %v8844_v21, 0.0  ;;  %v8104_v33 = vadd.f32 %v8103_v58, %v7959_v61  ;;  %v17221_v61 = vld [vmem:[#allocation93_spill] sm:$0xff] }
 0x908   : > { %v8309_v48 = vadd.f32 %v8230_v63, %v17213_v1  ;;  %v17218_v1 = vld [vmem:[#allocation51_spill] sm:$0xff] }
 0x909   : > { %v8105_v22 = vpop.f32.mrf.mxu0 }
 0x90a   : > { %v8791_v7 = vadd.f32 %v15855_v52, %v8309_v48 }
 0x90c   : > { %v8707_v51 = vpop.f32.mrf.mxu2 }
 0x90d   : > { %v8232_v15 = vpop.f32.mrf.mxu1  ;;  %v8845_v2 = vadd.f32 %v8791_v7, %v8707_v51  ;;  %v17219_v51 = vld [vmem:[#allocation31_spill] sm:$0xff] }
 0x90e   : > { %v8233_v46 = vadd.f32 %v8232_v15, %v8089_v41  ;;  %v7961_v9 = vpop.f32.mrf.mxu3 }
 0x90f   : > { %v8899_v3 = vmax.f32 %v8845_v2, 0.0 }
 0x910   : > { %v8310_v27 = vadd.f32 %v8233_v46, %v17214_v26 }
 0x911   : > { %v11002_v20 = vpack.c.bf16 %v8899_v3, %v8898_v62  ;;  %v8108_v62 = vpop.f32.mrf.mxu0 }
 0x912   : > { %v8792_v38 = vadd.f32 %v15855_v52, %v8310_v27 }
 0x913   : > { %11061 = vst [vmem:[%s15650_s30 + $0x90] sm:$0xff] %v11002_v20  }
 0x914   : > { %v8710_v39 = vpop.f32.mrf.mxu2 }
 0x915   : > { %v8234_v49 = vpop.f32.mrf.mxu1  ;;  %v8846_v37 = vadd.f32 %v8792_v38, %v8710_v39 }
 0x916   : > { %v8235_v29 = vadd.f32 %v8234_v49, %v8091_v59  ;;  %v7964_v2 = vpop.f32.mrf.mxu3  ;;  %v8106_v49 = vadd.f32 %v8105_v22, %v7961_v9 }
 0x917   : > { %v8900_v30 = vmax.f32 %v8846_v37, 0.0 }
 0x918   : > { %v8311_v13 = vadd.f32 %v8235_v29, %v17215_v56  ;;  %v17220_v29 = vld [vmem:[#allocation37_spill] sm:$0xff] }
 0x919   : > { %v8110_v37 = vpop.f32.mrf.mxu0 }
 0x91a   : > { %v8793_v31 = vadd.f32 %v15855_v52, %v8311_v13 }
 0x91c   : > { %v8712_v23 = vpop.f32.mrf.mxu2 }
 0x91d   : > { %v8237_v5 = vpop.f32.mrf.mxu1  ;;  %v8847_v60 = vadd.f32 %v8793_v31, %v8712_v23 }
 0x91e   : > { %v8238_v43 = vadd.f32 %v8237_v5, %v8094_v24  ;;  %v7966_v31 = vpop.f32.mrf.mxu3 }
 0x91f   : > { %v8901_v17 = vmax.f32 %v8847_v60, 0.0 }
 0x920   : > { %v8312_v35 = vadd.f32 %v8238_v43, %v17216_v55 }
 0x921   : > { %v11007_v8 = vpack.c.bf16 %v8901_v17, %v8900_v30  ;;  %v8109_v17 = vadd.f32 %v8108_v62, %v7964_v2  ;;  %v17224_v62 = vld [vmem:[#allocation74_spill] sm:$0xff] }
 0x922   : > { %v8794_v54 = vadd.f32 %v15855_v52, %v8312_v35 }
 0x923   : > { %11062 = vst [vmem:[%s15650_s30 + $0x98] sm:$0xff] %v11007_v8  }
 0x924   : > { %v8715_v45 = vpop.f32.mrf.mxu2 }
 0x925   : > { %v8239_v32 = vpop.f32.mrf.mxu1  ;;  %v8848_v14 = vadd.f32 %v8794_v54, %v8715_v45 }
 0x926   : > { %v8240_v4 = vadd.f32 %v8239_v32, %v8096_v6  ;;  %v7969_v8 = vpop.f32.mrf.mxu3  ;;  %v8113_v6 = vpop.f32.mrf.mxu0 }
 0x927   : > { %v8902_v34 = vmax.f32 %v8848_v14, 0.0 }
 0x928   : > { %v8313_v44 = vadd.f32 %v8240_v4, %v17217_v42  ;;  %v8111_v4 = vadd.f32 %v8110_v37, %v7966_v31  ;;  %v17225_v31 = vld [vmem:[#allocation35_spill] sm:$0xff] }
 0x92a   : > { %v8795_v16 = vadd.f32 %v15855_v52, %v8313_v44 }
 0x92c   : > { %v8717_v12 = vpop.f32.mrf.mxu2 }
 0x92d   : > { %v8242_v0 = vpop.f32.mrf.mxu1  ;;  %v8849_v18 = vadd.f32 %v8795_v16, %v8717_v12  ;;  %v17222_v16 = vld [vmem:[#allocation116_spill] sm:$0xff] }
 0x92e   : > { %v8243_v36 = vadd.f32 %v8242_v0, %v8099_v53  ;;  %v7971_v12 = vpop.f32.mrf.mxu3  ;;  %v8115_v0 = vpop.f32.mrf.mxu0 }
 0x92f   : > { %v8903_v10 = vmax.f32 %v8849_v18, 0.0 }
 0x930   : > { %v8314_v48 = vadd.f32 %v8243_v36, %v17218_v1  ;;  %v8114_v36 = vadd.f32 %v8113_v6, %v7969_v8 }
 0x931   : > { %v11012_v63 = vpack.c.bf16 %v8903_v10, %v8902_v34 }
 0x932   : > { %v8796_v21 = vadd.f32 %v15855_v52, %v8314_v48 }
 0x933   : > { %11063 = vst [vmem:[%s15650_s30 + $0xa0] sm:$0xff] %v11012_v63  }
 0x934   : > { %v8720_v50 = vpop.f32.mrf.mxu2 }
 0x935   : > { %v8244_v28 = vpop.f32.mrf.mxu1  ;;  %v8850_v3 = vadd.f32 %v8796_v21, %v8720_v50  ;;  %v8116_v50 = vadd.f32 %v8115_v0, %v7971_v12  ;;  %v17227_v0 = vld [vmem:[#allocation15_spill] sm:$0xff] }
 0x936   : > { %v8245_v7 = vadd.f32 %v8244_v28, %v8101_v25  ;;  %v7974_v48 = vpop.f32.mrf.mxu3  ;;  %v8118_v28 = vpop.f32.mrf.mxu0 }
 0x937   : > { %v8904_v11 = vmax.f32 %v8850_v3, 0.0 }
 0x938   : > { %v8315_v15 = vadd.f32 %v8245_v7, %v17219_v51  ;;  %v17223_v7 = vld [vmem:[#allocation108_spill] sm:$0xff] }
 0x93a   : > { %v8797_v41 = vadd.f32 %v15855_v52, %v8315_v15 }
 0x93c   : > { %v8722_v46 = vpop.f32.mrf.mxu2 }
 0x93d   : > { %v8247_v20 = vpop.f32.mrf.mxu1  ;;  %v8851_v59 = vadd.f32 %v8797_v41, %v8722_v46 }
 0x93e   : > { %v8248_v27 = vadd.f32 %v8247_v20, %v8104_v33 }
 0x93f   : > { %v8905_v26 = vmax.f32 %v8851_v59, 0.0 }
 0x940   : > { %v8316_v38 = vadd.f32 %v8248_v27, %v17220_v29  ;;  %v7976_v27 = vpop.f32.mrf.mxu3 }
 0x941   : > { %v11017_v39 = vpack.c.bf16 %v8905_v26, %v8904_v11  ;;  %v8119_v11 = vadd.f32 %v8118_v28, %v7974_v48 }
 0x942   : > { %v8798_v5 = vadd.f32 %v15855_v52, %v8316_v38 }
 0x943   : > { %11064 = vst [vmem:[%s15650_s30 + $0xa8] sm:$0xff] %v11017_v39   ;;  %v8120_v39 = vpop.f32.mrf.mxu0 }
 0x944   : > { %v8725_v56 = vpop.f32.mrf.mxu2 }
 0x945   : > { %v8249_v13 = vpop.f32.mrf.mxu1  ;;  %v8852_v57 = vadd.f32 %v8798_v5, %v8725_v56 }
 0x946   : > { %v8250_v23 = vadd.f32 %v8249_v13, %v8106_v49  ;;  %v8121_v13 = vadd.f32 %v8120_v39, %v7976_v27 }
 0x947   : > { %v8906_v55 = vmax.f32 %v8852_v57, 0.0 }
 0x948   : > { %v8317_v19 = vadd.f32 %v8250_v23, %v15578_v47 }
 0x94a   : > { %v8799_v24 = vadd.f32 %v15855_v52, %v8317_v19 }
 0x94b   : > { %v8123_v57 = vpop.f32.mrf.mxu0 }
 0x94c   : > { %v8727_v60 = vpop.f32.mrf.mxu2 }
 0x94d   : > { %v8252_v30 = vpop.f32.mrf.mxu1  ;;  %v8853_v43 = vadd.f32 %v8799_v24, %v8727_v60  ;;  %v7979_v24 = vpop.f32.mrf.mxu3 }
 0x94e   : > { %v8253_v45 = vadd.f32 %v8252_v30, %v8109_v17 }
 0x94f   : > { %v8907_v35 = vmax.f32 %v8853_v43, 0.0  ;;  %v8124_v43 = vadd.f32 %v8123_v57, %v7979_v24 }
 0x950   : > { %v8318_v58 = vadd.f32 %v8253_v45, %v17221_v61 }
 0x951   : > { %v11022_v32 = vpack.c.bf16 %v8907_v35, %v8906_v55 }
 0x952   : > { %v8800_v44 = vadd.f32 %v15855_v52, %v8318_v58 }
 0x953   : > { %11065 = vst [vmem:[%s15650_s30 + $0xb0] sm:$0xff] %v11022_v32   ;;  %v8125_v58 = vpop.f32.mrf.mxu0 }
 0x954   : > { %v8730_v54 = vpop.f32.mrf.mxu2 }
 0x955   : > { %v8254_v42 = vpop.f32.mrf.mxu1  ;;  %v8854_v18 = vadd.f32 %v8800_v44, %v8730_v54  ;;  %v7981_v61 = vpop.f32.mrf.mxu3 }
 0x956   : > { %v8255_v47 = vadd.f32 %v8254_v42, %v8111_v4  ;;  %v8126_v42 = vadd.f32 %v8125_v58, %v7981_v61 }
 0x957   : > { %v8908_v22 = vmax.f32 %v8854_v18, 0.0 }
 0x958   : > { %v8319_v14 = vadd.f32 %v8255_v47, %v17222_v16  ;;  %v17226_v47 = vld [vmem:[#allocation104_spill] sm:$0xff] }
 0x95a   : > { %v8801_v53 = vadd.f32 %v15855_v52, %v8319_v14 }
 0x95c   : > { %v8732_v34 = vpop.f32.mrf.mxu2 }
 0x95d   : > { %v8257_v10 = vpop.f32.mrf.mxu1  ;;  %v8855_v9 = vadd.f32 %v8801_v53, %v8732_v34 }
 0x95e   : > { %v8258_v25 = vadd.f32 %v8257_v10, %v8114_v36 }
 0x95f   : > { %v8909_v63 = vmax.f32 %v8855_v9, 0.0 }
 0x960   : > { %v8320_v21 = vadd.f32 %v8258_v25, %v17223_v7 }
 0x961   : > { %v11027_v1 = vpack.c.bf16 %v8909_v63, %v8908_v22 }
 0x962   : > { %v8802_v2 = vadd.f32 %v15855_v52, %v8320_v21 }
 0x963   : > { %11066 = vst [vmem:[%s15650_s30 + $0xb8] sm:$0xff] %v11027_v1  }
 0x964   : > { %v8735_v51 = vpop.f32.mrf.mxu2 }
 0x965   : > { %v8259_v15 = vpop.f32.mrf.mxu1  ;;  %v8856_v20 = vadd.f32 %v8802_v2, %v8735_v51 }
 0x966   : > { %v8260_v41 = vadd.f32 %v8259_v15, %v8116_v50 }
 0x967   : > { %v8910_v49 = vmax.f32 %v8856_v20, 0.0 }
 0x968   : > { %v8321_v3 = vadd.f32 %v8260_v41, %v17224_v62 }
 0x96a   : > { %v8803_v46 = vadd.f32 %v15855_v52, %v8321_v3 }
 0x96c   : > { %v8737_v33 = vpop.f32.mrf.mxu2 }
 0x96d   : > { %v8262_v59 = vpop.f32.mrf.mxu1  ;;  %v8857_v26 = vadd.f32 %v8803_v46, %v8737_v33 }
 0x96e   : > { %v8263_v38 = vadd.f32 %v8262_v59, %v8119_v11 }
 0x96f   : > { %v8911_v29 = vmax.f32 %v8857_v26, 0.0 }
 0x970   : > { %v8322_v37 = vadd.f32 %v8263_v38, %v17225_v31 }
 0x971   : > { %v11032_v56 = vpack.c.bf16 %v8911_v29, %v8910_v49 }
 0x972   : > { %v8804_v60 = vadd.f32 %v15855_v52, %v8322_v37 }
 0x973   : > { %11067 = vst [vmem:[%s15650_s30 + $0xc0] sm:$0xff] %v11032_v56  }
 0x974   : > { %v8740_v23 = vpop.f32.mrf.mxu2 }
 0x975   : > { %v8264_v5 = vpop.f32.mrf.mxu1  ;;  %v8858_v8 = vadd.f32 %v8804_v60, %v8740_v23 }
 0x976   : > { %v8265_v19 = vadd.f32 %v8264_v5, %v8121_v13 }
 0x977   : > { %v8912_v45 = vmax.f32 %v8858_v8, 0.0 }
 0x978   : > { %v8323_v30 = vadd.f32 %v8265_v19, %v15614_v40 }
 0x97a   : > { %v8805_v17 = vadd.f32 %v15855_v52, %v8323_v30 }
 0x97c   : > { %v8742_v6 = vpop.f32.mrf.mxu2 }
 0x97d   : > { %v8267_v55 = vpop.f32.mrf.mxu1  ;;  %v8859_v35 = vadd.f32 %v8805_v17, %v8742_v6 }
 0x97e   : > { %v8268_v4 = vadd.f32 %v8267_v55, %v8124_v43 }
 0x97f   : > { %v8913_v32 = vmax.f32 %v8859_v35, 0.0 }
 0x980   : > { %v8324_v44 = vadd.f32 %v8268_v4, %v17226_v47 }
 0x981   : > { %v11037_v54 = vpack.c.bf16 %v8913_v32, %v8912_v45 }
 0x982   : > { %v8806_v12 = vadd.f32 %v15855_v52, %v8324_v44 }
 0x983   : > { %11068 = vst [vmem:[%s15650_s30 + $0xc8] sm:$0xff] %v11037_v54  }
 0x984   : > { %v8745_v40 = vpop.f32.mrf.mxu2 }
 0x985   : > { %v8269_v16 = vpop.f32.mrf.mxu1  ;;  %v8860_v34 = vadd.f32 %v8806_v12, %v8745_v40 }
 0x986   : > { %v8270_v14 = vadd.f32 %v8269_v16, %v8126_v42 }
 0x987   : > { %v8914_v9 = vmax.f32 %v8860_v34, 0.0 }
 0x988   : > { %v8325_v53 = vadd.f32 %v8270_v14, %v17227_v0 }
 0x98a   : > { %v8807_v18 = vadd.f32 %v15855_v52, %v8325_v53 }
 0x98c   : > { %v8747_v10 = vpop.f32.mrf.mxu2 }
 0x98d   : > { %v8861_v36 = vadd.f32 %v8807_v18, %v8747_v10 }
 0x98f   : > { %v8915_v22 = vmax.f32 %v8861_v36, 0.0 }
 0x991   : > { %v11042_v63 = vpack.c.bf16 %v8915_v22, %v8914_v9 }
 0x993   : > { %11069 = vst [vmem:[%s15650_s30 + $0xd0] sm:$0xff] %v11042_v63  }
 0x994   : > { %11301 = shalt.err (!%p11298_p10)
}
 0x995   : > { %s11353_s4 = smov 64   ;;  %s11354_s30 = smov 4  }
 0x996   : > { %11109 = dma.vmem_to_hbm [thread:$0]  (%p11461_p3), %s9038_s23, 3456, %s9040_s29, %s9025_s16, %s11353_s4, %s11353_s4, %s11354_s30  }
 0x997 PF: > { %s9054_s12 = sand.u32 1, %s11332_s24   ;;  %p17228_p12 = scmp.ge.s32.totalorder %s11344_s27, 2 }
 0x998   : > { %s9055_s15 = scalar_lea.sflag [#allocation5], %s9054_s12 }
 0x999   : > { %p11123_p13 = pnand %p17228_p12, %p11430_p6 }
 0x99b   : > { %p11124_p0 = pneg %p11123_p13 }
 0x99d   : > { %11327 = dma.done.wait (%p11124_p0), %s9055_s15, 3456  }
 0x99e   : > { %11329 = vsyncadd (%p11124_p0), %s9055_s15, 4294963840  ;;  %s17229_s2 = sld [smem:[#allocation13_spill]]  ;;  %p21_p5 = scmp.ge.s32.totalorder %s11451_s22, 4  }
 0x99f   : > { %s17230_s24 = smov %s11336_s25  ;;  %s17231_s25 = smov %s11340_s26 }
 0x9a0   : > { %s17233_s27 = smov %s11451_s22  ;;  %23 = sbr.rel (!%p21_p5) target bundleno = 9 (0x9), region = 105 }
 0x9a4   : > { %s17232_s26 = smov %s17229_s2 }
 0x9a5   :  { %9061 = vsyncpa [#allocation4], 1 }
 0x9a6   :  { %9063 = vsyncpa [#allocation4 + $0x1], 1 }
 0x9a7   :  { %9064 = vsyncpa [#allocation7], 1 }
 0x9a8   :  { %9065 = vsyncpa [#allocation5], 1 }
 0x9a9   :  { %9067 = vsyncpa [#allocation5 + $0x1], 1 }

</bundles_post_ra>
